<compile_context>
chip_gen: v6e
topology: v6e:2x2x1
jax: 0.10.0
libtpu: 0.0.40
codegen_flags: <defaults>
</compile_context>

<pallas_src>
import functools

import jax
import jax.numpy as jnp
from jax.experimental import pallas as pl
from jax.experimental.pallas import tpu as pltpu

BN_EPS = 1e-5


# ----------------------------------------------------------------------------
# Generation-aware VMEM budget & tiling helpers
# ----------------------------------------------------------------------------
def _vmem_limit_bytes():
    cap = 128 * 1024 * 1024
    try:
        info = pltpu.get_tpu_info()
        cap = int(getattr(info, "vmem_capacity_bytes", cap))
    except Exception:
        pass
    # Leave headroom for compiler scratch / double buffering (v7x: 64 MiB phys).
    return int(min(cap - 16 * 1024 * 1024, 96 * 1024 * 1024))


_VMEM_LIMIT = _vmem_limit_bytes()
_VMEM_SPEC = pl.BlockSpec(memory_space=pltpu.MemorySpace.VMEM)
_SIMPLE_PARAMS = pltpu.CompilerParams(vmem_limit_bytes=_VMEM_LIMIT)

# Max tile sizes; chosen so 2x(A+B) double buffers + out + f32 acc stay well
# under even v7x's VMEM budget (~4 MiB at 512x512x256 bf16/f32).
_TM_MAX, _TN_MAX, _TK_MAX = 512, 256, 512


def _round_up(x, m):
    return ((x + m - 1) // m) * m


def _pick_tile(dim, max_tile, align):
    """(tile, padded): padded = round_up(dim, align); tile = largest multiple of
    `align` that divides `padded` and is <= max_tile (zero extra K/N/M waste)."""
    padded = _round_up(dim, align)
    units = padded // align
    best = 1
    for d in range(1, units + 1):
        if units % d == 0 and d * align <= max_tile:
            best = d
    return best * align, padded


def _pad2(x, rows, cols):
    r, c = x.shape
    if r == rows and c == cols:
        return x
    return jnp.pad(x, ((0, rows - r), (0, cols - c)))


# ----------------------------------------------------------------------------
# Pallas kernels
# ----------------------------------------------------------------------------
def _fused_mm_kernel(a_ref, b_ref, scale_ref, shift_ref, o_ref, acc_ref, *, relu):
    @pl.when(pl.program_id(2) == 0)
    def _():
        acc_ref[...] = jnp.zeros_like(acc_ref)

    acc_ref[...] += jnp.dot(a_ref[...], b_ref[...],
                            preferred_element_type=jnp.float32)

    @pl.when(pl.program_id(2) == pl.num_programs(2) - 1)
    def _():
        out = acc_ref[...] * scale_ref[...] + shift_ref[...]
        if relu:
            out = jnp.maximum(out, 0.0)
        o_ref[...] = out


def _fused_mm_res_kernel(a_ref, b_ref, scale_ref, shift_ref, res_ref, o_ref,
                         acc_ref, *, relu):
    @pl.when(pl.program_id(2) == 0)
    def _():
        acc_ref[...] = jnp.zeros_like(acc_ref)

    acc_ref[...] += jnp.dot(a_ref[...], b_ref[...],
                            preferred_element_type=jnp.float32)

    @pl.when(pl.program_id(2) == pl.num_programs(2) - 1)
    def _():
        out = acc_ref[...] * scale_ref[...] + shift_ref[...] + res_ref[...]
        if relu:
            out = jnp.maximum(out, 0.0)
        o_ref[...] = out


def _max9_kernel(t0, t1, t2, t3, t4, t5, t6, t7, t8, o_ref):
    # Elementwise maximum tree over the 9 window taps (VPU only, lane-dense).
    m01 = jnp.maximum(t0[...], t1[...])
    m23 = jnp.maximum(t2[...], t3[...])
    m45 = jnp.maximum(t4[...], t5[...])
    m67 = jnp.maximum(t6[...], t7[...])
    m = jnp.maximum(jnp.maximum(m01, m23), jnp.maximum(m45, m67))
    o_ref[...] = jnp.maximum(m, t8[...])


def _head_kernel(x_ref, w_ref, b_ref, o_ref):
    # Fused AdaptiveAvgPool2d((1,1)) + Linear: mean over spatial, then GEMM.
    pooled = jnp.mean(x_ref[...].astype(jnp.float32), axis=1)      # (N, C)
    o_ref[...] = (jnp.dot(pooled, w_ref[...],
                          preferred_element_type=jnp.float32) + b_ref[...])


# ----------------------------------------------------------------------------
# Pallas wrappers
# ----------------------------------------------------------------------------
def fused_matmul(a, b, scale, shift, residual=None, relu=False):
    """relu?((a @ b) * scale + shift (+ residual)) via a tiled Pallas GEMM."""
    m, k = a.shape
    k2, n = b.shape
    assert k == k2

    tm, mp = _pick_tile(m, _TM_MAX, 16)    # 16 = bf16 sublane packing
    tn, npad = _pick_tile(n, _TN_MAX, 128)
    tk, kp = _pick_tile(k, _TK_MAX, 128)

    a_p = _pad2(a.astype(jnp.bfloat16), mp, kp)
    b_p = _pad2(b.astype(jnp.bfloat16), kp, npad)
    scale_p = _pad2(scale.reshape(1, n).astype(jnp.float32), 1, npad)
    shift_p = _pad2(shift.reshape(1, n).astype(jnp.float32), 1, npad)

    in_specs = [
        pl.BlockSpec((tm, tk), lambda i, j, kk: (i, kk)),
        pl.BlockSpec((tk, tn), lambda i, j, kk: (kk, j)),
        pl.BlockSpec((1, tn), lambda i, j, kk: (0, j)),
        pl.BlockSpec((1, tn), lambda i, j, kk: (0, j)),
    ]
    args = [a_p, b_p, scale_p, shift_p]

    if residual is None:
        kern = functools.partial(_fused_mm_kernel, relu=relu)
    else:
        in_specs.append(pl.BlockSpec((tm, tn), lambda i, j, kk: (i, j)))
        args.append(_pad2(residual.astype(jnp.float32), mp, npad))
        kern = functools.partial(_fused_mm_res_kernel, relu=relu)

    grid = (mp // tm, npad // tn, kp // tk)
    out = pl.pallas_call(
        kern,
        out_shape=jax.ShapeDtypeStruct((mp, npad), jnp.float32),
        grid_spec=pltpu.PrefetchScalarGridSpec(
            num_scalar_prefetch=0,
            grid=grid,
            in_specs=in_specs,
            out_specs=pl.BlockSpec((tm, tn), lambda i, j, kk: (i, j)),
            scratch_shapes=[pltpu.VMEM((tm, tn), jnp.float32)],
        ),
        compiler_params=pltpu.CompilerParams(
            dimension_semantics=("parallel", "parallel", "arbitrary"),
            vmem_limit_bytes=_VMEM_LIMIT,
        ),
    )(*args)
    return out[:m, :n]


def maxpool2d_3x3_s2_p1(x):
    """MaxPool2d(kernel=3, stride=2, padding=1) on NHWC input."""
    N, H, W, C = x.shape
    Ho = (H + 2 - 3) // 2 + 1
    Wo = (W + 2 - 3) // 2 + 1
    xp = jnp.pad(x, ((0, 0), (1, 1), (1, 1), (0, 0)), constant_values=-jnp.inf)
    P = N * Ho * Wo
    tp = min(1024, _round_up(P, 8))
    Pp = _round_up(P, tp)
    taps = []
    for ky in range(3):
        for kx in range(3):
            t = xp[:, ky:ky + 2 * Ho:2, kx:kx + 2 * Wo:2, :].reshape(P, C)
            taps.append(_pad2(t, Pp, C))
    out = pl.pallas_call(
        _max9_kernel,
        out_shape=jax.ShapeDtypeStruct((Pp, C), x.dtype),
        grid_spec=pltpu.PrefetchScalarGridSpec(
            num_scalar_prefetch=0,
            grid=(Pp // tp,),
            in_specs=[pl.BlockSpec((tp, C), lambda i: (i, 0))] * 9,
            out_specs=pl.BlockSpec((tp, C), lambda i: (i, 0)),
        ),
        compiler_params=pltpu.CompilerParams(
            dimension_semantics=("parallel",),
            vmem_limit_bytes=_VMEM_LIMIT,
        ),
    )(*taps)
    return out[:P].reshape(N, Ho, Wo, C)


def avgpool_fc_head(x, w_fc, b_fc):
    """Fused global average pool + Linear(512, num_classes), lane-dense output."""
    N, H, W, C = x.shape
    xr = x.reshape(N, H * W, C)
    n_out = w_fc.shape[0]
    n_pad = _round_up(n_out, 128)
    w = jnp.zeros((C, n_pad), jnp.float32).at[:, :n_out].set(w_fc.T)
    b = jnp.zeros((1, n_pad), jnp.float32).at[:, :n_out].set(b_fc)
    out = pl.pallas_call(
        _head_kernel,
        out_shape=jax.ShapeDtypeStruct((N, n_pad), jnp.float32),
        in_specs=[_VMEM_SPEC, _VMEM_SPEC, _VMEM_SPEC],
        out_specs=_VMEM_SPEC,
        compiler_params=_SIMPLE_PARAMS,
    )(xr, w, b)
    return out[:, :n_out]


# ----------------------------------------------------------------------------
# Conv-as-GEMM glue
# ----------------------------------------------------------------------------
def _im2col(x, kh, kw, stride, padding):
    """NHWC -> patches (N*Ho*Wo, kh*kw*Cin) ordered (ky, kx, cin)."""
    N, H, W, C = x.shape
    Ho = (H + 2 * padding - kh) // stride + 1
    Wo = (W + 2 * padding - kw) // stride + 1
    xp = jnp.pad(x, ((0, 0), (padding, padding), (padding, padding), (0, 0)))
    taps = []
    for ky in range(kh):
        for kx in range(kw):
            taps.append(xp[:, ky:ky + stride * Ho:stride,
                           kx:kx + stride * Wo:stride, :])
    patches = jnp.stack(taps, axis=3)  # (N, Ho, Wo, kh*kw, C)
    return patches.reshape(N * Ho * Wo, kh * kw * C), Ho, Wo


def _bn_scale_shift(bn, conv_bias=None):
    scale = bn["gamma"] / jnp.sqrt(bn["var"] + BN_EPS)
    shift = bn["beta"] - bn["mean"] * scale
    if conv_bias is not None:
        shift = shift + conv_bias * scale
    return scale, shift


def conv_bn(x, w, bias, bn, stride, padding, relu, residual=None):
    """Conv2d (PyTorch OIHW weight) + folded BatchNorm (+residual, +ReLU)."""
    Cout, Cin, kh, kw = w.shape
    N = x.shape[0]
    patches, Ho, Wo = _im2col(x, kh, kw, stride, padding)
    w2 = jnp.transpose(w, (2, 3, 1, 0)).reshape(kh * kw * Cin, Cout)
    scale, shift = _bn_scale_shift(bn, bias)
    res_flat = None if residual is None else residual.reshape(N * Ho * Wo, Cout)
    out = fused_matmul(patches, w2, scale, shift, residual=res_flat, relu=relu)
    return out.reshape(N, Ho, Wo, Cout)


def basic_block(x, p, stride):
    if "downsample" in p:
        identity = conv_bn(x, p["downsample"]["w"], None, p["downsample"]["bn"],
                           stride=stride, padding=0, relu=False)
    else:
        identity = x
    out = conv_bn(x, p["conv1"], None, p["bn1"], stride=stride, padding=1, relu=True)
    out = conv_bn(out, p["conv2"], None, p["bn2"], stride=1, padding=1, relu=True,
                  residual=identity)
    return out


def resnet18_forward(x_nchw, params):
    x = jnp.transpose(x_nchw, (0, 2, 3, 1)).astype(jnp.float32)  # NCHW -> NHWC
    # first_conv: Conv2d(num_channel, 3, 3, pad=1) + BatchNorm2d(3), no activation
    x = conv_bn(x, params["first_conv"]["w"], params["first_conv"]["b"],
                params["first_conv"]["bn"], stride=1, padding=1, relu=False)
    # resnet stem: conv 7x7 s2 p3 + bn + relu, maxpool 3x3 s2 p1
    x = conv_bn(x, params["conv1"], None, params["bn1"], stride=2, padding=3, relu=True)
    x = maxpool2d_3x3_s2_p1(x)
    strides = {"layer1": 1, "layer2": 2, "layer3": 2, "layer4": 2}
    for layer in ("layer1", "layer2", "layer3", "layer4"):
        for bi, blk in enumerate(params[layer]):
            x = basic_block(x, blk, strides[layer] if bi == 0 else 1)
    # fused AdaptiveAvgPool2d((1,1)) + fc
    logits = avgpool_fc_head(x, params["fc"]["w"], params["fc"]["b"])
    return logits                                        # (N, num_classes)


# ----------------------------------------------------------------------------
# Deterministic parameter init (synthetic; shapes match the PyTorch module)
# ----------------------------------------------------------------------------
def _bn_params(c):
    return dict(gamma=jnp.ones((c,), jnp.float32), beta=jnp.zeros((c,), jnp.float32),
                mean=jnp.zeros((c,), jnp.float32), var=jnp.ones((c,), jnp.float32))


def init_params(key, num_channel=21, num_classes=2):
    keys = iter(jax.random.split(key, 64))

    def conv_w(cout, cin, k):
        return jax.random.normal(next(keys), (cout, cin, k, k), jnp.float32) * 0.05

    p = {}
    p["first_conv"] = dict(
        w=conv_w(3, num_channel, 3),
        b=jax.random.normal(next(keys), (3,), jnp.float32) * 0.05,
        bn=_bn_params(3),
    )
    p["conv1"] = jax.random.normal(next(keys), (64, 3, 7, 7), jnp.float32) * 0.05
    p["bn1"] = _bn_params(64)

    def block(cin, cout, downsample):
        b = dict(conv1=conv_w(cout, cin, 3), bn1=_bn_params(cout),
                 conv2=conv_w(cout, cout, 3), bn2=_bn_params(cout))
        if downsample:
            b["downsample"] = dict(w=conv_w(cout, cin, 1), bn=_bn_params(cout))
        return b

    p["layer1"] = [block(64, 64, False), block(64, 64, False)]
    p["layer2"] = [block(64, 128, True), block(128, 128, False)]
    p["layer3"] = [block(128, 256, True), block(256, 256, False)]
    p["layer4"] = [block(256, 512, True), block(512, 512, False)]
    p["fc"] = dict(
        w=jax.random.normal(next(keys), (num_classes, 512), jnp.float32) * 0.05,
        b=jnp.zeros((num_classes,), jnp.float32),
    )
    return p


if __name__ == "__main__":
    key = jax.random.PRNGKey(0)
    pkey, xkey = jax.random.split(key)
    params = init_params(pkey, num_channel=21, num_classes=2)
    # batch=2, channels=21 (module default), spatial=32 (survives the 5
    # stride-2 stages down to 1x1 before the adaptive avg-pool).
    x = jax.random.normal(xkey, (2, 21, 32, 32), jnp.float32)
    logits = jax.jit(resnet18_forward)(x, params)
    jax.block_until_ready(logits)
    assert logits.shape == (2, 2) and logits.dtype == jnp.float32
    print("KERNEL_OK")
</pallas_src>

<mosaic_0001>
module attributes {stable_mosaic.version = 11 : i64} {
  func.func @_fused_mm_kernel(%arg0: i32, %arg1: i32, %arg2: i32, %arg3: memref<512x256xbf16, #tpu.memory_space<vmem>>, %arg4: memref<256x128xbf16, #tpu.memory_space<vmem>>, %arg5: memref<1x128xf32, #tpu.memory_space<vmem>>, %arg6: memref<1x128xf32, #tpu.memory_space<vmem>>, %arg7: memref<512x128xf32, #tpu.memory_space<vmem>>, %arg8: memref<512x128xf32, #tpu.memory_space<vmem>>) attributes {dimension_semantics = [#tpu.dimension_semantics<parallel>, #tpu.dimension_semantics<parallel>, #tpu.dimension_semantics<arbitrary>], iteration_bounds = array<i64: 4, 1, 1>, scalar_prefetch = 0 : i64, scratch_operands = 1 : i64, tpu.core_type = #tpu.core_type<tc>, window_params = [{transform_indices = @transform_0, window_bounds = array<i64: 512, 256>}, {transform_indices = @transform_1, window_bounds = array<i64: 256, 128>}, {transform_indices = @transform_2, window_bounds = array<i64: 1, 128>}, {transform_indices = @transform_3, window_bounds = array<i64: 1, 128>}, {transform_indices = @transform_4, window_bounds = array<i64: 512, 128>}]} {
    %c0_i32 = arith.constant 0 : i32
    %0 = arith.cmpi eq, %arg2, %c0_i32 : i32
    %1 = arith.extui %0 : i1 to i32
    %c0_i32_0 = arith.constant 0 : i32
    %2 = arith.cmpi ne, %1, %c0_i32_0 : i32
    scf.if %2 {
      %cst_10 = arith.constant 0.000000e+00 : f32
      %12 = vector.broadcast %cst_10 : f32 to vector<512x128xf32>
      %c0_11 = arith.constant 0 : index
      %c0_12 = arith.constant 0 : index
      %13 = vector.load %arg8[%c0_11, %c0_12] : memref<512x128xf32, #tpu.memory_space<vmem>>, vector<512x128xf32>
      tpu.vector_store %arg8[%c0_11, %c0_12], %12 {strides = array<i32>} : memref<512x128xf32, #tpu.memory_space<vmem>>, vector<512x128xf32>,
    } else {
    }
    %c0 = arith.constant 0 : index
    %c0_1 = arith.constant 0 : index
    %3 = vector.load %arg8[%c0, %c0_1] : memref<512x128xf32, #tpu.memory_space<vmem>>, vector<512x128xf32>
    %c0_2 = arith.constant 0 : index
    %c0_3 = arith.constant 0 : index
    %4 = vector.load %arg3[%c0_2, %c0_3] : memref<512x256xbf16, #tpu.memory_space<vmem>>, vector<512x256xbf16>
    %c0_4 = arith.constant 0 : index
    %c0_5 = arith.constant 0 : index
    %5 = vector.load %arg4[%c0_4, %c0_5] : memref<256x128xbf16, #tpu.memory_space<vmem>>, vector<256x128xbf16>
    %cst = arith.constant dense<0.000000e+00> : vector<512x128xf32>
    %6 = tpu.matmul %4, %5, %cst {dimension_numbers = #tpu.dot_dimension_numbers<[1], [0], [0], [1], [0, 0, 1, 1], [], []>} : vector<512x256xbf16>, vector<256x128xbf16>, vector<512x128xf32> -> vector<512x128xf32>
    %7 = arith.addf %3, %6 : vector<512x128xf32>
    %c0_6 = arith.constant 0 : index
    %c0_7 = arith.constant 0 : index
    %8 = vector.load %arg8[%c0_6, %c0_7] : memref<512x128xf32, #tpu.memory_space<vmem>>, vector<512x128xf32>
    tpu.vector_store %arg8[%c0_6, %c0_7], %7 {strides = array<i32>} : memref<512x128xf32, #tpu.memory_space<vmem>>, vector<512x128xf32>,
    %c0_i32_8 = arith.constant 0 : i32
    %9 = arith.cmpi eq, %arg2, %c0_i32_8 : i32
    %10 = arith.extui %9 : i1 to i32
    %c0_i32_9 = arith.constant 0 : i32
    %11 = arith.cmpi ne, %10, %c0_i32_9 : i32
    scf.if %11 {
      %c0_10 = arith.constant 0 : index
      %c0_11 = arith.constant 0 : index
      %12 = vector.load %arg8[%c0_10, %c0_11] : memref<512x128xf32, #tpu.memory_space<vmem>>, vector<512x128xf32>
      %c0_12 = arith.constant 0 : index
      %c0_13 = arith.constant 0 : index
      %13 = vector.load %arg5[%c0_12, %c0_13] : memref<1x128xf32, #tpu.memory_space<vmem>>, vector<1x128xf32>
      %14 = vector.broadcast %13 : vector<1x128xf32> to vector<512x128xf32>
      %15 = arith.mulf %12, %14 : vector<512x128xf32>
      %c0_14 = arith.constant 0 : index
      %c0_15 = arith.constant 0 : index
      %16 = vector.load %arg6[%c0_14, %c0_15] : memref<1x128xf32, #tpu.memory_space<vmem>>, vector<1x128xf32>
      %17 = vector.broadcast %16 : vector<1x128xf32> to vector<512x128xf32>
      %18 = arith.addf %15, %17 : vector<512x128xf32>
      %c0_16 = arith.constant 0 : index
      %c0_17 = arith.constant 0 : index
      %19 = vector.load %arg7[%c0_16, %c0_17] : memref<512x128xf32, #tpu.memory_space<vmem>>, vector<512x128xf32>
      tpu.vector_store %arg7[%c0_16, %c0_17], %18 {strides = array<i32>} : memref<512x128xf32, #tpu.memory_space<vmem>>, vector<512x128xf32>,
    } else {
    }
    return
  }
  func.func @transform_0(%arg0: i32, %arg1: i32, %arg2: i32) -> (i32, i32) {
    %c0_i32 = arith.constant 0 : i32
    return %arg0, %arg2 : i32, i32
  }
  func.func @transform_1(%arg0: i32, %arg1: i32, %arg2: i32) -> (i32, i32) {
    %c0_i32 = arith.constant 0 : i32
    return %arg2, %arg1 : i32, i32
  }
  func.func @transform_2(%arg0: i32, %arg1: i32, %arg2: i32) -> (i32, i32) {
    %c0_i32 = arith.constant 0 : i32
    %c0_i32_0 = arith.constant 0 : i32
    return %c0_i32, %arg1 : i32, i32
  }
  func.func @transform_3(%arg0: i32, %arg1: i32, %arg2: i32) -> (i32, i32) {
    %c0_i32 = arith.constant 0 : i32
    %c0_i32_0 = arith.constant 0 : i32
    return %c0_i32, %arg1 : i32, i32
  }
  func.func @transform_4(%arg0: i32, %arg1: i32, %arg2: i32) -> (i32, i32) {
    %c0_i32 = arith.constant 0 : i32
    return %arg0, %arg1 : i32, i32
  }
}

module attributes {stable_mosaic.version = 11 : i64} {
  func.func @_fused_mm_kernel(%arg0: i32, %arg1: i32, %arg2: i32, %arg3: memref<512x256xbf16, #tpu.memory_space<vmem>>, %arg4: memref<256x128xbf16, #tpu.memory_space<vmem>>, %arg5: memref<1x128xf32, #tpu.memory_space<vmem>>, %arg6: memref<1x128xf32, #tpu.memory_space<vmem>>, %arg7: memref<512x128xf32, #tpu.memory_space<vmem>>, %arg8: memref<512x128xf32, #tpu.memory_space<vmem>>) attributes {dimension_semantics = [#tpu.dimension_semantics<parallel>, #tpu.dimension_semantics<parallel>, #tpu.dimension_semantics<arbitrary>], iteration_bounds = array<i64: 1, 1, 1>, scalar_prefetch = 0 : i64, scratch_operands = 1 : i64, tpu.core_type = #tpu.core_type<tc>, window_params = [{transform_indices = @transform_0, window_bounds = array<i64: 512, 256>}, {transform_indices = @transform_1, window_bounds = array<i64: 256, 128>}, {transform_indices = @transform_2, window_bounds = array<i64: 1, 128>}, {transform_indices = @transform_3, window_bounds = array<i64: 1, 128>}, {transform_indices = @transform_4, window_bounds = array<i64: 512, 128>}]} {
    %c0_i32 = arith.constant 0 : i32
    %0 = arith.cmpi eq, %arg2, %c0_i32 : i32
    %1 = arith.extui %0 : i1 to i32
    %c0_i32_0 = arith.constant 0 : i32
    %2 = arith.cmpi ne, %1, %c0_i32_0 : i32
    scf.if %2 {
      %cst_10 = arith.constant 0.000000e+00 : f32
      %12 = vector.broadcast %cst_10 : f32 to vector<512x128xf32>
      %c0_11 = arith.constant 0 : index
      %c0_12 = arith.constant 0 : index
      %13 = vector.load %arg8[%c0_11, %c0_12] : memref<512x128xf32, #tpu.memory_space<vmem>>, vector<512x128xf32>
      tpu.vector_store %arg8[%c0_11, %c0_12], %12 {strides = array<i32>} : memref<512x128xf32, #tpu.memory_space<vmem>>, vector<512x128xf32>,
    } else {
    }
    %c0 = arith.constant 0 : index
    %c0_1 = arith.constant 0 : index
    %3 = vector.load %arg8[%c0, %c0_1] : memref<512x128xf32, #tpu.memory_space<vmem>>, vector<512x128xf32>
    %c0_2 = arith.constant 0 : index
    %c0_3 = arith.constant 0 : index
    %4 = vector.load %arg3[%c0_2, %c0_3] : memref<512x256xbf16, #tpu.memory_space<vmem>>, vector<512x256xbf16>
    %c0_4 = arith.constant 0 : index
    %c0_5 = arith.constant 0 : index
    %5 = vector.load %arg4[%c0_4, %c0_5] : memref<256x128xbf16, #tpu.memory_space<vmem>>, vector<256x128xbf16>
    %cst = arith.constant dense<0.000000e+00> : vector<512x128xf32>
    %6 = tpu.matmul %4, %5, %cst {dimension_numbers = #tpu.dot_dimension_numbers<[1], [0], [0], [1], [0, 0, 1, 1], [], []>} : vector<512x256xbf16>, vector<256x128xbf16>, vector<512x128xf32> -> vector<512x128xf32>
    %7 = arith.addf %3, %6 : vector<512x128xf32>
    %c0_6 = arith.constant 0 : index
    %c0_7 = arith.constant 0 : index
    %8 = vector.load %arg8[%c0_6, %c0_7] : memref<512x128xf32, #tpu.memory_space<vmem>>, vector<512x128xf32>
    tpu.vector_store %arg8[%c0_6, %c0_7], %7 {strides = array<i32>} : memref<512x128xf32, #tpu.memory_space<vmem>>, vector<512x128xf32>,
    %c0_i32_8 = arith.constant 0 : i32
    %9 = arith.cmpi eq, %arg2, %c0_i32_8 : i32
    %10 = arith.extui %9 : i1 to i32
    %c0_i32_9 = arith.constant 0 : i32
    %11 = arith.cmpi ne, %10, %c0_i32_9 : i32
    scf.if %11 {
      %c0_10 = arith.constant 0 : index
      %c0_11 = arith.constant 0 : index
      %12 = vector.load %arg8[%c0_10, %c0_11] : memref<512x128xf32, #tpu.memory_space<vmem>>, vector<512x128xf32>
      %c0_12 = arith.constant 0 : index
      %c0_13 = arith.constant 0 : index
      %13 = vector.load %arg5[%c0_12, %c0_13] : memref<1x128xf32, #tpu.memory_space<vmem>>, vector<1x128xf32>
      %14 = vector.broadcast %13 : vector<1x128xf32> to vector<512x128xf32>
      %15 = arith.mulf %12, %14 : vector<512x128xf32>
      %c0_14 = arith.constant 0 : index
      %c0_15 = arith.constant 0 : index
      %16 = vector.load %arg6[%c0_14, %c0_15] : memref<1x128xf32, #tpu.memory_space<vmem>>, vector<1x128xf32>
      %17 = vector.broadcast %16 : vector<1x128xf32> to vector<512x128xf32>
      %18 = arith.addf %15, %17 : vector<512x128xf32>
      %cst_16 = arith.constant 0.000000e+00 : f32
      %19 = vector.broadcast %cst_16 : f32 to vector<512x128xf32>
      %20 = arith.maximumf %18, %19 : vector<512x128xf32>
      %c0_17 = arith.constant 0 : index
      %c0_18 = arith.constant 0 : index
      %21 = vector.load %arg7[%c0_17, %c0_18] : memref<512x128xf32, #tpu.memory_space<vmem>>, vector<512x128xf32>
      tpu.vector_store %arg7[%c0_17, %c0_18], %20 {strides = array<i32>} : memref<512x128xf32, #tpu.memory_space<vmem>>, vector<512x128xf32>,
    } else {
    }
    return
  }
  func.func @transform_0(%arg0: i32, %arg1: i32, %arg2: i32) -> (i32, i32) {
    %c0_i32 = arith.constant 0 : i32
    return %arg0, %arg2 : i32, i32
  }
  func.func @transform_1(%arg0: i32, %arg1: i32, %arg2: i32) -> (i32, i32) {
    %c0_i32 = arith.constant 0 : i32
    return %arg2, %arg1 : i32, i32
  }
  func.func @transform_2(%arg0: i32, %arg1: i32, %arg2: i32) -> (i32, i32) {
    %c0_i32 = arith.constant 0 : i32
    %c0_i32_0 = arith.constant 0 : i32
    return %c0_i32, %arg1 : i32, i32
  }
  func.func @transform_3(%arg0: i32, %arg1: i32, %arg2: i32) -> (i32, i32) {
    %c0_i32 = arith.constant 0 : i32
    %c0_i32_0 = arith.constant 0 : i32
    return %c0_i32, %arg1 : i32, i32
  }
  func.func @transform_4(%arg0: i32, %arg1: i32, %arg2: i32) -> (i32, i32) {
    %c0_i32 = arith.constant 0 : i32
    return %arg0, %arg1 : i32, i32
  }
}

module attributes {stable_mosaic.version = 11 : i64} {
  func.func @_max9_kernel(%arg0: i32, %arg1: memref<128x64xf32, #tpu.memory_space<vmem>>, %arg2: memref<128x64xf32, #tpu.memory_space<vmem>>, %arg3: memref<128x64xf32, #tpu.memory_space<vmem>>, %arg4: memref<128x64xf32, #tpu.memory_space<vmem>>, %arg5: memref<128x64xf32, #tpu.memory_space<vmem>>, %arg6: memref<128x64xf32, #tpu.memory_space<vmem>>, %arg7: memref<128x64xf32, #tpu.memory_space<vmem>>, %arg8: memref<128x64xf32, #tpu.memory_space<vmem>>, %arg9: memref<128x64xf32, #tpu.memory_space<vmem>>, %arg10: memref<128x64xf32, #tpu.memory_space<vmem>>) attributes {dimension_semantics = [#tpu.dimension_semantics<parallel>], iteration_bounds = array<i64: 1>, scalar_prefetch = 0 : i64, scratch_operands = 0 : i64, tpu.core_type = #tpu.core_type<tc>, window_params = [{transform_indices = @transform_0, window_bounds = array<i64: 128, 64>}, {transform_indices = @transform_1, window_bounds = array<i64: 128, 64>}, {transform_indices = @transform_2, window_bounds = array<i64: 128, 64>}, {transform_indices = @transform_3, window_bounds = array<i64: 128, 64>}, {transform_indices = @transform_4, window_bounds = array<i64: 128, 64>}, {transform_indices = @transform_5, window_bounds = array<i64: 128, 64>}, {transform_indices = @transform_6, window_bounds = array<i64: 128, 64>}, {transform_indices = @transform_7, window_bounds = array<i64: 128, 64>}, {transform_indices = @transform_8, window_bounds = array<i64: 128, 64>}, {transform_indices = @transform_9, window_bounds = array<i64: 128, 64>}]} {
    %c0 = arith.constant 0 : index
    %c0_0 = arith.constant 0 : index
    %0 = vector.load %arg1[%c0, %c0_0] : memref<128x64xf32, #tpu.memory_space<vmem>>, vector<128x64xf32>
    %c0_1 = arith.constant 0 : index
    %c0_2 = arith.constant 0 : index
    %1 = vector.load %arg2[%c0_1, %c0_2] : memref<128x64xf32, #tpu.memory_space<vmem>>, vector<128x64xf32>
    %2 = arith.maximumf %0, %1 : vector<128x64xf32>
    %c0_3 = arith.constant 0 : index
    %c0_4 = arith.constant 0 : index
    %3 = vector.load %arg3[%c0_3, %c0_4] : memref<128x64xf32, #tpu.memory_space<vmem>>, vector<128x64xf32>
    %c0_5 = arith.constant 0 : index
    %c0_6 = arith.constant 0 : index
    %4 = vector.load %arg4[%c0_5, %c0_6] : memref<128x64xf32, #tpu.memory_space<vmem>>, vector<128x64xf32>
    %5 = arith.maximumf %3, %4 : vector<128x64xf32>
    %c0_7 = arith.constant 0 : index
    %c0_8 = arith.constant 0 : index
    %6 = vector.load %arg5[%c0_7, %c0_8] : memref<128x64xf32, #tpu.memory_space<vmem>>, vector<128x64xf32>
    %c0_9 = arith.constant 0 : index
    %c0_10 = arith.constant 0 : index
    %7 = vector.load %arg6[%c0_9, %c0_10] : memref<128x64xf32, #tpu.memory_space<vmem>>, vector<128x64xf32>
    %8 = arith.maximumf %6, %7 : vector<128x64xf32>
    %c0_11 = arith.constant 0 : index
    %c0_12 = arith.constant 0 : index
    %9 = vector.load %arg7[%c0_11, %c0_12] : memref<128x64xf32, #tpu.memory_space<vmem>>, vector<128x64xf32>
    %c0_13 = arith.constant 0 : index
    %c0_14 = arith.constant 0 : index
    %10 = vector.load %arg8[%c0_13, %c0_14] : memref<128x64xf32, #tpu.memory_space<vmem>>, vector<128x64xf32>
    %11 = arith.maximumf %9, %10 : vector<128x64xf32>
    %12 = arith.maximumf %2, %5 : vector<128x64xf32>
    %13 = arith.maximumf %8, %11 : vector<128x64xf32>
    %14 = arith.maximumf %12, %13 : vector<128x64xf32>
    %c0_15 = arith.constant 0 : index
    %c0_16 = arith.constant 0 : index
    %15 = vector.load %arg9[%c0_15, %c0_16] : memref<128x64xf32, #tpu.memory_space<vmem>>, vector<128x64xf32>
    %16 = arith.maximumf %14, %15 : vector<128x64xf32>
    %c0_17 = arith.constant 0 : index
    %c0_18 = arith.constant 0 : index
    %17 = vector.load %arg10[%c0_17, %c0_18] : memref<128x64xf32, #tpu.memory_space<vmem>>, vector<128x64xf32>
    tpu.vector_store %arg10[%c0_17, %c0_18], %16 {strides = array<i32>} : memref<128x64xf32, #tpu.memory_space<vmem>>, vector<128x64xf32>,
    return
  }
  func.func @transform_0(%arg0: i32) -> (i32, i32) {
    %c0_i32 = arith.constant 0 : i32
    %c0_i32_0 = arith.constant 0 : i32
    return %arg0, %c0_i32 : i32, i32
  }
  func.func @transform_1(%arg0: i32) -> (i32, i32) {
    %c0_i32 = arith.constant 0 : i32
    %c0_i32_0 = arith.constant 0 : i32
    return %arg0, %c0_i32 : i32, i32
  }
  func.func @transform_2(%arg0: i32) -> (i32, i32) {
    %c0_i32 = arith.constant 0 : i32
    %c0_i32_0 = arith.constant 0 : i32
    return %arg0, %c0_i32 : i32, i32
  }
  func.func @transform_3(%arg0: i32) -> (i32, i32) {
    %c0_i32 = arith.constant 0 : i32
    %c0_i32_0 = arith.constant 0 : i32
    return %arg0, %c0_i32 : i32, i32
  }
  func.func @transform_4(%arg0: i32) -> (i32, i32) {
    %c0_i32 = arith.constant 0 : i32
    %c0_i32_0 = arith.constant 0 : i32
    return %arg0, %c0_i32 : i32, i32
  }
  func.func @transform_5(%arg0: i32) -> (i32, i32) {
    %c0_i32 = arith.constant 0 : i32
    %c0_i32_0 = arith.constant 0 : i32
    return %arg0, %c0_i32 : i32, i32
  }
  func.func @transform_6(%arg0: i32) -> (i32, i32) {
    %c0_i32 = arith.constant 0 : i32
    %c0_i32_0 = arith.constant 0 : i32
    return %arg0, %c0_i32 : i32, i32
  }
  func.func @transform_7(%arg0: i32) -> (i32, i32) {
    %c0_i32 = arith.constant 0 : i32
    %c0_i32_0 = arith.constant 0 : i32
    return %arg0, %c0_i32 : i32, i32
  }
  func.func @transform_8(%arg0: i32) -> (i32, i32) {
    %c0_i32 = arith.constant 0 : i32
    %c0_i32_0 = arith.constant 0 : i32
    return %arg0, %c0_i32 : i32, i32
  }
  func.func @transform_9(%arg0: i32) -> (i32, i32) {
    %c0_i32 = arith.constant 0 : i32
    %c0_i32_0 = arith.constant 0 : i32
    return %arg0, %c0_i32 : i32, i32
  }
}

module attributes {stable_mosaic.version = 11 : i64} {
  func.func @_fused_mm_kernel(%arg0: i32, %arg1: i32, %arg2: i32, %arg3: memref<128x128xbf16, #tpu.memory_space<vmem>>, %arg4: memref<128x128xbf16, #tpu.memory_space<vmem>>, %arg5: memref<1x128xf32, #tpu.memory_space<vmem>>, %arg6: memref<1x128xf32, #tpu.memory_space<vmem>>, %arg7: memref<128x128xf32, #tpu.memory_space<vmem>>, %arg8: memref<128x128xf32, #tpu.memory_space<vmem>>) attributes {dimension_semantics = [#tpu.dimension_semantics<parallel>, #tpu.dimension_semantics<parallel>, #tpu.dimension_semantics<arbitrary>], iteration_bounds = array<i64: 1, 1, 5>, scalar_prefetch = 0 : i64, scratch_operands = 1 : i64, tpu.core_type = #tpu.core_type<tc>, window_params = [{transform_indices = @transform_0, window_bounds = array<i64: 128, 128>}, {transform_indices = @transform_1, window_bounds = array<i64: 128, 128>}, {transform_indices = @transform_2, window_bounds = array<i64: 1, 128>}, {transform_indices = @transform_3, window_bounds = array<i64: 1, 128>}, {transform_indices = @transform_4, window_bounds = array<i64: 128, 128>}]} {
    %c0_i32 = arith.constant 0 : i32
    %0 = arith.cmpi eq, %arg2, %c0_i32 : i32
    %1 = arith.extui %0 : i1 to i32
    %c0_i32_0 = arith.constant 0 : i32
    %2 = arith.cmpi ne, %1, %c0_i32_0 : i32
    scf.if %2 {
      %cst_9 = arith.constant 0.000000e+00 : f32
      %12 = vector.broadcast %cst_9 : f32 to vector<128x128xf32>
      %c0_10 = arith.constant 0 : index
      %c0_11 = arith.constant 0 : index
      %13 = vector.load %arg8[%c0_10, %c0_11] : memref<128x128xf32, #tpu.memory_space<vmem>>, vector<128x128xf32>
      tpu.vector_store %arg8[%c0_10, %c0_11], %12 {strides = array<i32>} : memref<128x128xf32, #tpu.memory_space<vmem>>, vector<128x128xf32>,
    } else {
    }
    %c0 = arith.constant 0 : index
    %c0_1 = arith.constant 0 : index
    %3 = vector.load %arg8[%c0, %c0_1] : memref<128x128xf32, #tpu.memory_space<vmem>>, vector<128x128xf32>
    %c0_2 = arith.constant 0 : index
    %c0_3 = arith.constant 0 : index
    %4 = vector.load %arg3[%c0_2, %c0_3] : memref<128x128xbf16, #tpu.memory_space<vmem>>, vector<128x128xbf16>
    %c0_4 = arith.constant 0 : index
    %c0_5 = arith.constant 0 : index
    %5 = vector.load %arg4[%c0_4, %c0_5] : memref<128x128xbf16, #tpu.memory_space<vmem>>, vector<128x128xbf16>
    %cst = arith.constant dense<0.000000e+00> : vector<128x128xf32>
    %6 = tpu.matmul %4, %5, %cst {dimension_numbers = #tpu.dot_dimension_numbers<[1], [0], [0], [1], [0, 0, 1, 1], [], []>} : vector<128x128xbf16>, vector<128x128xbf16>, vector<128x128xf32> -> vector<128x128xf32>
    %7 = arith.addf %3, %6 : vector<128x128xf32>
    %c0_6 = arith.constant 0 : index
    %c0_7 = arith.constant 0 : index
    %8 = vector.load %arg8[%c0_6, %c0_7] : memref<128x128xf32, #tpu.memory_space<vmem>>, vector<128x128xf32>
    tpu.vector_store %arg8[%c0_6, %c0_7], %7 {strides = array<i32>} : memref<128x128xf32, #tpu.memory_space<vmem>>, vector<128x128xf32>,
    %c4_i32 = arith.constant 4 : i32
    %9 = arith.cmpi eq, %arg2, %c4_i32 : i32
    %10 = arith.extui %9 : i1 to i32
    %c0_i32_8 = arith.constant 0 : i32
    %11 = arith.cmpi ne, %10, %c0_i32_8 : i32
    scf.if %11 {
      %c0_9 = arith.constant 0 : index
      %c0_10 = arith.constant 0 : index
      %12 = vector.load %arg8[%c0_9, %c0_10] : memref<128x128xf32, #tpu.memory_space<vmem>>, vector<128x128xf32>
      %c0_11 = arith.constant 0 : index
      %c0_12 = arith.constant 0 : index
      %13 = vector.load %arg5[%c0_11, %c0_12] : memref<1x128xf32, #tpu.memory_space<vmem>>, vector<1x128xf32>
      %14 = vector.broadcast %13 : vector<1x128xf32> to vector<128x128xf32>
      %15 = arith.mulf %12, %14 : vector<128x128xf32>
      %c0_13 = arith.constant 0 : index
      %c0_14 = arith.constant 0 : index
      %16 = vector.load %arg6[%c0_13, %c0_14] : memref<1x128xf32, #tpu.memory_space<vmem>>, vector<1x128xf32>
      %17 = vector.broadcast %16 : vector<1x128xf32> to vector<128x128xf32>
      %18 = arith.addf %15, %17 : vector<128x128xf32>
      %cst_15 = arith.constant 0.000000e+00 : f32
      %19 = vector.broadcast %cst_15 : f32 to vector<128x128xf32>
      %20 = arith.maximumf %18, %19 : vector<128x128xf32>
      %c0_16 = arith.constant 0 : index
      %c0_17 = arith.constant 0 : index
      %21 = vector.load %arg7[%c0_16, %c0_17] : memref<128x128xf32, #tpu.memory_space<vmem>>, vector<128x128xf32>
      tpu.vector_store %arg7[%c0_16, %c0_17], %20 {strides = array<i32>} : memref<128x128xf32, #tpu.memory_space<vmem>>, vector<128x128xf32>,
    } else {
    }
    return
  }
  func.func @transform_0(%arg0: i32, %arg1: i32, %arg2: i32) -> (i32, i32) {
    %c0_i32 = arith.constant 0 : i32
    return %arg0, %arg2 : i32, i32
  }
  func.func @transform_1(%arg0: i32, %arg1: i32, %arg2: i32) -> (i32, i32) {
    %c0_i32 = arith.constant 0 : i32
    return %arg2, %arg1 : i32, i32
  }
  func.func @transform_2(%arg0: i32, %arg1: i32, %arg2: i32) -> (i32, i32) {
    %c0_i32 = arith.constant 0 : i32
    %c0_i32_0 = arith.constant 0 : i32
    return %c0_i32, %arg1 : i32, i32
  }
  func.func @transform_3(%arg0: i32, %arg1: i32, %arg2: i32) -> (i32, i32) {
    %c0_i32 = arith.constant 0 : i32
    %c0_i32_0 = arith.constant 0 : i32
    return %c0_i32, %arg1 : i32, i32
  }
  func.func @transform_4(%arg0: i32, %arg1: i32, %arg2: i32) -> (i32, i32) {
    %c0_i32 = arith.constant 0 : i32
    return %arg0, %arg1 : i32, i32
  }
}

module attributes {stable_mosaic.version = 11 : i64} {
  func.func @_fused_mm_res_kernel(%arg0: i32, %arg1: i32, %arg2: i32, %arg3: memref<128x128xbf16, #tpu.memory_space<vmem>>, %arg4: memref<128x128xbf16, #tpu.memory_space<vmem>>, %arg5: memref<1x128xf32, #tpu.memory_space<vmem>>, %arg6: memref<1x128xf32, #tpu.memory_space<vmem>>, %arg7: memref<128x128xf32, #tpu.memory_space<vmem>>, %arg8: memref<128x128xf32, #tpu.memory_space<vmem>>, %arg9: memref<128x128xf32, #tpu.memory_space<vmem>>) attributes {dimension_semantics = [#tpu.dimension_semantics<parallel>, #tpu.dimension_semantics<parallel>, #tpu.dimension_semantics<arbitrary>], iteration_bounds = array<i64: 1, 1, 5>, scalar_prefetch = 0 : i64, scratch_operands = 1 : i64, tpu.core_type = #tpu.core_type<tc>, window_params = [{transform_indices = @transform_0, window_bounds = array<i64: 128, 128>}, {transform_indices = @transform_1, window_bounds = array<i64: 128, 128>}, {transform_indices = @transform_2, window_bounds = array<i64: 1, 128>}, {transform_indices = @transform_3, window_bounds = array<i64: 1, 128>}, {transform_indices = @transform_4, window_bounds = array<i64: 128, 128>}, {transform_indices = @transform_5, window_bounds = array<i64: 128, 128>}]} {
    %c0_i32 = arith.constant 0 : i32
    %0 = arith.cmpi eq, %arg2, %c0_i32 : i32
    %1 = arith.extui %0 : i1 to i32
    %c0_i32_0 = arith.constant 0 : i32
    %2 = arith.cmpi ne, %1, %c0_i32_0 : i32
    scf.if %2 {
      %cst_9 = arith.constant 0.000000e+00 : f32
      %12 = vector.broadcast %cst_9 : f32 to vector<128x128xf32>
      %c0_10 = arith.constant 0 : index
      %c0_11 = arith.constant 0 : index
      %13 = vector.load %arg9[%c0_10, %c0_11] : memref<128x128xf32, #tpu.memory_space<vmem>>, vector<128x128xf32>
      tpu.vector_store %arg9[%c0_10, %c0_11], %12 {strides = array<i32>} : memref<128x128xf32, #tpu.memory_space<vmem>>, vector<128x128xf32>,
    } else {
    }
    %c0 = arith.constant 0 : index
    %c0_1 = arith.constant 0 : index
    %3 = vector.load %arg9[%c0, %c0_1] : memref<128x128xf32, #tpu.memory_space<vmem>>, vector<128x128xf32>
    %c0_2 = arith.constant 0 : index
    %c0_3 = arith.constant 0 : index
    %4 = vector.load %arg3[%c0_2, %c0_3] : memref<128x128xbf16, #tpu.memory_space<vmem>>, vector<128x128xbf16>
    %c0_4 = arith.constant 0 : index
    %c0_5 = arith.constant 0 : index
    %5 = vector.load %arg4[%c0_4, %c0_5] : memref<128x128xbf16, #tpu.memory_space<vmem>>, vector<128x128xbf16>
    %cst = arith.constant dense<0.000000e+00> : vector<128x128xf32>
    %6 = tpu.matmul %4, %5, %cst {dimension_numbers = #tpu.dot_dimension_numbers<[1], [0], [0], [1], [0, 0, 1, 1], [], []>} : vector<128x128xbf16>, vector<128x128xbf16>, vector<128x128xf32> -> vector<128x128xf32>
    %7 = arith.addf %3, %6 : vector<128x128xf32>
    %c0_6 = arith.constant 0 : index
    %c0_7 = arith.constant 0 : index
    %8 = vector.load %arg9[%c0_6, %c0_7] : memref<128x128xf32, #tpu.memory_space<vmem>>, vector<128x128xf32>
    tpu.vector_store %arg9[%c0_6, %c0_7], %7 {strides = array<i32>} : memref<128x128xf32, #tpu.memory_space<vmem>>, vector<128x128xf32>,
    %c4_i32 = arith.constant 4 : i32
    %9 = arith.cmpi eq, %arg2, %c4_i32 : i32
    %10 = arith.extui %9 : i1 to i32
    %c0_i32_8 = arith.constant 0 : i32
    %11 = arith.cmpi ne, %10, %c0_i32_8 : i32
    scf.if %11 {
      %c0_9 = arith.constant 0 : index
      %c0_10 = arith.constant 0 : index
      %12 = vector.load %arg9[%c0_9, %c0_10] : memref<128x128xf32, #tpu.memory_space<vmem>>, vector<128x128xf32>
      %c0_11 = arith.constant 0 : index
      %c0_12 = arith.constant 0 : index
      %13 = vector.load %arg5[%c0_11, %c0_12] : memref<1x128xf32, #tpu.memory_space<vmem>>, vector<1x128xf32>
      %14 = vector.broadcast %13 : vector<1x128xf32> to vector<128x128xf32>
      %15 = arith.mulf %12, %14 : vector<128x128xf32>
      %c0_13 = arith.constant 0 : index
      %c0_14 = arith.constant 0 : index
      %16 = vector.load %arg6[%c0_13, %c0_14] : memref<1x128xf32, #tpu.memory_space<vmem>>, vector<1x128xf32>
      %17 = vector.broadcast %16 : vector<1x128xf32> to vector<128x128xf32>
      %18 = arith.addf %15, %17 : vector<128x128xf32>
      %c0_15 = arith.constant 0 : index
      %c0_16 = arith.constant 0 : index
      %19 = vector.load %arg7[%c0_15, %c0_16] : memref<128x128xf32, #tpu.memory_space<vmem>>, vector<128x128xf32>
      %20 = arith.addf %18, %19 : vector<128x128xf32>
      %cst_17 = arith.constant 0.000000e+00 : f32
      %21 = vector.broadcast %cst_17 : f32 to vector<128x128xf32>
      %22 = arith.maximumf %20, %21 : vector<128x128xf32>
      %c0_18 = arith.constant 0 : index
      %c0_19 = arith.constant 0 : index
      %23 = vector.load %arg8[%c0_18, %c0_19] : memref<128x128xf32, #tpu.memory_space<vmem>>, vector<128x128xf32>
      tpu.vector_store %arg8[%c0_18, %c0_19], %22 {strides = array<i32>} : memref<128x128xf32, #tpu.memory_space<vmem>>, vector<128x128xf32>,
    } else {
    }
    return
  }
  func.func @transform_0(%arg0: i32, %arg1: i32, %arg2: i32) -> (i32, i32) {
    %c0_i32 = arith.constant 0 : i32
    return %arg0, %arg2 : i32, i32
  }
  func.func @transform_1(%arg0: i32, %arg1: i32, %arg2: i32) -> (i32, i32) {
    %c0_i32 = arith.constant 0 : i32
    return %arg2, %arg1 : i32, i32
  }
  func.func @transform_2(%arg0: i32, %arg1: i32, %arg2: i32) -> (i32, i32) {
    %c0_i32 = arith.constant 0 : i32
    %c0_i32_0 = arith.constant 0 : i32
    return %c0_i32, %arg1 : i32, i32
  }
  func.func @transform_3(%arg0: i32, %arg1: i32, %arg2: i32) -> (i32, i32) {
    %c0_i32 = arith.constant 0 : i32
    %c0_i32_0 = arith.constant 0 : i32
    return %c0_i32, %arg1 : i32, i32
  }
  func.func @transform_4(%arg0: i32, %arg1: i32, %arg2: i32) -> (i32, i32) {
    %c0_i32 = arith.constant 0 : i32
    return %arg0, %arg1 : i32, i32
  }
  func.func @transform_5(%arg0: i32, %arg1: i32, %arg2: i32) -> (i32, i32) {
    %c0_i32 = arith.constant 0 : i32
    return %arg0, %arg1 : i32, i32
  }
}

module attributes {stable_mosaic.version = 11 : i64} {
  func.func @_fused_mm_kernel(%arg0: i32, %arg1: i32, %arg2: i32, %arg3: memref<32x128xbf16, #tpu.memory_space<vmem>>, %arg4: memref<128x128xbf16, #tpu.memory_space<vmem>>, %arg5: memref<1x128xf32, #tpu.memory_space<vmem>>, %arg6: memref<1x128xf32, #tpu.memory_space<vmem>>, %arg7: memref<32x128xf32, #tpu.memory_space<vmem>>, %arg8: memref<32x128xf32, #tpu.memory_space<vmem>>) attributes {dimension_semantics = [#tpu.dimension_semantics<parallel>, #tpu.dimension_semantics<parallel>, #tpu.dimension_semantics<arbitrary>], iteration_bounds = array<i64: 1, 1, 5>, scalar_prefetch = 0 : i64, scratch_operands = 1 : i64, tpu.core_type = #tpu.core_type<tc>, window_params = [{transform_indices = @transform_0, window_bounds = array<i64: 32, 128>}, {transform_indices = @transform_1, window_bounds = array<i64: 128, 128>}, {transform_indices = @transform_2, window_bounds = array<i64: 1, 128>}, {transform_indices = @transform_3, window_bounds = array<i64: 1, 128>}, {transform_indices = @transform_4, window_bounds = array<i64: 32, 128>}]} {
    %c0_i32 = arith.constant 0 : i32
    %0 = arith.cmpi eq, %arg2, %c0_i32 : i32
    %1 = arith.extui %0 : i1 to i32
    %c0_i32_0 = arith.constant 0 : i32
    %2 = arith.cmpi ne, %1, %c0_i32_0 : i32
    scf.if %2 {
      %cst_9 = arith.constant 0.000000e+00 : f32
      %12 = vector.broadcast %cst_9 : f32 to vector<32x128xf32>
      %c0_10 = arith.constant 0 : index
      %c0_11 = arith.constant 0 : index
      %13 = vector.load %arg8[%c0_10, %c0_11] : memref<32x128xf32, #tpu.memory_space<vmem>>, vector<32x128xf32>
      tpu.vector_store %arg8[%c0_10, %c0_11], %12 {strides = array<i32>} : memref<32x128xf32, #tpu.memory_space<vmem>>, vector<32x128xf32>,
    } else {
    }
    %c0 = arith.constant 0 : index
    %c0_1 = arith.constant 0 : index
    %3 = vector.load %arg8[%c0, %c0_1] : memref<32x128xf32, #tpu.memory_space<vmem>>, vector<32x128xf32>
    %c0_2 = arith.constant 0 : index
    %c0_3 = arith.constant 0 : index
    %4 = vector.load %arg3[%c0_2, %c0_3] : memref<32x128xbf16, #tpu.memory_space<vmem>>, vector<32x128xbf16>
    %c0_4 = arith.constant 0 : index
    %c0_5 = arith.constant 0 : index
    %5 = vector.load %arg4[%c0_4, %c0_5] : memref<128x128xbf16, #tpu.memory_space<vmem>>, vector<128x128xbf16>
    %cst = arith.constant dense<0.000000e+00> : vector<32x128xf32>
    %6 = tpu.matmul %4, %5, %cst {dimension_numbers = #tpu.dot_dimension_numbers<[1], [0], [0], [1], [0, 0, 1, 1], [], []>} : vector<32x128xbf16>, vector<128x128xbf16>, vector<32x128xf32> -> vector<32x128xf32>
    %7 = arith.addf %3, %6 : vector<32x128xf32>
    %c0_6 = arith.constant 0 : index
    %c0_7 = arith.constant 0 : index
    %8 = vector.load %arg8[%c0_6, %c0_7] : memref<32x128xf32, #tpu.memory_space<vmem>>, vector<32x128xf32>
    tpu.vector_store %arg8[%c0_6, %c0_7], %7 {strides = array<i32>} : memref<32x128xf32, #tpu.memory_space<vmem>>, vector<32x128xf32>,
    %c4_i32 = arith.constant 4 : i32
    %9 = arith.cmpi eq, %arg2, %c4_i32 : i32
    %10 = arith.extui %9 : i1 to i32
    %c0_i32_8 = arith.constant 0 : i32
    %11 = arith.cmpi ne, %10, %c0_i32_8 : i32
    scf.if %11 {
      %c0_9 = arith.constant 0 : index
      %c0_10 = arith.constant 0 : index
      %12 = vector.load %arg8[%c0_9, %c0_10] : memref<32x128xf32, #tpu.memory_space<vmem>>, vector<32x128xf32>
      %c0_11 = arith.constant 0 : index
      %c0_12 = arith.constant 0 : index
      %13 = vector.load %arg5[%c0_11, %c0_12] : memref<1x128xf32, #tpu.memory_space<vmem>>, vector<1x128xf32>
      %14 = vector.broadcast %13 : vector<1x128xf32> to vector<32x128xf32>
      %15 = arith.mulf %12, %14 : vector<32x128xf32>
      %c0_13 = arith.constant 0 : index
      %c0_14 = arith.constant 0 : index
      %16 = vector.load %arg6[%c0_13, %c0_14] : memref<1x128xf32, #tpu.memory_space<vmem>>, vector<1x128xf32>
      %17 = vector.broadcast %16 : vector<1x128xf32> to vector<32x128xf32>
      %18 = arith.addf %15, %17 : vector<32x128xf32>
      %cst_15 = arith.constant 0.000000e+00 : f32
      %19 = vector.broadcast %cst_15 : f32 to vector<32x128xf32>
      %20 = arith.maximumf %18, %19 : vector<32x128xf32>
      %c0_16 = arith.constant 0 : index
      %c0_17 = arith.constant 0 : index
      %21 = vector.load %arg7[%c0_16, %c0_17] : memref<32x128xf32, #tpu.memory_space<vmem>>, vector<32x128xf32>
      tpu.vector_store %arg7[%c0_16, %c0_17], %20 {strides = array<i32>} : memref<32x128xf32, #tpu.memory_space<vmem>>, vector<32x128xf32>,
    } else {
    }
    return
  }
  func.func @transform_0(%arg0: i32, %arg1: i32, %arg2: i32) -> (i32, i32) {
    %c0_i32 = arith.constant 0 : i32
    return %arg0, %arg2 : i32, i32
  }
  func.func @transform_1(%arg0: i32, %arg1: i32, %arg2: i32) -> (i32, i32) {
    %c0_i32 = arith.constant 0 : i32
    return %arg2, %arg1 : i32, i32
  }
  func.func @transform_2(%arg0: i32, %arg1: i32, %arg2: i32) -> (i32, i32) {
    %c0_i32 = arith.constant 0 : i32
    %c0_i32_0 = arith.constant 0 : i32
    return %c0_i32, %arg1 : i32, i32
  }
  func.func @transform_3(%arg0: i32, %arg1: i32, %arg2: i32) -> (i32, i32) {
    %c0_i32 = arith.constant 0 : i32
    %c0_i32_0 = arith.constant 0 : i32
    return %c0_i32, %arg1 : i32, i32
  }
  func.func @transform_4(%arg0: i32, %arg1: i32, %arg2: i32) -> (i32, i32) {
    %c0_i32 = arith.constant 0 : i32
    return %arg0, %arg1 : i32, i32
  }
}

module attributes {stable_mosaic.version = 11 : i64} {
  func.func @_fused_mm_kernel(%arg0: i32, %arg1: i32, %arg2: i32, %arg3: memref<32x128xbf16, #tpu.memory_space<vmem>>, %arg4: memref<128x128xbf16, #tpu.memory_space<vmem>>, %arg5: memref<1x128xf32, #tpu.memory_space<vmem>>, %arg6: memref<1x128xf32, #tpu.memory_space<vmem>>, %arg7: memref<32x128xf32, #tpu.memory_space<vmem>>, %arg8: memref<32x128xf32, #tpu.memory_space<vmem>>) attributes {dimension_semantics = [#tpu.dimension_semantics<parallel>, #tpu.dimension_semantics<parallel>, #tpu.dimension_semantics<arbitrary>], iteration_bounds = array<i64: 1, 1, 1>, scalar_prefetch = 0 : i64, scratch_operands = 1 : i64, tpu.core_type = #tpu.core_type<tc>, window_params = [{transform_indices = @transform_0, window_bounds = array<i64: 32, 128>}, {transform_indices = @transform_1, window_bounds = array<i64: 128, 128>}, {transform_indices = @transform_2, window_bounds = array<i64: 1, 128>}, {transform_indices = @transform_3, window_bounds = array<i64: 1, 128>}, {transform_indices = @transform_4, window_bounds = array<i64: 32, 128>}]} {
    %c0_i32 = arith.constant 0 : i32
    %0 = arith.cmpi eq, %arg2, %c0_i32 : i32
    %1 = arith.extui %0 : i1 to i32
    %c0_i32_0 = arith.constant 0 : i32
    %2 = arith.cmpi ne, %1, %c0_i32_0 : i32
    scf.if %2 {
      %cst_10 = arith.constant 0.000000e+00 : f32
      %12 = vector.broadcast %cst_10 : f32 to vector<32x128xf32>
      %c0_11 = arith.constant 0 : index
      %c0_12 = arith.constant 0 : index
      %13 = vector.load %arg8[%c0_11, %c0_12] : memref<32x128xf32, #tpu.memory_space<vmem>>, vector<32x128xf32>
      tpu.vector_store %arg8[%c0_11, %c0_12], %12 {strides = array<i32>} : memref<32x128xf32, #tpu.memory_space<vmem>>, vector<32x128xf32>,
    } else {
    }
    %c0 = arith.constant 0 : index
    %c0_1 = arith.constant 0 : index
    %3 = vector.load %arg8[%c0, %c0_1] : memref<32x128xf32, #tpu.memory_space<vmem>>, vector<32x128xf32>
    %c0_2 = arith.constant 0 : index
    %c0_3 = arith.constant 0 : index
    %4 = vector.load %arg3[%c0_2, %c0_3] : memref<32x128xbf16, #tpu.memory_space<vmem>>, vector<32x128xbf16>
    %c0_4 = arith.constant 0 : index
    %c0_5 = arith.constant 0 : index
    %5 = vector.load %arg4[%c0_4, %c0_5] : memref<128x128xbf16, #tpu.memory_space<vmem>>, vector<128x128xbf16>
    %cst = arith.constant dense<0.000000e+00> : vector<32x128xf32>
    %6 = tpu.matmul %4, %5, %cst {dimension_numbers = #tpu.dot_dimension_numbers<[1], [0], [0], [1], [0, 0, 1, 1], [], []>} : vector<32x128xbf16>, vector<128x128xbf16>, vector<32x128xf32> -> vector<32x128xf32>
    %7 = arith.addf %3, %6 : vector<32x128xf32>
    %c0_6 = arith.constant 0 : index
    %c0_7 = arith.constant 0 : index
    %8 = vector.load %arg8[%c0_6, %c0_7] : memref<32x128xf32, #tpu.memory_space<vmem>>, vector<32x128xf32>
    tpu.vector_store %arg8[%c0_6, %c0_7], %7 {strides = array<i32>} : memref<32x128xf32, #tpu.memory_space<vmem>>, vector<32x128xf32>,
    %c0_i32_8 = arith.constant 0 : i32
    %9 = arith.cmpi eq, %arg2, %c0_i32_8 : i32
    %10 = arith.extui %9 : i1 to i32
    %c0_i32_9 = arith.constant 0 : i32
    %11 = arith.cmpi ne, %10, %c0_i32_9 : i32
    scf.if %11 {
      %c0_10 = arith.constant 0 : index
      %c0_11 = arith.constant 0 : index
      %12 = vector.load %arg8[%c0_10, %c0_11] : memref<32x128xf32, #tpu.memory_space<vmem>>, vector<32x128xf32>
      %c0_12 = arith.constant 0 : index
      %c0_13 = arith.constant 0 : index
      %13 = vector.load %arg5[%c0_12, %c0_13] : memref<1x128xf32, #tpu.memory_space<vmem>>, vector<1x128xf32>
      %14 = vector.broadcast %13 : vector<1x128xf32> to vector<32x128xf32>
      %15 = arith.mulf %12, %14 : vector<32x128xf32>
      %c0_14 = arith.constant 0 : index
      %c0_15 = arith.constant 0 : index
      %16 = vector.load %arg6[%c0_14, %c0_15] : memref<1x128xf32, #tpu.memory_space<vmem>>, vector<1x128xf32>
      %17 = vector.broadcast %16 : vector<1x128xf32> to vector<32x128xf32>
      %18 = arith.addf %15, %17 : vector<32x128xf32>
      %c0_16 = arith.constant 0 : index
      %c0_17 = arith.constant 0 : index
      %19 = vector.load %arg7[%c0_16, %c0_17] : memref<32x128xf32, #tpu.memory_space<vmem>>, vector<32x128xf32>
      tpu.vector_store %arg7[%c0_16, %c0_17], %18 {strides = array<i32>} : memref<32x128xf32, #tpu.memory_space<vmem>>, vector<32x128xf32>,
    } else {
    }
    return
  }
  func.func @transform_0(%arg0: i32, %arg1: i32, %arg2: i32) -> (i32, i32) {
    %c0_i32 = arith.constant 0 : i32
    return %arg0, %arg2 : i32, i32
  }
  func.func @transform_1(%arg0: i32, %arg1: i32, %arg2: i32) -> (i32, i32) {
    %c0_i32 = arith.constant 0 : i32
    return %arg2, %arg1 : i32, i32
  }
  func.func @transform_2(%arg0: i32, %arg1: i32, %arg2: i32) -> (i32, i32) {
    %c0_i32 = arith.constant 0 : i32
    %c0_i32_0 = arith.constant 0 : i32
    return %c0_i32, %arg1 : i32, i32
  }
  func.func @transform_3(%arg0: i32, %arg1: i32, %arg2: i32) -> (i32, i32) {
    %c0_i32 = arith.constant 0 : i32
    %c0_i32_0 = arith.constant 0 : i32
    return %c0_i32, %arg1 : i32, i32
  }
  func.func @transform_4(%arg0: i32, %arg1: i32, %arg2: i32) -> (i32, i32) {
    %c0_i32 = arith.constant 0 : i32
    return %arg0, %arg1 : i32, i32
  }
}

module attributes {stable_mosaic.version = 11 : i64} {
  func.func @_fused_mm_res_kernel(%arg0: i32, %arg1: i32, %arg2: i32, %arg3: memref<32x384xbf16, #tpu.memory_space<vmem>>, %arg4: memref<384x128xbf16, #tpu.memory_space<vmem>>, %arg5: memref<1x128xf32, #tpu.memory_space<vmem>>, %arg6: memref<1x128xf32, #tpu.memory_space<vmem>>, %arg7: memref<32x128xf32, #tpu.memory_space<vmem>>, %arg8: memref<32x128xf32, #tpu.memory_space<vmem>>, %arg9: memref<32x128xf32, #tpu.memory_space<vmem>>) attributes {dimension_semantics = [#tpu.dimension_semantics<parallel>, #tpu.dimension_semantics<parallel>, #tpu.dimension_semantics<arbitrary>], iteration_bounds = array<i64: 1, 1, 3>, scalar_prefetch = 0 : i64, scratch_operands = 1 : i64, tpu.core_type = #tpu.core_type<tc>, window_params = [{transform_indices = @transform_0, window_bounds = array<i64: 32, 384>}, {transform_indices = @transform_1, window_bounds = array<i64: 384, 128>}, {transform_indices = @transform_2, window_bounds = array<i64: 1, 128>}, {transform_indices = @transform_3, window_bounds = array<i64: 1, 128>}, {transform_indices = @transform_4, window_bounds = array<i64: 32, 128>}, {transform_indices = @transform_5, window_bounds = array<i64: 32, 128>}]} {
    %c0_i32 = arith.constant 0 : i32
    %0 = arith.cmpi eq, %arg2, %c0_i32 : i32
    %1 = arith.extui %0 : i1 to i32
    %c0_i32_0 = arith.constant 0 : i32
    %2 = arith.cmpi ne, %1, %c0_i32_0 : i32
    scf.if %2 {
      %cst_9 = arith.constant 0.000000e+00 : f32
      %12 = vector.broadcast %cst_9 : f32 to vector<32x128xf32>
      %c0_10 = arith.constant 0 : index
      %c0_11 = arith.constant 0 : index
      %13 = vector.load %arg9[%c0_10, %c0_11] : memref<32x128xf32, #tpu.memory_space<vmem>>, vector<32x128xf32>
      tpu.vector_store %arg9[%c0_10, %c0_11], %12 {strides = array<i32>} : memref<32x128xf32, #tpu.memory_space<vmem>>, vector<32x128xf32>,
    } else {
    }
    %c0 = arith.constant 0 : index
    %c0_1 = arith.constant 0 : index
    %3 = vector.load %arg9[%c0, %c0_1] : memref<32x128xf32, #tpu.memory_space<vmem>>, vector<32x128xf32>
    %c0_2 = arith.constant 0 : index
    %c0_3 = arith.constant 0 : index
    %4 = vector.load %arg3[%c0_2, %c0_3] : memref<32x384xbf16, #tpu.memory_space<vmem>>, vector<32x384xbf16>
    %c0_4 = arith.constant 0 : index
    %c0_5 = arith.constant 0 : index
    %5 = vector.load %arg4[%c0_4, %c0_5] : memref<384x128xbf16, #tpu.memory_space<vmem>>, vector<384x128xbf16>
    %cst = arith.constant dense<0.000000e+00> : vector<32x128xf32>
    %6 = tpu.matmul %4, %5, %cst {dimension_numbers = #tpu.dot_dimension_numbers<[1], [0], [0], [1], [0, 0, 1, 1], [], []>} : vector<32x384xbf16>, vector<384x128xbf16>, vector<32x128xf32> -> vector<32x128xf32>
    %7 = arith.addf %3, %6 : vector<32x128xf32>
    %c0_6 = arith.constant 0 : index
    %c0_7 = arith.constant 0 : index
    %8 = vector.load %arg9[%c0_6, %c0_7] : memref<32x128xf32, #tpu.memory_space<vmem>>, vector<32x128xf32>
    tpu.vector_store %arg9[%c0_6, %c0_7], %7 {strides = array<i32>} : memref<32x128xf32, #tpu.memory_space<vmem>>, vector<32x128xf32>,
    %c2_i32 = arith.constant 2 : i32
    %9 = arith.cmpi eq, %arg2, %c2_i32 : i32
    %10 = arith.extui %9 : i1 to i32
    %c0_i32_8 = arith.constant 0 : i32
    %11 = arith.cmpi ne, %10, %c0_i32_8 : i32
    scf.if %11 {
      %c0_9 = arith.constant 0 : index
      %c0_10 = arith.constant 0 : index
      %12 = vector.load %arg9[%c0_9, %c0_10] : memref<32x128xf32, #tpu.memory_space<vmem>>, vector<32x128xf32>
      %c0_11 = arith.constant 0 : index
      %c0_12 = arith.constant 0 : index
      %13 = vector.load %arg5[%c0_11, %c0_12] : memref<1x128xf32, #tpu.memory_space<vmem>>, vector<1x128xf32>
      %14 = vector.broadcast %13 : vector<1x128xf32> to vector<32x128xf32>
      %15 = arith.mulf %12, %14 : vector<32x128xf32>
      %c0_13 = arith.constant 0 : index
      %c0_14 = arith.constant 0 : index
      %16 = vector.load %arg6[%c0_13, %c0_14] : memref<1x128xf32, #tpu.memory_space<vmem>>, vector<1x128xf32>
      %17 = vector.broadcast %16 : vector<1x128xf32> to vector<32x128xf32>
      %18 = arith.addf %15, %17 : vector<32x128xf32>
      %c0_15 = arith.constant 0 : index
      %c0_16 = arith.constant 0 : index
      %19 = vector.load %arg7[%c0_15, %c0_16] : memref<32x128xf32, #tpu.memory_space<vmem>>, vector<32x128xf32>
      %20 = arith.addf %18, %19 : vector<32x128xf32>
      %cst_17 = arith.constant 0.000000e+00 : f32
      %21 = vector.broadcast %cst_17 : f32 to vector<32x128xf32>
      %22 = arith.maximumf %20, %21 : vector<32x128xf32>
      %c0_18 = arith.constant 0 : index
      %c0_19 = arith.constant 0 : index
      %23 = vector.load %arg8[%c0_18, %c0_19] : memref<32x128xf32, #tpu.memory_space<vmem>>, vector<32x128xf32>
      tpu.vector_store %arg8[%c0_18, %c0_19], %22 {strides = array<i32>} : memref<32x128xf32, #tpu.memory_space<vmem>>, vector<32x128xf32>,
    } else {
    }
    return
  }
  func.func @transform_0(%arg0: i32, %arg1: i32, %arg2: i32) -> (i32, i32) {
    %c0_i32 = arith.constant 0 : i32
    return %arg0, %arg2 : i32, i32
  }
  func.func @transform_1(%arg0: i32, %arg1: i32, %arg2: i32) -> (i32, i32) {
    %c0_i32 = arith.constant 0 : i32
    return %arg2, %arg1 : i32, i32
  }
  func.func @transform_2(%arg0: i32, %arg1: i32, %arg2: i32) -> (i32, i32) {
    %c0_i32 = arith.constant 0 : i32
    %c0_i32_0 = arith.constant 0 : i32
    return %c0_i32, %arg1 : i32, i32
  }
  func.func @transform_3(%arg0: i32, %arg1: i32, %arg2: i32) -> (i32, i32) {
    %c0_i32 = arith.constant 0 : i32
    %c0_i32_0 = arith.constant 0 : i32
    return %c0_i32, %arg1 : i32, i32
  }
  func.func @transform_4(%arg0: i32, %arg1: i32, %arg2: i32) -> (i32, i32) {
    %c0_i32 = arith.constant 0 : i32
    return %arg0, %arg1 : i32, i32
  }
  func.func @transform_5(%arg0: i32, %arg1: i32, %arg2: i32) -> (i32, i32) {
    %c0_i32 = arith.constant 0 : i32
    return %arg0, %arg1 : i32, i32
  }
}

module attributes {stable_mosaic.version = 11 : i64} {
  func.func @_fused_mm_kernel(%arg0: i32, %arg1: i32, %arg2: i32, %arg3: memref<32x384xbf16, #tpu.memory_space<vmem>>, %arg4: memref<384x128xbf16, #tpu.memory_space<vmem>>, %arg5: memref<1x128xf32, #tpu.memory_space<vmem>>, %arg6: memref<1x128xf32, #tpu.memory_space<vmem>>, %arg7: memref<32x128xf32, #tpu.memory_space<vmem>>, %arg8: memref<32x128xf32, #tpu.memory_space<vmem>>) attributes {dimension_semantics = [#tpu.dimension_semantics<parallel>, #tpu.dimension_semantics<parallel>, #tpu.dimension_semantics<arbitrary>], iteration_bounds = array<i64: 1, 1, 3>, scalar_prefetch = 0 : i64, scratch_operands = 1 : i64, tpu.core_type = #tpu.core_type<tc>, window_params = [{transform_indices = @transform_0, window_bounds = array<i64: 32, 384>}, {transform_indices = @transform_1, window_bounds = array<i64: 384, 128>}, {transform_indices = @transform_2, window_bounds = array<i64: 1, 128>}, {transform_indices = @transform_3, window_bounds = array<i64: 1, 128>}, {transform_indices = @transform_4, window_bounds = array<i64: 32, 128>}]} {
    %c0_i32 = arith.constant 0 : i32
    %0 = arith.cmpi eq, %arg2, %c0_i32 : i32
    %1 = arith.extui %0 : i1 to i32
    %c0_i32_0 = arith.constant 0 : i32
    %2 = arith.cmpi ne, %1, %c0_i32_0 : i32
    scf.if %2 {
      %cst_9 = arith.constant 0.000000e+00 : f32
      %12 = vector.broadcast %cst_9 : f32 to vector<32x128xf32>
      %c0_10 = arith.constant 0 : index
      %c0_11 = arith.constant 0 : index
      %13 = vector.load %arg8[%c0_10, %c0_11] : memref<32x128xf32, #tpu.memory_space<vmem>>, vector<32x128xf32>
      tpu.vector_store %arg8[%c0_10, %c0_11], %12 {strides = array<i32>} : memref<32x128xf32, #tpu.memory_space<vmem>>, vector<32x128xf32>,
    } else {
    }
    %c0 = arith.constant 0 : index
    %c0_1 = arith.constant 0 : index
    %3 = vector.load %arg8[%c0, %c0_1] : memref<32x128xf32, #tpu.memory_space<vmem>>, vector<32x128xf32>
    %c0_2 = arith.constant 0 : index
    %c0_3 = arith.constant 0 : index
    %4 = vector.load %arg3[%c0_2, %c0_3] : memref<32x384xbf16, #tpu.memory_space<vmem>>, vector<32x384xbf16>
    %c0_4 = arith.constant 0 : index
    %c0_5 = arith.constant 0 : index
    %5 = vector.load %arg4[%c0_4, %c0_5] : memref<384x128xbf16, #tpu.memory_space<vmem>>, vector<384x128xbf16>
    %cst = arith.constant dense<0.000000e+00> : vector<32x128xf32>
    %6 = tpu.matmul %4, %5, %cst {dimension_numbers = #tpu.dot_dimension_numbers<[1], [0], [0], [1], [0, 0, 1, 1], [], []>} : vector<32x384xbf16>, vector<384x128xbf16>, vector<32x128xf32> -> vector<32x128xf32>
    %7 = arith.addf %3, %6 : vector<32x128xf32>
    %c0_6 = arith.constant 0 : index
    %c0_7 = arith.constant 0 : index
    %8 = vector.load %arg8[%c0_6, %c0_7] : memref<32x128xf32, #tpu.memory_space<vmem>>, vector<32x128xf32>
    tpu.vector_store %arg8[%c0_6, %c0_7], %7 {strides = array<i32>} : memref<32x128xf32, #tpu.memory_space<vmem>>, vector<32x128xf32>,
    %c2_i32 = arith.constant 2 : i32
    %9 = arith.cmpi eq, %arg2, %c2_i32 : i32
    %10 = arith.extui %9 : i1 to i32
    %c0_i32_8 = arith.constant 0 : i32
    %11 = arith.cmpi ne, %10, %c0_i32_8 : i32
    scf.if %11 {
      %c0_9 = arith.constant 0 : index
      %c0_10 = arith.constant 0 : index
      %12 = vector.load %arg8[%c0_9, %c0_10] : memref<32x128xf32, #tpu.memory_space<vmem>>, vector<32x128xf32>
      %c0_11 = arith.constant 0 : index
      %c0_12 = arith.constant 0 : index
      %13 = vector.load %arg5[%c0_11, %c0_12] : memref<1x128xf32, #tpu.memory_space<vmem>>, vector<1x128xf32>
      %14 = vector.broadcast %13 : vector<1x128xf32> to vector<32x128xf32>
      %15 = arith.mulf %12, %14 : vector<32x128xf32>
      %c0_13 = arith.constant 0 : index
      %c0_14 = arith.constant 0 : index
      %16 = vector.load %arg6[%c0_13, %c0_14] : memref<1x128xf32, #tpu.memory_space<vmem>>, vector<1x128xf32>
      %17 = vector.broadcast %16 : vector<1x128xf32> to vector<32x128xf32>
      %18 = arith.addf %15, %17 : vector<32x128xf32>
      %cst_15 = arith.constant 0.000000e+00 : f32
      %19 = vector.broadcast %cst_15 : f32 to vector<32x128xf32>
      %20 = arith.maximumf %18, %19 : vector<32x128xf32>
      %c0_16 = arith.constant 0 : index
      %c0_17 = arith.constant 0 : index
      %21 = vector.load %arg7[%c0_16, %c0_17] : memref<32x128xf32, #tpu.memory_space<vmem>>, vector<32x128xf32>
      tpu.vector_store %arg7[%c0_16, %c0_17], %20 {strides = array<i32>} : memref<32x128xf32, #tpu.memory_space<vmem>>, vector<32x128xf32>,
    } else {
    }
    return
  }
  func.func @transform_0(%arg0: i32, %arg1: i32, %arg2: i32) -> (i32, i32) {
    %c0_i32 = arith.constant 0 : i32
    return %arg0, %arg2 : i32, i32
  }
  func.func @transform_1(%arg0: i32, %arg1: i32, %arg2: i32) -> (i32, i32) {
    %c0_i32 = arith.constant 0 : i32
    return %arg2, %arg1 : i32, i32
  }
  func.func @transform_2(%arg0: i32, %arg1: i32, %arg2: i32) -> (i32, i32) {
    %c0_i32 = arith.constant 0 : i32
    %c0_i32_0 = arith.constant 0 : i32
    return %c0_i32, %arg1 : i32, i32
  }
  func.func @transform_3(%arg0: i32, %arg1: i32, %arg2: i32) -> (i32, i32) {
    %c0_i32 = arith.constant 0 : i32
    %c0_i32_0 = arith.constant 0 : i32
    return %c0_i32, %arg1 : i32, i32
  }
  func.func @transform_4(%arg0: i32, %arg1: i32, %arg2: i32) -> (i32, i32) {
    %c0_i32 = arith.constant 0 : i32
    return %arg0, %arg1 : i32, i32
  }
}

module attributes {stable_mosaic.version = 11 : i64} {
  func.func @_fused_mm_kernel(%arg0: i32, %arg1: i32, %arg2: i32, %arg3: memref<16x384xbf16, #tpu.memory_space<vmem>>, %arg4: memref<384x256xbf16, #tpu.memory_space<vmem>>, %arg5: memref<1x256xf32, #tpu.memory_space<vmem>>, %arg6: memref<1x256xf32, #tpu.memory_space<vmem>>, %arg7: memref<16x256xf32, #tpu.memory_space<vmem>>, %arg8: memref<16x256xf32, #tpu.memory_space<vmem>>) attributes {dimension_semantics = [#tpu.dimension_semantics<parallel>, #tpu.dimension_semantics<parallel>, #tpu.dimension_semantics<arbitrary>], iteration_bounds = array<i64: 1, 1, 3>, scalar_prefetch = 0 : i64, scratch_operands = 1 : i64, tpu.core_type = #tpu.core_type<tc>, window_params = [{transform_indices = @transform_0, window_bounds = array<i64: 16, 384>}, {transform_indices = @transform_1, window_bounds = array<i64: 384, 256>}, {transform_indices = @transform_2, window_bounds = array<i64: 1, 256>}, {transform_indices = @transform_3, window_bounds = array<i64: 1, 256>}, {transform_indices = @transform_4, window_bounds = array<i64: 16, 256>}]} {
    %c0_i32 = arith.constant 0 : i32
    %0 = arith.cmpi eq, %arg2, %c0_i32 : i32
    %1 = arith.extui %0 : i1 to i32
    %c0_i32_0 = arith.constant 0 : i32
    %2 = arith.cmpi ne, %1, %c0_i32_0 : i32
    scf.if %2 {
      %cst_9 = arith.constant 0.000000e+00 : f32
      %12 = vector.broadcast %cst_9 : f32 to vector<16x256xf32>
      %c0_10 = arith.constant 0 : index
      %c0_11 = arith.constant 0 : index
      %13 = vector.load %arg8[%c0_10, %c0_11] : memref<16x256xf32, #tpu.memory_space<vmem>>, vector<16x256xf32>
      tpu.vector_store %arg8[%c0_10, %c0_11], %12 {strides = array<i32>} : memref<16x256xf32, #tpu.memory_space<vmem>>, vector<16x256xf32>,
    } else {
    }
    %c0 = arith.constant 0 : index
    %c0_1 = arith.constant 0 : index
    %3 = vector.load %arg8[%c0, %c0_1] : memref<16x256xf32, #tpu.memory_space<vmem>>, vector<16x256xf32>
    %c0_2 = arith.constant 0 : index
    %c0_3 = arith.constant 0 : index
    %4 = vector.load %arg3[%c0_2, %c0_3] : memref<16x384xbf16, #tpu.memory_space<vmem>>, vector<16x384xbf16>
    %c0_4 = arith.constant 0 : index
    %c0_5 = arith.constant 0 : index
    %5 = vector.load %arg4[%c0_4, %c0_5] : memref<384x256xbf16, #tpu.memory_space<vmem>>, vector<384x256xbf16>
    %cst = arith.constant dense<0.000000e+00> : vector<16x256xf32>
    %6 = tpu.matmul %4, %5, %cst {dimension_numbers = #tpu.dot_dimension_numbers<[1], [0], [0], [1], [0, 0, 1, 1], [], []>} : vector<16x384xbf16>, vector<384x256xbf16>, vector<16x256xf32> -> vector<16x256xf32>
    %7 = arith.addf %3, %6 : vector<16x256xf32>
    %c0_6 = arith.constant 0 : index
    %c0_7 = arith.constant 0 : index
    %8 = vector.load %arg8[%c0_6, %c0_7] : memref<16x256xf32, #tpu.memory_space<vmem>>, vector<16x256xf32>
    tpu.vector_store %arg8[%c0_6, %c0_7], %7 {strides = array<i32>} : memref<16x256xf32, #tpu.memory_space<vmem>>, vector<16x256xf32>,
    %c2_i32 = arith.constant 2 : i32
    %9 = arith.cmpi eq, %arg2, %c2_i32 : i32
    %10 = arith.extui %9 : i1 to i32
    %c0_i32_8 = arith.constant 0 : i32
    %11 = arith.cmpi ne, %10, %c0_i32_8 : i32
    scf.if %11 {
      %c0_9 = arith.constant 0 : index
      %c0_10 = arith.constant 0 : index
      %12 = vector.load %arg8[%c0_9, %c0_10] : memref<16x256xf32, #tpu.memory_space<vmem>>, vector<16x256xf32>
      %c0_11 = arith.constant 0 : index
      %c0_12 = arith.constant 0 : index
      %13 = vector.load %arg5[%c0_11, %c0_12] : memref<1x256xf32, #tpu.memory_space<vmem>>, vector<1x256xf32>
      %14 = vector.broadcast %13 : vector<1x256xf32> to vector<16x256xf32>
      %15 = arith.mulf %12, %14 : vector<16x256xf32>
      %c0_13 = arith.constant 0 : index
      %c0_14 = arith.constant 0 : index
      %16 = vector.load %arg6[%c0_13, %c0_14] : memref<1x256xf32, #tpu.memory_space<vmem>>, vector<1x256xf32>
      %17 = vector.broadcast %16 : vector<1x256xf32> to vector<16x256xf32>
      %18 = arith.addf %15, %17 : vector<16x256xf32>
      %cst_15 = arith.constant 0.000000e+00 : f32
      %19 = vector.broadcast %cst_15 : f32 to vector<16x256xf32>
      %20 = arith.maximumf %18, %19 : vector<16x256xf32>
      %c0_16 = arith.constant 0 : index
      %c0_17 = arith.constant 0 : index
      %21 = vector.load %arg7[%c0_16, %c0_17] : memref<16x256xf32, #tpu.memory_space<vmem>>, vector<16x256xf32>
      tpu.vector_store %arg7[%c0_16, %c0_17], %20 {strides = array<i32>} : memref<16x256xf32, #tpu.memory_space<vmem>>, vector<16x256xf32>,
    } else {
    }
    return
  }
  func.func @transform_0(%arg0: i32, %arg1: i32, %arg2: i32) -> (i32, i32) {
    %c0_i32 = arith.constant 0 : i32
    return %arg0, %arg2 : i32, i32
  }
  func.func @transform_1(%arg0: i32, %arg1: i32, %arg2: i32) -> (i32, i32) {
    %c0_i32 = arith.constant 0 : i32
    return %arg2, %arg1 : i32, i32
  }
  func.func @transform_2(%arg0: i32, %arg1: i32, %arg2: i32) -> (i32, i32) {
    %c0_i32 = arith.constant 0 : i32
    %c0_i32_0 = arith.constant 0 : i32
    return %c0_i32, %arg1 : i32, i32
  }
  func.func @transform_3(%arg0: i32, %arg1: i32, %arg2: i32) -> (i32, i32) {
    %c0_i32 = arith.constant 0 : i32
    %c0_i32_0 = arith.constant 0 : i32
    return %c0_i32, %arg1 : i32, i32
  }
  func.func @transform_4(%arg0: i32, %arg1: i32, %arg2: i32) -> (i32, i32) {
    %c0_i32 = arith.constant 0 : i32
    return %arg0, %arg1 : i32, i32
  }
}

module attributes {stable_mosaic.version = 11 : i64} {
  func.func @_fused_mm_kernel(%arg0: i32, %arg1: i32, %arg2: i32, %arg3: memref<16x128xbf16, #tpu.memory_space<vmem>>, %arg4: memref<128x256xbf16, #tpu.memory_space<vmem>>, %arg5: memref<1x256xf32, #tpu.memory_space<vmem>>, %arg6: memref<1x256xf32, #tpu.memory_space<vmem>>, %arg7: memref<16x256xf32, #tpu.memory_space<vmem>>, %arg8: memref<16x256xf32, #tpu.memory_space<vmem>>) attributes {dimension_semantics = [#tpu.dimension_semantics<parallel>, #tpu.dimension_semantics<parallel>, #tpu.dimension_semantics<arbitrary>], iteration_bounds = array<i64: 1, 1, 1>, scalar_prefetch = 0 : i64, scratch_operands = 1 : i64, tpu.core_type = #tpu.core_type<tc>, window_params = [{transform_indices = @transform_0, window_bounds = array<i64: 16, 128>}, {transform_indices = @transform_1, window_bounds = array<i64: 128, 256>}, {transform_indices = @transform_2, window_bounds = array<i64: 1, 256>}, {transform_indices = @transform_3, window_bounds = array<i64: 1, 256>}, {transform_indices = @transform_4, window_bounds = array<i64: 16, 256>}]} {
    %c0_i32 = arith.constant 0 : i32
    %0 = arith.cmpi eq, %arg2, %c0_i32 : i32
    %1 = arith.extui %0 : i1 to i32
    %c0_i32_0 = arith.constant 0 : i32
    %2 = arith.cmpi ne, %1, %c0_i32_0 : i32
    scf.if %2 {
      %cst_10 = arith.constant 0.000000e+00 : f32
      %12 = vector.broadcast %cst_10 : f32 to vector<16x256xf32>
      %c0_11 = arith.constant 0 : index
      %c0_12 = arith.constant 0 : index
      %13 = vector.load %arg8[%c0_11, %c0_12] : memref<16x256xf32, #tpu.memory_space<vmem>>, vector<16x256xf32>
      tpu.vector_store %arg8[%c0_11, %c0_12], %12 {strides = array<i32>} : memref<16x256xf32, #tpu.memory_space<vmem>>, vector<16x256xf32>,
    } else {
    }
    %c0 = arith.constant 0 : index
    %c0_1 = arith.constant 0 : index
    %3 = vector.load %arg8[%c0, %c0_1] : memref<16x256xf32, #tpu.memory_space<vmem>>, vector<16x256xf32>
    %c0_2 = arith.constant 0 : index
    %c0_3 = arith.constant 0 : index
    %4 = vector.load %arg3[%c0_2, %c0_3] : memref<16x128xbf16, #tpu.memory_space<vmem>>, vector<16x128xbf16>
    %c0_4 = arith.constant 0 : index
    %c0_5 = arith.constant 0 : index
    %5 = vector.load %arg4[%c0_4, %c0_5] : memref<128x256xbf16, #tpu.memory_space<vmem>>, vector<128x256xbf16>
    %cst = arith.constant dense<0.000000e+00> : vector<16x256xf32>
    %6 = tpu.matmul %4, %5, %cst {dimension_numbers = #tpu.dot_dimension_numbers<[1], [0], [0], [1], [0, 0, 1, 1], [], []>} : vector<16x128xbf16>, vector<128x256xbf16>, vector<16x256xf32> -> vector<16x256xf32>
    %7 = arith.addf %3, %6 : vector<16x256xf32>
    %c0_6 = arith.constant 0 : index
    %c0_7 = arith.constant 0 : index
    %8 = vector.load %arg8[%c0_6, %c0_7] : memref<16x256xf32, #tpu.memory_space<vmem>>, vector<16x256xf32>
    tpu.vector_store %arg8[%c0_6, %c0_7], %7 {strides = array<i32>} : memref<16x256xf32, #tpu.memory_space<vmem>>, vector<16x256xf32>,
    %c0_i32_8 = arith.constant 0 : i32
    %9 = arith.cmpi eq, %arg2, %c0_i32_8 : i32
    %10 = arith.extui %9 : i1 to i32
    %c0_i32_9 = arith.constant 0 : i32
    %11 = arith.cmpi ne, %10, %c0_i32_9 : i32
    scf.if %11 {
      %c0_10 = arith.constant 0 : index
      %c0_11 = arith.constant 0 : index
      %12 = vector.load %arg8[%c0_10, %c0_11] : memref<16x256xf32, #tpu.memory_space<vmem>>, vector<16x256xf32>
      %c0_12 = arith.constant 0 : index
      %c0_13 = arith.constant 0 : index
      %13 = vector.load %arg5[%c0_12, %c0_13] : memref<1x256xf32, #tpu.memory_space<vmem>>, vector<1x256xf32>
      %14 = vector.broadcast %13 : vector<1x256xf32> to vector<16x256xf32>
      %15 = arith.mulf %12, %14 : vector<16x256xf32>
      %c0_14 = arith.constant 0 : index
      %c0_15 = arith.constant 0 : index
      %16 = vector.load %arg6[%c0_14, %c0_15] : memref<1x256xf32, #tpu.memory_space<vmem>>, vector<1x256xf32>
      %17 = vector.broadcast %16 : vector<1x256xf32> to vector<16x256xf32>
      %18 = arith.addf %15, %17 : vector<16x256xf32>
      %c0_16 = arith.constant 0 : index
      %c0_17 = arith.constant 0 : index
      %19 = vector.load %arg7[%c0_16, %c0_17] : memref<16x256xf32, #tpu.memory_space<vmem>>, vector<16x256xf32>
      tpu.vector_store %arg7[%c0_16, %c0_17], %18 {strides = array<i32>} : memref<16x256xf32, #tpu.memory_space<vmem>>, vector<16x256xf32>,
    } else {
    }
    return
  }
  func.func @transform_0(%arg0: i32, %arg1: i32, %arg2: i32) -> (i32, i32) {
    %c0_i32 = arith.constant 0 : i32
    return %arg0, %arg2 : i32, i32
  }
  func.func @transform_1(%arg0: i32, %arg1: i32, %arg2: i32) -> (i32, i32) {
    %c0_i32 = arith.constant 0 : i32
    return %arg2, %arg1 : i32, i32
  }
  func.func @transform_2(%arg0: i32, %arg1: i32, %arg2: i32) -> (i32, i32) {
    %c0_i32 = arith.constant 0 : i32
    %c0_i32_0 = arith.constant 0 : i32
    return %c0_i32, %arg1 : i32, i32
  }
  func.func @transform_3(%arg0: i32, %arg1: i32, %arg2: i32) -> (i32, i32) {
    %c0_i32 = arith.constant 0 : i32
    %c0_i32_0 = arith.constant 0 : i32
    return %c0_i32, %arg1 : i32, i32
  }
  func.func @transform_4(%arg0: i32, %arg1: i32, %arg2: i32) -> (i32, i32) {
    %c0_i32 = arith.constant 0 : i32
    return %arg0, %arg1 : i32, i32
  }
}

module attributes {stable_mosaic.version = 11 : i64} {
  func.func @_fused_mm_res_kernel(%arg0: i32, %arg1: i32, %arg2: i32, %arg3: memref<16x384xbf16, #tpu.memory_space<vmem>>, %arg4: memref<384x256xbf16, #tpu.memory_space<vmem>>, %arg5: memref<1x256xf32, #tpu.memory_space<vmem>>, %arg6: memref<1x256xf32, #tpu.memory_space<vmem>>, %arg7: memref<16x256xf32, #tpu.memory_space<vmem>>, %arg8: memref<16x256xf32, #tpu.memory_space<vmem>>, %arg9: memref<16x256xf32, #tpu.memory_space<vmem>>) attributes {dimension_semantics = [#tpu.dimension_semantics<parallel>, #tpu.dimension_semantics<parallel>, #tpu.dimension_semantics<arbitrary>], iteration_bounds = array<i64: 1, 1, 6>, scalar_prefetch = 0 : i64, scratch_operands = 1 : i64, tpu.core_type = #tpu.core_type<tc>, window_params = [{transform_indices = @transform_0, window_bounds = array<i64: 16, 384>}, {transform_indices = @transform_1, window_bounds = array<i64: 384, 256>}, {transform_indices = @transform_2, window_bounds = array<i64: 1, 256>}, {transform_indices = @transform_3, window_bounds = array<i64: 1, 256>}, {transform_indices = @transform_4, window_bounds = array<i64: 16, 256>}, {transform_indices = @transform_5, window_bounds = array<i64: 16, 256>}]} {
    %c0_i32 = arith.constant 0 : i32
    %0 = arith.cmpi eq, %arg2, %c0_i32 : i32
    %1 = arith.extui %0 : i1 to i32
    %c0_i32_0 = arith.constant 0 : i32
    %2 = arith.cmpi ne, %1, %c0_i32_0 : i32
    scf.if %2 {
      %cst_9 = arith.constant 0.000000e+00 : f32
      %12 = vector.broadcast %cst_9 : f32 to vector<16x256xf32>
      %c0_10 = arith.constant 0 : index
      %c0_11 = arith.constant 0 : index
      %13 = vector.load %arg9[%c0_10, %c0_11] : memref<16x256xf32, #tpu.memory_space<vmem>>, vector<16x256xf32>
      tpu.vector_store %arg9[%c0_10, %c0_11], %12 {strides = array<i32>} : memref<16x256xf32, #tpu.memory_space<vmem>>, vector<16x256xf32>,
    } else {
    }
    %c0 = arith.constant 0 : index
    %c0_1 = arith.constant 0 : index
    %3 = vector.load %arg9[%c0, %c0_1] : memref<16x256xf32, #tpu.memory_space<vmem>>, vector<16x256xf32>
    %c0_2 = arith.constant 0 : index
    %c0_3 = arith.constant 0 : index
    %4 = vector.load %arg3[%c0_2, %c0_3] : memref<16x384xbf16, #tpu.memory_space<vmem>>, vector<16x384xbf16>
    %c0_4 = arith.constant 0 : index
    %c0_5 = arith.constant 0 : index
    %5 = vector.load %arg4[%c0_4, %c0_5] : memref<384x256xbf16, #tpu.memory_space<vmem>>, vector<384x256xbf16>
    %cst = arith.constant dense<0.000000e+00> : vector<16x256xf32>
    %6 = tpu.matmul %4, %5, %cst {dimension_numbers = #tpu.dot_dimension_numbers<[1], [0], [0], [1], [0, 0, 1, 1], [], []>} : vector<16x384xbf16>, vector<384x256xbf16>, vector<16x256xf32> -> vector<16x256xf32>
    %7 = arith.addf %3, %6 : vector<16x256xf32>
    %c0_6 = arith.constant 0 : index
    %c0_7 = arith.constant 0 : index
    %8 = vector.load %arg9[%c0_6, %c0_7] : memref<16x256xf32, #tpu.memory_space<vmem>>, vector<16x256xf32>
    tpu.vector_store %arg9[%c0_6, %c0_7], %7 {strides = array<i32>} : memref<16x256xf32, #tpu.memory_space<vmem>>, vector<16x256xf32>,
    %c5_i32 = arith.constant 5 : i32
    %9 = arith.cmpi eq, %arg2, %c5_i32 : i32
    %10 = arith.extui %9 : i1 to i32
    %c0_i32_8 = arith.constant 0 : i32
    %11 = arith.cmpi ne, %10, %c0_i32_8 : i32
    scf.if %11 {
      %c0_9 = arith.constant 0 : index
      %c0_10 = arith.constant 0 : index
      %12 = vector.load %arg9[%c0_9, %c0_10] : memref<16x256xf32, #tpu.memory_space<vmem>>, vector<16x256xf32>
      %c0_11 = arith.constant 0 : index
      %c0_12 = arith.constant 0 : index
      %13 = vector.load %arg5[%c0_11, %c0_12] : memref<1x256xf32, #tpu.memory_space<vmem>>, vector<1x256xf32>
      %14 = vector.broadcast %13 : vector<1x256xf32> to vector<16x256xf32>
      %15 = arith.mulf %12, %14 : vector<16x256xf32>
      %c0_13 = arith.constant 0 : index
      %c0_14 = arith.constant 0 : index
      %16 = vector.load %arg6[%c0_13, %c0_14] : memref<1x256xf32, #tpu.memory_space<vmem>>, vector<1x256xf32>
      %17 = vector.broadcast %16 : vector<1x256xf32> to vector<16x256xf32>
      %18 = arith.addf %15, %17 : vector<16x256xf32>
      %c0_15 = arith.constant 0 : index
      %c0_16 = arith.constant 0 : index
      %19 = vector.load %arg7[%c0_15, %c0_16] : memref<16x256xf32, #tpu.memory_space<vmem>>, vector<16x256xf32>
      %20 = arith.addf %18, %19 : vector<16x256xf32>
      %cst_17 = arith.constant 0.000000e+00 : f32
      %21 = vector.broadcast %cst_17 : f32 to vector<16x256xf32>
      %22 = arith.maximumf %20, %21 : vector<16x256xf32>
      %c0_18 = arith.constant 0 : index
      %c0_19 = arith.constant 0 : index
      %23 = vector.load %arg8[%c0_18, %c0_19] : memref<16x256xf32, #tpu.memory_space<vmem>>, vector<16x256xf32>
      tpu.vector_store %arg8[%c0_18, %c0_19], %22 {strides = array<i32>} : memref<16x256xf32, #tpu.memory_space<vmem>>, vector<16x256xf32>,
    } else {
    }
    return
  }
  func.func @transform_0(%arg0: i32, %arg1: i32, %arg2: i32) -> (i32, i32) {
    %c0_i32 = arith.constant 0 : i32
    return %arg0, %arg2 : i32, i32
  }
  func.func @transform_1(%arg0: i32, %arg1: i32, %arg2: i32) -> (i32, i32) {
    %c0_i32 = arith.constant 0 : i32
    return %arg2, %arg1 : i32, i32
  }
  func.func @transform_2(%arg0: i32, %arg1: i32, %arg2: i32) -> (i32, i32) {
    %c0_i32 = arith.constant 0 : i32
    %c0_i32_0 = arith.constant 0 : i32
    return %c0_i32, %arg1 : i32, i32
  }
  func.func @transform_3(%arg0: i32, %arg1: i32, %arg2: i32) -> (i32, i32) {
    %c0_i32 = arith.constant 0 : i32
    %c0_i32_0 = arith.constant 0 : i32
    return %c0_i32, %arg1 : i32, i32
  }
  func.func @transform_4(%arg0: i32, %arg1: i32, %arg2: i32) -> (i32, i32) {
    %c0_i32 = arith.constant 0 : i32
    return %arg0, %arg1 : i32, i32
  }
  func.func @transform_5(%arg0: i32, %arg1: i32, %arg2: i32) -> (i32, i32) {
    %c0_i32 = arith.constant 0 : i32
    return %arg0, %arg1 : i32, i32
  }
}

module attributes {stable_mosaic.version = 11 : i64} {
  func.func @_fused_mm_kernel(%arg0: i32, %arg1: i32, %arg2: i32, %arg3: memref<16x384xbf16, #tpu.memory_space<vmem>>, %arg4: memref<384x256xbf16, #tpu.memory_space<vmem>>, %arg5: memref<1x256xf32, #tpu.memory_space<vmem>>, %arg6: memref<1x256xf32, #tpu.memory_space<vmem>>, %arg7: memref<16x256xf32, #tpu.memory_space<vmem>>, %arg8: memref<16x256xf32, #tpu.memory_space<vmem>>) attributes {dimension_semantics = [#tpu.dimension_semantics<parallel>, #tpu.dimension_semantics<parallel>, #tpu.dimension_semantics<arbitrary>], iteration_bounds = array<i64: 1, 1, 6>, scalar_prefetch = 0 : i64, scratch_operands = 1 : i64, tpu.core_type = #tpu.core_type<tc>, window_params = [{transform_indices = @transform_0, window_bounds = array<i64: 16, 384>}, {transform_indices = @transform_1, window_bounds = array<i64: 384, 256>}, {transform_indices = @transform_2, window_bounds = array<i64: 1, 256>}, {transform_indices = @transform_3, window_bounds = array<i64: 1, 256>}, {transform_indices = @transform_4, window_bounds = array<i64: 16, 256>}]} {
    %c0_i32 = arith.constant 0 : i32
    %0 = arith.cmpi eq, %arg2, %c0_i32 : i32
    %1 = arith.extui %0 : i1 to i32
    %c0_i32_0 = arith.constant 0 : i32
    %2 = arith.cmpi ne, %1, %c0_i32_0 : i32
    scf.if %2 {
      %cst_9 = arith.constant 0.000000e+00 : f32
      %12 = vector.broadcast %cst_9 : f32 to vector<16x256xf32>
      %c0_10 = arith.constant 0 : index
      %c0_11 = arith.constant 0 : index
      %13 = vector.load %arg8[%c0_10, %c0_11] : memref<16x256xf32, #tpu.memory_space<vmem>>, vector<16x256xf32>
      tpu.vector_store %arg8[%c0_10, %c0_11], %12 {strides = array<i32>} : memref<16x256xf32, #tpu.memory_space<vmem>>, vector<16x256xf32>,
    } else {
    }
    %c0 = arith.constant 0 : index
    %c0_1 = arith.constant 0 : index
    %3 = vector.load %arg8[%c0, %c0_1] : memref<16x256xf32, #tpu.memory_space<vmem>>, vector<16x256xf32>
    %c0_2 = arith.constant 0 : index
    %c0_3 = arith.constant 0 : index
    %4 = vector.load %arg3[%c0_2, %c0_3] : memref<16x384xbf16, #tpu.memory_space<vmem>>, vector<16x384xbf16>
    %c0_4 = arith.constant 0 : index
    %c0_5 = arith.constant 0 : index
    %5 = vector.load %arg4[%c0_4, %c0_5] : memref<384x256xbf16, #tpu.memory_space<vmem>>, vector<384x256xbf16>
    %cst = arith.constant dense<0.000000e+00> : vector<16x256xf32>
    %6 = tpu.matmul %4, %5, %cst {dimension_numbers = #tpu.dot_dimension_numbers<[1], [0], [0], [1], [0, 0, 1, 1], [], []>} : vector<16x384xbf16>, vector<384x256xbf16>, vector<16x256xf32> -> vector<16x256xf32>
    %7 = arith.addf %3, %6 : vector<16x256xf32>
    %c0_6 = arith.constant 0 : index
    %c0_7 = arith.constant 0 : index
    %8 = vector.load %arg8[%c0_6, %c0_7] : memref<16x256xf32, #tpu.memory_space<vmem>>, vector<16x256xf32>
    tpu.vector_store %arg8[%c0_6, %c0_7], %7 {strides = array<i32>} : memref<16x256xf32, #tpu.memory_space<vmem>>, vector<16x256xf32>,
    %c5_i32 = arith.constant 5 : i32
    %9 = arith.cmpi eq, %arg2, %c5_i32 : i32
    %10 = arith.extui %9 : i1 to i32
    %c0_i32_8 = arith.constant 0 : i32
    %11 = arith.cmpi ne, %10, %c0_i32_8 : i32
    scf.if %11 {
      %c0_9 = arith.constant 0 : index
      %c0_10 = arith.constant 0 : index
      %12 = vector.load %arg8[%c0_9, %c0_10] : memref<16x256xf32, #tpu.memory_space<vmem>>, vector<16x256xf32>
      %c0_11 = arith.constant 0 : index
      %c0_12 = arith.constant 0 : index
      %13 = vector.load %arg5[%c0_11, %c0_12] : memref<1x256xf32, #tpu.memory_space<vmem>>, vector<1x256xf32>
      %14 = vector.broadcast %13 : vector<1x256xf32> to vector<16x256xf32>
      %15 = arith.mulf %12, %14 : vector<16x256xf32>
      %c0_13 = arith.constant 0 : index
      %c0_14 = arith.constant 0 : index
      %16 = vector.load %arg6[%c0_13, %c0_14] : memref<1x256xf32, #tpu.memory_space<vmem>>, vector<1x256xf32>
      %17 = vector.broadcast %16 : vector<1x256xf32> to vector<16x256xf32>
      %18 = arith.addf %15, %17 : vector<16x256xf32>
      %cst_15 = arith.constant 0.000000e+00 : f32
      %19 = vector.broadcast %cst_15 : f32 to vector<16x256xf32>
      %20 = arith.maximumf %18, %19 : vector<16x256xf32>
      %c0_16 = arith.constant 0 : index
      %c0_17 = arith.constant 0 : index
      %21 = vector.load %arg7[%c0_16, %c0_17] : memref<16x256xf32, #tpu.memory_space<vmem>>, vector<16x256xf32>
      tpu.vector_store %arg7[%c0_16, %c0_17], %20 {strides = array<i32>} : memref<16x256xf32, #tpu.memory_space<vmem>>, vector<16x256xf32>,
    } else {
    }
    return
  }
  func.func @transform_0(%arg0: i32, %arg1: i32, %arg2: i32) -> (i32, i32) {
    %c0_i32 = arith.constant 0 : i32
    return %arg0, %arg2 : i32, i32
  }
  func.func @transform_1(%arg0: i32, %arg1: i32, %arg2: i32) -> (i32, i32) {
    %c0_i32 = arith.constant 0 : i32
    return %arg2, %arg1 : i32, i32
  }
  func.func @transform_2(%arg0: i32, %arg1: i32, %arg2: i32) -> (i32, i32) {
    %c0_i32 = arith.constant 0 : i32
    %c0_i32_0 = arith.constant 0 : i32
    return %c0_i32, %arg1 : i32, i32
  }
  func.func @transform_3(%arg0: i32, %arg1: i32, %arg2: i32) -> (i32, i32) {
    %c0_i32 = arith.constant 0 : i32
    %c0_i32_0 = arith.constant 0 : i32
    return %c0_i32, %arg1 : i32, i32
  }
  func.func @transform_4(%arg0: i32, %arg1: i32, %arg2: i32) -> (i32, i32) {
    %c0_i32 = arith.constant 0 : i32
    return %arg0, %arg1 : i32, i32
  }
}

module attributes {stable_mosaic.version = 11 : i64} {
  func.func @_fused_mm_kernel(%arg0: i32, %arg1: i32, %arg2: i32, %arg3: memref<16x384xbf16, #tpu.memory_space<vmem>>, %arg4: memref<384x256xbf16, #tpu.memory_space<vmem>>, %arg5: memref<1x256xf32, #tpu.memory_space<vmem>>, %arg6: memref<1x256xf32, #tpu.memory_space<vmem>>, %arg7: memref<16x256xf32, #tpu.memory_space<vmem>>, %arg8: memref<16x256xf32, #tpu.memory_space<vmem>>) attributes {dimension_semantics = [#tpu.dimension_semantics<parallel>, #tpu.dimension_semantics<parallel>, #tpu.dimension_semantics<arbitrary>], iteration_bounds = array<i64: 1, 2, 6>, scalar_prefetch = 0 : i64, scratch_operands = 1 : i64, tpu.core_type = #tpu.core_type<tc>, window_params = [{transform_indices = @transform_0, window_bounds = array<i64: 16, 384>}, {transform_indices = @transform_1, window_bounds = array<i64: 384, 256>}, {transform_indices = @transform_2, window_bounds = array<i64: 1, 256>}, {transform_indices = @transform_3, window_bounds = array<i64: 1, 256>}, {transform_indices = @transform_4, window_bounds = array<i64: 16, 256>}]} {
    %c0_i32 = arith.constant 0 : i32
    %0 = arith.cmpi eq, %arg2, %c0_i32 : i32
    %1 = arith.extui %0 : i1 to i32
    %c0_i32_0 = arith.constant 0 : i32
    %2 = arith.cmpi ne, %1, %c0_i32_0 : i32
    scf.if %2 {
      %cst_9 = arith.constant 0.000000e+00 : f32
      %12 = vector.broadcast %cst_9 : f32 to vector<16x256xf32>
      %c0_10 = arith.constant 0 : index
      %c0_11 = arith.constant 0 : index
      %13 = vector.load %arg8[%c0_10, %c0_11] : memref<16x256xf32, #tpu.memory_space<vmem>>, vector<16x256xf32>
      tpu.vector_store %arg8[%c0_10, %c0_11], %12 {strides = array<i32>} : memref<16x256xf32, #tpu.memory_space<vmem>>, vector<16x256xf32>,
    } else {
    }
    %c0 = arith.constant 0 : index
    %c0_1 = arith.constant 0 : index
    %3 = vector.load %arg8[%c0, %c0_1] : memref<16x256xf32, #tpu.memory_space<vmem>>, vector<16x256xf32>
    %c0_2 = arith.constant 0 : index
    %c0_3 = arith.constant 0 : index
    %4 = vector.load %arg3[%c0_2, %c0_3] : memref<16x384xbf16, #tpu.memory_space<vmem>>, vector<16x384xbf16>
    %c0_4 = arith.constant 0 : index
    %c0_5 = arith.constant 0 : index
    %5 = vector.load %arg4[%c0_4, %c0_5] : memref<384x256xbf16, #tpu.memory_space<vmem>>, vector<384x256xbf16>
    %cst = arith.constant dense<0.000000e+00> : vector<16x256xf32>
    %6 = tpu.matmul %4, %5, %cst {dimension_numbers = #tpu.dot_dimension_numbers<[1], [0], [0], [1], [0, 0, 1, 1], [], []>} : vector<16x384xbf16>, vector<384x256xbf16>, vector<16x256xf32> -> vector<16x256xf32>
    %7 = arith.addf %3, %6 : vector<16x256xf32>
    %c0_6 = arith.constant 0 : index
    %c0_7 = arith.constant 0 : index
    %8 = vector.load %arg8[%c0_6, %c0_7] : memref<16x256xf32, #tpu.memory_space<vmem>>, vector<16x256xf32>
    tpu.vector_store %arg8[%c0_6, %c0_7], %7 {strides = array<i32>} : memref<16x256xf32, #tpu.memory_space<vmem>>, vector<16x256xf32>,
    %c5_i32 = arith.constant 5 : i32
    %9 = arith.cmpi eq, %arg2, %c5_i32 : i32
    %10 = arith.extui %9 : i1 to i32
    %c0_i32_8 = arith.constant 0 : i32
    %11 = arith.cmpi ne, %10, %c0_i32_8 : i32
    scf.if %11 {
      %c0_9 = arith.constant 0 : index
      %c0_10 = arith.constant 0 : index
      %12 = vector.load %arg8[%c0_9, %c0_10] : memref<16x256xf32, #tpu.memory_space<vmem>>, vector<16x256xf32>
      %c0_11 = arith.constant 0 : index
      %c0_12 = arith.constant 0 : index
      %13 = vector.load %arg5[%c0_11, %c0_12] : memref<1x256xf32, #tpu.memory_space<vmem>>, vector<1x256xf32>
      %14 = vector.broadcast %13 : vector<1x256xf32> to vector<16x256xf32>
      %15 = arith.mulf %12, %14 : vector<16x256xf32>
      %c0_13 = arith.constant 0 : index
      %c0_14 = arith.constant 0 : index
      %16 = vector.load %arg6[%c0_13, %c0_14] : memref<1x256xf32, #tpu.memory_space<vmem>>, vector<1x256xf32>
      %17 = vector.broadcast %16 : vector<1x256xf32> to vector<16x256xf32>
      %18 = arith.addf %15, %17 : vector<16x256xf32>
      %cst_15 = arith.constant 0.000000e+00 : f32
      %19 = vector.broadcast %cst_15 : f32 to vector<16x256xf32>
      %20 = arith.maximumf %18, %19 : vector<16x256xf32>
      %c0_16 = arith.constant 0 : index
      %c0_17 = arith.constant 0 : index
      %21 = vector.load %arg7[%c0_16, %c0_17] : memref<16x256xf32, #tpu.memory_space<vmem>>, vector<16x256xf32>
      tpu.vector_store %arg7[%c0_16, %c0_17], %20 {strides = array<i32>} : memref<16x256xf32, #tpu.memory_space<vmem>>, vector<16x256xf32>,
    } else {
    }
    return
  }
  func.func @transform_0(%arg0: i32, %arg1: i32, %arg2: i32) -> (i32, i32) {
    %c0_i32 = arith.constant 0 : i32
    return %arg0, %arg2 : i32, i32
  }
  func.func @transform_1(%arg0: i32, %arg1: i32, %arg2: i32) -> (i32, i32) {
    %c0_i32 = arith.constant 0 : i32
    return %arg2, %arg1 : i32, i32
  }
  func.func @transform_2(%arg0: i32, %arg1: i32, %arg2: i32) -> (i32, i32) {
    %c0_i32 = arith.constant 0 : i32
    %c0_i32_0 = arith.constant 0 : i32
    return %c0_i32, %arg1 : i32, i32
  }
  func.func @transform_3(%arg0: i32, %arg1: i32, %arg2: i32) -> (i32, i32) {
    %c0_i32 = arith.constant 0 : i32
    %c0_i32_0 = arith.constant 0 : i32
    return %c0_i32, %arg1 : i32, i32
  }
  func.func @transform_4(%arg0: i32, %arg1: i32, %arg2: i32) -> (i32, i32) {
    %c0_i32 = arith.constant 0 : i32
    return %arg0, %arg1 : i32, i32
  }
}

module attributes {stable_mosaic.version = 11 : i64} {
  func.func @_fused_mm_kernel(%arg0: i32, %arg1: i32, %arg2: i32, %arg3: memref<16x256xbf16, #tpu.memory_space<vmem>>, %arg4: memref<256x256xbf16, #tpu.memory_space<vmem>>, %arg5: memref<1x256xf32, #tpu.memory_space<vmem>>, %arg6: memref<1x256xf32, #tpu.memory_space<vmem>>, %arg7: memref<16x256xf32, #tpu.memory_space<vmem>>, %arg8: memref<16x256xf32, #tpu.memory_space<vmem>>) attributes {dimension_semantics = [#tpu.dimension_semantics<parallel>, #tpu.dimension_semantics<parallel>, #tpu.dimension_semantics<arbitrary>], iteration_bounds = array<i64: 1, 2, 1>, scalar_prefetch = 0 : i64, scratch_operands = 1 : i64, tpu.core_type = #tpu.core_type<tc>, window_params = [{transform_indices = @transform_0, window_bounds = array<i64: 16, 256>}, {transform_indices = @transform_1, window_bounds = array<i64: 256, 256>}, {transform_indices = @transform_2, window_bounds = array<i64: 1, 256>}, {transform_indices = @transform_3, window_bounds = array<i64: 1, 256>}, {transform_indices = @transform_4, window_bounds = array<i64: 16, 256>}]} {
    %c0_i32 = arith.constant 0 : i32
    %0 = arith.cmpi eq, %arg2, %c0_i32 : i32
    %1 = arith.extui %0 : i1 to i32
    %c0_i32_0 = arith.constant 0 : i32
    %2 = arith.cmpi ne, %1, %c0_i32_0 : i32
    scf.if %2 {
      %cst_10 = arith.constant 0.000000e+00 : f32
      %12 = vector.broadcast %cst_10 : f32 to vector<16x256xf32>
      %c0_11 = arith.constant 0 : index
      %c0_12 = arith.constant 0 : index
      %13 = vector.load %arg8[%c0_11, %c0_12] : memref<16x256xf32, #tpu.memory_space<vmem>>, vector<16x256xf32>
      tpu.vector_store %arg8[%c0_11, %c0_12], %12 {strides = array<i32>} : memref<16x256xf32, #tpu.memory_space<vmem>>, vector<16x256xf32>,
    } else {
    }
    %c0 = arith.constant 0 : index
    %c0_1 = arith.constant 0 : index
    %3 = vector.load %arg8[%c0, %c0_1] : memref<16x256xf32, #tpu.memory_space<vmem>>, vector<16x256xf32>
    %c0_2 = arith.constant 0 : index
    %c0_3 = arith.constant 0 : index
    %4 = vector.load %arg3[%c0_2, %c0_3] : memref<16x256xbf16, #tpu.memory_space<vmem>>, vector<16x256xbf16>
    %c0_4 = arith.constant 0 : index
    %c0_5 = arith.constant 0 : index
    %5 = vector.load %arg4[%c0_4, %c0_5] : memref<256x256xbf16, #tpu.memory_space<vmem>>, vector<256x256xbf16>
    %cst = arith.constant dense<0.000000e+00> : vector<16x256xf32>
    %6 = tpu.matmul %4, %5, %cst {dimension_numbers = #tpu.dot_dimension_numbers<[1], [0], [0], [1], [0, 0, 1, 1], [], []>} : vector<16x256xbf16>, vector<256x256xbf16>, vector<16x256xf32> -> vector<16x256xf32>
    %7 = arith.addf %3, %6 : vector<16x256xf32>
    %c0_6 = arith.constant 0 : index
    %c0_7 = arith.constant 0 : index
    %8 = vector.load %arg8[%c0_6, %c0_7] : memref<16x256xf32, #tpu.memory_space<vmem>>, vector<16x256xf32>
    tpu.vector_store %arg8[%c0_6, %c0_7], %7 {strides = array<i32>} : memref<16x256xf32, #tpu.memory_space<vmem>>, vector<16x256xf32>,
    %c0_i32_8 = arith.constant 0 : i32
    %9 = arith.cmpi eq, %arg2, %c0_i32_8 : i32
    %10 = arith.extui %9 : i1 to i32
    %c0_i32_9 = arith.constant 0 : i32
    %11 = arith.cmpi ne, %10, %c0_i32_9 : i32
    scf.if %11 {
      %c0_10 = arith.constant 0 : index
      %c0_11 = arith.constant 0 : index
      %12 = vector.load %arg8[%c0_10, %c0_11] : memref<16x256xf32, #tpu.memory_space<vmem>>, vector<16x256xf32>
      %c0_12 = arith.constant 0 : index
      %c0_13 = arith.constant 0 : index
      %13 = vector.load %arg5[%c0_12, %c0_13] : memref<1x256xf32, #tpu.memory_space<vmem>>, vector<1x256xf32>
      %14 = vector.broadcast %13 : vector<1x256xf32> to vector<16x256xf32>
      %15 = arith.mulf %12, %14 : vector<16x256xf32>
      %c0_14 = arith.constant 0 : index
      %c0_15 = arith.constant 0 : index
      %16 = vector.load %arg6[%c0_14, %c0_15] : memref<1x256xf32, #tpu.memory_space<vmem>>, vector<1x256xf32>
      %17 = vector.broadcast %16 : vector<1x256xf32> to vector<16x256xf32>
      %18 = arith.addf %15, %17 : vector<16x256xf32>
      %c0_16 = arith.constant 0 : index
      %c0_17 = arith.constant 0 : index
      %19 = vector.load %arg7[%c0_16, %c0_17] : memref<16x256xf32, #tpu.memory_space<vmem>>, vector<16x256xf32>
      tpu.vector_store %arg7[%c0_16, %c0_17], %18 {strides = array<i32>} : memref<16x256xf32, #tpu.memory_space<vmem>>, vector<16x256xf32>,
    } else {
    }
    return
  }
  func.func @transform_0(%arg0: i32, %arg1: i32, %arg2: i32) -> (i32, i32) {
    %c0_i32 = arith.constant 0 : i32
    return %arg0, %arg2 : i32, i32
  }
  func.func @transform_1(%arg0: i32, %arg1: i32, %arg2: i32) -> (i32, i32) {
    %c0_i32 = arith.constant 0 : i32
    return %arg2, %arg1 : i32, i32
  }
  func.func @transform_2(%arg0: i32, %arg1: i32, %arg2: i32) -> (i32, i32) {
    %c0_i32 = arith.constant 0 : i32
    %c0_i32_0 = arith.constant 0 : i32
    return %c0_i32, %arg1 : i32, i32
  }
  func.func @transform_3(%arg0: i32, %arg1: i32, %arg2: i32) -> (i32, i32) {
    %c0_i32 = arith.constant 0 : i32
    %c0_i32_0 = arith.constant 0 : i32
    return %c0_i32, %arg1 : i32, i32
  }
  func.func @transform_4(%arg0: i32, %arg1: i32, %arg2: i32) -> (i32, i32) {
    %c0_i32 = arith.constant 0 : i32
    return %arg0, %arg1 : i32, i32
  }
}

module attributes {stable_mosaic.version = 11 : i64} {
  func.func @_fused_mm_res_kernel(%arg0: i32, %arg1: i32, %arg2: i32, %arg3: memref<16x512xbf16, #tpu.memory_space<vmem>>, %arg4: memref<512x256xbf16, #tpu.memory_space<vmem>>, %arg5: memref<1x256xf32, #tpu.memory_space<vmem>>, %arg6: memref<1x256xf32, #tpu.memory_space<vmem>>, %arg7: memref<16x256xf32, #tpu.memory_space<vmem>>, %arg8: memref<16x256xf32, #tpu.memory_space<vmem>>, %arg9: memref<16x256xf32, #tpu.memory_space<vmem>>) attributes {dimension_semantics = [#tpu.dimension_semantics<parallel>, #tpu.dimension_semantics<parallel>, #tpu.dimension_semantics<arbitrary>], iteration_bounds = array<i64: 1, 2, 9>, scalar_prefetch = 0 : i64, scratch_operands = 1 : i64, tpu.core_type = #tpu.core_type<tc>, window_params = [{transform_indices = @transform_0, window_bounds = array<i64: 16, 512>}, {transform_indices = @transform_1, window_bounds = array<i64: 512, 256>}, {transform_indices = @transform_2, window_bounds = array<i64: 1, 256>}, {transform_indices = @transform_3, window_bounds = array<i64: 1, 256>}, {transform_indices = @transform_4, window_bounds = array<i64: 16, 256>}, {transform_indices = @transform_5, window_bounds = array<i64: 16, 256>}]} {
    %c0_i32 = arith.constant 0 : i32
    %0 = arith.cmpi eq, %arg2, %c0_i32 : i32
    %1 = arith.extui %0 : i1 to i32
    %c0_i32_0 = arith.constant 0 : i32
    %2 = arith.cmpi ne, %1, %c0_i32_0 : i32
    scf.if %2 {
      %cst_9 = arith.constant 0.000000e+00 : f32
      %12 = vector.broadcast %cst_9 : f32 to vector<16x256xf32>
      %c0_10 = arith.constant 0 : index
      %c0_11 = arith.constant 0 : index
      %13 = vector.load %arg9[%c0_10, %c0_11] : memref<16x256xf32, #tpu.memory_space<vmem>>, vector<16x256xf32>
      tpu.vector_store %arg9[%c0_10, %c0_11], %12 {strides = array<i32>} : memref<16x256xf32, #tpu.memory_space<vmem>>, vector<16x256xf32>,
    } else {
    }
    %c0 = arith.constant 0 : index
    %c0_1 = arith.constant 0 : index
    %3 = vector.load %arg9[%c0, %c0_1] : memref<16x256xf32, #tpu.memory_space<vmem>>, vector<16x256xf32>
    %c0_2 = arith.constant 0 : index
    %c0_3 = arith.constant 0 : index
    %4 = vector.load %arg3[%c0_2, %c0_3] : memref<16x512xbf16, #tpu.memory_space<vmem>>, vector<16x512xbf16>
    %c0_4 = arith.constant 0 : index
    %c0_5 = arith.constant 0 : index
    %5 = vector.load %arg4[%c0_4, %c0_5] : memref<512x256xbf16, #tpu.memory_space<vmem>>, vector<512x256xbf16>
    %cst = arith.constant dense<0.000000e+00> : vector<16x256xf32>
    %6 = tpu.matmul %4, %5, %cst {dimension_numbers = #tpu.dot_dimension_numbers<[1], [0], [0], [1], [0, 0, 1, 1], [], []>} : vector<16x512xbf16>, vector<512x256xbf16>, vector<16x256xf32> -> vector<16x256xf32>
    %7 = arith.addf %3, %6 : vector<16x256xf32>
    %c0_6 = arith.constant 0 : index
    %c0_7 = arith.constant 0 : index
    %8 = vector.load %arg9[%c0_6, %c0_7] : memref<16x256xf32, #tpu.memory_space<vmem>>, vector<16x256xf32>
    tpu.vector_store %arg9[%c0_6, %c0_7], %7 {strides = array<i32>} : memref<16x256xf32, #tpu.memory_space<vmem>>, vector<16x256xf32>,
    %c8_i32 = arith.constant 8 : i32
    %9 = arith.cmpi eq, %arg2, %c8_i32 : i32
    %10 = arith.extui %9 : i1 to i32
    %c0_i32_8 = arith.constant 0 : i32
    %11 = arith.cmpi ne, %10, %c0_i32_8 : i32
    scf.if %11 {
      %c0_9 = arith.constant 0 : index
      %c0_10 = arith.constant 0 : index
      %12 = vector.load %arg9[%c0_9, %c0_10] : memref<16x256xf32, #tpu.memory_space<vmem>>, vector<16x256xf32>
      %c0_11 = arith.constant 0 : index
      %c0_12 = arith.constant 0 : index
      %13 = vector.load %arg5[%c0_11, %c0_12] : memref<1x256xf32, #tpu.memory_space<vmem>>, vector<1x256xf32>
      %14 = vector.broadcast %13 : vector<1x256xf32> to vector<16x256xf32>
      %15 = arith.mulf %12, %14 : vector<16x256xf32>
      %c0_13 = arith.constant 0 : index
      %c0_14 = arith.constant 0 : index
      %16 = vector.load %arg6[%c0_13, %c0_14] : memref<1x256xf32, #tpu.memory_space<vmem>>, vector<1x256xf32>
      %17 = vector.broadcast %16 : vector<1x256xf32> to vector<16x256xf32>
      %18 = arith.addf %15, %17 : vector<16x256xf32>
      %c0_15 = arith.constant 0 : index
      %c0_16 = arith.constant 0 : index
      %19 = vector.load %arg7[%c0_15, %c0_16] : memref<16x256xf32, #tpu.memory_space<vmem>>, vector<16x256xf32>
      %20 = arith.addf %18, %19 : vector<16x256xf32>
      %cst_17 = arith.constant 0.000000e+00 : f32
      %21 = vector.broadcast %cst_17 : f32 to vector<16x256xf32>
      %22 = arith.maximumf %20, %21 : vector<16x256xf32>
      %c0_18 = arith.constant 0 : index
      %c0_19 = arith.constant 0 : index
      %23 = vector.load %arg8[%c0_18, %c0_19] : memref<16x256xf32, #tpu.memory_space<vmem>>, vector<16x256xf32>
      tpu.vector_store %arg8[%c0_18, %c0_19], %22 {strides = array<i32>} : memref<16x256xf32, #tpu.memory_space<vmem>>, vector<16x256xf32>,
    } else {
    }
    return
  }
  func.func @transform_0(%arg0: i32, %arg1: i32, %arg2: i32) -> (i32, i32) {
    %c0_i32 = arith.constant 0 : i32
    return %arg0, %arg2 : i32, i32
  }
  func.func @transform_1(%arg0: i32, %arg1: i32, %arg2: i32) -> (i32, i32) {
    %c0_i32 = arith.constant 0 : i32
    return %arg2, %arg1 : i32, i32
  }
  func.func @transform_2(%arg0: i32, %arg1: i32, %arg2: i32) -> (i32, i32) {
    %c0_i32 = arith.constant 0 : i32
    %c0_i32_0 = arith.constant 0 : i32
    return %c0_i32, %arg1 : i32, i32
  }
  func.func @transform_3(%arg0: i32, %arg1: i32, %arg2: i32) -> (i32, i32) {
    %c0_i32 = arith.constant 0 : i32
    %c0_i32_0 = arith.constant 0 : i32
    return %c0_i32, %arg1 : i32, i32
  }
  func.func @transform_4(%arg0: i32, %arg1: i32, %arg2: i32) -> (i32, i32) {
    %c0_i32 = arith.constant 0 : i32
    return %arg0, %arg1 : i32, i32
  }
  func.func @transform_5(%arg0: i32, %arg1: i32, %arg2: i32) -> (i32, i32) {
    %c0_i32 = arith.constant 0 : i32
    return %arg0, %arg1 : i32, i32
  }
}

module attributes {stable_mosaic.version = 11 : i64} {
  func.func @_fused_mm_kernel(%arg0: i32, %arg1: i32, %arg2: i32, %arg3: memref<16x512xbf16, #tpu.memory_space<vmem>>, %arg4: memref<512x256xbf16, #tpu.memory_space<vmem>>, %arg5: memref<1x256xf32, #tpu.memory_space<vmem>>, %arg6: memref<1x256xf32, #tpu.memory_space<vmem>>, %arg7: memref<16x256xf32, #tpu.memory_space<vmem>>, %arg8: memref<16x256xf32, #tpu.memory_space<vmem>>) attributes {dimension_semantics = [#tpu.dimension_semantics<parallel>, #tpu.dimension_semantics<parallel>, #tpu.dimension_semantics<arbitrary>], iteration_bounds = array<i64: 1, 2, 9>, scalar_prefetch = 0 : i64, scratch_operands = 1 : i64, tpu.core_type = #tpu.core_type<tc>, window_params = [{transform_indices = @transform_0, window_bounds = array<i64: 16, 512>}, {transform_indices = @transform_1, window_bounds = array<i64: 512, 256>}, {transform_indices = @transform_2, window_bounds = array<i64: 1, 256>}, {transform_indices = @transform_3, window_bounds = array<i64: 1, 256>}, {transform_indices = @transform_4, window_bounds = array<i64: 16, 256>}]} {
    %c0_i32 = arith.constant 0 : i32
    %0 = arith.cmpi eq, %arg2, %c0_i32 : i32
    %1 = arith.extui %0 : i1 to i32
    %c0_i32_0 = arith.constant 0 : i32
    %2 = arith.cmpi ne, %1, %c0_i32_0 : i32
    scf.if %2 {
      %cst_9 = arith.constant 0.000000e+00 : f32
      %12 = vector.broadcast %cst_9 : f32 to vector<16x256xf32>
      %c0_10 = arith.constant 0 : index
      %c0_11 = arith.constant 0 : index
      %13 = vector.load %arg8[%c0_10, %c0_11] : memref<16x256xf32, #tpu.memory_space<vmem>>, vector<16x256xf32>
      tpu.vector_store %arg8[%c0_10, %c0_11], %12 {strides = array<i32>} : memref<16x256xf32, #tpu.memory_space<vmem>>, vector<16x256xf32>,
    } else {
    }
    %c0 = arith.constant 0 : index
    %c0_1 = arith.constant 0 : index
    %3 = vector.load %arg8[%c0, %c0_1] : memref<16x256xf32, #tpu.memory_space<vmem>>, vector<16x256xf32>
    %c0_2 = arith.constant 0 : index
    %c0_3 = arith.constant 0 : index
    %4 = vector.load %arg3[%c0_2, %c0_3] : memref<16x512xbf16, #tpu.memory_space<vmem>>, vector<16x512xbf16>
    %c0_4 = arith.constant 0 : index
    %c0_5 = arith.constant 0 : index
    %5 = vector.load %arg4[%c0_4, %c0_5] : memref<512x256xbf16, #tpu.memory_space<vmem>>, vector<512x256xbf16>
    %cst = arith.constant dense<0.000000e+00> : vector<16x256xf32>
    %6 = tpu.matmul %4, %5, %cst {dimension_numbers = #tpu.dot_dimension_numbers<[1], [0], [0], [1], [0, 0, 1, 1], [], []>} : vector<16x512xbf16>, vector<512x256xbf16>, vector<16x256xf32> -> vector<16x256xf32>
    %7 = arith.addf %3, %6 : vector<16x256xf32>
    %c0_6 = arith.constant 0 : index
    %c0_7 = arith.constant 0 : index
    %8 = vector.load %arg8[%c0_6, %c0_7] : memref<16x256xf32, #tpu.memory_space<vmem>>, vector<16x256xf32>
    tpu.vector_store %arg8[%c0_6, %c0_7], %7 {strides = array<i32>} : memref<16x256xf32, #tpu.memory_space<vmem>>, vector<16x256xf32>,
    %c8_i32 = arith.constant 8 : i32
    %9 = arith.cmpi eq, %arg2, %c8_i32 : i32
    %10 = arith.extui %9 : i1 to i32
    %c0_i32_8 = arith.constant 0 : i32
    %11 = arith.cmpi ne, %10, %c0_i32_8 : i32
    scf.if %11 {
      %c0_9 = arith.constant 0 : index
      %c0_10 = arith.constant 0 : index
      %12 = vector.load %arg8[%c0_9, %c0_10] : memref<16x256xf32, #tpu.memory_space<vmem>>, vector<16x256xf32>
      %c0_11 = arith.constant 0 : index
      %c0_12 = arith.constant 0 : index
      %13 = vector.load %arg5[%c0_11, %c0_12] : memref<1x256xf32, #tpu.memory_space<vmem>>, vector<1x256xf32>
      %14 = vector.broadcast %13 : vector<1x256xf32> to vector<16x256xf32>
      %15 = arith.mulf %12, %14 : vector<16x256xf32>
      %c0_13 = arith.constant 0 : index
      %c0_14 = arith.constant 0 : index
      %16 = vector.load %arg6[%c0_13, %c0_14] : memref<1x256xf32, #tpu.memory_space<vmem>>, vector<1x256xf32>
      %17 = vector.broadcast %16 : vector<1x256xf32> to vector<16x256xf32>
      %18 = arith.addf %15, %17 : vector<16x256xf32>
      %cst_15 = arith.constant 0.000000e+00 : f32
      %19 = vector.broadcast %cst_15 : f32 to vector<16x256xf32>
      %20 = arith.maximumf %18, %19 : vector<16x256xf32>
      %c0_16 = arith.constant 0 : index
      %c0_17 = arith.constant 0 : index
      %21 = vector.load %arg7[%c0_16, %c0_17] : memref<16x256xf32, #tpu.memory_space<vmem>>, vector<16x256xf32>
      tpu.vector_store %arg7[%c0_16, %c0_17], %20 {strides = array<i32>} : memref<16x256xf32, #tpu.memory_space<vmem>>, vector<16x256xf32>,
    } else {
    }
    return
  }
  func.func @transform_0(%arg0: i32, %arg1: i32, %arg2: i32) -> (i32, i32) {
    %c0_i32 = arith.constant 0 : i32
    return %arg0, %arg2 : i32, i32
  }
  func.func @transform_1(%arg0: i32, %arg1: i32, %arg2: i32) -> (i32, i32) {
    %c0_i32 = arith.constant 0 : i32
    return %arg2, %arg1 : i32, i32
  }
  func.func @transform_2(%arg0: i32, %arg1: i32, %arg2: i32) -> (i32, i32) {
    %c0_i32 = arith.constant 0 : i32
    %c0_i32_0 = arith.constant 0 : i32
    return %c0_i32, %arg1 : i32, i32
  }
  func.func @transform_3(%arg0: i32, %arg1: i32, %arg2: i32) -> (i32, i32) {
    %c0_i32 = arith.constant 0 : i32
    %c0_i32_0 = arith.constant 0 : i32
    return %c0_i32, %arg1 : i32, i32
  }
  func.func @transform_4(%arg0: i32, %arg1: i32, %arg2: i32) -> (i32, i32) {
    %c0_i32 = arith.constant 0 : i32
    return %arg0, %arg1 : i32, i32
  }
}

module attributes {stable_mosaic.version = 11 : i64} {
  func.func @_head_kernel(%arg0: memref<2x1x512xf32, #tpu.memory_space<vmem>>, %arg1: memref<512x128xf32, #tpu.memory_space<vmem>>, %arg2: memref<1x128xf32, #tpu.memory_space<vmem>>, %arg3: memref<2x128xf32, #tpu.memory_space<vmem>>) attributes {dimension_semantics = [], scalar_prefetch = 0 : i64, scratch_operands = 0 : i64, tpu.core_type = #tpu.core_type<tc>} {
    %c0 = arith.constant 0 : index
    %c0_0 = arith.constant 0 : index
    %c0_1 = arith.constant 0 : index
    %0 = vector.load %arg0[%c0, %c0_0, %c0_1] : memref<2x1x512xf32, #tpu.memory_space<vmem>>, vector<2x1x512xf32>
    %cst = arith.constant dense<0.000000e+00> : vector<2x512xf32>
    %1 = vector.multi_reduction <add>, %0, %cst [1] : vector<2x1x512xf32> to vector<2x512xf32>
    %cst_2 = arith.constant 1.000000e+00 : f32
    %2 = vector.broadcast %cst_2 : f32 to vector<2x512xf32>
    %3 = arith.divf %1, %2 : vector<2x512xf32>
    %c0_3 = arith.constant 0 : index
    %c0_4 = arith.constant 0 : index
    %4 = vector.load %arg1[%c0_3, %c0_4] : memref<512x128xf32, #tpu.memory_space<vmem>>, vector<512x128xf32>
    %cst_5 = arith.constant dense<0.000000e+00> : vector<2x128xf32>
    %5 = tpu.matmul %3, %4, %cst_5 {dimension_numbers = #tpu.dot_dimension_numbers<[1], [0], [0], [1], [0, 0, 1, 1], [], []>} : vector<2x512xf32>, vector<512x128xf32>, vector<2x128xf32> -> vector<2x128xf32>
    %c0_6 = arith.constant 0 : index
    %c0_7 = arith.constant 0 : index
    %6 = vector.load %arg2[%c0_6, %c0_7] : memref<1x128xf32, #tpu.memory_space<vmem>>, vector<1x128xf32>
    %7 = vector.broadcast %6 : vector<1x128xf32> to vector<2x128xf32>
    %8 = arith.addf %5, %7 : vector<2x128xf32>
    %c0_8 = arith.constant 0 : index
    %c0_9 = arith.constant 0 : index
    %9 = vector.load %arg3[%c0_8, %c0_9] : memref<2x128xf32, #tpu.memory_space<vmem>>, vector<2x128xf32>
    tpu.vector_store %arg3[%c0_8, %c0_9], %8 {strides = array<i32>} : memref<2x128xf32, #tpu.memory_space<vmem>>, vector<2x128xf32>,
    return
  }
}

</mosaic_0001>

<bundles_post_ra>
// kernel: resnet18_forward.23
= control target key start
LH: loop header
LB: loop body
LE: loop exit
PB: predicated region body
PF: predicated region fallthrough
CT: control target
= control target key end

     0   :  { %s2086_s15 = smov 0   ;;  %s2088_s16 = smov 0   ;;  %s2476_s0 = inlined_call_operand.vmem [shape: bf16[2048,256], index: 0, kind: input, shape index: {}]   ;;  %s2477_s1 = inlined_call_operand.vmem [shape: bf16[256,128], index: 1, kind: input, shape index: {}]   ;;  %s2478_s2 = inlined_call_operand.vmem [shape: f32[1,128], index: 2, kind: input, shape index: {}]   ;;  %s2479_s3 = inlined_call_operand.vmem [shape: f32[1,128], index: 3, kind: input, shape index: {}]   ;;  %s2480_s4 = inlined_call_operand.vmem [shape: f32[2048,128], index: 4, kind: output, shape index: {}]  }
   0x1   :  { %s2090_s17 = smov 0  }
   0x2 LB: > { %s33_s18 = sadd.s32 1, %s2054_s16  ;;  %p1776_p0 = scmp.ge.s32.totalorder %s2058_s17, 1  ;;  %s2058_s17 = sphi %s2090_s17, %s14_s17   ;;  %s2054_s16 = sphi %s2088_s16, %s2482_s16   ;;  %s2050_s15 = sphi %s2086_s15, %s2481_s15  }
   0x3   : > { %p35_p1 = scmp.ge.s32.totalorder %s33_s18, 4  ;;  %p224_p2 = scmp.lt.s32.totalorder %s2058_s17, 5 }
   0x5   : > { %s2484_s18 = smov (%p35_p1, %s33_s18), 0  ;;  %p225_p3 = pnand %p1776_p0, %p224_p2 }
   0x6   : > { %s1777_s21 = sshll.u32 (!%p225_p3), %s2050_s15, 6 }
   0x7   : > { %228 = sbr.rel (%p225_p3) target bundleno = 399 (0x18f), region = 36  ;;  %p274_p4 = scmp.lt.s32.totalorder (!%p225_p3), %s1777_s21, 255 }
   0xc   : > { %v1924_v0 = vld [vmem:[%s2477_s1 + $0x38] sm:$0xff]   ;;  %v2060_v1 = vmov 0   ;;  %v1925_v2 = vld [vmem:[%s2477_s1 + $0x30] sm:$0xff]   ;;  %v1926_v3 = vld [vmem:[%s2477_s1 + $0x28] sm:$0xff]   ;;  %s2486_s21 = smov (!%p274_p4, %s1777_s21), 255 }
   0xd   : > { %953 = vmatprep.subr.bf16.mxu0 %v2060_v1  ;;  %1867 = vmatprep.subr.bf16.mxu1 %v2060_v1  ;;  %v1927_v4 = vld [vmem:[%s2477_s1 + $0x20] sm:$0xff]   ;;  %s1866_s28 = sshll.u32 %s2486_s21, 3  ;;  %v1928_v5 = vld [vmem:[%s2477_s1 + $0x18] sm:$0xff]   ;;  %v1929_v7 = vld [vmem:[%s2477_s1 + $0x10] sm:$0xff]  }
   0xe   : > { %954 = vmatpush1.bf16.msra.mxu0 %v1924_v0  ;;  %1883 = vmatpush1.bf16.msra.mxu1 %v1924_v0  ;;  %s2135_s7 = scalar_lea.vmem %s2476_s0, %s1866_s28  ;;  %v1930_v9 = vld [vmem:[%s2477_s1 + $0x8] sm:$0xff]   ;;  %v1931_v10 = vld [vmem:[%s2477_s1] sm:$0xff]   ;;  %v1932_v11 = vld [vmem:[%s2477_s1 + $0x78] sm:$0xff]   ;;  %s2275_s15 = scalar_lea.vmem %s2480_s4, %s1866_s28 }
   0xf   : > { %955 = vmatprep.subr.bf16.mxu0 %v2060_v1  ;;  %1868 = vmatprep.subr.bf16.mxu1 %v2060_v1  ;;  %v1942_v6 = vld [vmem:[%s2135_s7 + $0x4] ss:$8 sps:$4 sm:$0xff]   ;;  %v1933_v12 = vld [vmem:[%s2477_s1 + $0x70] sm:$0xff]   ;;  %v1936_v15 = vld [vmem:[%s2477_s1 + $0x58] sm:$0xff]  }
  0x10   : > { %v1945_v8 = vld [vmem:[%s2135_s7 + $0x104] ss:$8 sps:$4 sm:$0xff]   ;;  %985 = vmatprep.mubr.bf16.mxu0 %v1942_v6  ;;  %v1937_v16 = vld [vmem:[%s2477_s1 + $0x50] sm:$0xff]   ;;  %v1940_v19 = vld [vmem:[%s2135_s7] ss:$8 sps:$4 sm:$0xff]  }
  0x11   : > { %1113 = vmatprep.mubr.bf16.mxu1 %v1945_v8  ;;  %v1934_v13 = vld [vmem:[%s2477_s1 + $0x68] sm:$0xff]   ;;  %v1935_v14 = vld [vmem:[%s2477_s1 + $0x60] sm:$0xff]   ;;  %v1946_v21 = vld [vmem:[%s2135_s7 + $0x14] ss:$8 sps:$4 sm:$0xff]  }
  0x12   : > { %956 = vmatpush1.bf16.msra.mxu0 %v1925_v2  ;;  %1884 = vmatpush1.bf16.msra.mxu1 %v1925_v2  ;;  %v1938_v17 = vld [vmem:[%s2477_s1 + $0x48] sm:$0xff]   ;;  %v1939_v18 = vld [vmem:[%s2477_s1 + $0x40] sm:$0xff]   ;;  %v1948_v22 = vld [vmem:[%s2135_s7 + $0x114] ss:$8 sps:$4 sm:$0xff]  }
  0x13   : > { %957 = vmatprep.subr.bf16.mxu0 %v2060_v1  ;;  %1869 = vmatprep.subr.bf16.mxu1 %v2060_v1  ;;  %v1943_v20 = vld [vmem:[%s2135_s7 + $0x100] ss:$8 sps:$4 sm:$0xff]   ;;  %v1950_v23 = vld [vmem:[%s2135_s7 + $0x10] ss:$8 sps:$4 sm:$0xff]   ;;  %v1952_v25 = vld [vmem:[%s2135_s7 + $0x24] ss:$8 sps:$4 sm:$0xff]  }
  0x14   : > { %v1951_v24 = vld [vmem:[%s2135_s7 + $0x110] ss:$8 sps:$4 sm:$0xff]   ;;  %v1954_v26 = vld [vmem:[%s2135_s7 + $0x124] ss:$8 sps:$4 sm:$0xff]   ;;  %v1956_v27 = vld [vmem:[%s2135_s7 + $0x20] ss:$8 sps:$4 sm:$0xff]  }
  0x15   : > { %v1957_v28 = vld [vmem:[%s2135_s7 + $0x120] ss:$8 sps:$4 sm:$0xff]   ;;  %v1958_v29 = vld [vmem:[%s2135_s7 + $0x34] ss:$8 sps:$4 sm:$0xff]   ;;  %v1962_v31 = vld [vmem:[%s2135_s7 + $0x30] ss:$8 sps:$4 sm:$0xff]  }
  0x16   : > { %958 = vmatpush1.bf16.msra.mxu0 %v1926_v3  ;;  %1885 = vmatpush1.bf16.msra.mxu1 %v1926_v3  ;;  %v1960_v30 = vld [vmem:[%s2135_s7 + $0x134] ss:$8 sps:$4 sm:$0xff]   ;;  %v1963_v32 = vld [vmem:[%s2135_s7 + $0x130] ss:$8 sps:$4 sm:$0xff]   ;;  %v1964_v33 = vld [vmem:[%s2135_s7 + $0x44] ss:$8 sps:$4 sm:$0xff]  }
  0x17   : > { %959 = vmatprep.subr.bf16.mxu0 %v2060_v1  ;;  %1870 = vmatprep.subr.bf16.mxu1 %v2060_v1  ;;  %v1966_v34 = vld [vmem:[%s2135_s7 + $0x144] ss:$8 sps:$4 sm:$0xff]   ;;  %v1968_v35 = vld [vmem:[%s2135_s7 + $0x40] ss:$8 sps:$4 sm:$0xff]   ;;  %v1970_v37 = vld [vmem:[%s2135_s7 + $0x54] ss:$8 sps:$4 sm:$0xff]  }
  0x18   : > { %v1969_v36 = vld [vmem:[%s2135_s7 + $0x140] ss:$8 sps:$4 sm:$0xff]   ;;  %v1972_v38 = vld [vmem:[%s2135_s7 + $0x154] ss:$8 sps:$4 sm:$0xff]   ;;  %v1974_v39 = vld [vmem:[%s2135_s7 + $0x50] ss:$8 sps:$4 sm:$0xff]  }
  0x19   : > { %v1975_v40 = vld [vmem:[%s2135_s7 + $0x150] ss:$8 sps:$4 sm:$0xff]   ;;  %v1976_v41 = vld [vmem:[%s2135_s7 + $0x64] ss:$8 sps:$4 sm:$0xff]   ;;  %v1980_v43 = vld [vmem:[%s2135_s7 + $0x60] ss:$8 sps:$4 sm:$0xff]  }
  0x1a   : > { %960 = vmatpush1.bf16.msra.mxu0 %v1927_v4  ;;  %1886 = vmatpush1.bf16.msra.mxu1 %v1927_v4  ;;  %v1978_v42 = vld [vmem:[%s2135_s7 + $0x164] ss:$8 sps:$4 sm:$0xff]   ;;  %v1981_v44 = vld [vmem:[%s2135_s7 + $0x160] ss:$8 sps:$4 sm:$0xff]   ;;  %v1982_v45 = vld [vmem:[%s2135_s7 + $0x74] ss:$8 sps:$4 sm:$0xff]  }
  0x1b   : > { %961 = vmatprep.subr.bf16.mxu0 %v2060_v1  ;;  %1871 = vmatprep.subr.bf16.mxu1 %v2060_v1  ;;  %v1984_v46 = vld [vmem:[%s2135_s7 + $0x174] ss:$8 sps:$4 sm:$0xff]   ;;  %v1986_v47 = vld [vmem:[%s2135_s7 + $0x70] ss:$8 sps:$4 sm:$0xff]   ;;  %v1988_v49 = vld [vmem:[%s2135_s7 + $0x84] ss:$8 sps:$4 sm:$0xff]  }
  0x1c   : > { %v1987_v48 = vld [vmem:[%s2135_s7 + $0x170] ss:$8 sps:$4 sm:$0xff]   ;;  %v1990_v50 = vld [vmem:[%s2135_s7 + $0x184] ss:$8 sps:$4 sm:$0xff]   ;;  %v1992_v51 = vld [vmem:[%s2135_s7 + $0x80] ss:$8 sps:$4 sm:$0xff]  }
  0x1d   : > { %v1993_v52 = vld [vmem:[%s2135_s7 + $0x180] ss:$8 sps:$4 sm:$0xff]   ;;  %v1994_v53 = vld [vmem:[%s2135_s7 + $0x94] ss:$8 sps:$4 sm:$0xff]   ;;  %v1998_v55 = vld [vmem:[%s2135_s7 + $0x90] ss:$8 sps:$4 sm:$0xff]  }
  0x1e   : > { %962 = vmatpush1.bf16.msra.mxu0 %v1928_v5  ;;  %1887 = vmatpush1.bf16.msra.mxu1 %v1928_v5  ;;  %v1996_v54 = vld [vmem:[%s2135_s7 + $0x194] ss:$8 sps:$4 sm:$0xff]   ;;  %v1999_v56 = vld [vmem:[%s2135_s7 + $0x190] ss:$8 sps:$4 sm:$0xff]   ;;  %v2000_v57 = vld [vmem:[%s2135_s7 + $0xa4] ss:$8 sps:$4 sm:$0xff]  }
  0x1f   : > { %963 = vmatprep.subr.bf16.mxu0 %v2060_v1  ;;  %1872 = vmatprep.subr.bf16.mxu1 %v2060_v1  ;;  %v2002_v58 = vld [vmem:[%s2135_s7 + $0x1a4] ss:$8 sps:$4 sm:$0xff]   ;;  %v2004_v59 = vld [vmem:[%s2135_s7 + $0xa0] ss:$8 sps:$4 sm:$0xff]   ;;  %v2006_v61 = vld [vmem:[%s2135_s7 + $0xb4] ss:$8 sps:$4 sm:$0xff]  }
  0x20   : > { %v2005_v60 = vld [vmem:[%s2135_s7 + $0x1a0] ss:$8 sps:$4 sm:$0xff]   ;;  %v2008_v62 = vld [vmem:[%s2135_s7 + $0x1b4] ss:$8 sps:$4 sm:$0xff]   ;;  %v2010_v63 = vld [vmem:[%s2135_s7 + $0xb0] ss:$8 sps:$4 sm:$0xff]  }
  0x21   : > { %v2011_v0 = vld [vmem:[%s2135_s7 + $0x1b0] ss:$8 sps:$4 sm:$0xff]   ;;  %v2014_v2 = vld [vmem:[%s2135_s7 + $0x1c4] ss:$8 sps:$4 sm:$0xff]   ;;  %v2016_v3 = vld [vmem:[%s2135_s7 + $0xc0] ss:$8 sps:$4 sm:$0xff]  }
  0x22   : > { %964 = vmatpush1.bf16.msra.mxu0 %v1929_v7  ;;  %1888 = vmatpush1.bf16.msra.mxu1 %v1929_v7  ;;  %v2017_v4 = vld [vmem:[%s2135_s7 + $0x1c0] ss:$8 sps:$4 sm:$0xff]   ;;  %v2018_v5 = vld [vmem:[%s2135_s7 + $0xd4] ss:$8 sps:$4 sm:$0xff]   ;;  %v2022_v7 = vld [vmem:[%s2135_s7 + $0xd0] ss:$8 sps:$4 sm:$0xff]  }
  0x23   : > { %965 = vmatprep.subr.bf16.mxu0 %v2060_v1  ;;  %1873 = vmatprep.subr.bf16.mxu1 %v2060_v1  ;;  %v2020_v6 = vld [vmem:[%s2135_s7 + $0x1d4] ss:$8 sps:$4 sm:$0xff]   ;;  %v2023_v8 = vld [vmem:[%s2135_s7 + $0x1d0] ss:$8 sps:$4 sm:$0xff]  }
  0x26   : > { %966 = vmatpush1.bf16.msra.mxu0 %v1930_v9  ;;  %1889 = vmatpush1.bf16.msra.mxu1 %v1930_v9  ;;  %v2024_v9 = vld [vmem:[%s2135_s7 + $0xe4] ss:$8 sps:$4 sm:$0xff]  }
  0x27   : > { %967 = vmatprep.subr.bf16.mxu0 %v2060_v1  ;;  %1874 = vmatprep.subr.bf16.mxu1 %v2060_v1 }
  0x2a   : > { %968 = vmatpush1.bf16.msra.mxu0 %v1931_v10  ;;  %1890 = vmatpush1.bf16.msra.mxu1 %v1931_v10  ;;  %v2026_v10 = vld [vmem:[%s2135_s7 + $0x1e4] ss:$8 sps:$4 sm:$0xff]  }
  0x2b   : > { %969 = vmatprep.subr.bf16.mxu0 %v2060_v1  ;;  %1875 = vmatprep.subr.bf16.mxu1 %v2060_v1 }
  0x2e   : > { %970 = vmatpush2.bf16.msra.mxu0 %v1932_v11  ;;  %1891 = vmatpush2.bf16.msra.mxu1 %v1932_v11  ;;  %v2028_v11 = vld [vmem:[%s2135_s7 + $0xe0] ss:$8 sps:$4 sm:$0xff]  }
  0x2f   : > { %971 = vmatprep.subr.bf16.mxu0 %v2060_v1  ;;  %1876 = vmatprep.subr.bf16.mxu1 %v2060_v1 }
  0x32   : > { %972 = vmatpush2.bf16.msra.mxu0 %v1933_v12  ;;  %1892 = vmatpush2.bf16.msra.mxu1 %v1933_v12  ;;  %v2029_v12 = vld [vmem:[%s2135_s7 + $0x1e0] ss:$8 sps:$4 sm:$0xff]  }
  0x33   : > { %973 = vmatprep.subr.bf16.mxu0 %v2060_v1  ;;  %1877 = vmatprep.subr.bf16.mxu1 %v2060_v1 }
  0x36   : > { %974 = vmatpush2.bf16.msra.mxu0 %v1934_v13  ;;  %1893 = vmatpush2.bf16.msra.mxu1 %v1934_v13  ;;  %v2030_v13 = vld [vmem:[%s2135_s7 + $0xf4] ss:$8 sps:$4 sm:$0xff]  }
  0x37   : > { %975 = vmatprep.subr.bf16.mxu0 %v2060_v1  ;;  %1878 = vmatprep.subr.bf16.mxu1 %v2060_v1 }
  0x3a   : > { %976 = vmatpush2.bf16.msra.mxu0 %v1935_v14  ;;  %1894 = vmatpush2.bf16.msra.mxu1 %v1935_v14  ;;  %v2032_v14 = vld [vmem:[%s2135_s7 + $0x1f4] ss:$8 sps:$4 sm:$0xff]  }
  0x3b   : > { %977 = vmatprep.subr.bf16.mxu0 %v2060_v1  ;;  %1879 = vmatprep.subr.bf16.mxu1 %v2060_v1 }
  0x3e   : > { %978 = vmatpush2.bf16.msra.mxu0 %v1936_v15  ;;  %1895 = vmatpush2.bf16.msra.mxu1 %v1936_v15  ;;  %v2034_v15 = vld [vmem:[%s2135_s7 + $0xf0] ss:$8 sps:$4 sm:$0xff]  }
  0x3f   : > { %979 = vmatprep.subr.bf16.mxu0 %v2060_v1  ;;  %1880 = vmatprep.subr.bf16.mxu1 %v2060_v1 }
  0x42   : > { %980 = vmatpush2.bf16.msra.mxu0 %v1937_v16  ;;  %1896 = vmatpush2.bf16.msra.mxu1 %v1937_v16  ;;  %v2035_v16 = vld [vmem:[%s2135_s7 + $0x1f0] ss:$8 sps:$4 sm:$0xff]  }
  0x43   : > { %981 = vmatprep.subr.bf16.mxu0 %v2060_v1  ;;  %1881 = vmatprep.subr.bf16.mxu1 %v2060_v1 }
  0x46   : > { %982 = vmatpush2.bf16.msra.mxu0 %v1938_v17  ;;  %1897 = vmatpush2.bf16.msra.mxu1 %v1938_v17  ;;  %v2261_v17 = vld [vmem:[%s2478_s2] ss:$0 sm:$0xff] }
  0x47   : > { %983 = vmatprep.subr.bf16.mxu0 %v2060_v1  ;;  %1882 = vmatprep.subr.bf16.mxu1 %v2060_v1  ;;  %v2012_v1 = vld [vmem:[%s2135_s7 + $0xc4] ss:$8 sps:$4 sm:$0xff]  }
  0x4a   : > { %984 = vmatpush2.bf16.msra.mxu0 %v1939_v18  ;;  %1898 = vmatpush2.bf16.msra.mxu1 %v1939_v18 }
  0x4d   : > { %986 = vmatmul.mubr.bf16.vlgmr.msra.gmra.mxu0 %v1940_v19  ;;  %1114 = vmatmul.mubr.bf16.vlgmr.msra.gmra.mxu1 %v1943_v20  ;;  %v2266_v19 = vld [vmem:[%s2479_s3] ss:$0 sm:$0xff] }
  0x4e   : > { %993 = vmatprep.mubr.bf16.mxu0 %v1946_v21  ;;  %1121 = vmatprep.mubr.bf16.mxu1 %v1948_v22 }
  0x55   : > { %994 = vmatmul.mubr.bf16.gmra.mxu0 %v1950_v23  ;;  %1122 = vmatmul.mubr.bf16.gmra.mxu1 %v1951_v24 }
  0x56   : > { %1001 = vmatprep.mubr.bf16.mxu0 %v1952_v25  ;;  %1129 = vmatprep.mubr.bf16.mxu1 %v1954_v26 }
  0x5d   : > { %1002 = vmatmul.mubr.bf16.gmra.mxu0 %v1956_v27  ;;  %1130 = vmatmul.mubr.bf16.gmra.mxu1 %v1957_v28 }
  0x5e   : > { %1009 = vmatprep.mubr.bf16.mxu0 %v1958_v29  ;;  %1137 = vmatprep.mubr.bf16.mxu1 %v1960_v30 }
  0x65   : > { %1010 = vmatmul.mubr.bf16.gmra.mxu0 %v1962_v31  ;;  %1138 = vmatmul.mubr.bf16.gmra.mxu1 %v1963_v32 }
  0x66   : > { %1017 = vmatprep.mubr.bf16.mxu0 %v1964_v33  ;;  %1145 = vmatprep.mubr.bf16.mxu1 %v1966_v34 }
  0x6d   : > { %1018 = vmatmul.mubr.bf16.gmra.mxu0 %v1968_v35  ;;  %1146 = vmatmul.mubr.bf16.gmra.mxu1 %v1969_v36 }
  0x6e   : > { %1025 = vmatprep.mubr.bf16.mxu0 %v1970_v37  ;;  %1153 = vmatprep.mubr.bf16.mxu1 %v1972_v38 }
  0x75   : > { %1026 = vmatmul.mubr.bf16.gmra.mxu0 %v1974_v39  ;;  %1154 = vmatmul.mubr.bf16.gmra.mxu1 %v1975_v40 }
  0x76   : > { %1033 = vmatprep.mubr.bf16.mxu0 %v1976_v41  ;;  %1161 = vmatprep.mubr.bf16.mxu1 %v1978_v42 }
  0x7d   : > { %1034 = vmatmul.mubr.bf16.gmra.mxu0 %v1980_v43  ;;  %1162 = vmatmul.mubr.bf16.gmra.mxu1 %v1981_v44 }
  0x7e   : > { %1041 = vmatprep.mubr.bf16.mxu0 %v1982_v45  ;;  %1169 = vmatprep.mubr.bf16.mxu1 %v1984_v46 }
  0x85   : > { %1042 = vmatmul.mubr.bf16.gmra.mxu0 %v1986_v47  ;;  %1170 = vmatmul.mubr.bf16.gmra.mxu1 %v1987_v48 }
  0x86   : > { %1049 = vmatprep.mubr.bf16.mxu0 %v1988_v49  ;;  %1177 = vmatprep.mubr.bf16.mxu1 %v1990_v50 }
  0x8d   : > { %1050 = vmatmul.mubr.bf16.gmra.mxu0 %v1992_v51  ;;  %1178 = vmatmul.mubr.bf16.gmra.mxu1 %v1993_v52 }
  0x8e   : > { %1057 = vmatprep.mubr.bf16.mxu0 %v1994_v53  ;;  %1185 = vmatprep.mubr.bf16.mxu1 %v1996_v54 }
  0x95   : > { %1058 = vmatmul.mubr.bf16.gmra.mxu0 %v1998_v55  ;;  %1186 = vmatmul.mubr.bf16.gmra.mxu1 %v1999_v56 }
  0x96   : > { %1065 = vmatprep.mubr.bf16.mxu0 %v2000_v57  ;;  %1193 = vmatprep.mubr.bf16.mxu1 %v2002_v58 }
  0x9d   : > { %1066 = vmatmul.mubr.bf16.gmra.mxu0 %v2004_v59  ;;  %1194 = vmatmul.mubr.bf16.gmra.mxu1 %v2005_v60 }
  0x9e   : > { %1073 = vmatprep.mubr.bf16.mxu0 %v2006_v61  ;;  %1201 = vmatprep.mubr.bf16.mxu1 %v2008_v62 }
  0xa5   : > { %1074 = vmatmul.mubr.bf16.gmra.mxu0 %v2010_v63  ;;  %1202 = vmatmul.mubr.bf16.gmra.mxu1 %v2011_v0 }
  0xa6   : > { %1081 = vmatprep.mubr.bf16.mxu0 %v2012_v1  ;;  %1209 = vmatprep.mubr.bf16.mxu1 %v2014_v2 }
  0xad   : > { %1082 = vmatmul.mubr.bf16.gmra.mxu0 %v2016_v3  ;;  %1210 = vmatmul.mubr.bf16.gmra.mxu1 %v2017_v4 }
  0xae   : > { %1089 = vmatprep.mubr.bf16.mxu0 %v2018_v5  ;;  %1217 = vmatprep.mubr.bf16.mxu1 %v2020_v6 }
  0xb5   : > { %1090 = vmatmul.mubr.bf16.gmra.mxu0 %v2022_v7  ;;  %1218 = vmatmul.mubr.bf16.gmra.mxu1 %v2023_v8 }
  0xb6   : > { %1097 = vmatprep.mubr.bf16.mxu0 %v2024_v9  ;;  %1225 = vmatprep.mubr.bf16.mxu1 %v2026_v10 }
  0xbd   : > { %1098 = vmatmul.mubr.bf16.gmra.mxu0 %v2028_v11  ;;  %1226 = vmatmul.mubr.bf16.gmra.mxu1 %v2029_v12 }
  0xbe   : > { %1105 = vmatprep.mubr.bf16.mxu0 %v2030_v13  ;;  %1233 = vmatprep.mubr.bf16.mxu1 %v2032_v14 }
  0xc5   : > { %1106 = vmatmul.mubr.bf16.gmra.mxu0 %v2034_v15  ;;  %1234 = vmatmul.mubr.bf16.gmra.mxu1 %v2035_v16 }
 0x10d   : > { %v987_v18 = vpop.f32.mrf.mxu0  ;;  %v1115_v20 = vpop.f32.mrf.mxu1 }
 0x10e   : > { %v1444_v21 = vmul.f32 %v2261_v17, %v987_v18  ;;  %v1476_v22 = vmul.f32 %v2261_v17, %v1115_v20 }
 0x10f   : > { %v989_v23 = vpop.f32.mrf.mxu0  ;;  %v1117_v24 = vpop.f32.mrf.mxu1 }
 0x110   : > { %v1515_v25 = vadd.f32 %v2266_v19, %v1444_v21  ;;  %v1547_v26 = vadd.f32 %v2266_v19, %v1476_v22 }
 0x111   : > { %v990_v27 = vpop.f32.mrf.mxu0  ;;  %v1118_v28 = vpop.f32.mrf.mxu1 }
 0x112   : > { %1579 = vst [vmem:[%s2275_s15] sm:$0xff] %v1515_v25  ;;  %1611 = vst [vmem:[%s2275_s15 + $0x100] sm:$0xff] %v1547_v26  ;;  %v1445_v29 = vmul.f32 %v2261_v17, %v990_v27  ;;  %v1477_v30 = vmul.f32 %v2261_v17, %v1118_v28 }
 0x113   : > { %v992_v31 = vpop.f32.mrf.mxu0  ;;  %v1120_v32 = vpop.f32.mrf.mxu1 }
 0x114   : > { %v1516_v33 = vadd.f32 %v2266_v19, %v1445_v29  ;;  %v1548_v34 = vadd.f32 %v2266_v19, %v1477_v30 }
 0x115   : > { %v995_v35 = vpop.f32.mrf.mxu0  ;;  %v1123_v36 = vpop.f32.mrf.mxu1 }
 0x116   : > { %1580 = vst [vmem:[%s2275_s15 + $0x8] sm:$0xff] %v1516_v33  ;;  %1612 = vst [vmem:[%s2275_s15 + $0x108] sm:$0xff] %v1548_v34  ;;  %v1446_v37 = vmul.f32 %v2261_v17, %v995_v35  ;;  %v1478_v38 = vmul.f32 %v2261_v17, %v1123_v36 }
 0x117   : > { %v997_v39 = vpop.f32.mrf.mxu0  ;;  %v1125_v40 = vpop.f32.mrf.mxu1 }
 0x118   : > { %v1517_v41 = vadd.f32 %v2266_v19, %v1446_v37  ;;  %v1549_v42 = vadd.f32 %v2266_v19, %v1478_v38 }
 0x119   : > { %v998_v43 = vpop.f32.mrf.mxu0  ;;  %v1126_v44 = vpop.f32.mrf.mxu1 }
 0x11a   : > { %1581 = vst [vmem:[%s2275_s15 + $0x10] sm:$0xff] %v1517_v41  ;;  %1613 = vst [vmem:[%s2275_s15 + $0x110] sm:$0xff] %v1549_v42  ;;  %v1447_v45 = vmul.f32 %v2261_v17, %v998_v43  ;;  %v1479_v46 = vmul.f32 %v2261_v17, %v1126_v44 }
 0x11b   : > { %v1000_v47 = vpop.f32.mrf.mxu0  ;;  %v1128_v48 = vpop.f32.mrf.mxu1 }
 0x11c   : > { %v1518_v49 = vadd.f32 %v2266_v19, %v1447_v45  ;;  %v1550_v50 = vadd.f32 %v2266_v19, %v1479_v46 }
 0x11d   : > { %v1003_v51 = vpop.f32.mrf.mxu0  ;;  %v1131_v52 = vpop.f32.mrf.mxu1 }
 0x11e   : > { %1582 = vst [vmem:[%s2275_s15 + $0x18] sm:$0xff] %v1518_v49  ;;  %1614 = vst [vmem:[%s2275_s15 + $0x118] sm:$0xff] %v1550_v50  ;;  %v1448_v53 = vmul.f32 %v2261_v17, %v1003_v51  ;;  %v1480_v54 = vmul.f32 %v2261_v17, %v1131_v52 }
 0x11f   : > { %v1005_v55 = vpop.f32.mrf.mxu0  ;;  %v1133_v56 = vpop.f32.mrf.mxu1 }
 0x120   : > { %v1519_v57 = vadd.f32 %v2266_v19, %v1448_v53  ;;  %v1551_v58 = vadd.f32 %v2266_v19, %v1480_v54 }
 0x121   : > { %v1006_v59 = vpop.f32.mrf.mxu0  ;;  %v1134_v60 = vpop.f32.mrf.mxu1 }
 0x122   : > { %1583 = vst [vmem:[%s2275_s15 + $0x20] sm:$0xff] %v1519_v57  ;;  %1615 = vst [vmem:[%s2275_s15 + $0x120] sm:$0xff] %v1551_v58  ;;  %v1449_v61 = vmul.f32 %v2261_v17, %v1006_v59  ;;  %v1481_v62 = vmul.f32 %v2261_v17, %v1134_v60 }
 0x123   : > { %v1008_v63 = vpop.f32.mrf.mxu0  ;;  %v1136_v0 = vpop.f32.mrf.mxu1 }
 0x124   : > { %v1520_v1 = vadd.f32 %v2266_v19, %v1449_v61  ;;  %v1552_v2 = vadd.f32 %v2266_v19, %v1481_v62 }
 0x125   : > { %v1011_v3 = vpop.f32.mrf.mxu0  ;;  %v1139_v4 = vpop.f32.mrf.mxu1 }
 0x126   : > { %1584 = vst [vmem:[%s2275_s15 + $0x28] sm:$0xff] %v1520_v1  ;;  %1616 = vst [vmem:[%s2275_s15 + $0x128] sm:$0xff] %v1552_v2  ;;  %v1450_v5 = vmul.f32 %v2261_v17, %v1011_v3  ;;  %v1482_v6 = vmul.f32 %v2261_v17, %v1139_v4 }
 0x127   : > { %v1013_v7 = vpop.f32.mrf.mxu0  ;;  %v1141_v8 = vpop.f32.mrf.mxu1 }
 0x128   : > { %v1521_v9 = vadd.f32 %v2266_v19, %v1450_v5  ;;  %v1553_v10 = vadd.f32 %v2266_v19, %v1482_v6 }
 0x129   : > { %v1014_v11 = vpop.f32.mrf.mxu0  ;;  %v1142_v12 = vpop.f32.mrf.mxu1 }
 0x12a   : > { %1585 = vst [vmem:[%s2275_s15 + $0x30] sm:$0xff] %v1521_v9  ;;  %1617 = vst [vmem:[%s2275_s15 + $0x130] sm:$0xff] %v1553_v10  ;;  %v1451_v13 = vmul.f32 %v2261_v17, %v1014_v11  ;;  %v1483_v14 = vmul.f32 %v2261_v17, %v1142_v12 }
 0x12b   : > { %v1016_v15 = vpop.f32.mrf.mxu0  ;;  %v1144_v16 = vpop.f32.mrf.mxu1 }
 0x12c   : > { %v1522_v18 = vadd.f32 %v2266_v19, %v1451_v13  ;;  %v1554_v20 = vadd.f32 %v2266_v19, %v1483_v14 }
 0x12d   : > { %v1019_v21 = vpop.f32.mrf.mxu0  ;;  %v1147_v22 = vpop.f32.mrf.mxu1 }
 0x12e   : > { %1586 = vst [vmem:[%s2275_s15 + $0x38] sm:$0xff] %v1522_v18  ;;  %1618 = vst [vmem:[%s2275_s15 + $0x138] sm:$0xff] %v1554_v20  ;;  %v1452_v23 = vmul.f32 %v2261_v17, %v1019_v21  ;;  %v1484_v24 = vmul.f32 %v2261_v17, %v1147_v22 }
 0x12f   : > { %v1021_v25 = vpop.f32.mrf.mxu0  ;;  %v1149_v26 = vpop.f32.mrf.mxu1 }
 0x130   : > { %v1523_v27 = vadd.f32 %v2266_v19, %v1452_v23  ;;  %v1555_v28 = vadd.f32 %v2266_v19, %v1484_v24 }
 0x131   : > { %v1022_v29 = vpop.f32.mrf.mxu0  ;;  %v1150_v30 = vpop.f32.mrf.mxu1 }
 0x132   : > { %1587 = vst [vmem:[%s2275_s15 + $0x40] sm:$0xff] %v1523_v27  ;;  %1619 = vst [vmem:[%s2275_s15 + $0x140] sm:$0xff] %v1555_v28  ;;  %v1453_v31 = vmul.f32 %v2261_v17, %v1022_v29  ;;  %v1485_v32 = vmul.f32 %v2261_v17, %v1150_v30 }
 0x133   : > { %v1024_v33 = vpop.f32.mrf.mxu0  ;;  %v1152_v34 = vpop.f32.mrf.mxu1 }
 0x134   : > { %v1524_v35 = vadd.f32 %v2266_v19, %v1453_v31  ;;  %v1556_v36 = vadd.f32 %v2266_v19, %v1485_v32 }
 0x135   : > { %v1027_v37 = vpop.f32.mrf.mxu0  ;;  %v1155_v38 = vpop.f32.mrf.mxu1 }
 0x136   : > { %1588 = vst [vmem:[%s2275_s15 + $0x48] sm:$0xff] %v1524_v35  ;;  %1620 = vst [vmem:[%s2275_s15 + $0x148] sm:$0xff] %v1556_v36  ;;  %v1454_v39 = vmul.f32 %v2261_v17, %v1027_v37  ;;  %v1486_v40 = vmul.f32 %v2261_v17, %v1155_v38 }
 0x137   : > { %v1029_v41 = vpop.f32.mrf.mxu0  ;;  %v1157_v42 = vpop.f32.mrf.mxu1 }
 0x138   : > { %v1525_v43 = vadd.f32 %v2266_v19, %v1454_v39  ;;  %v1557_v44 = vadd.f32 %v2266_v19, %v1486_v40 }
 0x139   : > { %v1030_v45 = vpop.f32.mrf.mxu0  ;;  %v1158_v46 = vpop.f32.mrf.mxu1 }
 0x13a   : > { %1589 = vst [vmem:[%s2275_s15 + $0x50] sm:$0xff] %v1525_v43  ;;  %1621 = vst [vmem:[%s2275_s15 + $0x150] sm:$0xff] %v1557_v44  ;;  %v1455_v47 = vmul.f32 %v2261_v17, %v1030_v45  ;;  %v1487_v48 = vmul.f32 %v2261_v17, %v1158_v46 }
 0x13b   : > { %v1032_v49 = vpop.f32.mrf.mxu0  ;;  %v1160_v50 = vpop.f32.mrf.mxu1 }
 0x13c   : > { %v1526_v51 = vadd.f32 %v2266_v19, %v1455_v47  ;;  %v1558_v52 = vadd.f32 %v2266_v19, %v1487_v48 }
 0x13d   : > { %v1035_v53 = vpop.f32.mrf.mxu0  ;;  %v1163_v54 = vpop.f32.mrf.mxu1 }
 0x13e   : > { %1590 = vst [vmem:[%s2275_s15 + $0x58] sm:$0xff] %v1526_v51  ;;  %1622 = vst [vmem:[%s2275_s15 + $0x158] sm:$0xff] %v1558_v52  ;;  %v1456_v55 = vmul.f32 %v2261_v17, %v1035_v53  ;;  %v1488_v56 = vmul.f32 %v2261_v17, %v1163_v54 }
 0x13f   : > { %v1037_v57 = vpop.f32.mrf.mxu0  ;;  %v1165_v58 = vpop.f32.mrf.mxu1 }
 0x140   : > { %v1527_v59 = vadd.f32 %v2266_v19, %v1456_v55  ;;  %v1559_v60 = vadd.f32 %v2266_v19, %v1488_v56 }
 0x141   : > { %v1038_v61 = vpop.f32.mrf.mxu0  ;;  %v1166_v62 = vpop.f32.mrf.mxu1 }
 0x142   : > { %1591 = vst [vmem:[%s2275_s15 + $0x60] sm:$0xff] %v1527_v59  ;;  %1623 = vst [vmem:[%s2275_s15 + $0x160] sm:$0xff] %v1559_v60  ;;  %v1457_v63 = vmul.f32 %v2261_v17, %v1038_v61  ;;  %v1489_v0 = vmul.f32 %v2261_v17, %v1166_v62 }
 0x143   : > { %v1040_v1 = vpop.f32.mrf.mxu0  ;;  %v1168_v2 = vpop.f32.mrf.mxu1 }
 0x144   : > { %v1528_v3 = vadd.f32 %v2266_v19, %v1457_v63  ;;  %v1560_v4 = vadd.f32 %v2266_v19, %v1489_v0 }
 0x145   : > { %v1043_v5 = vpop.f32.mrf.mxu0  ;;  %v1171_v6 = vpop.f32.mrf.mxu1 }
 0x146   : > { %1592 = vst [vmem:[%s2275_s15 + $0x68] sm:$0xff] %v1528_v3  ;;  %1624 = vst [vmem:[%s2275_s15 + $0x168] sm:$0xff] %v1560_v4  ;;  %v1458_v7 = vmul.f32 %v2261_v17, %v1043_v5  ;;  %v1490_v8 = vmul.f32 %v2261_v17, %v1171_v6 }
 0x147   : > { %v1045_v9 = vpop.f32.mrf.mxu0  ;;  %v1173_v10 = vpop.f32.mrf.mxu1 }
 0x148   : > { %v1529_v11 = vadd.f32 %v2266_v19, %v1458_v7  ;;  %v1561_v12 = vadd.f32 %v2266_v19, %v1490_v8 }
 0x149   : > { %v1046_v13 = vpop.f32.mrf.mxu0  ;;  %v1174_v14 = vpop.f32.mrf.mxu1 }
 0x14a   : > { %1593 = vst [vmem:[%s2275_s15 + $0x70] sm:$0xff] %v1529_v11  ;;  %1625 = vst [vmem:[%s2275_s15 + $0x170] sm:$0xff] %v1561_v12  ;;  %v1459_v15 = vmul.f32 %v2261_v17, %v1046_v13  ;;  %v1491_v16 = vmul.f32 %v2261_v17, %v1174_v14 }
 0x14b   : > { %v1048_v18 = vpop.f32.mrf.mxu0  ;;  %v1176_v20 = vpop.f32.mrf.mxu1 }
 0x14c   : > { %v1530_v21 = vadd.f32 %v2266_v19, %v1459_v15  ;;  %v1562_v22 = vadd.f32 %v2266_v19, %v1491_v16 }
 0x14d   : > { %v1051_v23 = vpop.f32.mrf.mxu0  ;;  %v1179_v24 = vpop.f32.mrf.mxu1 }
 0x14e   : > { %1594 = vst [vmem:[%s2275_s15 + $0x78] sm:$0xff] %v1530_v21  ;;  %1626 = vst [vmem:[%s2275_s15 + $0x178] sm:$0xff] %v1562_v22  ;;  %v1460_v25 = vmul.f32 %v2261_v17, %v1051_v23  ;;  %v1492_v26 = vmul.f32 %v2261_v17, %v1179_v24 }
 0x14f   : > { %v1053_v27 = vpop.f32.mrf.mxu0  ;;  %v1181_v28 = vpop.f32.mrf.mxu1 }
 0x150   : > { %v1531_v29 = vadd.f32 %v2266_v19, %v1460_v25  ;;  %v1563_v30 = vadd.f32 %v2266_v19, %v1492_v26 }
 0x151   : > { %v1054_v31 = vpop.f32.mrf.mxu0  ;;  %v1182_v32 = vpop.f32.mrf.mxu1 }
 0x152   : > { %1595 = vst [vmem:[%s2275_s15 + $0x80] sm:$0xff] %v1531_v29  ;;  %1627 = vst [vmem:[%s2275_s15 + $0x180] sm:$0xff] %v1563_v30  ;;  %v1461_v33 = vmul.f32 %v2261_v17, %v1054_v31  ;;  %v1493_v34 = vmul.f32 %v2261_v17, %v1182_v32 }
 0x153   : > { %v1056_v35 = vpop.f32.mrf.mxu0  ;;  %v1184_v36 = vpop.f32.mrf.mxu1 }
 0x154   : > { %v1532_v37 = vadd.f32 %v2266_v19, %v1461_v33  ;;  %v1564_v38 = vadd.f32 %v2266_v19, %v1493_v34 }
 0x155   : > { %v1059_v39 = vpop.f32.mrf.mxu0  ;;  %v1187_v40 = vpop.f32.mrf.mxu1 }
 0x156   : > { %1596 = vst [vmem:[%s2275_s15 + $0x88] sm:$0xff] %v1532_v37  ;;  %1628 = vst [vmem:[%s2275_s15 + $0x188] sm:$0xff] %v1564_v38  ;;  %v1462_v41 = vmul.f32 %v2261_v17, %v1059_v39  ;;  %v1494_v42 = vmul.f32 %v2261_v17, %v1187_v40 }
 0x157   : > { %v1061_v43 = vpop.f32.mrf.mxu0  ;;  %v1189_v44 = vpop.f32.mrf.mxu1 }
 0x158   : > { %v1533_v45 = vadd.f32 %v2266_v19, %v1462_v41  ;;  %v1565_v46 = vadd.f32 %v2266_v19, %v1494_v42 }
 0x159   : > { %v1062_v47 = vpop.f32.mrf.mxu0  ;;  %v1190_v48 = vpop.f32.mrf.mxu1 }
 0x15a   : > { %1597 = vst [vmem:[%s2275_s15 + $0x90] sm:$0xff] %v1533_v45  ;;  %1629 = vst [vmem:[%s2275_s15 + $0x190] sm:$0xff] %v1565_v46  ;;  %v1463_v49 = vmul.f32 %v2261_v17, %v1062_v47  ;;  %v1495_v50 = vmul.f32 %v2261_v17, %v1190_v48 }
 0x15b   : > { %v1064_v51 = vpop.f32.mrf.mxu0  ;;  %v1192_v52 = vpop.f32.mrf.mxu1 }
 0x15c   : > { %v1534_v53 = vadd.f32 %v2266_v19, %v1463_v49  ;;  %v1566_v54 = vadd.f32 %v2266_v19, %v1495_v50 }
 0x15d   : > { %v1067_v55 = vpop.f32.mrf.mxu0  ;;  %v1195_v56 = vpop.f32.mrf.mxu1 }
 0x15e   : > { %1598 = vst [vmem:[%s2275_s15 + $0x98] sm:$0xff] %v1534_v53  ;;  %1630 = vst [vmem:[%s2275_s15 + $0x198] sm:$0xff] %v1566_v54  ;;  %v1464_v57 = vmul.f32 %v2261_v17, %v1067_v55  ;;  %v1496_v58 = vmul.f32 %v2261_v17, %v1195_v56 }
 0x15f   : > { %v1069_v59 = vpop.f32.mrf.mxu0  ;;  %v1197_v60 = vpop.f32.mrf.mxu1 }
 0x160   : > { %v1535_v61 = vadd.f32 %v2266_v19, %v1464_v57  ;;  %v1567_v62 = vadd.f32 %v2266_v19, %v1496_v58 }
 0x161   : > { %v1070_v63 = vpop.f32.mrf.mxu0  ;;  %v1198_v0 = vpop.f32.mrf.mxu1 }
 0x162   : > { %1599 = vst [vmem:[%s2275_s15 + $0xa0] sm:$0xff] %v1535_v61  ;;  %1631 = vst [vmem:[%s2275_s15 + $0x1a0] sm:$0xff] %v1567_v62  ;;  %v1465_v1 = vmul.f32 %v2261_v17, %v1070_v63  ;;  %v1497_v2 = vmul.f32 %v2261_v17, %v1198_v0 }
 0x163   : > { %v1072_v3 = vpop.f32.mrf.mxu0  ;;  %v1200_v4 = vpop.f32.mrf.mxu1 }
 0x164   : > { %v1536_v5 = vadd.f32 %v2266_v19, %v1465_v1  ;;  %v1568_v6 = vadd.f32 %v2266_v19, %v1497_v2 }
 0x165   : > { %v1075_v7 = vpop.f32.mrf.mxu0  ;;  %v1203_v8 = vpop.f32.mrf.mxu1 }
 0x166   : > { %1600 = vst [vmem:[%s2275_s15 + $0xa8] sm:$0xff] %v1536_v5  ;;  %1632 = vst [vmem:[%s2275_s15 + $0x1a8] sm:$0xff] %v1568_v6  ;;  %v1466_v9 = vmul.f32 %v2261_v17, %v1075_v7  ;;  %v1498_v10 = vmul.f32 %v2261_v17, %v1203_v8 }
 0x167   : > { %v1077_v11 = vpop.f32.mrf.mxu0  ;;  %v1205_v12 = vpop.f32.mrf.mxu1 }
 0x168   : > { %v1537_v13 = vadd.f32 %v2266_v19, %v1466_v9  ;;  %v1569_v14 = vadd.f32 %v2266_v19, %v1498_v10 }
 0x169   : > { %v1078_v15 = vpop.f32.mrf.mxu0  ;;  %v1206_v16 = vpop.f32.mrf.mxu1 }
 0x16a   : > { %1601 = vst [vmem:[%s2275_s15 + $0xb0] sm:$0xff] %v1537_v13  ;;  %1633 = vst [vmem:[%s2275_s15 + $0x1b0] sm:$0xff] %v1569_v14  ;;  %v1467_v18 = vmul.f32 %v2261_v17, %v1078_v15  ;;  %v1499_v20 = vmul.f32 %v2261_v17, %v1206_v16 }
 0x16b   : > { %v1080_v21 = vpop.f32.mrf.mxu0  ;;  %v1208_v22 = vpop.f32.mrf.mxu1 }
 0x16c   : > { %v1538_v23 = vadd.f32 %v2266_v19, %v1467_v18  ;;  %v1570_v24 = vadd.f32 %v2266_v19, %v1499_v20 }
 0x16d   : > { %v1083_v25 = vpop.f32.mrf.mxu0  ;;  %v1211_v26 = vpop.f32.mrf.mxu1 }
 0x16e   : > { %1602 = vst [vmem:[%s2275_s15 + $0xb8] sm:$0xff] %v1538_v23  ;;  %1634 = vst [vmem:[%s2275_s15 + $0x1b8] sm:$0xff] %v1570_v24  ;;  %v1468_v27 = vmul.f32 %v2261_v17, %v1083_v25  ;;  %v1500_v28 = vmul.f32 %v2261_v17, %v1211_v26 }
 0x16f   : > { %v1085_v29 = vpop.f32.mrf.mxu0  ;;  %v1213_v30 = vpop.f32.mrf.mxu1 }
 0x170   : > { %v1539_v31 = vadd.f32 %v2266_v19, %v1468_v27  ;;  %v1571_v32 = vadd.f32 %v2266_v19, %v1500_v28 }
 0x171   : > { %v1086_v33 = vpop.f32.mrf.mxu0  ;;  %v1214_v34 = vpop.f32.mrf.mxu1 }
 0x172   : > { %1603 = vst [vmem:[%s2275_s15 + $0xc0] sm:$0xff] %v1539_v31  ;;  %1635 = vst [vmem:[%s2275_s15 + $0x1c0] sm:$0xff] %v1571_v32  ;;  %v1469_v35 = vmul.f32 %v2261_v17, %v1086_v33  ;;  %v1501_v36 = vmul.f32 %v2261_v17, %v1214_v34 }
 0x173   : > { %v1088_v37 = vpop.f32.mrf.mxu0  ;;  %v1216_v38 = vpop.f32.mrf.mxu1 }
 0x174   : > { %v1540_v39 = vadd.f32 %v2266_v19, %v1469_v35  ;;  %v1572_v40 = vadd.f32 %v2266_v19, %v1501_v36 }
 0x175   : > { %v1091_v41 = vpop.f32.mrf.mxu0  ;;  %v1219_v42 = vpop.f32.mrf.mxu1 }
 0x176   : > { %1604 = vst [vmem:[%s2275_s15 + $0xc8] sm:$0xff] %v1540_v39  ;;  %1636 = vst [vmem:[%s2275_s15 + $0x1c8] sm:$0xff] %v1572_v40  ;;  %v1470_v43 = vmul.f32 %v2261_v17, %v1091_v41  ;;  %v1502_v44 = vmul.f32 %v2261_v17, %v1219_v42 }
 0x177   : > { %v1093_v45 = vpop.f32.mrf.mxu0  ;;  %v1221_v46 = vpop.f32.mrf.mxu1 }
 0x178   : > { %v1541_v47 = vadd.f32 %v2266_v19, %v1470_v43  ;;  %v1573_v48 = vadd.f32 %v2266_v19, %v1502_v44 }
 0x179   : > { %v1094_v49 = vpop.f32.mrf.mxu0  ;;  %v1222_v50 = vpop.f32.mrf.mxu1 }
 0x17a   : > { %1605 = vst [vmem:[%s2275_s15 + $0xd0] sm:$0xff] %v1541_v47  ;;  %1637 = vst [vmem:[%s2275_s15 + $0x1d0] sm:$0xff] %v1573_v48  ;;  %v1471_v51 = vmul.f32 %v2261_v17, %v1094_v49  ;;  %v1503_v52 = vmul.f32 %v2261_v17, %v1222_v50 }
 0x17b   : > { %v1096_v53 = vpop.f32.mrf.mxu0  ;;  %v1224_v54 = vpop.f32.mrf.mxu1 }
 0x17c   : > { %v1542_v55 = vadd.f32 %v2266_v19, %v1471_v51  ;;  %v1574_v56 = vadd.f32 %v2266_v19, %v1503_v52 }
 0x17d   : > { %v1099_v57 = vpop.f32.mrf.mxu0  ;;  %v1227_v58 = vpop.f32.mrf.mxu1 }
 0x17e   : > { %1606 = vst [vmem:[%s2275_s15 + $0xd8] sm:$0xff] %v1542_v55  ;;  %1638 = vst [vmem:[%s2275_s15 + $0x1d8] sm:$0xff] %v1574_v56  ;;  %v1472_v59 = vmul.f32 %v2261_v17, %v1099_v57  ;;  %v1504_v60 = vmul.f32 %v2261_v17, %v1227_v58 }
 0x17f   : > { %v1101_v61 = vpop.f32.mrf.mxu0  ;;  %v1229_v62 = vpop.f32.mrf.mxu1 }
 0x180   : > { %v1543_v63 = vadd.f32 %v2266_v19, %v1472_v59  ;;  %v1575_v0 = vadd.f32 %v2266_v19, %v1504_v60 }
 0x181   : > { %v1102_v1 = vpop.f32.mrf.mxu0  ;;  %v1230_v2 = vpop.f32.mrf.mxu1 }
 0x182   : > { %1607 = vst [vmem:[%s2275_s15 + $0xe0] sm:$0xff] %v1543_v63  ;;  %1639 = vst [vmem:[%s2275_s15 + $0x1e0] sm:$0xff] %v1575_v0  ;;  %v1473_v3 = vmul.f32 %v2261_v17, %v1102_v1  ;;  %v1505_v4 = vmul.f32 %v2261_v17, %v1230_v2 }
 0x183   : > { %v1104_v5 = vpop.f32.mrf.mxu0  ;;  %v1232_v6 = vpop.f32.mrf.mxu1 }
 0x184   : > { %v1544_v7 = vadd.f32 %v2266_v19, %v1473_v3  ;;  %v1576_v8 = vadd.f32 %v2266_v19, %v1505_v4 }
 0x185   : > { %v1107_v9 = vpop.f32.mrf.mxu0  ;;  %v1235_v10 = vpop.f32.mrf.mxu1 }
 0x186   : > { %1608 = vst [vmem:[%s2275_s15 + $0xe8] sm:$0xff] %v1544_v7  ;;  %1640 = vst [vmem:[%s2275_s15 + $0x1e8] sm:$0xff] %v1576_v8  ;;  %v1474_v11 = vmul.f32 %v2261_v17, %v1107_v9  ;;  %v1506_v12 = vmul.f32 %v2261_v17, %v1235_v10 }
 0x187   : > { %v1109_v13 = vpop.f32.mrf.mxu0  ;;  %v1237_v14 = vpop.f32.mrf.mxu1 }
 0x188   : > { %v1545_v15 = vadd.f32 %v2266_v19, %v1474_v11  ;;  %v1577_v16 = vadd.f32 %v2266_v19, %v1506_v12 }
 0x189   : > { %v1110_v18 = vpop.f32.mrf.mxu0  ;;  %v1238_v20 = vpop.f32.mrf.mxu1 }
 0x18a   : > { %1609 = vst [vmem:[%s2275_s15 + $0xf0] sm:$0xff] %v1545_v15  ;;  %1641 = vst [vmem:[%s2275_s15 + $0x1f0] sm:$0xff] %v1577_v16  ;;  %v1475_v21 = vmul.f32 %v2261_v17, %v1110_v18  ;;  %v1507_v22 = vmul.f32 %v2261_v17, %v1238_v20 }
 0x18b   : > { %v1112_v23 = vpop.f32.mrf.mxu0  ;;  %v1240_v24 = vpop.f32.mrf.mxu1 }
 0x18c   : > { %v1546_v25 = vadd.f32 %v2266_v19, %v1475_v21  ;;  %v1578_v26 = vadd.f32 %v2266_v19, %v1507_v22 }
 0x18e   : > { %1610 = vst [vmem:[%s2275_s15 + $0xf8] sm:$0xff] %v1546_v25  ;;  %1642 = vst [vmem:[%s2275_s15 + $0x1f8] sm:$0xff] %v1578_v26 }
 0x18f PF: > { %s14_s17 = sadd.s32 1, %s2058_s17   ;;  %s2481_s15 = smov %s2054_s16 }
 0x190   : > { %p11_p5 = scmp.ge.s32.totalorder %s14_s17, 6   ;;  %s2482_s16 = smov %s2484_s18 }
 0x192   :  { %13 = sbr.rel (!%p11_p5) target bundleno = 2 (0x2), region = 83 }

// kernel: resnet18_forward.24
= control target key start
LH: loop header
LB: loop body
LE: loop exit
PB: predicated region body
PF: predicated region fallthrough
CT: control target
= control target key end

     0   :  { %v1647_v0 = vmov 0   ;;  %s2275_s1 = inlined_call_operand.vmem [shape: bf16[256,128], index: 1, kind: input, shape index: {}]   ;;  %s2276_s0 = inlined_call_operand.vmem [shape: bf16[512,256], index: 0, kind: input, shape index: {}]   ;;  %s2277_s2 = inlined_call_operand.vmem [shape: f32[1,128], index: 2, kind: input, shape index: {}]   ;;  %s2278_s3 = inlined_call_operand.vmem [shape: f32[1,128], index: 3, kind: input, shape index: {}]   ;;  %s2279_s4 = inlined_call_operand.vmem [shape: f32[512,128], index: 4, kind: output, shape index: {}]  }
   0x1   :  { %662 = vmatprep.subr.bf16.mxu0 %v1647_v0  ;;  %1502 = vmatprep.subr.bf16.mxu1 %v1647_v0  ;;  %v1535_v1 = vld [vmem:[%s2275_s1 + $0x38] sm:$0xff]   ;;  %v1536_v2 = vld [vmem:[%s2275_s1 + $0x30] sm:$0xff]   ;;  %v1537_v3 = vld [vmem:[%s2275_s1 + $0x28] sm:$0xff]  }
   0x2   :  { %663 = vmatpush1.bf16.msra.mxu0 %v1535_v1  ;;  %1518 = vmatpush1.bf16.msra.mxu1 %v1535_v1  ;;  %v1538_v4 = vld [vmem:[%s2275_s1 + $0x20] sm:$0xff]   ;;  %v1539_v5 = vld [vmem:[%s2275_s1 + $0x18] sm:$0xff]   ;;  %v1540_v7 = vld [vmem:[%s2275_s1 + $0x10] sm:$0xff]  }
   0x3   :  { %664 = vmatprep.subr.bf16.mxu0 %v1647_v0  ;;  %1503 = vmatprep.subr.bf16.mxu1 %v1647_v0  ;;  %v1553_v6 = vld [vmem:[%s2276_s0 + $0x4] ss:$8 sps:$4 sm:$0xff]   ;;  %v1543_v11 = vld [vmem:[%s2275_s1 + $0x78] sm:$0xff]   ;;  %v1544_v12 = vld [vmem:[%s2275_s1 + $0x70] sm:$0xff]  }
   0x4   :  { %v1556_v8 = vld [vmem:[%s2276_s0 + $0x104] ss:$8 sps:$4 sm:$0xff]   ;;  %694 = vmatprep.mubr.bf16.mxu0 %v1553_v6  ;;  %v1547_v15 = vld [vmem:[%s2275_s1 + $0x58] sm:$0xff]   ;;  %v1548_v16 = vld [vmem:[%s2275_s1 + $0x50] sm:$0xff]  }
   0x5   :  { %822 = vmatprep.mubr.bf16.mxu1 %v1556_v8  ;;  %v1541_v9 = vld [vmem:[%s2275_s1 + $0x8] sm:$0xff]   ;;  %v1542_v10 = vld [vmem:[%s2275_s1] sm:$0xff]   ;;  %v1557_v21 = vld [vmem:[%s2276_s0 + $0x14] ss:$8 sps:$4 sm:$0xff]  }
   0x6   :  { %665 = vmatpush1.bf16.msra.mxu0 %v1536_v2  ;;  %1519 = vmatpush1.bf16.msra.mxu1 %v1536_v2  ;;  %v1545_v13 = vld [vmem:[%s2275_s1 + $0x68] sm:$0xff]   ;;  %v1546_v14 = vld [vmem:[%s2275_s1 + $0x60] sm:$0xff]   ;;  %v1559_v22 = vld [vmem:[%s2276_s0 + $0x114] ss:$8 sps:$4 sm:$0xff]  }
   0x7   :  { %666 = vmatprep.subr.bf16.mxu0 %v1647_v0  ;;  %1504 = vmatprep.subr.bf16.mxu1 %v1647_v0  ;;  %v1549_v17 = vld [vmem:[%s2275_s1 + $0x48] sm:$0xff]   ;;  %v1550_v18 = vld [vmem:[%s2275_s1 + $0x40] sm:$0xff]   ;;  %v1561_v23 = vld [vmem:[%s2276_s0 + $0x10] ss:$8 sps:$4 sm:$0xff]  }
   0x8   :  { %v1551_v19 = vld [vmem:[%s2276_s0] ss:$8 sps:$4 sm:$0xff]   ;;  %v1562_v24 = vld [vmem:[%s2276_s0 + $0x110] ss:$8 sps:$4 sm:$0xff]   ;;  %v1563_v25 = vld [vmem:[%s2276_s0 + $0x24] ss:$8 sps:$4 sm:$0xff]  }
   0x9   :  { %v1554_v20 = vld [vmem:[%s2276_s0 + $0x100] ss:$8 sps:$4 sm:$0xff]   ;;  %v1565_v26 = vld [vmem:[%s2276_s0 + $0x124] ss:$8 sps:$4 sm:$0xff]   ;;  %v1569_v29 = vld [vmem:[%s2276_s0 + $0x34] ss:$8 sps:$4 sm:$0xff]  }
   0xa   :  { %667 = vmatpush1.bf16.msra.mxu0 %v1537_v3  ;;  %1520 = vmatpush1.bf16.msra.mxu1 %v1537_v3  ;;  %v1567_v27 = vld [vmem:[%s2276_s0 + $0x20] ss:$8 sps:$4 sm:$0xff]   ;;  %v1571_v30 = vld [vmem:[%s2276_s0 + $0x134] ss:$8 sps:$4 sm:$0xff]   ;;  %v1573_v31 = vld [vmem:[%s2276_s0 + $0x30] ss:$8 sps:$4 sm:$0xff]  }
   0xb   :  { %668 = vmatprep.subr.bf16.mxu0 %v1647_v0  ;;  %1505 = vmatprep.subr.bf16.mxu1 %v1647_v0  ;;  %v1568_v28 = vld [vmem:[%s2276_s0 + $0x120] ss:$8 sps:$4 sm:$0xff]   ;;  %v1574_v32 = vld [vmem:[%s2276_s0 + $0x130] ss:$8 sps:$4 sm:$0xff]   ;;  %v1575_v33 = vld [vmem:[%s2276_s0 + $0x44] ss:$8 sps:$4 sm:$0xff]  }
   0xc   :  { %v1577_v34 = vld [vmem:[%s2276_s0 + $0x144] ss:$8 sps:$4 sm:$0xff]   ;;  %v1579_v35 = vld [vmem:[%s2276_s0 + $0x40] ss:$8 sps:$4 sm:$0xff]   ;;  %v1581_v37 = vld [vmem:[%s2276_s0 + $0x54] ss:$8 sps:$4 sm:$0xff]  }
   0xd   :  { %v1580_v36 = vld [vmem:[%s2276_s0 + $0x140] ss:$8 sps:$4 sm:$0xff]   ;;  %v1583_v38 = vld [vmem:[%s2276_s0 + $0x154] ss:$8 sps:$4 sm:$0xff]   ;;  %v1585_v39 = vld [vmem:[%s2276_s0 + $0x50] ss:$8 sps:$4 sm:$0xff]  }
   0xe   :  { %669 = vmatpush1.bf16.msra.mxu0 %v1538_v4  ;;  %1521 = vmatpush1.bf16.msra.mxu1 %v1538_v4  ;;  %v1586_v40 = vld [vmem:[%s2276_s0 + $0x150] ss:$8 sps:$4 sm:$0xff]   ;;  %v1587_v41 = vld [vmem:[%s2276_s0 + $0x64] ss:$8 sps:$4 sm:$0xff]   ;;  %v1591_v43 = vld [vmem:[%s2276_s0 + $0x60] ss:$8 sps:$4 sm:$0xff]  }
   0xf   :  { %670 = vmatprep.subr.bf16.mxu0 %v1647_v0  ;;  %1506 = vmatprep.subr.bf16.mxu1 %v1647_v0  ;;  %v1589_v42 = vld [vmem:[%s2276_s0 + $0x164] ss:$8 sps:$4 sm:$0xff]   ;;  %v1592_v44 = vld [vmem:[%s2276_s0 + $0x160] ss:$8 sps:$4 sm:$0xff]   ;;  %v1593_v45 = vld [vmem:[%s2276_s0 + $0x74] ss:$8 sps:$4 sm:$0xff]  }
  0x10   :  { %v1595_v46 = vld [vmem:[%s2276_s0 + $0x174] ss:$8 sps:$4 sm:$0xff]   ;;  %v1597_v47 = vld [vmem:[%s2276_s0 + $0x70] ss:$8 sps:$4 sm:$0xff]   ;;  %v1599_v49 = vld [vmem:[%s2276_s0 + $0x84] ss:$8 sps:$4 sm:$0xff]  }
  0x11   :  { %v1598_v48 = vld [vmem:[%s2276_s0 + $0x170] ss:$8 sps:$4 sm:$0xff]   ;;  %v1601_v50 = vld [vmem:[%s2276_s0 + $0x184] ss:$8 sps:$4 sm:$0xff]   ;;  %v1603_v51 = vld [vmem:[%s2276_s0 + $0x80] ss:$8 sps:$4 sm:$0xff]  }
  0x12   :  { %671 = vmatpush1.bf16.msra.mxu0 %v1539_v5  ;;  %1522 = vmatpush1.bf16.msra.mxu1 %v1539_v5  ;;  %v1604_v52 = vld [vmem:[%s2276_s0 + $0x180] ss:$8 sps:$4 sm:$0xff]   ;;  %v1605_v53 = vld [vmem:[%s2276_s0 + $0x94] ss:$8 sps:$4 sm:$0xff]   ;;  %v1609_v55 = vld [vmem:[%s2276_s0 + $0x90] ss:$8 sps:$4 sm:$0xff]  }
  0x13   :  { %672 = vmatprep.subr.bf16.mxu0 %v1647_v0  ;;  %1507 = vmatprep.subr.bf16.mxu1 %v1647_v0  ;;  %v1607_v54 = vld [vmem:[%s2276_s0 + $0x194] ss:$8 sps:$4 sm:$0xff]   ;;  %v1610_v56 = vld [vmem:[%s2276_s0 + $0x190] ss:$8 sps:$4 sm:$0xff]   ;;  %v1611_v57 = vld [vmem:[%s2276_s0 + $0xa4] ss:$8 sps:$4 sm:$0xff]  }
  0x14   :  { %v1613_v58 = vld [vmem:[%s2276_s0 + $0x1a4] ss:$8 sps:$4 sm:$0xff]   ;;  %v1615_v59 = vld [vmem:[%s2276_s0 + $0xa0] ss:$8 sps:$4 sm:$0xff]   ;;  %v1617_v61 = vld [vmem:[%s2276_s0 + $0xb4] ss:$8 sps:$4 sm:$0xff]  }
  0x15   :  { %v1616_v60 = vld [vmem:[%s2276_s0 + $0x1a0] ss:$8 sps:$4 sm:$0xff]   ;;  %v1619_v62 = vld [vmem:[%s2276_s0 + $0x1b4] ss:$8 sps:$4 sm:$0xff]   ;;  %v1621_v63 = vld [vmem:[%s2276_s0 + $0xb0] ss:$8 sps:$4 sm:$0xff]  }
  0x16   :  { %673 = vmatpush1.bf16.msra.mxu0 %v1540_v7  ;;  %1523 = vmatpush1.bf16.msra.mxu1 %v1540_v7  ;;  %v1623_v1 = vld [vmem:[%s2276_s0 + $0xc4] ss:$8 sps:$4 sm:$0xff]   ;;  %v1627_v3 = vld [vmem:[%s2276_s0 + $0xc0] ss:$8 sps:$4 sm:$0xff]   ;;  %v1629_v5 = vld [vmem:[%s2276_s0 + $0xd4] ss:$8 sps:$4 sm:$0xff]  }
  0x17   :  { %674 = vmatprep.subr.bf16.mxu0 %v1647_v0  ;;  %1508 = vmatprep.subr.bf16.mxu1 %v1647_v0  ;;  %v1625_v2 = vld [vmem:[%s2276_s0 + $0x1c4] ss:$8 sps:$4 sm:$0xff]   ;;  %v1628_v4 = vld [vmem:[%s2276_s0 + $0x1c0] ss:$8 sps:$4 sm:$0xff]   ;;  %v1631_v6 = vld [vmem:[%s2276_s0 + $0x1d4] ss:$8 sps:$4 sm:$0xff]  }
  0x18   :  { %v1633_v7 = vld [vmem:[%s2276_s0 + $0xd0] ss:$8 sps:$4 sm:$0xff]  }
  0x19   :  { %v1634_v8 = vld [vmem:[%s2276_s0 + $0x1d0] ss:$8 sps:$4 sm:$0xff]  }
  0x1a   :  { %675 = vmatpush1.bf16.msra.mxu0 %v1541_v9  ;;  %1524 = vmatpush1.bf16.msra.mxu1 %v1541_v9  ;;  %v1635_v9 = vld [vmem:[%s2276_s0 + $0xe4] ss:$8 sps:$4 sm:$0xff]  }
  0x1b   :  { %676 = vmatprep.subr.bf16.mxu0 %v1647_v0  ;;  %1509 = vmatprep.subr.bf16.mxu1 %v1647_v0 }
  0x1e   :  { %677 = vmatpush1.bf16.msra.mxu0 %v1542_v10  ;;  %1525 = vmatpush1.bf16.msra.mxu1 %v1542_v10  ;;  %v1637_v10 = vld [vmem:[%s2276_s0 + $0x1e4] ss:$8 sps:$4 sm:$0xff]  }
  0x1f   :  { %678 = vmatprep.subr.bf16.mxu0 %v1647_v0  ;;  %1510 = vmatprep.subr.bf16.mxu1 %v1647_v0 }
  0x22   :  { %679 = vmatpush2.bf16.msra.mxu0 %v1543_v11  ;;  %1526 = vmatpush2.bf16.msra.mxu1 %v1543_v11  ;;  %v1639_v11 = vld [vmem:[%s2276_s0 + $0xe0] ss:$8 sps:$4 sm:$0xff]  }
  0x23   :  { %680 = vmatprep.subr.bf16.mxu0 %v1647_v0  ;;  %1511 = vmatprep.subr.bf16.mxu1 %v1647_v0 }
  0x26   :  { %681 = vmatpush2.bf16.msra.mxu0 %v1544_v12  ;;  %1527 = vmatpush2.bf16.msra.mxu1 %v1544_v12  ;;  %v1640_v12 = vld [vmem:[%s2276_s0 + $0x1e0] ss:$8 sps:$4 sm:$0xff]  }
  0x27   :  { %682 = vmatprep.subr.bf16.mxu0 %v1647_v0  ;;  %1512 = vmatprep.subr.bf16.mxu1 %v1647_v0 }
  0x2a   :  { %683 = vmatpush2.bf16.msra.mxu0 %v1545_v13  ;;  %1528 = vmatpush2.bf16.msra.mxu1 %v1545_v13  ;;  %v1641_v13 = vld [vmem:[%s2276_s0 + $0xf4] ss:$8 sps:$4 sm:$0xff]  }
  0x2b   :  { %684 = vmatprep.subr.bf16.mxu0 %v1647_v0  ;;  %1513 = vmatprep.subr.bf16.mxu1 %v1647_v0 }
  0x2e   :  { %685 = vmatpush2.bf16.msra.mxu0 %v1546_v14  ;;  %1529 = vmatpush2.bf16.msra.mxu1 %v1546_v14  ;;  %v1643_v14 = vld [vmem:[%s2276_s0 + $0x1f4] ss:$8 sps:$4 sm:$0xff]  }
  0x2f   :  { %686 = vmatprep.subr.bf16.mxu0 %v1647_v0  ;;  %1514 = vmatprep.subr.bf16.mxu1 %v1647_v0 }
  0x32   :  { %687 = vmatpush2.bf16.msra.mxu0 %v1547_v15  ;;  %1530 = vmatpush2.bf16.msra.mxu1 %v1547_v15  ;;  %v1645_v15 = vld [vmem:[%s2276_s0 + $0xf0] ss:$8 sps:$4 sm:$0xff]  }
  0x33   :  { %688 = vmatprep.subr.bf16.mxu0 %v1647_v0  ;;  %1515 = vmatprep.subr.bf16.mxu1 %v1647_v0 }
  0x36   :  { %689 = vmatpush2.bf16.msra.mxu0 %v1548_v16  ;;  %1531 = vmatpush2.bf16.msra.mxu1 %v1548_v16  ;;  %v1646_v16 = vld [vmem:[%s2276_s0 + $0x1f0] ss:$8 sps:$4 sm:$0xff]  }
  0x37   :  { %690 = vmatprep.subr.bf16.mxu0 %v1647_v0  ;;  %1516 = vmatprep.subr.bf16.mxu1 %v1647_v0 }
  0x3a   :  { %691 = vmatpush2.bf16.msra.mxu0 %v1549_v17  ;;  %1532 = vmatpush2.bf16.msra.mxu1 %v1549_v17  ;;  %v1948_v17 = vld [vmem:[%s2277_s2] ss:$0 sm:$0xff] }
  0x3b   :  { %692 = vmatprep.subr.bf16.mxu0 %v1647_v0  ;;  %1517 = vmatprep.subr.bf16.mxu1 %v1647_v0  ;;  %v1622_v0 = vld [vmem:[%s2276_s0 + $0x1b0] ss:$8 sps:$4 sm:$0xff]  }
  0x3e   :  { %693 = vmatpush2.bf16.msra.mxu0 %v1550_v18  ;;  %1533 = vmatpush2.bf16.msra.mxu1 %v1550_v18 }
  0x41   :  { %695 = vmatmul.mubr.bf16.vlgmr.msra.gmra.mxu0 %v1551_v19  ;;  %823 = vmatmul.mubr.bf16.vlgmr.msra.gmra.mxu1 %v1554_v20  ;;  %v1953_v19 = vld [vmem:[%s2278_s3] ss:$0 sm:$0xff] }
  0x42   :  { %702 = vmatprep.mubr.bf16.mxu0 %v1557_v21  ;;  %830 = vmatprep.mubr.bf16.mxu1 %v1559_v22 }
  0x49   :  { %703 = vmatmul.mubr.bf16.gmra.mxu0 %v1561_v23  ;;  %831 = vmatmul.mubr.bf16.gmra.mxu1 %v1562_v24 }
  0x4a   :  { %710 = vmatprep.mubr.bf16.mxu0 %v1563_v25  ;;  %838 = vmatprep.mubr.bf16.mxu1 %v1565_v26 }
  0x51   :  { %711 = vmatmul.mubr.bf16.gmra.mxu0 %v1567_v27  ;;  %839 = vmatmul.mubr.bf16.gmra.mxu1 %v1568_v28 }
  0x52   :  { %718 = vmatprep.mubr.bf16.mxu0 %v1569_v29  ;;  %846 = vmatprep.mubr.bf16.mxu1 %v1571_v30 }
  0x59   :  { %719 = vmatmul.mubr.bf16.gmra.mxu0 %v1573_v31  ;;  %847 = vmatmul.mubr.bf16.gmra.mxu1 %v1574_v32 }
  0x5a   :  { %726 = vmatprep.mubr.bf16.mxu0 %v1575_v33  ;;  %854 = vmatprep.mubr.bf16.mxu1 %v1577_v34 }
  0x61   :  { %727 = vmatmul.mubr.bf16.gmra.mxu0 %v1579_v35  ;;  %855 = vmatmul.mubr.bf16.gmra.mxu1 %v1580_v36 }
  0x62   :  { %734 = vmatprep.mubr.bf16.mxu0 %v1581_v37  ;;  %862 = vmatprep.mubr.bf16.mxu1 %v1583_v38 }
  0x69   :  { %735 = vmatmul.mubr.bf16.gmra.mxu0 %v1585_v39  ;;  %863 = vmatmul.mubr.bf16.gmra.mxu1 %v1586_v40 }
  0x6a   :  { %742 = vmatprep.mubr.bf16.mxu0 %v1587_v41  ;;  %870 = vmatprep.mubr.bf16.mxu1 %v1589_v42 }
  0x71   :  { %743 = vmatmul.mubr.bf16.gmra.mxu0 %v1591_v43  ;;  %871 = vmatmul.mubr.bf16.gmra.mxu1 %v1592_v44 }
  0x72   :  { %750 = vmatprep.mubr.bf16.mxu0 %v1593_v45  ;;  %878 = vmatprep.mubr.bf16.mxu1 %v1595_v46 }
  0x79   :  { %751 = vmatmul.mubr.bf16.gmra.mxu0 %v1597_v47  ;;  %879 = vmatmul.mubr.bf16.gmra.mxu1 %v1598_v48 }
  0x7a   :  { %758 = vmatprep.mubr.bf16.mxu0 %v1599_v49  ;;  %886 = vmatprep.mubr.bf16.mxu1 %v1601_v50 }
  0x81   :  { %759 = vmatmul.mubr.bf16.gmra.mxu0 %v1603_v51  ;;  %887 = vmatmul.mubr.bf16.gmra.mxu1 %v1604_v52 }
  0x82   :  { %766 = vmatprep.mubr.bf16.mxu0 %v1605_v53  ;;  %894 = vmatprep.mubr.bf16.mxu1 %v1607_v54 }
  0x89   :  { %767 = vmatmul.mubr.bf16.gmra.mxu0 %v1609_v55  ;;  %895 = vmatmul.mubr.bf16.gmra.mxu1 %v1610_v56 }
  0x8a   :  { %774 = vmatprep.mubr.bf16.mxu0 %v1611_v57  ;;  %902 = vmatprep.mubr.bf16.mxu1 %v1613_v58 }
  0x91   :  { %775 = vmatmul.mubr.bf16.gmra.mxu0 %v1615_v59  ;;  %903 = vmatmul.mubr.bf16.gmra.mxu1 %v1616_v60 }
  0x92   :  { %782 = vmatprep.mubr.bf16.mxu0 %v1617_v61  ;;  %910 = vmatprep.mubr.bf16.mxu1 %v1619_v62 }
  0x99   :  { %783 = vmatmul.mubr.bf16.gmra.mxu0 %v1621_v63  ;;  %911 = vmatmul.mubr.bf16.gmra.mxu1 %v1622_v0 }
  0x9a   :  { %790 = vmatprep.mubr.bf16.mxu0 %v1623_v1  ;;  %918 = vmatprep.mubr.bf16.mxu1 %v1625_v2 }
  0xa1   :  { %791 = vmatmul.mubr.bf16.gmra.mxu0 %v1627_v3  ;;  %919 = vmatmul.mubr.bf16.gmra.mxu1 %v1628_v4 }
  0xa2   :  { %798 = vmatprep.mubr.bf16.mxu0 %v1629_v5  ;;  %926 = vmatprep.mubr.bf16.mxu1 %v1631_v6 }
  0xa9   :  { %799 = vmatmul.mubr.bf16.gmra.mxu0 %v1633_v7  ;;  %927 = vmatmul.mubr.bf16.gmra.mxu1 %v1634_v8 }
  0xaa   :  { %806 = vmatprep.mubr.bf16.mxu0 %v1635_v9  ;;  %934 = vmatprep.mubr.bf16.mxu1 %v1637_v10 }
  0xb1   :  { %807 = vmatmul.mubr.bf16.gmra.mxu0 %v1639_v11  ;;  %935 = vmatmul.mubr.bf16.gmra.mxu1 %v1640_v12 }
  0xb2   :  { %814 = vmatprep.mubr.bf16.mxu0 %v1641_v13  ;;  %942 = vmatprep.mubr.bf16.mxu1 %v1643_v14 }
  0xb9   :  { %815 = vmatmul.mubr.bf16.gmra.mxu0 %v1645_v15  ;;  %943 = vmatmul.mubr.bf16.gmra.mxu1 %v1646_v16 }
 0x101   :  { %v696_v18 = vpop.f32.mrf.mxu0  ;;  %v824_v20 = vpop.f32.mrf.mxu1 }
 0x102   :  { %v1153_v21 = vmul.f32 %v1948_v17, %v696_v18  ;;  %v1185_v22 = vmul.f32 %v1948_v17, %v824_v20 }
 0x103   :  { %v698_v23 = vpop.f32.mrf.mxu0  ;;  %v826_v24 = vpop.f32.mrf.mxu1 }
 0x104   :  { %v1224_v25 = vadd.f32 %v1953_v19, %v1153_v21  ;;  %v1256_v26 = vadd.f32 %v1953_v19, %v1185_v22 }
 0x105   :  { %v699_v27 = vpop.f32.mrf.mxu0  ;;  %v827_v28 = vpop.f32.mrf.mxu1 }
 0x106   :  { %v1288_v29 = vmax.f32 %v1224_v25, 0.0  ;;  %v1320_v30 = vmax.f32 %v1256_v26, 0.0  ;;  %v1154_v31 = vmul.f32 %v1948_v17, %v699_v27  ;;  %v1186_v32 = vmul.f32 %v1948_v17, %v827_v28 }
 0x107   :  { %v701_v33 = vpop.f32.mrf.mxu0  ;;  %v829_v34 = vpop.f32.mrf.mxu1 }
 0x108   :  { %1352 = vst [vmem:[%s2279_s4] sm:$0xff] %v1288_v29  ;;  %1384 = vst [vmem:[%s2279_s4 + $0x100] sm:$0xff] %v1320_v30  ;;  %v1225_v35 = vadd.f32 %v1953_v19, %v1154_v31  ;;  %v1257_v36 = vadd.f32 %v1953_v19, %v1186_v32 }
 0x109   :  { %v704_v37 = vpop.f32.mrf.mxu0  ;;  %v832_v38 = vpop.f32.mrf.mxu1 }
 0x10a   :  { %v1289_v39 = vmax.f32 %v1225_v35, 0.0  ;;  %v1321_v40 = vmax.f32 %v1257_v36, 0.0  ;;  %v1155_v41 = vmul.f32 %v1948_v17, %v704_v37  ;;  %v1187_v42 = vmul.f32 %v1948_v17, %v832_v38 }
 0x10b   :  { %v706_v43 = vpop.f32.mrf.mxu0  ;;  %v834_v44 = vpop.f32.mrf.mxu1 }
 0x10c   :  { %1353 = vst [vmem:[%s2279_s4 + $0x8] sm:$0xff] %v1289_v39  ;;  %1385 = vst [vmem:[%s2279_s4 + $0x108] sm:$0xff] %v1321_v40  ;;  %v1226_v45 = vadd.f32 %v1953_v19, %v1155_v41  ;;  %v1258_v46 = vadd.f32 %v1953_v19, %v1187_v42 }
 0x10d   :  { %v707_v47 = vpop.f32.mrf.mxu0  ;;  %v835_v48 = vpop.f32.mrf.mxu1 }
 0x10e   :  { %v1290_v49 = vmax.f32 %v1226_v45, 0.0  ;;  %v1322_v50 = vmax.f32 %v1258_v46, 0.0  ;;  %v1156_v51 = vmul.f32 %v1948_v17, %v707_v47  ;;  %v1188_v52 = vmul.f32 %v1948_v17, %v835_v48 }
 0x10f   :  { %v709_v53 = vpop.f32.mrf.mxu0  ;;  %v837_v54 = vpop.f32.mrf.mxu1 }
 0x110   :  { %1354 = vst [vmem:[%s2279_s4 + $0x10] sm:$0xff] %v1290_v49  ;;  %1386 = vst [vmem:[%s2279_s4 + $0x110] sm:$0xff] %v1322_v50  ;;  %v1227_v55 = vadd.f32 %v1953_v19, %v1156_v51  ;;  %v1259_v56 = vadd.f32 %v1953_v19, %v1188_v52 }
 0x111   :  { %v712_v57 = vpop.f32.mrf.mxu0  ;;  %v840_v58 = vpop.f32.mrf.mxu1 }
 0x112   :  { %v1291_v59 = vmax.f32 %v1227_v55, 0.0  ;;  %v1323_v60 = vmax.f32 %v1259_v56, 0.0  ;;  %v1157_v61 = vmul.f32 %v1948_v17, %v712_v57  ;;  %v1189_v62 = vmul.f32 %v1948_v17, %v840_v58 }
 0x113   :  { %v714_v63 = vpop.f32.mrf.mxu0  ;;  %v842_v0 = vpop.f32.mrf.mxu1 }
 0x114   :  { %1355 = vst [vmem:[%s2279_s4 + $0x18] sm:$0xff] %v1291_v59  ;;  %1387 = vst [vmem:[%s2279_s4 + $0x118] sm:$0xff] %v1323_v60  ;;  %v1228_v1 = vadd.f32 %v1953_v19, %v1157_v61  ;;  %v1260_v2 = vadd.f32 %v1953_v19, %v1189_v62 }
 0x115   :  { %v715_v3 = vpop.f32.mrf.mxu0  ;;  %v843_v4 = vpop.f32.mrf.mxu1 }
 0x116   :  { %v1292_v5 = vmax.f32 %v1228_v1, 0.0  ;;  %v1324_v6 = vmax.f32 %v1260_v2, 0.0  ;;  %v1158_v7 = vmul.f32 %v1948_v17, %v715_v3  ;;  %v1190_v8 = vmul.f32 %v1948_v17, %v843_v4 }
 0x117   :  { %v717_v9 = vpop.f32.mrf.mxu0  ;;  %v845_v10 = vpop.f32.mrf.mxu1 }
 0x118   :  { %1356 = vst [vmem:[%s2279_s4 + $0x20] sm:$0xff] %v1292_v5  ;;  %1388 = vst [vmem:[%s2279_s4 + $0x120] sm:$0xff] %v1324_v6  ;;  %v1229_v11 = vadd.f32 %v1953_v19, %v1158_v7  ;;  %v1261_v12 = vadd.f32 %v1953_v19, %v1190_v8 }
 0x119   :  { %v720_v13 = vpop.f32.mrf.mxu0  ;;  %v848_v14 = vpop.f32.mrf.mxu1 }
 0x11a   :  { %v1293_v15 = vmax.f32 %v1229_v11, 0.0  ;;  %v1325_v16 = vmax.f32 %v1261_v12, 0.0  ;;  %v1159_v18 = vmul.f32 %v1948_v17, %v720_v13  ;;  %v1191_v20 = vmul.f32 %v1948_v17, %v848_v14 }
 0x11b   :  { %v722_v21 = vpop.f32.mrf.mxu0  ;;  %v850_v22 = vpop.f32.mrf.mxu1 }
 0x11c   :  { %1357 = vst [vmem:[%s2279_s4 + $0x28] sm:$0xff] %v1293_v15  ;;  %1389 = vst [vmem:[%s2279_s4 + $0x128] sm:$0xff] %v1325_v16  ;;  %v1230_v23 = vadd.f32 %v1953_v19, %v1159_v18  ;;  %v1262_v24 = vadd.f32 %v1953_v19, %v1191_v20 }
 0x11d   :  { %v723_v25 = vpop.f32.mrf.mxu0  ;;  %v851_v26 = vpop.f32.mrf.mxu1 }
 0x11e   :  { %v1294_v27 = vmax.f32 %v1230_v23, 0.0  ;;  %v1326_v28 = vmax.f32 %v1262_v24, 0.0  ;;  %v1160_v29 = vmul.f32 %v1948_v17, %v723_v25  ;;  %v1192_v30 = vmul.f32 %v1948_v17, %v851_v26 }
 0x11f   :  { %v725_v31 = vpop.f32.mrf.mxu0  ;;  %v853_v32 = vpop.f32.mrf.mxu1 }
 0x120   :  { %1358 = vst [vmem:[%s2279_s4 + $0x30] sm:$0xff] %v1294_v27  ;;  %1390 = vst [vmem:[%s2279_s4 + $0x130] sm:$0xff] %v1326_v28  ;;  %v1231_v33 = vadd.f32 %v1953_v19, %v1160_v29  ;;  %v1263_v34 = vadd.f32 %v1953_v19, %v1192_v30 }
 0x121   :  { %v728_v35 = vpop.f32.mrf.mxu0  ;;  %v856_v36 = vpop.f32.mrf.mxu1 }
 0x122   :  { %v1295_v37 = vmax.f32 %v1231_v33, 0.0  ;;  %v1327_v38 = vmax.f32 %v1263_v34, 0.0  ;;  %v1161_v39 = vmul.f32 %v1948_v17, %v728_v35  ;;  %v1193_v40 = vmul.f32 %v1948_v17, %v856_v36 }
 0x123   :  { %v730_v41 = vpop.f32.mrf.mxu0  ;;  %v858_v42 = vpop.f32.mrf.mxu1 }
 0x124   :  { %1359 = vst [vmem:[%s2279_s4 + $0x38] sm:$0xff] %v1295_v37  ;;  %1391 = vst [vmem:[%s2279_s4 + $0x138] sm:$0xff] %v1327_v38  ;;  %v1232_v43 = vadd.f32 %v1953_v19, %v1161_v39  ;;  %v1264_v44 = vadd.f32 %v1953_v19, %v1193_v40 }
 0x125   :  { %v731_v45 = vpop.f32.mrf.mxu0  ;;  %v859_v46 = vpop.f32.mrf.mxu1 }
 0x126   :  { %v1296_v47 = vmax.f32 %v1232_v43, 0.0  ;;  %v1328_v48 = vmax.f32 %v1264_v44, 0.0  ;;  %v1162_v49 = vmul.f32 %v1948_v17, %v731_v45  ;;  %v1194_v50 = vmul.f32 %v1948_v17, %v859_v46 }
 0x127   :  { %v733_v51 = vpop.f32.mrf.mxu0  ;;  %v861_v52 = vpop.f32.mrf.mxu1 }
 0x128   :  { %1360 = vst [vmem:[%s2279_s4 + $0x40] sm:$0xff] %v1296_v47  ;;  %1392 = vst [vmem:[%s2279_s4 + $0x140] sm:$0xff] %v1328_v48  ;;  %v1233_v53 = vadd.f32 %v1953_v19, %v1162_v49  ;;  %v1265_v54 = vadd.f32 %v1953_v19, %v1194_v50 }
 0x129   :  { %v736_v55 = vpop.f32.mrf.mxu0  ;;  %v864_v56 = vpop.f32.mrf.mxu1 }
 0x12a   :  { %v1297_v57 = vmax.f32 %v1233_v53, 0.0  ;;  %v1329_v58 = vmax.f32 %v1265_v54, 0.0  ;;  %v1163_v59 = vmul.f32 %v1948_v17, %v736_v55  ;;  %v1195_v60 = vmul.f32 %v1948_v17, %v864_v56 }
 0x12b   :  { %v738_v61 = vpop.f32.mrf.mxu0  ;;  %v866_v62 = vpop.f32.mrf.mxu1 }
 0x12c   :  { %1361 = vst [vmem:[%s2279_s4 + $0x48] sm:$0xff] %v1297_v57  ;;  %1393 = vst [vmem:[%s2279_s4 + $0x148] sm:$0xff] %v1329_v58  ;;  %v1234_v63 = vadd.f32 %v1953_v19, %v1163_v59  ;;  %v1266_v0 = vadd.f32 %v1953_v19, %v1195_v60 }
 0x12d   :  { %v739_v1 = vpop.f32.mrf.mxu0  ;;  %v867_v2 = vpop.f32.mrf.mxu1 }
 0x12e   :  { %v1298_v3 = vmax.f32 %v1234_v63, 0.0  ;;  %v1330_v4 = vmax.f32 %v1266_v0, 0.0  ;;  %v1164_v5 = vmul.f32 %v1948_v17, %v739_v1  ;;  %v1196_v6 = vmul.f32 %v1948_v17, %v867_v2 }
 0x12f   :  { %v741_v7 = vpop.f32.mrf.mxu0  ;;  %v869_v8 = vpop.f32.mrf.mxu1 }
 0x130   :  { %1362 = vst [vmem:[%s2279_s4 + $0x50] sm:$0xff] %v1298_v3  ;;  %1394 = vst [vmem:[%s2279_s4 + $0x150] sm:$0xff] %v1330_v4  ;;  %v1235_v9 = vadd.f32 %v1953_v19, %v1164_v5  ;;  %v1267_v10 = vadd.f32 %v1953_v19, %v1196_v6 }
 0x131   :  { %v744_v11 = vpop.f32.mrf.mxu0  ;;  %v872_v12 = vpop.f32.mrf.mxu1 }
 0x132   :  { %v1299_v13 = vmax.f32 %v1235_v9, 0.0  ;;  %v1331_v14 = vmax.f32 %v1267_v10, 0.0  ;;  %v1165_v15 = vmul.f32 %v1948_v17, %v744_v11  ;;  %v1197_v16 = vmul.f32 %v1948_v17, %v872_v12 }
 0x133   :  { %v746_v18 = vpop.f32.mrf.mxu0  ;;  %v874_v20 = vpop.f32.mrf.mxu1 }
 0x134   :  { %1363 = vst [vmem:[%s2279_s4 + $0x58] sm:$0xff] %v1299_v13  ;;  %1395 = vst [vmem:[%s2279_s4 + $0x158] sm:$0xff] %v1331_v14  ;;  %v1236_v21 = vadd.f32 %v1953_v19, %v1165_v15  ;;  %v1268_v22 = vadd.f32 %v1953_v19, %v1197_v16 }
 0x135   :  { %v747_v23 = vpop.f32.mrf.mxu0  ;;  %v875_v24 = vpop.f32.mrf.mxu1 }
 0x136   :  { %v1300_v25 = vmax.f32 %v1236_v21, 0.0  ;;  %v1332_v26 = vmax.f32 %v1268_v22, 0.0  ;;  %v1166_v27 = vmul.f32 %v1948_v17, %v747_v23  ;;  %v1198_v28 = vmul.f32 %v1948_v17, %v875_v24 }
 0x137   :  { %v749_v29 = vpop.f32.mrf.mxu0  ;;  %v877_v30 = vpop.f32.mrf.mxu1 }
 0x138   :  { %1364 = vst [vmem:[%s2279_s4 + $0x60] sm:$0xff] %v1300_v25  ;;  %1396 = vst [vmem:[%s2279_s4 + $0x160] sm:$0xff] %v1332_v26  ;;  %v1237_v31 = vadd.f32 %v1953_v19, %v1166_v27  ;;  %v1269_v32 = vadd.f32 %v1953_v19, %v1198_v28 }
 0x139   :  { %v752_v33 = vpop.f32.mrf.mxu0  ;;  %v880_v34 = vpop.f32.mrf.mxu1 }
 0x13a   :  { %v1301_v35 = vmax.f32 %v1237_v31, 0.0  ;;  %v1333_v36 = vmax.f32 %v1269_v32, 0.0  ;;  %v1167_v37 = vmul.f32 %v1948_v17, %v752_v33  ;;  %v1199_v38 = vmul.f32 %v1948_v17, %v880_v34 }
 0x13b   :  { %v754_v39 = vpop.f32.mrf.mxu0  ;;  %v882_v40 = vpop.f32.mrf.mxu1 }
 0x13c   :  { %1365 = vst [vmem:[%s2279_s4 + $0x68] sm:$0xff] %v1301_v35  ;;  %1397 = vst [vmem:[%s2279_s4 + $0x168] sm:$0xff] %v1333_v36  ;;  %v1238_v41 = vadd.f32 %v1953_v19, %v1167_v37  ;;  %v1270_v42 = vadd.f32 %v1953_v19, %v1199_v38 }
 0x13d   :  { %v755_v43 = vpop.f32.mrf.mxu0  ;;  %v883_v44 = vpop.f32.mrf.mxu1 }
 0x13e   :  { %v1302_v45 = vmax.f32 %v1238_v41, 0.0  ;;  %v1334_v46 = vmax.f32 %v1270_v42, 0.0  ;;  %v1168_v47 = vmul.f32 %v1948_v17, %v755_v43  ;;  %v1200_v48 = vmul.f32 %v1948_v17, %v883_v44 }
 0x13f   :  { %v757_v49 = vpop.f32.mrf.mxu0  ;;  %v885_v50 = vpop.f32.mrf.mxu1 }
 0x140   :  { %1366 = vst [vmem:[%s2279_s4 + $0x70] sm:$0xff] %v1302_v45  ;;  %1398 = vst [vmem:[%s2279_s4 + $0x170] sm:$0xff] %v1334_v46  ;;  %v1239_v51 = vadd.f32 %v1953_v19, %v1168_v47  ;;  %v1271_v52 = vadd.f32 %v1953_v19, %v1200_v48 }
 0x141   :  { %v760_v53 = vpop.f32.mrf.mxu0  ;;  %v888_v54 = vpop.f32.mrf.mxu1 }
 0x142   :  { %v1303_v55 = vmax.f32 %v1239_v51, 0.0  ;;  %v1335_v56 = vmax.f32 %v1271_v52, 0.0  ;;  %v1169_v57 = vmul.f32 %v1948_v17, %v760_v53  ;;  %v1201_v58 = vmul.f32 %v1948_v17, %v888_v54 }
 0x143   :  { %v762_v59 = vpop.f32.mrf.mxu0  ;;  %v890_v60 = vpop.f32.mrf.mxu1 }
 0x144   :  { %1367 = vst [vmem:[%s2279_s4 + $0x78] sm:$0xff] %v1303_v55  ;;  %1399 = vst [vmem:[%s2279_s4 + $0x178] sm:$0xff] %v1335_v56  ;;  %v1240_v61 = vadd.f32 %v1953_v19, %v1169_v57  ;;  %v1272_v62 = vadd.f32 %v1953_v19, %v1201_v58 }
 0x145   :  { %v763_v63 = vpop.f32.mrf.mxu0  ;;  %v891_v0 = vpop.f32.mrf.mxu1 }
 0x146   :  { %v1304_v1 = vmax.f32 %v1240_v61, 0.0  ;;  %v1336_v2 = vmax.f32 %v1272_v62, 0.0  ;;  %v1170_v3 = vmul.f32 %v1948_v17, %v763_v63  ;;  %v1202_v4 = vmul.f32 %v1948_v17, %v891_v0 }
 0x147   :  { %v765_v5 = vpop.f32.mrf.mxu0  ;;  %v893_v6 = vpop.f32.mrf.mxu1 }
 0x148   :  { %1368 = vst [vmem:[%s2279_s4 + $0x80] sm:$0xff] %v1304_v1  ;;  %1400 = vst [vmem:[%s2279_s4 + $0x180] sm:$0xff] %v1336_v2  ;;  %v1241_v7 = vadd.f32 %v1953_v19, %v1170_v3  ;;  %v1273_v8 = vadd.f32 %v1953_v19, %v1202_v4 }
 0x149   :  { %v768_v9 = vpop.f32.mrf.mxu0  ;;  %v896_v10 = vpop.f32.mrf.mxu1 }
 0x14a   :  { %v1305_v11 = vmax.f32 %v1241_v7, 0.0  ;;  %v1337_v12 = vmax.f32 %v1273_v8, 0.0  ;;  %v1171_v13 = vmul.f32 %v1948_v17, %v768_v9  ;;  %v1203_v14 = vmul.f32 %v1948_v17, %v896_v10 }
 0x14b   :  { %v770_v15 = vpop.f32.mrf.mxu0  ;;  %v898_v16 = vpop.f32.mrf.mxu1 }
 0x14c   :  { %1369 = vst [vmem:[%s2279_s4 + $0x88] sm:$0xff] %v1305_v11  ;;  %1401 = vst [vmem:[%s2279_s4 + $0x188] sm:$0xff] %v1337_v12  ;;  %v1242_v18 = vadd.f32 %v1953_v19, %v1171_v13  ;;  %v1274_v20 = vadd.f32 %v1953_v19, %v1203_v14 }
 0x14d   :  { %v771_v21 = vpop.f32.mrf.mxu0  ;;  %v899_v22 = vpop.f32.mrf.mxu1 }
 0x14e   :  { %v1306_v23 = vmax.f32 %v1242_v18, 0.0  ;;  %v1338_v24 = vmax.f32 %v1274_v20, 0.0  ;;  %v1172_v25 = vmul.f32 %v1948_v17, %v771_v21  ;;  %v1204_v26 = vmul.f32 %v1948_v17, %v899_v22 }
 0x14f   :  { %v773_v27 = vpop.f32.mrf.mxu0  ;;  %v901_v28 = vpop.f32.mrf.mxu1 }
 0x150   :  { %1370 = vst [vmem:[%s2279_s4 + $0x90] sm:$0xff] %v1306_v23  ;;  %1402 = vst [vmem:[%s2279_s4 + $0x190] sm:$0xff] %v1338_v24  ;;  %v1243_v29 = vadd.f32 %v1953_v19, %v1172_v25  ;;  %v1275_v30 = vadd.f32 %v1953_v19, %v1204_v26 }
 0x151   :  { %v776_v31 = vpop.f32.mrf.mxu0  ;;  %v904_v32 = vpop.f32.mrf.mxu1 }
 0x152   :  { %v1307_v33 = vmax.f32 %v1243_v29, 0.0  ;;  %v1339_v34 = vmax.f32 %v1275_v30, 0.0  ;;  %v1173_v35 = vmul.f32 %v1948_v17, %v776_v31  ;;  %v1205_v36 = vmul.f32 %v1948_v17, %v904_v32 }
 0x153   :  { %v778_v37 = vpop.f32.mrf.mxu0  ;;  %v906_v38 = vpop.f32.mrf.mxu1 }
 0x154   :  { %1371 = vst [vmem:[%s2279_s4 + $0x98] sm:$0xff] %v1307_v33  ;;  %1403 = vst [vmem:[%s2279_s4 + $0x198] sm:$0xff] %v1339_v34  ;;  %v1244_v39 = vadd.f32 %v1953_v19, %v1173_v35  ;;  %v1276_v40 = vadd.f32 %v1953_v19, %v1205_v36 }
 0x155   :  { %v779_v41 = vpop.f32.mrf.mxu0  ;;  %v907_v42 = vpop.f32.mrf.mxu1 }
 0x156   :  { %v1308_v43 = vmax.f32 %v1244_v39, 0.0  ;;  %v1340_v44 = vmax.f32 %v1276_v40, 0.0  ;;  %v1174_v45 = vmul.f32 %v1948_v17, %v779_v41  ;;  %v1206_v46 = vmul.f32 %v1948_v17, %v907_v42 }
 0x157   :  { %v781_v47 = vpop.f32.mrf.mxu0  ;;  %v909_v48 = vpop.f32.mrf.mxu1 }
 0x158   :  { %1372 = vst [vmem:[%s2279_s4 + $0xa0] sm:$0xff] %v1308_v43  ;;  %1404 = vst [vmem:[%s2279_s4 + $0x1a0] sm:$0xff] %v1340_v44  ;;  %v1245_v49 = vadd.f32 %v1953_v19, %v1174_v45  ;;  %v1277_v50 = vadd.f32 %v1953_v19, %v1206_v46 }
 0x159   :  { %v784_v51 = vpop.f32.mrf.mxu0  ;;  %v912_v52 = vpop.f32.mrf.mxu1 }
 0x15a   :  { %v1309_v53 = vmax.f32 %v1245_v49, 0.0  ;;  %v1341_v54 = vmax.f32 %v1277_v50, 0.0  ;;  %v1175_v55 = vmul.f32 %v1948_v17, %v784_v51  ;;  %v1207_v56 = vmul.f32 %v1948_v17, %v912_v52 }
 0x15b   :  { %v786_v57 = vpop.f32.mrf.mxu0  ;;  %v914_v58 = vpop.f32.mrf.mxu1 }
 0x15c   :  { %1373 = vst [vmem:[%s2279_s4 + $0xa8] sm:$0xff] %v1309_v53  ;;  %1405 = vst [vmem:[%s2279_s4 + $0x1a8] sm:$0xff] %v1341_v54  ;;  %v1246_v59 = vadd.f32 %v1953_v19, %v1175_v55  ;;  %v1278_v60 = vadd.f32 %v1953_v19, %v1207_v56 }
 0x15d   :  { %v787_v61 = vpop.f32.mrf.mxu0  ;;  %v915_v62 = vpop.f32.mrf.mxu1 }
 0x15e   :  { %v1310_v63 = vmax.f32 %v1246_v59, 0.0  ;;  %v1342_v0 = vmax.f32 %v1278_v60, 0.0  ;;  %v1176_v1 = vmul.f32 %v1948_v17, %v787_v61  ;;  %v1208_v2 = vmul.f32 %v1948_v17, %v915_v62 }
 0x15f   :  { %v789_v3 = vpop.f32.mrf.mxu0  ;;  %v917_v4 = vpop.f32.mrf.mxu1 }
 0x160   :  { %1374 = vst [vmem:[%s2279_s4 + $0xb0] sm:$0xff] %v1310_v63  ;;  %1406 = vst [vmem:[%s2279_s4 + $0x1b0] sm:$0xff] %v1342_v0  ;;  %v1247_v5 = vadd.f32 %v1953_v19, %v1176_v1  ;;  %v1279_v6 = vadd.f32 %v1953_v19, %v1208_v2 }
 0x161   :  { %v792_v7 = vpop.f32.mrf.mxu0  ;;  %v920_v8 = vpop.f32.mrf.mxu1 }
 0x162   :  { %v1311_v9 = vmax.f32 %v1247_v5, 0.0  ;;  %v1343_v10 = vmax.f32 %v1279_v6, 0.0  ;;  %v1177_v11 = vmul.f32 %v1948_v17, %v792_v7  ;;  %v1209_v12 = vmul.f32 %v1948_v17, %v920_v8 }
 0x163   :  { %v794_v13 = vpop.f32.mrf.mxu0  ;;  %v922_v14 = vpop.f32.mrf.mxu1 }
 0x164   :  { %1375 = vst [vmem:[%s2279_s4 + $0xb8] sm:$0xff] %v1311_v9  ;;  %1407 = vst [vmem:[%s2279_s4 + $0x1b8] sm:$0xff] %v1343_v10  ;;  %v1248_v15 = vadd.f32 %v1953_v19, %v1177_v11  ;;  %v1280_v16 = vadd.f32 %v1953_v19, %v1209_v12 }
 0x165   :  { %v795_v18 = vpop.f32.mrf.mxu0  ;;  %v923_v20 = vpop.f32.mrf.mxu1 }
 0x166   :  { %v1312_v21 = vmax.f32 %v1248_v15, 0.0  ;;  %v1344_v22 = vmax.f32 %v1280_v16, 0.0  ;;  %v1178_v23 = vmul.f32 %v1948_v17, %v795_v18  ;;  %v1210_v24 = vmul.f32 %v1948_v17, %v923_v20 }
 0x167   :  { %v797_v25 = vpop.f32.mrf.mxu0  ;;  %v925_v26 = vpop.f32.mrf.mxu1 }
 0x168   :  { %1376 = vst [vmem:[%s2279_s4 + $0xc0] sm:$0xff] %v1312_v21  ;;  %1408 = vst [vmem:[%s2279_s4 + $0x1c0] sm:$0xff] %v1344_v22  ;;  %v1249_v27 = vadd.f32 %v1953_v19, %v1178_v23  ;;  %v1281_v28 = vadd.f32 %v1953_v19, %v1210_v24 }
 0x169   :  { %v800_v29 = vpop.f32.mrf.mxu0  ;;  %v928_v30 = vpop.f32.mrf.mxu1 }
 0x16a   :  { %v1313_v31 = vmax.f32 %v1249_v27, 0.0  ;;  %v1345_v32 = vmax.f32 %v1281_v28, 0.0  ;;  %v1179_v33 = vmul.f32 %v1948_v17, %v800_v29  ;;  %v1211_v34 = vmul.f32 %v1948_v17, %v928_v30 }
 0x16b   :  { %v802_v35 = vpop.f32.mrf.mxu0  ;;  %v930_v36 = vpop.f32.mrf.mxu1 }
 0x16c   :  { %1377 = vst [vmem:[%s2279_s4 + $0xc8] sm:$0xff] %v1313_v31  ;;  %1409 = vst [vmem:[%s2279_s4 + $0x1c8] sm:$0xff] %v1345_v32  ;;  %v1250_v37 = vadd.f32 %v1953_v19, %v1179_v33  ;;  %v1282_v38 = vadd.f32 %v1953_v19, %v1211_v34 }
 0x16d   :  { %v803_v39 = vpop.f32.mrf.mxu0  ;;  %v931_v40 = vpop.f32.mrf.mxu1 }
 0x16e   :  { %v1314_v41 = vmax.f32 %v1250_v37, 0.0  ;;  %v1346_v42 = vmax.f32 %v1282_v38, 0.0  ;;  %v1180_v43 = vmul.f32 %v1948_v17, %v803_v39  ;;  %v1212_v44 = vmul.f32 %v1948_v17, %v931_v40 }
 0x16f   :  { %v805_v45 = vpop.f32.mrf.mxu0  ;;  %v933_v46 = vpop.f32.mrf.mxu1 }
 0x170   :  { %1378 = vst [vmem:[%s2279_s4 + $0xd0] sm:$0xff] %v1314_v41  ;;  %1410 = vst [vmem:[%s2279_s4 + $0x1d0] sm:$0xff] %v1346_v42  ;;  %v1251_v47 = vadd.f32 %v1953_v19, %v1180_v43  ;;  %v1283_v48 = vadd.f32 %v1953_v19, %v1212_v44 }
 0x171   :  { %v808_v49 = vpop.f32.mrf.mxu0  ;;  %v936_v50 = vpop.f32.mrf.mxu1 }
 0x172   :  { %v1315_v51 = vmax.f32 %v1251_v47, 0.0  ;;  %v1347_v52 = vmax.f32 %v1283_v48, 0.0  ;;  %v1181_v53 = vmul.f32 %v1948_v17, %v808_v49  ;;  %v1213_v54 = vmul.f32 %v1948_v17, %v936_v50 }
 0x173   :  { %v810_v55 = vpop.f32.mrf.mxu0  ;;  %v938_v56 = vpop.f32.mrf.mxu1 }
 0x174   :  { %1379 = vst [vmem:[%s2279_s4 + $0xd8] sm:$0xff] %v1315_v51  ;;  %1411 = vst [vmem:[%s2279_s4 + $0x1d8] sm:$0xff] %v1347_v52  ;;  %v1252_v57 = vadd.f32 %v1953_v19, %v1181_v53  ;;  %v1284_v58 = vadd.f32 %v1953_v19, %v1213_v54 }
 0x175   :  { %v811_v59 = vpop.f32.mrf.mxu0  ;;  %v939_v60 = vpop.f32.mrf.mxu1 }
 0x176   :  { %v1316_v61 = vmax.f32 %v1252_v57, 0.0  ;;  %v1348_v62 = vmax.f32 %v1284_v58, 0.0  ;;  %v1182_v63 = vmul.f32 %v1948_v17, %v811_v59  ;;  %v1214_v0 = vmul.f32 %v1948_v17, %v939_v60 }
 0x177   :  { %v813_v1 = vpop.f32.mrf.mxu0  ;;  %v941_v2 = vpop.f32.mrf.mxu1 }
 0x178   :  { %1380 = vst [vmem:[%s2279_s4 + $0xe0] sm:$0xff] %v1316_v61  ;;  %1412 = vst [vmem:[%s2279_s4 + $0x1e0] sm:$0xff] %v1348_v62  ;;  %v1253_v3 = vadd.f32 %v1953_v19, %v1182_v63  ;;  %v1285_v4 = vadd.f32 %v1953_v19, %v1214_v0 }
 0x179   :  { %v816_v5 = vpop.f32.mrf.mxu0  ;;  %v944_v6 = vpop.f32.mrf.mxu1 }
 0x17a   :  { %v1317_v7 = vmax.f32 %v1253_v3, 0.0  ;;  %v1349_v8 = vmax.f32 %v1285_v4, 0.0  ;;  %v1183_v9 = vmul.f32 %v1948_v17, %v816_v5  ;;  %v1215_v10 = vmul.f32 %v1948_v17, %v944_v6 }
 0x17b   :  { %v818_v11 = vpop.f32.mrf.mxu0  ;;  %v946_v12 = vpop.f32.mrf.mxu1 }
 0x17c   :  { %1381 = vst [vmem:[%s2279_s4 + $0xe8] sm:$0xff] %v1317_v7  ;;  %1413 = vst [vmem:[%s2279_s4 + $0x1e8] sm:$0xff] %v1349_v8  ;;  %v1254_v13 = vadd.f32 %v1953_v19, %v1183_v9  ;;  %v1286_v14 = vadd.f32 %v1953_v19, %v1215_v10 }
 0x17d   :  { %v819_v15 = vpop.f32.mrf.mxu0  ;;  %v947_v16 = vpop.f32.mrf.mxu1 }
 0x17e   :  { %v1318_v18 = vmax.f32 %v1254_v13, 0.0  ;;  %v1350_v20 = vmax.f32 %v1286_v14, 0.0  ;;  %v1184_v21 = vmul.f32 %v1948_v17, %v819_v15  ;;  %v1216_v22 = vmul.f32 %v1948_v17, %v947_v16 }
 0x17f   :  { %v821_v23 = vpop.f32.mrf.mxu0  ;;  %v949_v24 = vpop.f32.mrf.mxu1 }
 0x180   :  { %1382 = vst [vmem:[%s2279_s4 + $0xf0] sm:$0xff] %v1318_v18  ;;  %1414 = vst [vmem:[%s2279_s4 + $0x1f0] sm:$0xff] %v1350_v20  ;;  %v1255_v25 = vadd.f32 %v1953_v19, %v1184_v21  ;;  %v1287_v26 = vadd.f32 %v1953_v19, %v1216_v22 }
 0x182   :  { %v1319_v27 = vmax.f32 %v1255_v25, 0.0  ;;  %v1351_v28 = vmax.f32 %v1287_v26, 0.0 }
 0x184   :  { %1383 = vst [vmem:[%s2279_s4 + $0xf8] sm:$0xff] %v1319_v27  ;;  %1415 = vst [vmem:[%s2279_s4 + $0x1f8] sm:$0xff] %v1351_v28 }

// kernel: resnet18_forward.25
= control target key start
LH: loop header
LB: loop body
LE: loop exit
PB: predicated region body
PF: predicated region fallthrough
CT: control target
= control target key end

     0   :  { %vm304_vm0 = vcmask 523264   ;;  %s871_s0 = inlined_call_operand.vmem [shape: f32[128,64], index: 0, kind: input, shape index: {}]   ;;  %s872_s1 = inlined_call_operand.vmem [shape: f32[128,64], index: 1, kind: input, shape index: {}]   ;;  %s873_s2 = inlined_call_operand.vmem [shape: f32[128,64], index: 2, kind: input, shape index: {}]   ;;  %s874_s3 = inlined_call_operand.vmem [shape: f32[128,64], index: 3, kind: input, shape index: {}]   ;;  %s875_s4 = inlined_call_operand.vmem [shape: f32[128,64], index: 4, kind: input, shape index: {}]   ;;  %s876_s5 = inlined_call_operand.vmem [shape: f32[128,64], index: 5, kind: input, shape index: {}]   ;;  %s877_s6 = inlined_call_operand.vmem [shape: f32[128,64], index: 6, kind: input, shape index: {}]   ;;  %s878_s7 = inlined_call_operand.vmem [shape: f32[128,64], index: 7, kind: input, shape index: {}]   ;;  %s879_s8 = inlined_call_operand.vmem [shape: f32[128,64], index: 8, kind: input, shape index: {}]   ;;  %s880_s9 = inlined_call_operand.vmem [shape: f32[128,64], index: 9, kind: output, shape index: {}]  }
   0x1   :  { %v32_v0 = vld [vmem:[%s871_s0] sm:$0xff]  ;;  %v33_v12 = vld [vmem:[%s871_s0 + $0x8] sm:$0xff]  ;;  %v34_v27 = vld [vmem:[%s871_s0 + $0x10] sm:$0xff] }
   0x2   :  { %v48_v1 = vld [vmem:[%s872_s1] sm:$0xff]  ;;  %v49_v13 = vld [vmem:[%s872_s1 + $0x8] sm:$0xff]  ;;  %v50_v28 = vld [vmem:[%s872_s1 + $0x10] sm:$0xff] }
   0x3   :  { %v80_v2 = vld [vmem:[%s873_s2] sm:$0xff]  ;;  %v64_v3 = vmax.f32 %v32_v0, %v48_v1  ;;  %v81_v14 = vld [vmem:[%s873_s2 + $0x8] sm:$0xff]  ;;  %v65_v16 = vmax.f32 %v33_v12, %v49_v13  ;;  %v82_v29 = vld [vmem:[%s873_s2 + $0x10] sm:$0xff]  ;;  %v66_v32 = vmax.f32 %v34_v27, %v50_v28 }
   0x4   :  { %v96_v4 = vld [vmem:[%s874_s3] sm:$0xff]  ;;  %v97_v17 = vld [vmem:[%s874_s3 + $0x8] sm:$0xff]  ;;  %v98_v33 = vld [vmem:[%s874_s3 + $0x10] sm:$0xff] }
   0x5   :  { %v128_v5 = vld [vmem:[%s875_s4] sm:$0xff]  ;;  %v112_v7 = vmax.f32 %v80_v2, %v96_v4  ;;  %v129_v18 = vld [vmem:[%s875_s4 + $0x8] sm:$0xff]  ;;  %v113_v22 = vmax.f32 %v81_v14, %v97_v17  ;;  %v130_v34 = vld [vmem:[%s875_s4 + $0x10] sm:$0xff]  ;;  %v114_v38 = vmax.f32 %v82_v29, %v98_v33 }
   0x6   :  { %v144_v6 = vld [vmem:[%s876_s5] sm:$0xff]  ;;  %v145_v19 = vld [vmem:[%s876_s5 + $0x8] sm:$0xff]  ;;  %v146_v35 = vld [vmem:[%s876_s5 + $0x10] sm:$0xff] }
   0x7   :  { %v160_v8 = vmax.f32 %v128_v5, %v144_v6  ;;  %v176_v9 = vld [vmem:[%s877_s6] sm:$0xff]  ;;  %v224_v15 = vmax.f32 %v64_v3, %v112_v7  ;;  %v161_v23 = vmax.f32 %v129_v18, %v145_v19  ;;  %v177_v24 = vld [vmem:[%s877_s6 + $0x8] sm:$0xff]  ;;  %v225_v31 = vmax.f32 %v65_v16, %v113_v22  ;;  %v178_v40 = vld [vmem:[%s877_s6 + $0x10] sm:$0xff] }
   0x8   :  { %v192_v10 = vld [vmem:[%s878_s7] sm:$0xff]  ;;  %v193_v25 = vld [vmem:[%s878_s7 + $0x8] sm:$0xff]  ;;  %v162_v39 = vmax.f32 %v130_v34, %v146_v35  ;;  %v194_v41 = vld [vmem:[%s878_s7 + $0x10] sm:$0xff]  ;;  %v226_v48 = vmax.f32 %v66_v32, %v114_v38 }
   0x9   :  { %v208_v11 = vmax.f32 %v176_v9, %v192_v10  ;;  %v272_v21 = vld [vmem:[%s879_s8] sm:$0xff]  ;;  %v209_v26 = vmax.f32 %v177_v24, %v193_v25  ;;  %v273_v37 = vld [vmem:[%s879_s8 + $0x8] sm:$0xff]  ;;  %v210_v43 = vmax.f32 %v178_v40, %v194_v41  ;;  %v35_v44 = vld [vmem:[%s871_s0 + $0x18] sm:$0xff] }
   0xa   :  { %v51_v45 = vld [vmem:[%s872_s1 + $0x18] sm:$0xff]  ;;  %v274_v54 = vld [vmem:[%s879_s8 + $0x10] sm:$0xff]  ;;  %v36_v61 = vld [vmem:[%s871_s0 + $0x20] sm:$0xff] }
   0xb   :  { %v240_v20 = vmax.f32 %v160_v8, %v208_v11  ;;  %v241_v36 = vmax.f32 %v161_v23, %v209_v26  ;;  %v83_v46 = vld [vmem:[%s873_s2 + $0x18] sm:$0xff]  ;;  %v67_v49 = vmax.f32 %v35_v44, %v51_v45  ;;  %v242_v53 = vmax.f32 %v162_v39, %v210_v43  ;;  %v52_v62 = vld [vmem:[%s872_s1 + $0x20] sm:$0xff]  ;;  %v37_v14 = vld [vmem:[%s871_s0 + $0x28] sm:$0xff] }
   0xc   :  { %v99_v50 = vld [vmem:[%s874_s3 + $0x18] sm:$0xff]  ;;  %v84_v63 = vld [vmem:[%s873_s2 + $0x20] sm:$0xff]  ;;  %v68_v2 = vmax.f32 %v36_v61, %v52_v62  ;;  %v85_v16 = vld [vmem:[%s873_s2 + $0x28] sm:$0xff] }
   0xd   :  { %v256_v30 = vmax.f32 %v224_v15, %v240_v20  ;;  %v257_v47 = vmax.f32 %v225_v31, %v241_v36  ;;  %v131_v51 = vld [vmem:[%s875_s4 + $0x18] sm:$0xff]  ;;  %v115_v55 = vmax.f32 %v83_v46, %v99_v50  ;;  %v258_v0 = vmax.f32 %v226_v48, %v242_v53  ;;  %v100_v3 = vld [vmem:[%s874_s3 + $0x20] sm:$0xff]  ;;  %v53_v15 = vld [vmem:[%s872_s1 + $0x28] sm:$0xff] }
   0xe   :  { %v147_v52 = vld [vmem:[%s876_s5 + $0x18] sm:$0xff]  ;;  %v132_v4 = vld [vmem:[%s875_s4 + $0x20] sm:$0xff]  ;;  %v116_v8 = vmax.f32 %v84_v63, %v100_v3  ;;  %v69_v19 = vmax.f32 %v37_v14, %v53_v15  ;;  %v101_v20 = vld [vmem:[%s874_s3 + $0x28] sm:$0xff] }
   0xf   :  { %v288_v42 = vmax.f32 %v256_v30, %v272_v21  ;;  %v163_v56 = vmax.f32 %v131_v51, %v147_v52  ;;  %v179_v57 = vld [vmem:[%s877_s6 + $0x18] sm:$0xff]  ;;  %v289_v59 = vmax.f32 %v257_v47, %v273_v37  ;;  %v227_v1 = vmax.f32 %v67_v49, %v115_v55  ;;  %v148_v5 = vld [vmem:[%s876_s5 + $0x20] sm:$0xff]  ;;  %v133_v21 = vld [vmem:[%s875_s4 + $0x28] sm:$0xff] }
  0x10   :  { %v195_v58 = vld [vmem:[%s878_s7 + $0x18] sm:$0xff]  ;;  %v164_v9 = vmax.f32 %v132_v4, %v148_v5  ;;  %v180_v10 = vld [vmem:[%s877_s6 + $0x20] sm:$0xff]  ;;  %v290_v12 = vmax.f32 %v258_v0, %v274_v54  ;;  %v228_v18 = vmax.f32 %v68_v2, %v116_v8  ;;  %v149_v22 = vld [vmem:[%s876_s5 + $0x28] sm:$0xff]  ;;  %v117_v25 = vmax.f32 %v85_v16, %v101_v20 }
  0x11   :  { %305 = vst.msk [vmem:[%s880_s9] sm:$0xff] %vm304_vm0, %v288_v42  ;;  %v211_v60 = vmax.f32 %v179_v57, %v195_v58  ;;  %306 = vst.msk [vmem:[%s880_s9 + $0x8] sm:$0xff] %vm304_vm0, %v289_v59  ;;  %v275_v7 = vld [vmem:[%s879_s8 + $0x18] sm:$0xff]  ;;  %v196_v11 = vld [vmem:[%s878_s7 + $0x20] sm:$0xff]  ;;  %v165_v26 = vmax.f32 %v133_v21, %v149_v22 }
  0x12   :  { %v212_v13 = vmax.f32 %v180_v10, %v196_v11  ;;  %307 = vst.msk [vmem:[%s880_s9 + $0x10] sm:$0xff] %vm304_vm0, %v290_v12  ;;  %v276_v24 = vld [vmem:[%s879_s8 + $0x20] sm:$0xff]  ;;  %v181_v27 = vld [vmem:[%s877_s6 + $0x28] sm:$0xff]  ;;  %v38_v31 = vld [vmem:[%s871_s0 + $0x30] sm:$0xff]  ;;  %v229_v35 = vmax.f32 %v69_v19, %v117_v25 }
  0x13   :  { %v243_v6 = vmax.f32 %v163_v56, %v211_v60  ;;  %v197_v28 = vld [vmem:[%s878_s7 + $0x28] sm:$0xff]  ;;  %v54_v32 = vld [vmem:[%s872_s1 + $0x30] sm:$0xff]  ;;  %v39_v48 = vld [vmem:[%s871_s0 + $0x38] sm:$0xff] }
  0x14   :  { %v244_v23 = vmax.f32 %v164_v9, %v212_v13  ;;  %v213_v30 = vmax.f32 %v181_v27, %v197_v28  ;;  %v86_v33 = vld [vmem:[%s873_s2 + $0x30] sm:$0xff]  ;;  %v70_v36 = vmax.f32 %v38_v31, %v54_v32  ;;  %v277_v41 = vld [vmem:[%s879_s8 + $0x28] sm:$0xff]  ;;  %v55_v49 = vld [vmem:[%s872_s1 + $0x38] sm:$0xff] }
  0x15   :  { %v259_v17 = vmax.f32 %v227_v1, %v243_v6  ;;  %v102_v37 = vld [vmem:[%s874_s3 + $0x30] sm:$0xff]  ;;  %v87_v50 = vld [vmem:[%s873_s2 + $0x38] sm:$0xff]  ;;  %v71_v53 = vmax.f32 %v39_v48, %v55_v49  ;;  %v40_v1 = vld [vmem:[%s871_s0 + $0x40] sm:$0xff] }
  0x16   :  { %v260_v34 = vmax.f32 %v228_v18, %v244_v23  ;;  %v134_v38 = vld [vmem:[%s875_s4 + $0x30] sm:$0xff]  ;;  %v245_v40 = vmax.f32 %v165_v26, %v213_v30  ;;  %v118_v42 = vmax.f32 %v86_v33, %v102_v37  ;;  %v103_v54 = vld [vmem:[%s874_s3 + $0x38] sm:$0xff]  ;;  %v56_v2 = vld [vmem:[%s872_s1 + $0x40] sm:$0xff] }
  0x17   :  { %v291_v29 = vmax.f32 %v259_v17, %v275_v7  ;;  %v150_v39 = vld [vmem:[%s876_s5 + $0x30] sm:$0xff]  ;;  %v135_v55 = vld [vmem:[%s875_s4 + $0x38] sm:$0xff]  ;;  %v119_v59 = vmax.f32 %v87_v50, %v103_v54  ;;  %v88_v3 = vld [vmem:[%s873_s2 + $0x40] sm:$0xff]  ;;  %v72_v6 = vmax.f32 %v40_v1, %v56_v2 }
  0x18   :  { %v166_v43 = vmax.f32 %v134_v38, %v150_v39  ;;  %v182_v44 = vld [vmem:[%s877_s6 + $0x30] sm:$0xff]  ;;  %v292_v46 = vmax.f32 %v260_v34, %v276_v24  ;;  %v261_v51 = vmax.f32 %v229_v35, %v245_v40  ;;  %v230_v52 = vmax.f32 %v70_v36, %v118_v42  ;;  %v151_v56 = vld [vmem:[%s876_s5 + $0x38] sm:$0xff]  ;;  %v104_v7 = vld [vmem:[%s874_s3 + $0x40] sm:$0xff] }
  0x19   :  { %308 = vst.msk [vmem:[%s880_s9 + $0x18] sm:$0xff] %vm304_vm0, %v291_v29  ;;  %v198_v45 = vld [vmem:[%s878_s7 + $0x30] sm:$0xff]  ;;  %v167_v60 = vmax.f32 %v135_v55, %v151_v56  ;;  %v183_v61 = vld [vmem:[%s877_s6 + $0x38] sm:$0xff]  ;;  %v231_v5 = vmax.f32 %v71_v53, %v119_v59  ;;  %v136_v8 = vld [vmem:[%s875_s4 + $0x40] sm:$0xff]  ;;  %v120_v12 = vmax.f32 %v88_v3, %v104_v7 }
  0x1a   :  { %v214_v47 = vmax.f32 %v182_v44, %v198_v45  ;;  %309 = vst.msk [vmem:[%s880_s9 + $0x20] sm:$0xff] %vm304_vm0, %v292_v46  ;;  %v278_v58 = vld [vmem:[%s879_s8 + $0x30] sm:$0xff]  ;;  %v199_v62 = vld [vmem:[%s878_s7 + $0x38] sm:$0xff]  ;;  %v293_v63 = vmax.f32 %v261_v51, %v277_v41  ;;  %v152_v9 = vld [vmem:[%s876_s5 + $0x40] sm:$0xff] }
  0x1b   :  { %v215_v0 = vmax.f32 %v183_v61, %v199_v62  ;;  %v279_v11 = vld [vmem:[%s879_s8 + $0x38] sm:$0xff]  ;;  %v168_v13 = vmax.f32 %v136_v8, %v152_v9  ;;  %v184_v14 = vld [vmem:[%s877_s6 + $0x40] sm:$0xff]  ;;  %v41_v18 = vld [vmem:[%s871_s0 + $0x48] sm:$0xff]  ;;  %v232_v22 = vmax.f32 %v72_v6, %v120_v12 }
  0x1c   :  { %v246_v57 = vmax.f32 %v166_v43, %v214_v47  ;;  %310 = vst.msk [vmem:[%s880_s9 + $0x28] sm:$0xff] %vm304_vm0, %v293_v63  ;;  %v200_v15 = vld [vmem:[%s878_s7 + $0x40] sm:$0xff]  ;;  %v57_v19 = vld [vmem:[%s872_s1 + $0x48] sm:$0xff]  ;;  %v42_v35 = vld [vmem:[%s871_s0 + $0x50] sm:$0xff] }
  0x1d   :  { %v247_v10 = vmax.f32 %v167_v60, %v215_v0  ;;  %v216_v17 = vmax.f32 %v184_v14, %v200_v15  ;;  %v89_v20 = vld [vmem:[%s873_s2 + $0x48] sm:$0xff]  ;;  %v73_v23 = vmax.f32 %v41_v18, %v57_v19  ;;  %v280_v28 = vld [vmem:[%s879_s8 + $0x40] sm:$0xff]  ;;  %v58_v36 = vld [vmem:[%s872_s1 + $0x50] sm:$0xff] }
  0x1e   :  { %v262_v4 = vmax.f32 %v230_v52, %v246_v57  ;;  %v105_v24 = vld [vmem:[%s874_s3 + $0x48] sm:$0xff]  ;;  %v90_v37 = vld [vmem:[%s873_s2 + $0x50] sm:$0xff]  ;;  %v74_v40 = vmax.f32 %v42_v35, %v58_v36  ;;  %v43_v52 = vld [vmem:[%s871_s0 + $0x58] sm:$0xff] }
  0x1f   :  { %v263_v21 = vmax.f32 %v231_v5, %v247_v10  ;;  %v137_v25 = vld [vmem:[%s875_s4 + $0x48] sm:$0xff]  ;;  %v248_v27 = vmax.f32 %v168_v13, %v216_v17  ;;  %v121_v29 = vmax.f32 %v89_v20, %v105_v24  ;;  %v106_v41 = vld [vmem:[%s874_s3 + $0x50] sm:$0xff]  ;;  %v59_v53 = vld [vmem:[%s872_s1 + $0x58] sm:$0xff] }
  0x20   :  { %v294_v16 = vmax.f32 %v262_v4, %v278_v58  ;;  %v153_v26 = vld [vmem:[%s876_s5 + $0x48] sm:$0xff]  ;;  %v138_v42 = vld [vmem:[%s875_s4 + $0x50] sm:$0xff]  ;;  %v122_v46 = vmax.f32 %v90_v37, %v106_v41  ;;  %v91_v54 = vld [vmem:[%s873_s2 + $0x58] sm:$0xff]  ;;  %v75_v57 = vmax.f32 %v43_v52, %v59_v53 }
  0x21   :  { %v169_v30 = vmax.f32 %v137_v25, %v153_v26  ;;  %v185_v31 = vld [vmem:[%s877_s6 + $0x48] sm:$0xff]  ;;  %v295_v33 = vmax.f32 %v263_v21, %v279_v11  ;;  %v264_v38 = vmax.f32 %v232_v22, %v248_v27  ;;  %v233_v39 = vmax.f32 %v73_v23, %v121_v29  ;;  %v154_v43 = vld [vmem:[%s876_s5 + $0x50] sm:$0xff]  ;;  %v107_v58 = vld [vmem:[%s874_s3 + $0x58] sm:$0xff] }
  0x22   :  { %311 = vst.msk [vmem:[%s880_s9 + $0x30] sm:$0xff] %vm304_vm0, %v294_v16  ;;  %v201_v32 = vld [vmem:[%s878_s7 + $0x48] sm:$0xff]  ;;  %v170_v47 = vmax.f32 %v138_v42, %v154_v43  ;;  %v186_v48 = vld [vmem:[%s877_s6 + $0x50] sm:$0xff]  ;;  %v234_v56 = vmax.f32 %v74_v40, %v122_v46  ;;  %v139_v59 = vld [vmem:[%s875_s4 + $0x58] sm:$0xff]  ;;  %v123_v63 = vmax.f32 %v91_v54, %v107_v58 }
  0x23   :  { %v217_v34 = vmax.f32 %v185_v31, %v201_v32  ;;  %312 = vst.msk [vmem:[%s880_s9 + $0x38] sm:$0xff] %vm304_vm0, %v295_v33  ;;  %v281_v45 = vld [vmem:[%s879_s8 + $0x48] sm:$0xff]  ;;  %v202_v49 = vld [vmem:[%s878_s7 + $0x50] sm:$0xff]  ;;  %v296_v50 = vmax.f32 %v264_v38, %v280_v28  ;;  %v155_v60 = vld [vmem:[%s876_s5 + $0x58] sm:$0xff] }
  0x24   :  { %v218_v51 = vmax.f32 %v186_v48, %v202_v49  ;;  %v282_v62 = vld [vmem:[%s879_s8 + $0x50] sm:$0xff]  ;;  %v171_v0 = vmax.f32 %v139_v59, %v155_v60  ;;  %v187_v1 = vld [vmem:[%s877_s6 + $0x58] sm:$0xff]  ;;  %v44_v5 = vld [vmem:[%s871_s0 + $0x60] sm:$0xff]  ;;  %v235_v9 = vmax.f32 %v75_v57, %v123_v63 }
  0x25   :  { %v249_v44 = vmax.f32 %v169_v30, %v217_v34  ;;  %313 = vst.msk [vmem:[%s880_s9 + $0x40] sm:$0xff] %vm304_vm0, %v296_v50  ;;  %v203_v2 = vld [vmem:[%s878_s7 + $0x58] sm:$0xff]  ;;  %v60_v6 = vld [vmem:[%s872_s1 + $0x60] sm:$0xff]  ;;  %v45_v22 = vld [vmem:[%s871_s0 + $0x68] sm:$0xff] }
  0x26   :  { %v250_v61 = vmax.f32 %v170_v47, %v218_v51  ;;  %v219_v4 = vmax.f32 %v187_v1, %v203_v2  ;;  %v92_v7 = vld [vmem:[%s873_s2 + $0x60] sm:$0xff]  ;;  %v76_v10 = vmax.f32 %v44_v5, %v60_v6  ;;  %v283_v15 = vld [vmem:[%s879_s8 + $0x58] sm:$0xff]  ;;  %v61_v23 = vld [vmem:[%s872_s1 + $0x68] sm:$0xff] }
  0x27   :  { %v265_v55 = vmax.f32 %v233_v39, %v249_v44  ;;  %v108_v11 = vld [vmem:[%s874_s3 + $0x60] sm:$0xff]  ;;  %v93_v24 = vld [vmem:[%s873_s2 + $0x68] sm:$0xff]  ;;  %v77_v27 = vmax.f32 %v45_v22, %v61_v23  ;;  %v46_v39 = vld [vmem:[%s871_s0 + $0x70] sm:$0xff] }
  0x28   :  { %v266_v8 = vmax.f32 %v234_v56, %v250_v61  ;;  %v140_v12 = vld [vmem:[%s875_s4 + $0x60] sm:$0xff]  ;;  %v251_v14 = vmax.f32 %v171_v0, %v219_v4  ;;  %v124_v16 = vmax.f32 %v92_v7, %v108_v11  ;;  %v109_v28 = vld [vmem:[%s874_s3 + $0x68] sm:$0xff]  ;;  %v62_v40 = vld [vmem:[%s872_s1 + $0x70] sm:$0xff] }
  0x29   :  { %v297_v3 = vmax.f32 %v265_v55, %v281_v45  ;;  %v156_v13 = vld [vmem:[%s876_s5 + $0x60] sm:$0xff]  ;;  %v141_v29 = vld [vmem:[%s875_s4 + $0x68] sm:$0xff]  ;;  %v125_v33 = vmax.f32 %v93_v24, %v109_v28  ;;  %v94_v41 = vld [vmem:[%s873_s2 + $0x70] sm:$0xff]  ;;  %v78_v44 = vmax.f32 %v46_v39, %v62_v40 }
  0x2a   :  { %v172_v17 = vmax.f32 %v140_v12, %v156_v13  ;;  %v188_v18 = vld [vmem:[%s877_s6 + $0x60] sm:$0xff]  ;;  %v298_v20 = vmax.f32 %v266_v8, %v282_v62  ;;  %v267_v25 = vmax.f32 %v235_v9, %v251_v14  ;;  %v236_v26 = vmax.f32 %v76_v10, %v124_v16  ;;  %v157_v30 = vld [vmem:[%s876_s5 + $0x68] sm:$0xff]  ;;  %v110_v45 = vld [vmem:[%s874_s3 + $0x70] sm:$0xff] }
  0x2b   :  { %314 = vst.msk [vmem:[%s880_s9 + $0x48] sm:$0xff] %vm304_vm0, %v297_v3  ;;  %v204_v19 = vld [vmem:[%s878_s7 + $0x60] sm:$0xff]  ;;  %v173_v34 = vmax.f32 %v141_v29, %v157_v30  ;;  %v189_v35 = vld [vmem:[%s877_s6 + $0x68] sm:$0xff]  ;;  %v237_v43 = vmax.f32 %v77_v27, %v125_v33  ;;  %v142_v46 = vld [vmem:[%s875_s4 + $0x70] sm:$0xff]  ;;  %v126_v50 = vmax.f32 %v94_v41, %v110_v45 }
  0x2c   :  { %v220_v21 = vmax.f32 %v188_v18, %v204_v19  ;;  %315 = vst.msk [vmem:[%s880_s9 + $0x50] sm:$0xff] %vm304_vm0, %v298_v20  ;;  %v284_v32 = vld [vmem:[%s879_s8 + $0x60] sm:$0xff]  ;;  %v205_v36 = vld [vmem:[%s878_s7 + $0x68] sm:$0xff]  ;;  %v299_v37 = vmax.f32 %v267_v25, %v283_v15  ;;  %v158_v47 = vld [vmem:[%s876_s5 + $0x70] sm:$0xff] }
  0x2d   :  { %v221_v38 = vmax.f32 %v189_v35, %v205_v36  ;;  %v285_v49 = vld [vmem:[%s879_s8 + $0x68] sm:$0xff]  ;;  %v174_v51 = vmax.f32 %v142_v46, %v158_v47  ;;  %v190_v52 = vld [vmem:[%s877_s6 + $0x70] sm:$0xff]  ;;  %v47_v56 = vld [vmem:[%s871_s0 + $0x78] sm:$0xff]  ;;  %v238_v60 = vmax.f32 %v78_v44, %v126_v50 }
  0x2e   :  { %v252_v31 = vmax.f32 %v172_v17, %v220_v21  ;;  %316 = vst.msk [vmem:[%s880_s9 + $0x58] sm:$0xff] %vm304_vm0, %v299_v37  ;;  %v206_v53 = vld [vmem:[%s878_s7 + $0x70] sm:$0xff]  ;;  %v63_v57 = vld [vmem:[%s872_s1 + $0x78] sm:$0xff] }
  0x2f   :  { %v253_v48 = vmax.f32 %v173_v34, %v221_v38  ;;  %v222_v55 = vmax.f32 %v190_v52, %v206_v53  ;;  %v95_v58 = vld [vmem:[%s873_s2 + $0x78] sm:$0xff]  ;;  %v79_v61 = vmax.f32 %v47_v56, %v63_v57  ;;  %v286_v7 = vld [vmem:[%s879_s8 + $0x70] sm:$0xff] }
  0x30   :  { %v268_v42 = vmax.f32 %v236_v26, %v252_v31  ;;  %v111_v62 = vld [vmem:[%s874_s3 + $0x78] sm:$0xff] }
  0x31   :  { %v269_v59 = vmax.f32 %v237_v43, %v253_v48  ;;  %v143_v63 = vld [vmem:[%s875_s4 + $0x78] sm:$0xff]  ;;  %v254_v1 = vmax.f32 %v174_v51, %v222_v55  ;;  %v127_v2 = vmax.f32 %v95_v58, %v111_v62 }
  0x32   :  { %v300_v54 = vmax.f32 %v268_v42, %v284_v32  ;;  %v159_v0 = vld [vmem:[%s876_s5 + $0x78] sm:$0xff] }
  0x33   :  { %v175_v3 = vmax.f32 %v143_v63, %v159_v0  ;;  %v191_v4 = vld [vmem:[%s877_s6 + $0x78] sm:$0xff]  ;;  %v301_v6 = vmax.f32 %v269_v59, %v285_v49  ;;  %v270_v9 = vmax.f32 %v238_v60, %v254_v1  ;;  %v239_v10 = vmax.f32 %v79_v61, %v127_v2 }
  0x34   :  { %317 = vst.msk [vmem:[%s880_s9 + $0x60] sm:$0xff] %vm304_vm0, %v300_v54  ;;  %v207_v5 = vld [vmem:[%s878_s7 + $0x78] sm:$0xff] }
  0x35   :  { %v223_v8 = vmax.f32 %v191_v4, %v207_v5  ;;  %318 = vst.msk [vmem:[%s880_s9 + $0x68] sm:$0xff] %vm304_vm0, %v301_v6  ;;  %v302_v12 = vmax.f32 %v270_v9, %v286_v7  ;;  %v287_v13 = vld [vmem:[%s879_s8 + $0x78] sm:$0xff] }
  0x37   :  { %v255_v11 = vmax.f32 %v175_v3, %v223_v8  ;;  %319 = vst.msk [vmem:[%s880_s9 + $0x70] sm:$0xff] %vm304_vm0, %v302_v12 }
  0x39   :  { %v271_v14 = vmax.f32 %v239_v10, %v255_v11 }
  0x3b   :  { %v303_v15 = vmax.f32 %v271_v14, %v287_v13 }
  0x3d   :  { %320 = vst.msk [vmem:[%s880_s9 + $0x78] sm:$0xff] %vm304_vm0, %v303_v15 }

// kernel: resnet18_forward.26
= control target key start
LH: loop header
LB: loop body
LE: loop exit
PB: predicated region body
PF: predicated region fallthrough
CT: control target
= control target key end

     0   :  { %s1132_s15 = smov 0   ;;  %s1134_s16 = smov 0   ;;  %s1309_s0 = inlined_call_operand.vmem [shape: bf16[128,640], index: 0, kind: input, shape index: {}]   ;;  %s1310_s1 = inlined_call_operand.vmem [shape: bf16[640,128], index: 1, kind: input, shape index: {}]   ;;  %s1311_s2 = inlined_call_operand.vmem [shape: f32[1,128], index: 2, kind: input, shape index: {}]   ;;  %s1312_s3 = inlined_call_operand.vmem [shape: f32[1,128], index: 3, kind: input, shape index: {}]   ;;  %s1313_s4 = inlined_call_operand.vmem [shape: f32[128,128], index: 4, kind: output, shape index: {}]  }
   0x1   :  { %s1136_s17 = smov 0   ;;  %s1138_s18 = smov 0  }
   0x2   :  { %s1140_s19 = smov 0  }
   0x3 LB: > { %s26_s20 = sadd.s32 1, %s1100_s18  ;;  %p49_p1 = scmp.ne.s32.totalorder %s1092_s16, %s1088_s15  ;;  %s1104_s19 = sphi %s1140_s19, %s14_s19   ;;  %s1100_s18 = sphi %s1138_s18, %s1317_s18   ;;  %s1096_s17 = sphi %s1136_s17, %s1316_s17   ;;  %s1092_s16 = sphi %s1134_s16, %s1315_s16   ;;  %s1088_s15 = sphi %s1132_s15, %s1314_s15  }
   0x4   : > { %p27_p0 = scmp.ge.s32.totalorder %s26_s20, 5  ;;  %p50_p2 = scmp.eq.s32.totalorder %s1104_s19, 0 }
   0x5   : > { %s42_s22 = sadd.s32 1, %s1092_s16  ;;  %p914_p5 = scmp.ge.s32.totalorder %s1104_s19, 5 }
   0x6   : > { %s1319_s20 = smov (%p27_p0, %s26_s20), 0  ;;  %p51_p3 = por %p50_p2, %p49_p1 }
   0x7   : > { %s38_s21 = ssub.s32 %s1100_s18, %s1319_s20  ;;  %195 = sbr.rel (%p914_p5) target bundleno = 26 (0x1a), region = 24 }
   0x8   : > { %p40_p4 = scmp.eq.s32.totalorder %s38_s21, 0 }
   0xa   : > { %s1167_s23 = scalar_select %p40_p4, %s1092_s16, %s42_s22  }
   0xc   : > { %198 = sbr.rel (!%p51_p3) target bundleno = 26 (0x1a), region = 28  ;;  %s200_s24 = sand.u32 (%p51_p3), 1, %s1092_s16  }
   0xd   : > { %s916_s25 = sshll.u32 (%p51_p3), %s1100_s18, 2  ;;  %s915_s26 = sshll.u32 (%p51_p3), %s200_s24, 6 }
   0xe   : > { %s1175_s29 = scalar_lea.vmem (%p51_p3), %s1309_s0, %s916_s25  ;;  %s202_s30 = scalar_lea.vmem (%p51_p3), [#allocation3], %s915_s26 }
   0xf   : > { %v224_v0 = vld [vmem:[%s1175_s29] sm:$0xf] (%p51_p3)  ;;  %v226_v1 = vld [vmem:[%s1175_s29 + $0x14] sm:$0xf] (%p51_p3)  ;;  %v228_v2 = vld [vmem:[%s1175_s29 + $0x28] sm:$0xf] (%p51_p3) }
  0x10   : > { %225 = vst [vmem:[%s202_s30] sm:$0xf] (%p51_p3), %v224_v0  ;;  %227 = vst [vmem:[%s202_s30 + $0x4] sm:$0xf] (%p51_p3), %v226_v1  ;;  %v230_v3 = vld [vmem:[%s1175_s29 + $0x3c] sm:$0xf] (%p51_p3) }
  0x11   : > { %v232_v4 = vld [vmem:[%s1175_s29 + $0x50] sm:$0xf]  ;;  %229 = vst [vmem:[%s202_s30 + $0x8] sm:$0xf] %v228_v2  ;;  %231 = vst [vmem:[%s202_s30 + $0xc] sm:$0xf] %v230_v3 }
  0x12   : > { %233 = vst [vmem:[%s202_s30 + $0x10] sm:$0xf] %v232_v4  ;;  %v234_v5 = vld [vmem:[%s1175_s29 + $0x64] sm:$0xf]  ;;  %v236_v6 = vld [vmem:[%s1175_s29 + $0x78] sm:$0xf] }
  0x13   : > { %v238_v7 = vld [vmem:[%s1175_s29 + $0x8c] sm:$0xf]  ;;  %235 = vst [vmem:[%s202_s30 + $0x14] sm:$0xf] %v234_v5  ;;  %237 = vst [vmem:[%s202_s30 + $0x18] sm:$0xf] %v236_v6 }
  0x14   : > { %239 = vst [vmem:[%s202_s30 + $0x1c] sm:$0xf] %v238_v7  ;;  %v240_v8 = vld [vmem:[%s1175_s29 + $0xa0] sm:$0xf]  ;;  %v242_v9 = vld [vmem:[%s1175_s29 + $0xb4] sm:$0xf] }
  0x15   : > { %v244_v10 = vld [vmem:[%s1175_s29 + $0xc8] sm:$0xf]  ;;  %241 = vst [vmem:[%s202_s30 + $0x20] sm:$0xf] %v240_v8  ;;  %243 = vst [vmem:[%s202_s30 + $0x24] sm:$0xf] %v242_v9 }
  0x16   : > { %245 = vst [vmem:[%s202_s30 + $0x28] sm:$0xf] %v244_v10  ;;  %v246_v11 = vld [vmem:[%s1175_s29 + $0xdc] sm:$0xf]  ;;  %v248_v12 = vld [vmem:[%s1175_s29 + $0xf0] sm:$0xf] }
  0x17   : > { %v250_v13 = vld [vmem:[%s1175_s29 + $0x104] sm:$0xf]  ;;  %247 = vst [vmem:[%s202_s30 + $0x2c] sm:$0xf] %v246_v11  ;;  %249 = vst [vmem:[%s202_s30 + $0x30] sm:$0xf] %v248_v12 }
  0x18   : > { %251 = vst [vmem:[%s202_s30 + $0x34] sm:$0xf] %v250_v13  ;;  %v252_v14 = vld [vmem:[%s1175_s29 + $0x118] sm:$0xf]  ;;  %v254_v15 = vld [vmem:[%s1175_s29 + $0x12c] sm:$0xf] }
  0x19   : > { %253 = vst [vmem:[%s202_s30 + $0x38] sm:$0xf] %v252_v14  ;;  %255 = vst [vmem:[%s202_s30 + $0x3c] sm:$0xf] %v254_v15 }
  0x1a PF: > { %p917_p6 = scmp.ge.s32.totalorder %s1104_s19, 1  ;;  %p322_p7 = scmp.lt.s32.totalorder %s1104_s19, 6 }
  0x1c   : > { %p323_p8 = pnand %p917_p6, %p322_p7 }
  0x1d   : > { %s329_s5 = sand.u32 (!%p323_p8), 1, %s1088_s15   ;;  %s919_s6 = sshll.u32 (!%p323_p8), %s1096_s17, 4 }
  0x1e   : > { %326 = sbr.rel (%p323_p8) target bundleno = 310 (0x136), region = 73  ;;  %s918_s7 = sshll.u32 (!%p323_p8), %s329_s5, 6 }
  0x1f   : > { %p373_p9 = scmp.lt.s32.totalorder (!%p323_p8), %s919_s6, 79  ;;  %s1202_s12 = scalar_lea.vmem (!%p323_p8), [#allocation3], %s918_s7 }
  0x20   : > { %p921_p10 = scmp.ne.s32.totalorder (!%p323_p8), %s1096_s17, 0 }
  0x23   : > { %s1321_s6 = smov (!%p373_p9, %s919_s6), 79  ;;  %400 = sbr.rel (%p921_p10) target bundleno = 49 (0x31), region = 81 }
  0x24   : > { %s920_s8 = sshll.u32 %s1321_s6, 2 }
  0x25   : > { %s1200_s11 = scalar_lea.vmem %s1310_s1, %s920_s8 }
  0x28   : > { %v1106_v16 = vmov 0.0  }
  0x29   : > { %401 = vst [vmem:[#allocation2 + $0x30] sm:$0xff] %v1106_v16  ;;  %402 = vst [vmem:[#allocation2] sm:$0xff] %v1106_v16 }
  0x2a   : > { %403 = vst [vmem:[#allocation2 + $0x58] sm:$0xff] %v1106_v16  ;;  %404 = vst [vmem:[#allocation2 + $0x18] sm:$0xff] %v1106_v16 }
  0x2b   : > { %405 = vst [vmem:[#allocation2 + $0x50] sm:$0xff] %v1106_v16  ;;  %406 = vst [vmem:[#allocation2 + $0x68] sm:$0xff] %v1106_v16 }
  0x2c   : > { %407 = vst [vmem:[#allocation2 + $0x8] sm:$0xff] %v1106_v16  ;;  %408 = vst [vmem:[#allocation2 + $0x48] sm:$0xff] %v1106_v16 }
  0x2d   : > { %409 = vst [vmem:[#allocation2 + $0x40] sm:$0xff] %v1106_v16  ;;  %410 = vst [vmem:[#allocation2 + $0x20] sm:$0xff] %v1106_v16 }
  0x2e   : > { %411 = vst [vmem:[#allocation2 + $0x10] sm:$0xff] %v1106_v16  ;;  %412 = vst [vmem:[#allocation2 + $0x38] sm:$0xff] %v1106_v16 }
  0x2f   : > { %413 = vst [vmem:[#allocation2 + $0x60] sm:$0xff] %v1106_v16  ;;  %414 = vst [vmem:[#allocation2 + $0x70] sm:$0xff] %v1106_v16 }
  0x30   : > { %415 = vst [vmem:[#allocation2 + $0x78] sm:$0xff] %v1106_v16  ;;  %416 = vst [vmem:[#allocation2 + $0x28] sm:$0xff] %v1106_v16 }
  0x31 PF: > { %v1050_v17 = vld [vmem:[%s1200_s11 + $0x38] sm:$0xff]   ;;  %v1051_v18 = vld [vmem:[%s1200_s11 + $0x30] sm:$0xff]   ;;  %v1052_v19 = vld [vmem:[%s1200_s11 + $0x28] sm:$0xff]   ;;  %p938_p11 = scmp.ne.s32.totalorder %s1096_s17, 4 }
  0x32   : > { %961 = vmatprep.subr.bf16.mxu0 %v1050_v17  ;;  %993 = vmatprep.subr.bf16.mxu1 %v1050_v17  ;;  %v1053_v20 = vld [vmem:[%s1200_s11 + $0x20] sm:$0xff]   ;;  %v1054_v23 = vld [vmem:[%s1200_s11 + $0x18] sm:$0xff]   ;;  %v1055_v24 = vld [vmem:[%s1200_s11 + $0x10] sm:$0xff]  }
  0x33   : > { %962 = vmatpush3.bf16.msra.mxu0 %v1050_v17  ;;  %1001 = vmatpush3.bf16.msra.mxu1 %v1050_v17  ;;  %v1058_v21 = vld [vmem:[%s1202_s12] sm:$0xff]   ;;  %v1056_v25 = vld [vmem:[%s1200_s11 + $0x8] sm:$0xff]   ;;  %v1062_v29 = vld [vmem:[%s1202_s12 + $0x10] sm:$0xff]  }
  0x34   : > { %963 = vmatprep.subr.bf16.mxu0 %v1051_v18  ;;  %994 = vmatprep.subr.bf16.mxu1 %v1051_v18  ;;  %v1059_v22 = vld [vmem:[%s1202_s12 + $0x20] sm:$0xff]   ;;  %v1060_v27 = vld [vmem:[%s1202_s12 + $0x8] sm:$0xff]   ;;  %v1063_v30 = vld [vmem:[%s1202_s12 + $0x30] sm:$0xff]  }
  0x35   : > { %977 = vmatprep.mubr.bf16.mxu0 %v1058_v21  ;;  %985 = vmatprep.mubr.bf16.mxu1 %v1059_v22  ;;  %v1057_v26 = vld [vmem:[%s1200_s11] sm:$0xff]   ;;  %v1061_v28 = vld [vmem:[%s1202_s12 + $0x28] sm:$0xff]   ;;  %v1064_v31 = vld [vmem:[%s1202_s12 + $0x18] sm:$0xff]  }
  0x36   : > { %v1065_v32 = vld [vmem:[%s1202_s12 + $0x38] sm:$0xff]   ;;  %v427_v34 = vld [vmem:[#allocation2 + $0x10] sm:$0xff]  ;;  %v425_v38 = vld [vmem:[#allocation2 + $0x40] sm:$0xff] }
  0x37   : > { %964 = vmatpush3.bf16.msra.mxu0 %v1051_v18  ;;  %1002 = vmatpush3.bf16.msra.mxu1 %v1051_v18  ;;  %v419_v33 = vld [vmem:[#allocation2 + $0x58] sm:$0xff]  ;;  %v417_v37 = vld [vmem:[#allocation2 + $0x30] sm:$0xff]  ;;  %v418_v49 = vld [vmem:[#allocation2] sm:$0xff] }
  0x38   : > { %965 = vmatprep.subr.bf16.mxu0 %v1052_v19  ;;  %995 = vmatprep.subr.bf16.mxu1 %v1052_v19  ;;  %v420_v43 = vld [vmem:[#allocation2 + $0x18] sm:$0xff]  ;;  %v426_v50 = vld [vmem:[#allocation2 + $0x20] sm:$0xff]  ;;  %v423_v55 = vld [vmem:[#allocation2 + $0x8] sm:$0xff] }
  0x39   : > { %v428_v44 = vld [vmem:[#allocation2 + $0x38] sm:$0xff]  ;;  %v421_v61 = vld [vmem:[#allocation2 + $0x50] sm:$0xff]  ;;  %v429_v62 = vld [vmem:[#allocation2 + $0x60] sm:$0xff] }
  0x3a   : > { %v431_v56 = vld [vmem:[#allocation2 + $0x78] sm:$0xff]  ;;  %v424_v3 = vld [vmem:[#allocation2 + $0x48] sm:$0xff]  ;;  %v430_v10 = vld [vmem:[#allocation2 + $0x70] sm:$0xff] }
  0x3b   : > { %966 = vmatpush3.bf16.msra.mxu0 %v1052_v19  ;;  %1003 = vmatpush3.bf16.msra.mxu1 %v1052_v19  ;;  %v432_v4 = vld [vmem:[#allocation2 + $0x28] sm:$0xff] }
  0x3c   : > { %967 = vmatprep.subr.bf16.mxu0 %v1053_v20  ;;  %996 = vmatprep.subr.bf16.mxu1 %v1053_v20  ;;  %v422_v9 = vld [vmem:[#allocation2 + $0x68] sm:$0xff] }
  0x3f   : > { %968 = vmatpush3.bf16.msra.mxu0 %v1053_v20  ;;  %1004 = vmatpush3.bf16.msra.mxu1 %v1053_v20 }
  0x40   : > { %969 = vmatprep.subr.bf16.mxu0 %v1054_v23  ;;  %997 = vmatprep.subr.bf16.mxu1 %v1054_v23 }
  0x43   : > { %970 = vmatpush3.bf16.msra.mxu0 %v1054_v23  ;;  %1005 = vmatpush3.bf16.msra.mxu1 %v1054_v23 }
  0x44   : > { %971 = vmatprep.subr.bf16.mxu0 %v1055_v24  ;;  %998 = vmatprep.subr.bf16.mxu1 %v1055_v24 }
  0x47   : > { %972 = vmatpush3.bf16.msra.mxu0 %v1055_v24  ;;  %1006 = vmatpush3.bf16.msra.mxu1 %v1055_v24 }
  0x48   : > { %973 = vmatprep.subr.bf16.mxu0 %v1056_v25  ;;  %999 = vmatprep.subr.bf16.mxu1 %v1056_v25 }
  0x4b   : > { %974 = vmatpush3.bf16.msra.mxu0 %v1056_v25  ;;  %1007 = vmatpush3.bf16.msra.mxu1 %v1056_v25 }
  0x4c   : > { %975 = vmatprep.subr.bf16.mxu0 %v1057_v26  ;;  %1000 = vmatprep.subr.bf16.mxu1 %v1057_v26 }
  0x4f   : > { %976 = vmatpush3.bf16.msra.mxu0 %v1057_v26  ;;  %1008 = vmatpush3.bf16.msra.mxu1 %v1057_v26 }
  0x52   : > { %978 = vmatmul.mubr.bf16.vlgmr.msra.gmra.mxu0 %v1060_v27  ;;  %986 = vmatmul.mubr.bf16.vlgmr.msra.gmra.mxu1 %v1061_v28 }
  0x53   : > { %981 = vmatprep.mubr.bf16.mxu0 %v1062_v29  ;;  %989 = vmatprep.mubr.bf16.mxu1 %v1063_v30 }
  0x5a   : > { %982 = vmatmul.mubr.bf16.gmra.mxu0 %v1064_v31  ;;  %990 = vmatmul.mubr.bf16.gmra.mxu1 %v1065_v32 }
 0x112   : > { %v979_v35 = vpop.f32.mrf.mxu0  ;;  %v987_v36 = vpop.f32.mrf.mxu1 }
 0x113   : > { %v660_v39 = vadd.f32 %v979_v35, %v419_v33  ;;  %v668_v40 = vadd.f32 %v987_v36, %v427_v34 }
 0x114   : > { %v595_v41 = vpop.f32.mrf.mxu0  ;;  %v627_v42 = vpop.f32.mrf.mxu1 }
 0x115   : > { %676 = vst [vmem:[#allocation2 + $0x58] sm:$0xff] %v660_v39  ;;  %684 = vst [vmem:[#allocation2 + $0x10] sm:$0xff] %v668_v40  ;;  %v658_v45 = vadd.f32 %v595_v41, %v417_v37  ;;  %v666_v46 = vadd.f32 %v627_v42, %v425_v38 }
 0x116   : > { %v980_v47 = vpop.f32.mrf.mxu0  ;;  %v988_v48 = vpop.f32.mrf.mxu1 }
 0x117   : > { %674 = vst [vmem:[#allocation2 + $0x30] sm:$0xff] %v658_v45  ;;  %682 = vst [vmem:[#allocation2 + $0x40] sm:$0xff] %v666_v46  ;;  %v661_v51 = vadd.f32 %v980_v47, %v420_v43  ;;  %v669_v52 = vadd.f32 %v988_v48, %v428_v44 }
 0x118   : > { %v598_v53 = vpop.f32.mrf.mxu0  ;;  %v630_v54 = vpop.f32.mrf.mxu1 }
 0x119   : > { %677 = vst [vmem:[#allocation2 + $0x18] sm:$0xff] %v661_v51  ;;  %685 = vst [vmem:[#allocation2 + $0x38] sm:$0xff] %v669_v52  ;;  %v659_v57 = vadd.f32 %v598_v53, %v418_v49  ;;  %v667_v58 = vadd.f32 %v630_v54, %v426_v50 }
 0x11a   : > { %v983_v59 = vpop.f32.mrf.mxu0  ;;  %v991_v60 = vpop.f32.mrf.mxu1 }
 0x11b   : > { %675 = vst [vmem:[#allocation2] sm:$0xff] %v659_v57  ;;  %683 = vst [vmem:[#allocation2 + $0x20] sm:$0xff] %v667_v58  ;;  %v664_v63 = vadd.f32 %v983_v59, %v423_v55  ;;  %v672_v0 = vadd.f32 %v991_v60, %v431_v56 }
 0x11c   : > { %v611_v1 = vpop.f32.mrf.mxu0  ;;  %v643_v2 = vpop.f32.mrf.mxu1 }
 0x11d   : > { %680 = vst [vmem:[#allocation2 + $0x8] sm:$0xff] %v664_v63  ;;  %688 = vst [vmem:[#allocation2 + $0x78] sm:$0xff] %v672_v0  ;;  %v662_v5 = vadd.f32 %v611_v1, %v421_v61  ;;  %v670_v6 = vadd.f32 %v643_v2, %v429_v62 }
 0x11e   : > { %v984_v7 = vpop.f32.mrf.mxu0  ;;  %v992_v8 = vpop.f32.mrf.mxu1 }
 0x11f   : > { %678 = vst [vmem:[#allocation2 + $0x50] sm:$0xff] %v662_v5  ;;  %686 = vst [vmem:[#allocation2 + $0x60] sm:$0xff] %v670_v6  ;;  %v665_v11 = vadd.f32 %v984_v7, %v424_v3  ;;  %v673_v12 = vadd.f32 %v992_v8, %v432_v4  ;;  %693 = sbr.rel (%p938_p11) target bundleno = 310 (0x136), region = 85 }
 0x120   : > { %v614_v13 = vpop.f32.mrf.mxu0  ;;  %v646_v14 = vpop.f32.mrf.mxu1 }
 0x121   : > { %681 = vst [vmem:[#allocation2 + $0x48] sm:$0xff] %v665_v11  ;;  %689 = vst [vmem:[#allocation2 + $0x28] sm:$0xff] %v673_v12  ;;  %v663_v15 = vadd.f32 %v614_v13, %v422_v9  ;;  %v671_v16 = vadd.f32 %v646_v14, %v430_v10 }
 0x123   : > { %679 = vst [vmem:[#allocation2 + $0x68] sm:$0xff] %v663_v15  ;;  %687 = vst [vmem:[#allocation2 + $0x70] sm:$0xff] %v671_v16 }
 0x124   : > { %v694_v17 = vld [vmem:[#allocation2 + $0x30] sm:$0xff]  ;;  %v939_v18 = vld [vmem:[%s1311_s2] ss:$0 sm:$0xff]  ;;  %v696_v22 = vld [vmem:[#allocation2 + $0x58] sm:$0xff] }
 0x125   : > { %v1228_v19 = vld [vmem:[%s1312_s3] ss:$0 sm:$0xff]  ;;  %v717_v20 = vmul.f32 %v939_v18, %v694_v17  ;;  %v697_v23 = vld [vmem:[#allocation2 + $0x18] sm:$0xff]  ;;  %v719_v25 = vmul.f32 %v939_v18, %v696_v22  ;;  %v700_v29 = vld [vmem:[#allocation2 + $0x8] sm:$0xff] }
 0x126   : > { %v695_v21 = vld [vmem:[#allocation2] sm:$0xff]  ;;  %v720_v26 = vmul.f32 %v939_v18, %v697_v23  ;;  %v698_v27 = vld [vmem:[#allocation2 + $0x50] sm:$0xff]  ;;  %v723_v33 = vmul.f32 %v939_v18, %v700_v29  ;;  %v705_v46 = vld [vmem:[#allocation2 + $0x38] sm:$0xff] }
 0x127   : > { %v718_v24 = vmul.f32 %v939_v18, %v695_v21  ;;  %v740_v30 = vadd.f32 %v1228_v19, %v717_v20  ;;  %v721_v31 = vmul.f32 %v939_v18, %v698_v27  ;;  %v742_v36 = vadd.f32 %v1228_v19, %v719_v25  ;;  %v702_v39 = vld [vmem:[#allocation2 + $0x40] sm:$0xff]  ;;  %v704_v45 = vld [vmem:[#allocation2 + $0x10] sm:$0xff]  ;;  %v708_v53 = vld [vmem:[#allocation2 + $0x78] sm:$0xff] }
 0x128   : > { %v701_v34 = vld [vmem:[#allocation2 + $0x48] sm:$0xff]  ;;  %v743_v37 = vadd.f32 %v1228_v19, %v720_v26  ;;  %v746_v43 = vadd.f32 %v1228_v19, %v723_v33  ;;  %v703_v44 = vld [vmem:[#allocation2 + $0x20] sm:$0xff]  ;;  %v725_v57 = vmul.f32 %v939_v18, %v702_v39  ;;  %v727_v61 = vmul.f32 %v939_v18, %v704_v45 }
 0x129   : > { %v741_v35 = vadd.f32 %v1228_v19, %v718_v24  ;;  %v724_v38 = vmul.f32 %v939_v18, %v701_v34  ;;  %v756_v40 = vmax.f32 %v740_v30, 0.0  ;;  %v744_v41 = vadd.f32 %v1228_v19, %v721_v31  ;;  %v706_v51 = vld [vmem:[#allocation2 + $0x60] sm:$0xff]  ;;  %v709_v58 = vld [vmem:[#allocation2 + $0x28] sm:$0xff] }
 0x12a   : > { %v699_v28 = vld [vmem:[#allocation2 + $0x68] sm:$0xff]  ;;  %v758_v48 = vmax.f32 %v742_v36, 0.0  ;;  %v759_v49 = vmax.f32 %v743_v37, 0.0  ;;  %v707_v52 = vld [vmem:[#allocation2 + $0x70] sm:$0xff]  ;;  %v762_v56 = vmax.f32 %v746_v43, 0.0  ;;  %v726_v60 = vmul.f32 %v939_v18, %v703_v44 }
 0x12b   : > { %v722_v32 = vmul.f32 %v939_v18, %v699_v28  ;;  %v757_v47 = vmax.f32 %v741_v35, 0.0  ;;  %v747_v50 = vadd.f32 %v1228_v19, %v724_v38  ;;  %772 = vst [vmem:[%s1313_s4] sm:$0xff] %v756_v40  ;;  %v760_v54 = vmax.f32 %v744_v41, 0.0 }
 0x12c   : > { %774 = vst [vmem:[%s1313_s4 + $0x10] sm:$0xff] %v758_v48  ;;  %775 = vst [vmem:[%s1313_s4 + $0x18] sm:$0xff] %v759_v49  ;;  %v728_v62 = vmul.f32 %v939_v18, %v705_v46  ;;  %v748_v63 = vadd.f32 %v1228_v19, %v725_v57  ;;  %v729_v0 = vmul.f32 %v939_v18, %v706_v51 }
 0x12d   : > { %v745_v42 = vadd.f32 %v1228_v19, %v722_v32  ;;  %773 = vst [vmem:[%s1313_s4 + $0x8] sm:$0xff] %v757_v47  ;;  %v763_v59 = vmax.f32 %v747_v50, 0.0  ;;  %776 = vst [vmem:[%s1313_s4 + $0x20] sm:$0xff] %v760_v54  ;;  %v730_v1 = vmul.f32 %v939_v18, %v707_v52  ;;  %v731_v2 = vmul.f32 %v939_v18, %v708_v53 }
 0x12e   : > { %778 = vst [vmem:[%s1313_s4 + $0x30] sm:$0xff] %v762_v56  ;;  %v749_v3 = vadd.f32 %v1228_v19, %v726_v60  ;;  %v750_v4 = vadd.f32 %v1228_v19, %v727_v61  ;;  %v751_v5 = vadd.f32 %v1228_v19, %v728_v62  ;;  %v732_v6 = vmul.f32 %v939_v18, %v709_v58 }
 0x12f   : > { %v761_v55 = vmax.f32 %v745_v42, 0.0  ;;  %779 = vst [vmem:[%s1313_s4 + $0x38] sm:$0xff] %v763_v59  ;;  %v764_v7 = vmax.f32 %v748_v63, 0.0  ;;  %v752_v8 = vadd.f32 %v1228_v19, %v729_v0  ;;  %v753_v9 = vadd.f32 %v1228_v19, %v730_v1 }
 0x130   : > { %v754_v10 = vadd.f32 %v1228_v19, %v731_v2  ;;  %v765_v11 = vmax.f32 %v749_v3, 0.0  ;;  %v766_v12 = vmax.f32 %v750_v4, 0.0  ;;  %v767_v13 = vmax.f32 %v751_v5, 0.0 }
 0x131   : > { %777 = vst [vmem:[%s1313_s4 + $0x28] sm:$0xff] %v761_v55  ;;  %v755_v14 = vadd.f32 %v1228_v19, %v732_v6  ;;  %780 = vst [vmem:[%s1313_s4 + $0x40] sm:$0xff] %v764_v7  ;;  %v768_v15 = vmax.f32 %v752_v8, 0.0  ;;  %v769_v16 = vmax.f32 %v753_v9, 0.0 }
 0x132   : > { %v770_v17 = vmax.f32 %v754_v10, 0.0  ;;  %781 = vst [vmem:[%s1313_s4 + $0x48] sm:$0xff] %v765_v11  ;;  %782 = vst [vmem:[%s1313_s4 + $0x50] sm:$0xff] %v766_v12 }
 0x133   : > { %783 = vst [vmem:[%s1313_s4 + $0x58] sm:$0xff] %v767_v13  ;;  %v771_v18 = vmax.f32 %v755_v14, 0.0  ;;  %784 = vst [vmem:[%s1313_s4 + $0x60] sm:$0xff] %v768_v15 }
 0x134   : > { %785 = vst [vmem:[%s1313_s4 + $0x68] sm:$0xff] %v769_v16  ;;  %786 = vst [vmem:[%s1313_s4 + $0x70] sm:$0xff] %v770_v17 }
 0x135   : > { %787 = vst [vmem:[%s1313_s4 + $0x78] sm:$0xff] %v771_v18 }
 0x136 PF: > { %s14_s19 = sadd.s32 1, %s1104_s19   ;;  %s1314_s15 = smov %s1092_s16 }
 0x137   : > { %p11_p12 = scmp.ge.s32.totalorder %s14_s19, 7   ;;  %s1315_s16 = smov %s1167_s23 }
 0x138   : > { %s1316_s17 = smov %s1100_s18  ;;  %s1317_s18 = smov %s1319_s20 }
 0x139   :  { %13 = sbr.rel (!%p11_p12) target bundleno = 3 (0x3), region = 129 }

// kernel: resnet18_forward.27
= control target key start
LH: loop header
LB: loop body
LE: loop exit
PB: predicated region body
PF: predicated region fallthrough
CT: control target
= control target key end

     0   :  { %s1248_s18 = smov 0   ;;  %s1250_s19 = smov 0   ;;  %s1491_s0 = inlined_call_operand.vmem [shape: bf16[128,640], index: 0, kind: input, shape index: {}]   ;;  %s1492_s1 = inlined_call_operand.vmem [shape: bf16[640,128], index: 1, kind: input, shape index: {}]   ;;  %s1493_s2 = inlined_call_operand.vmem [shape: f32[1,128], index: 2, kind: input, shape index: {}]   ;;  %s1494_s3 = inlined_call_operand.vmem [shape: f32[1,128], index: 3, kind: input, shape index: {}]   ;;  %s1495_s4 = inlined_call_operand.vmem [shape: f32[128,128], index: 4, kind: input, shape index: {}]   ;;  %s1496_s5 = inlined_call_operand.vmem [shape: f32[128,128], index: 5, kind: output, shape index: {}]  }
   0x1   :  { %s1252_s20 = smov 0   ;;  %s1254_s21 = smov 0  }
   0x2   :  { %s1256_s22 = smov 0  }
   0x3 LB: > { %s27_s23 = sadd.s32 1, %s1211_s21  ;;  %p50_p1 = scmp.ne.s32.totalorder %s1203_s19, %s1199_s18  ;;  %s1215_s22 = sphi %s1256_s22, %s15_s22   ;;  %s1211_s21 = sphi %s1254_s21, %s1500_s21   ;;  %s1207_s20 = sphi %s1252_s20, %s1499_s20   ;;  %s1203_s19 = sphi %s1250_s19, %s1498_s19   ;;  %s1199_s18 = sphi %s1248_s18, %s1497_s18  }
   0x4   : > { %p28_p0 = scmp.ge.s32.totalorder %s27_s23, 5  ;;  %p51_p2 = scmp.eq.s32.totalorder %s1215_s22, 0 }
   0x5   : > { %s43_s25 = sadd.s32 1, %s1203_s19  ;;  %p1025_p5 = scmp.ge.s32.totalorder %s1215_s22, 5 }
   0x6   : > { %s1502_s23 = smov (%p28_p0, %s27_s23), 0  ;;  %p52_p3 = por %p51_p2, %p50_p1 }
   0x7   : > { %s39_s24 = ssub.s32 %s1211_s21, %s1502_s23  ;;  %236 = sbr.rel (%p1025_p5) target bundleno = 26 (0x1a), region = 28 }
   0x8   : > { %p41_p4 = scmp.eq.s32.totalorder %s39_s24, 0 }
   0xa   : > { %s1283_s26 = scalar_select %p41_p4, %s1203_s19, %s43_s25  }
   0xc   : > { %239 = sbr.rel (!%p52_p3) target bundleno = 26 (0x1a), region = 32  ;;  %s241_s27 = sand.u32 (%p52_p3), 1, %s1203_s19  }
   0xd   : > { %s1027_s28 = sshll.u32 (%p52_p3), %s1211_s21, 2  ;;  %s1026_s29 = sshll.u32 (%p52_p3), %s241_s27, 6 }
   0xe   : > { %s1291_s7 = scalar_lea.vmem (%p52_p3), %s1491_s0, %s1027_s28  ;;  %s243_s8 = scalar_lea.vmem (%p52_p3), [#allocation3], %s1026_s29 }
   0xf   : > { %v265_v0 = vld [vmem:[%s1291_s7] sm:$0xf] (%p52_p3)  ;;  %v267_v1 = vld [vmem:[%s1291_s7 + $0x14] sm:$0xf] (%p52_p3)  ;;  %v269_v2 = vld [vmem:[%s1291_s7 + $0x28] sm:$0xf] (%p52_p3) }
  0x10   : > { %266 = vst [vmem:[%s243_s8] sm:$0xf] (%p52_p3), %v265_v0  ;;  %268 = vst [vmem:[%s243_s8 + $0x4] sm:$0xf] (%p52_p3), %v267_v1  ;;  %v271_v3 = vld [vmem:[%s1291_s7 + $0x3c] sm:$0xf] (%p52_p3) }
  0x11   : > { %v273_v4 = vld [vmem:[%s1291_s7 + $0x50] sm:$0xf]  ;;  %270 = vst [vmem:[%s243_s8 + $0x8] sm:$0xf] %v269_v2  ;;  %272 = vst [vmem:[%s243_s8 + $0xc] sm:$0xf] %v271_v3 }
  0x12   : > { %274 = vst [vmem:[%s243_s8 + $0x10] sm:$0xf] %v273_v4  ;;  %v275_v5 = vld [vmem:[%s1291_s7 + $0x64] sm:$0xf]  ;;  %v277_v6 = vld [vmem:[%s1291_s7 + $0x78] sm:$0xf] }
  0x13   : > { %v279_v7 = vld [vmem:[%s1291_s7 + $0x8c] sm:$0xf]  ;;  %276 = vst [vmem:[%s243_s8 + $0x14] sm:$0xf] %v275_v5  ;;  %278 = vst [vmem:[%s243_s8 + $0x18] sm:$0xf] %v277_v6 }
  0x14   : > { %280 = vst [vmem:[%s243_s8 + $0x1c] sm:$0xf] %v279_v7  ;;  %v281_v8 = vld [vmem:[%s1291_s7 + $0xa0] sm:$0xf]  ;;  %v283_v9 = vld [vmem:[%s1291_s7 + $0xb4] sm:$0xf] }
  0x15   : > { %v285_v10 = vld [vmem:[%s1291_s7 + $0xc8] sm:$0xf]  ;;  %282 = vst [vmem:[%s243_s8 + $0x20] sm:$0xf] %v281_v8  ;;  %284 = vst [vmem:[%s243_s8 + $0x24] sm:$0xf] %v283_v9 }
  0x16   : > { %286 = vst [vmem:[%s243_s8 + $0x28] sm:$0xf] %v285_v10  ;;  %v287_v11 = vld [vmem:[%s1291_s7 + $0xdc] sm:$0xf]  ;;  %v289_v12 = vld [vmem:[%s1291_s7 + $0xf0] sm:$0xf] }
  0x17   : > { %v291_v13 = vld [vmem:[%s1291_s7 + $0x104] sm:$0xf]  ;;  %288 = vst [vmem:[%s243_s8 + $0x2c] sm:$0xf] %v287_v11  ;;  %290 = vst [vmem:[%s243_s8 + $0x30] sm:$0xf] %v289_v12 }
  0x18   : > { %292 = vst [vmem:[%s243_s8 + $0x34] sm:$0xf] %v291_v13  ;;  %v293_v14 = vld [vmem:[%s1291_s7 + $0x118] sm:$0xf]  ;;  %v295_v15 = vld [vmem:[%s1291_s7 + $0x12c] sm:$0xf] }
  0x19   : > { %294 = vst [vmem:[%s243_s8 + $0x38] sm:$0xf] %v293_v14  ;;  %296 = vst [vmem:[%s243_s8 + $0x3c] sm:$0xf] %v295_v15 }
  0x1a PF: > { %p1028_p6 = scmp.ge.s32.totalorder %s1215_s22, 1  ;;  %p363_p7 = scmp.lt.s32.totalorder %s1215_s22, 6 }
  0x1c   : > { %p364_p8 = pnand %p1028_p6, %p363_p7 }
  0x1d   : > { %s370_s9 = sand.u32 (!%p364_p8), 1, %s1199_s18   ;;  %s1030_s10 = sshll.u32 (!%p364_p8), %s1207_s20, 4 }
  0x1e   : > { %367 = sbr.rel (%p364_p8) target bundleno = 315 (0x13b), region = 77  ;;  %s1029_s11 = sshll.u32 (!%p364_p8), %s370_s9, 6 }
  0x1f   : > { %p424_p9 = scmp.lt.s32.totalorder (!%p364_p8), %s1030_s10, 79  ;;  %s1318_s16 = scalar_lea.vmem (!%p364_p8), [#allocation3], %s1029_s11 }
  0x20   : > { %p1032_p10 = scmp.ne.s32.totalorder (!%p364_p8), %s1207_s20, 0 }
  0x23   : > { %s1504_s10 = smov (!%p424_p9, %s1030_s10), 79  ;;  %460 = sbr.rel (%p1032_p10) target bundleno = 49 (0x31), region = 85 }
  0x24   : > { %s1031_s12 = sshll.u32 %s1504_s10, 2 }
  0x25   : > { %s1316_s15 = scalar_lea.vmem %s1492_s1, %s1031_s12 }
  0x28   : > { %v1217_v16 = vmov 0.0  }
  0x29   : > { %461 = vst [vmem:[#allocation2 + $0x30] sm:$0xff] %v1217_v16  ;;  %462 = vst [vmem:[#allocation2] sm:$0xff] %v1217_v16 }
  0x2a   : > { %463 = vst [vmem:[#allocation2 + $0x58] sm:$0xff] %v1217_v16  ;;  %464 = vst [vmem:[#allocation2 + $0x18] sm:$0xff] %v1217_v16 }
  0x2b   : > { %465 = vst [vmem:[#allocation2 + $0x50] sm:$0xff] %v1217_v16  ;;  %466 = vst [vmem:[#allocation2 + $0x68] sm:$0xff] %v1217_v16 }
  0x2c   : > { %467 = vst [vmem:[#allocation2 + $0x8] sm:$0xff] %v1217_v16  ;;  %468 = vst [vmem:[#allocation2 + $0x48] sm:$0xff] %v1217_v16 }
  0x2d   : > { %469 = vst [vmem:[#allocation2 + $0x40] sm:$0xff] %v1217_v16  ;;  %470 = vst [vmem:[#allocation2 + $0x20] sm:$0xff] %v1217_v16 }
  0x2e   : > { %471 = vst [vmem:[#allocation2 + $0x10] sm:$0xff] %v1217_v16  ;;  %472 = vst [vmem:[#allocation2 + $0x38] sm:$0xff] %v1217_v16 }
  0x2f   : > { %473 = vst [vmem:[#allocation2 + $0x60] sm:$0xff] %v1217_v16  ;;  %474 = vst [vmem:[#allocation2 + $0x70] sm:$0xff] %v1217_v16 }
  0x30   : > { %475 = vst [vmem:[#allocation2 + $0x78] sm:$0xff] %v1217_v16  ;;  %476 = vst [vmem:[#allocation2 + $0x28] sm:$0xff] %v1217_v16 }
  0x31 PF: > { %v1161_v17 = vld [vmem:[%s1316_s15 + $0x38] sm:$0xff]   ;;  %v1162_v18 = vld [vmem:[%s1316_s15 + $0x30] sm:$0xff]   ;;  %v1163_v19 = vld [vmem:[%s1316_s15 + $0x28] sm:$0xff]   ;;  %p1049_p11 = scmp.ne.s32.totalorder %s1207_s20, 4 }
  0x32   : > { %1072 = vmatprep.subr.bf16.mxu0 %v1161_v17  ;;  %1104 = vmatprep.subr.bf16.mxu1 %v1161_v17  ;;  %v1164_v20 = vld [vmem:[%s1316_s15 + $0x20] sm:$0xff]   ;;  %v1165_v23 = vld [vmem:[%s1316_s15 + $0x18] sm:$0xff]   ;;  %v1166_v24 = vld [vmem:[%s1316_s15 + $0x10] sm:$0xff]  }
  0x33   : > { %1073 = vmatpush3.bf16.msra.mxu0 %v1161_v17  ;;  %1112 = vmatpush3.bf16.msra.mxu1 %v1161_v17  ;;  %v1169_v21 = vld [vmem:[%s1318_s16] sm:$0xff]   ;;  %v1167_v25 = vld [vmem:[%s1316_s15 + $0x8] sm:$0xff]   ;;  %v1173_v29 = vld [vmem:[%s1318_s16 + $0x10] sm:$0xff]  }
  0x34   : > { %1074 = vmatprep.subr.bf16.mxu0 %v1162_v18  ;;  %1105 = vmatprep.subr.bf16.mxu1 %v1162_v18  ;;  %v1170_v22 = vld [vmem:[%s1318_s16 + $0x20] sm:$0xff]   ;;  %v1171_v27 = vld [vmem:[%s1318_s16 + $0x8] sm:$0xff]   ;;  %v1174_v30 = vld [vmem:[%s1318_s16 + $0x30] sm:$0xff]  }
  0x35   : > { %1088 = vmatprep.mubr.bf16.mxu0 %v1169_v21  ;;  %1096 = vmatprep.mubr.bf16.mxu1 %v1170_v22  ;;  %v1168_v26 = vld [vmem:[%s1316_s15] sm:$0xff]   ;;  %v1172_v28 = vld [vmem:[%s1318_s16 + $0x28] sm:$0xff]   ;;  %v1175_v31 = vld [vmem:[%s1318_s16 + $0x18] sm:$0xff]  }
  0x36   : > { %v1176_v32 = vld [vmem:[%s1318_s16 + $0x38] sm:$0xff]   ;;  %v487_v34 = vld [vmem:[#allocation2 + $0x10] sm:$0xff]  ;;  %v485_v38 = vld [vmem:[#allocation2 + $0x40] sm:$0xff] }
  0x37   : > { %1075 = vmatpush3.bf16.msra.mxu0 %v1162_v18  ;;  %1113 = vmatpush3.bf16.msra.mxu1 %v1162_v18  ;;  %v479_v33 = vld [vmem:[#allocation2 + $0x58] sm:$0xff]  ;;  %v477_v37 = vld [vmem:[#allocation2 + $0x30] sm:$0xff]  ;;  %v478_v49 = vld [vmem:[#allocation2] sm:$0xff] }
  0x38   : > { %1076 = vmatprep.subr.bf16.mxu0 %v1163_v19  ;;  %1106 = vmatprep.subr.bf16.mxu1 %v1163_v19  ;;  %v480_v43 = vld [vmem:[#allocation2 + $0x18] sm:$0xff]  ;;  %v486_v50 = vld [vmem:[#allocation2 + $0x20] sm:$0xff]  ;;  %v483_v55 = vld [vmem:[#allocation2 + $0x8] sm:$0xff] }
  0x39   : > { %v488_v44 = vld [vmem:[#allocation2 + $0x38] sm:$0xff]  ;;  %v481_v61 = vld [vmem:[#allocation2 + $0x50] sm:$0xff]  ;;  %v489_v62 = vld [vmem:[#allocation2 + $0x60] sm:$0xff] }
  0x3a   : > { %v491_v56 = vld [vmem:[#allocation2 + $0x78] sm:$0xff]  ;;  %v484_v3 = vld [vmem:[#allocation2 + $0x48] sm:$0xff]  ;;  %v490_v10 = vld [vmem:[#allocation2 + $0x70] sm:$0xff] }
  0x3b   : > { %1077 = vmatpush3.bf16.msra.mxu0 %v1163_v19  ;;  %1114 = vmatpush3.bf16.msra.mxu1 %v1163_v19  ;;  %v492_v4 = vld [vmem:[#allocation2 + $0x28] sm:$0xff] }
  0x3c   : > { %1078 = vmatprep.subr.bf16.mxu0 %v1164_v20  ;;  %1107 = vmatprep.subr.bf16.mxu1 %v1164_v20  ;;  %v482_v9 = vld [vmem:[#allocation2 + $0x68] sm:$0xff] }
  0x3f   : > { %1079 = vmatpush3.bf16.msra.mxu0 %v1164_v20  ;;  %1115 = vmatpush3.bf16.msra.mxu1 %v1164_v20 }
  0x40   : > { %1080 = vmatprep.subr.bf16.mxu0 %v1165_v23  ;;  %1108 = vmatprep.subr.bf16.mxu1 %v1165_v23 }
  0x43   : > { %1081 = vmatpush3.bf16.msra.mxu0 %v1165_v23  ;;  %1116 = vmatpush3.bf16.msra.mxu1 %v1165_v23 }
  0x44   : > { %1082 = vmatprep.subr.bf16.mxu0 %v1166_v24  ;;  %1109 = vmatprep.subr.bf16.mxu1 %v1166_v24 }
  0x47   : > { %1083 = vmatpush3.bf16.msra.mxu0 %v1166_v24  ;;  %1117 = vmatpush3.bf16.msra.mxu1 %v1166_v24 }
  0x48   : > { %1084 = vmatprep.subr.bf16.mxu0 %v1167_v25  ;;  %1110 = vmatprep.subr.bf16.mxu1 %v1167_v25 }
  0x4b   : > { %1085 = vmatpush3.bf16.msra.mxu0 %v1167_v25  ;;  %1118 = vmatpush3.bf16.msra.mxu1 %v1167_v25 }
  0x4c   : > { %1086 = vmatprep.subr.bf16.mxu0 %v1168_v26  ;;  %1111 = vmatprep.subr.bf16.mxu1 %v1168_v26 }
  0x4f   : > { %1087 = vmatpush3.bf16.msra.mxu0 %v1168_v26  ;;  %1119 = vmatpush3.bf16.msra.mxu1 %v1168_v26 }
  0x52   : > { %1089 = vmatmul.mubr.bf16.vlgmr.msra.gmra.mxu0 %v1171_v27  ;;  %1097 = vmatmul.mubr.bf16.vlgmr.msra.gmra.mxu1 %v1172_v28 }
  0x53   : > { %1092 = vmatprep.mubr.bf16.mxu0 %v1173_v29  ;;  %1100 = vmatprep.mubr.bf16.mxu1 %v1174_v30 }
  0x5a   : > { %1093 = vmatmul.mubr.bf16.gmra.mxu0 %v1175_v31  ;;  %1101 = vmatmul.mubr.bf16.gmra.mxu1 %v1176_v32 }
 0x112   : > { %v1090_v35 = vpop.f32.mrf.mxu0  ;;  %v1098_v36 = vpop.f32.mrf.mxu1 }
 0x113   : > { %v720_v39 = vadd.f32 %v1090_v35, %v479_v33  ;;  %v728_v40 = vadd.f32 %v1098_v36, %v487_v34 }
 0x114   : > { %v655_v41 = vpop.f32.mrf.mxu0  ;;  %v687_v42 = vpop.f32.mrf.mxu1 }
 0x115   : > { %736 = vst [vmem:[#allocation2 + $0x58] sm:$0xff] %v720_v39  ;;  %744 = vst [vmem:[#allocation2 + $0x10] sm:$0xff] %v728_v40  ;;  %v718_v45 = vadd.f32 %v655_v41, %v477_v37  ;;  %v726_v46 = vadd.f32 %v687_v42, %v485_v38 }
 0x116   : > { %v1091_v47 = vpop.f32.mrf.mxu0  ;;  %v1099_v48 = vpop.f32.mrf.mxu1 }
 0x117   : > { %734 = vst [vmem:[#allocation2 + $0x30] sm:$0xff] %v718_v45  ;;  %742 = vst [vmem:[#allocation2 + $0x40] sm:$0xff] %v726_v46  ;;  %v721_v51 = vadd.f32 %v1091_v47, %v480_v43  ;;  %v729_v52 = vadd.f32 %v1099_v48, %v488_v44 }
 0x118   : > { %v658_v53 = vpop.f32.mrf.mxu0  ;;  %v690_v54 = vpop.f32.mrf.mxu1 }
 0x119   : > { %737 = vst [vmem:[#allocation2 + $0x18] sm:$0xff] %v721_v51  ;;  %745 = vst [vmem:[#allocation2 + $0x38] sm:$0xff] %v729_v52  ;;  %v719_v57 = vadd.f32 %v658_v53, %v478_v49  ;;  %v727_v58 = vadd.f32 %v690_v54, %v486_v50 }
 0x11a   : > { %v1094_v59 = vpop.f32.mrf.mxu0  ;;  %v1102_v60 = vpop.f32.mrf.mxu1 }
 0x11b   : > { %735 = vst [vmem:[#allocation2] sm:$0xff] %v719_v57  ;;  %743 = vst [vmem:[#allocation2 + $0x20] sm:$0xff] %v727_v58  ;;  %v724_v63 = vadd.f32 %v1094_v59, %v483_v55  ;;  %v732_v0 = vadd.f32 %v1102_v60, %v491_v56 }
 0x11c   : > { %v671_v1 = vpop.f32.mrf.mxu0  ;;  %v703_v2 = vpop.f32.mrf.mxu1 }
 0x11d   : > { %740 = vst [vmem:[#allocation2 + $0x8] sm:$0xff] %v724_v63  ;;  %748 = vst [vmem:[#allocation2 + $0x78] sm:$0xff] %v732_v0  ;;  %v722_v5 = vadd.f32 %v671_v1, %v481_v61  ;;  %v730_v6 = vadd.f32 %v703_v2, %v489_v62 }
 0x11e   : > { %v1095_v7 = vpop.f32.mrf.mxu0  ;;  %v1103_v8 = vpop.f32.mrf.mxu1 }
 0x11f   : > { %738 = vst [vmem:[#allocation2 + $0x50] sm:$0xff] %v722_v5  ;;  %746 = vst [vmem:[#allocation2 + $0x60] sm:$0xff] %v730_v6  ;;  %v725_v11 = vadd.f32 %v1095_v7, %v484_v3  ;;  %v733_v12 = vadd.f32 %v1103_v8, %v492_v4  ;;  %753 = sbr.rel (%p1049_p11) target bundleno = 315 (0x13b), region = 89 }
 0x120   : > { %v674_v13 = vpop.f32.mrf.mxu0  ;;  %v706_v14 = vpop.f32.mrf.mxu1 }
 0x121   : > { %741 = vst [vmem:[#allocation2 + $0x48] sm:$0xff] %v725_v11  ;;  %749 = vst [vmem:[#allocation2 + $0x28] sm:$0xff] %v733_v12  ;;  %v723_v15 = vadd.f32 %v674_v13, %v482_v9  ;;  %v731_v16 = vadd.f32 %v706_v14, %v490_v10 }
 0x123   : > { %739 = vst [vmem:[#allocation2 + $0x68] sm:$0xff] %v723_v15  ;;  %747 = vst [vmem:[#allocation2 + $0x70] sm:$0xff] %v731_v16 }
 0x124   : > { %v754_v17 = vld [vmem:[#allocation2 + $0x30] sm:$0xff]  ;;  %v1341_v18 = vld [vmem:[%s1493_s2] ss:$0 sm:$0xff]  ;;  %v756_v24 = vld [vmem:[#allocation2 + $0x58] sm:$0xff] }
 0x125   : > { %v1346_v19 = vld [vmem:[%s1494_s3] ss:$0 sm:$0xff]  ;;  %v777_v20 = vmul.f32 %v1341_v18, %v754_v17  ;;  %v757_v25 = vld [vmem:[#allocation2 + $0x18] sm:$0xff]  ;;  %v817_v27 = vld [vmem:[%s1495_s4 + $0x8] sm:$0xff]  ;;  %v779_v28 = vmul.f32 %v1341_v18, %v756_v24 }
 0x126   : > { %v755_v21 = vld [vmem:[#allocation2] sm:$0xff]  ;;  %v818_v29 = vld [vmem:[%s1495_s4 + $0x10] sm:$0xff]  ;;  %v780_v30 = vmul.f32 %v1341_v18, %v757_v25  ;;  %v819_v33 = vld [vmem:[%s1495_s4 + $0x18] sm:$0xff] }
 0x127   : > { %v816_v22 = vld [vmem:[%s1495_s4] sm:$0xff]  ;;  %v778_v23 = vmul.f32 %v1341_v18, %v755_v21  ;;  %v800_v26 = vadd.f32 %v1346_v19, %v777_v20  ;;  %v758_v31 = vld [vmem:[#allocation2 + $0x50] sm:$0xff]  ;;  %v760_v36 = vld [vmem:[#allocation2 + $0x8] sm:$0xff]  ;;  %v802_v38 = vadd.f32 %v1346_v19, %v779_v28 }
 0x128   : > { %v781_v34 = vmul.f32 %v1341_v18, %v758_v31  ;;  %v803_v39 = vadd.f32 %v1346_v19, %v780_v30  ;;  %v820_v40 = vld [vmem:[%s1495_s4 + $0x20] sm:$0xff]  ;;  %v761_v42 = vld [vmem:[#allocation2 + $0x48] sm:$0xff]  ;;  %v783_v46 = vmul.f32 %v1341_v18, %v760_v36  ;;  %v822_v53 = vld [vmem:[%s1495_s4 + $0x30] sm:$0xff] }
 0x129   : > { %v801_v32 = vadd.f32 %v1346_v19, %v778_v23  ;;  %v832_v37 = vadd.f32 %v816_v22, %v800_v26  ;;  %v821_v45 = vld [vmem:[%s1495_s4 + $0x28] sm:$0xff]  ;;  %v784_v47 = vmul.f32 %v1341_v18, %v761_v42  ;;  %v762_v48 = vld [vmem:[#allocation2 + $0x40] sm:$0xff]  ;;  %v834_v50 = vadd.f32 %v818_v29, %v802_v38  ;;  %v823_v54 = vld [vmem:[%s1495_s4 + $0x38] sm:$0xff] }
 0x12a   : > { %v759_v35 = vld [vmem:[#allocation2 + $0x68] sm:$0xff]  ;;  %v804_v44 = vadd.f32 %v1346_v19, %v781_v34  ;;  %v835_v51 = vadd.f32 %v819_v33, %v803_v39  ;;  %v763_v55 = vld [vmem:[#allocation2 + $0x20] sm:$0xff]  ;;  %v806_v58 = vadd.f32 %v1346_v19, %v783_v46  ;;  %v764_v60 = vld [vmem:[#allocation2 + $0x10] sm:$0xff]  ;;  %v785_v1 = vmul.f32 %v1341_v18, %v762_v48 }
 0x12b   : > { %v782_v41 = vmul.f32 %v1341_v18, %v759_v35  ;;  %v833_v43 = vadd.f32 %v817_v27, %v801_v32  ;;  %v848_v49 = vmax.f32 %v832_v37, 0.0  ;;  %v807_v59 = vadd.f32 %v1346_v19, %v784_v47  ;;  %v765_v61 = vld [vmem:[#allocation2 + $0x38] sm:$0xff]  ;;  %v766_v2 = vld [vmem:[#allocation2 + $0x60] sm:$0xff]  ;;  %v767_v8 = vld [vmem:[#allocation2 + $0x70] sm:$0xff] }
 0x12c   : > { %v836_v57 = vadd.f32 %v820_v40, %v804_v44  ;;  %v850_v62 = vmax.f32 %v834_v50, 0.0  ;;  %v851_v63 = vmax.f32 %v835_v51, 0.0  ;;  %v838_v4 = vadd.f32 %v822_v53, %v806_v58  ;;  %v824_v6 = vld [vmem:[%s1495_s4 + $0x40] sm:$0xff]  ;;  %v825_v11 = vld [vmem:[%s1495_s4 + $0x48] sm:$0xff]  ;;  %v768_v14 = vld [vmem:[#allocation2 + $0x78] sm:$0xff] }
 0x12d   : > { %v805_v52 = vadd.f32 %v1346_v19, %v782_v41  ;;  %v849_v56 = vmax.f32 %v833_v43, 0.0  ;;  %864 = vst [vmem:[%s1496_s5] sm:$0xff] %v848_v49  ;;  %v839_v5 = vadd.f32 %v823_v54, %v807_v59  ;;  %v786_v7 = vmul.f32 %v1341_v18, %v763_v55  ;;  %v769_v15 = vld [vmem:[#allocation2 + $0x28] sm:$0xff]  ;;  %v826_v21 = vld [vmem:[%s1495_s4 + $0x50] sm:$0xff]  ;;  %v827_v22 = vld [vmem:[%s1495_s4 + $0x58] sm:$0xff] }
 0x12e   : > { %v852_v3 = vmax.f32 %v836_v57, 0.0  ;;  %866 = vst [vmem:[%s1496_s5 + $0x10] sm:$0xff] %v850_v62  ;;  %867 = vst [vmem:[%s1496_s5 + $0x18] sm:$0xff] %v851_v63  ;;  %v808_v10 = vadd.f32 %v1346_v19, %v785_v1  ;;  %v787_v12 = vmul.f32 %v1341_v18, %v764_v60  ;;  %v788_v13 = vmul.f32 %v1341_v18, %v765_v61  ;;  %v828_v27 = vld [vmem:[%s1495_s4 + $0x60] sm:$0xff]  ;;  %v829_v31 = vld [vmem:[%s1495_s4 + $0x68] sm:$0xff] }
 0x12f   : > { %v837_v0 = vadd.f32 %v821_v45, %v805_v52  ;;  %865 = vst [vmem:[%s1496_s5 + $0x8] sm:$0xff] %v849_v56  ;;  %v854_v16 = vmax.f32 %v838_v4, 0.0  ;;  %v855_v17 = vmax.f32 %v839_v5, 0.0  ;;  %v809_v20 = vadd.f32 %v1346_v19, %v786_v7  ;;  %v830_v38 = vld [vmem:[%s1495_s4 + $0x70] sm:$0xff]  ;;  %v831_v39 = vld [vmem:[%s1495_s4 + $0x78] sm:$0xff] }
 0x130   : > { %868 = vst [vmem:[%s1496_s5 + $0x20] sm:$0xff] %v852_v3  ;;  %v789_v23 = vmul.f32 %v1341_v18, %v766_v2  ;;  %v840_v24 = vadd.f32 %v824_v6, %v808_v10  ;;  %v810_v25 = vadd.f32 %v1346_v19, %v787_v12  ;;  %v811_v26 = vadd.f32 %v1346_v19, %v788_v13 }
 0x131   : > { %v853_v9 = vmax.f32 %v837_v0, 0.0  ;;  %v790_v28 = vmul.f32 %v1341_v18, %v767_v8  ;;  %870 = vst [vmem:[%s1496_s5 + $0x30] sm:$0xff] %v854_v16  ;;  %871 = vst [vmem:[%s1496_s5 + $0x38] sm:$0xff] %v855_v17  ;;  %v841_v29 = vadd.f32 %v825_v11, %v809_v20  ;;  %v791_v32 = vmul.f32 %v1341_v18, %v768_v14 }
 0x132   : > { %v812_v30 = vadd.f32 %v1346_v19, %v789_v23  ;;  %v792_v33 = vmul.f32 %v1341_v18, %v769_v15  ;;  %v856_v34 = vmax.f32 %v840_v24, 0.0  ;;  %v842_v35 = vadd.f32 %v826_v21, %v810_v25 }
 0x133   : > { %869 = vst [vmem:[%s1496_s5 + $0x28] sm:$0xff] %v853_v9  ;;  %v843_v36 = vadd.f32 %v827_v22, %v811_v26  ;;  %v813_v37 = vadd.f32 %v1346_v19, %v790_v28  ;;  %v857_v40 = vmax.f32 %v841_v29, 0.0  ;;  %v814_v42 = vadd.f32 %v1346_v19, %v791_v32 }
 0x134   : > { %v844_v41 = vadd.f32 %v828_v27, %v812_v30  ;;  %v815_v43 = vadd.f32 %v1346_v19, %v792_v33  ;;  %872 = vst [vmem:[%s1496_s5 + $0x40] sm:$0xff] %v856_v34  ;;  %v858_v18 = vmax.f32 %v842_v35, 0.0 }
 0x135   : > { %v859_v44 = vmax.f32 %v843_v36, 0.0  ;;  %v845_v45 = vadd.f32 %v829_v31, %v813_v37  ;;  %873 = vst [vmem:[%s1496_s5 + $0x48] sm:$0xff] %v857_v40  ;;  %v846_v47 = vadd.f32 %v830_v38, %v814_v42 }
 0x136   : > { %v860_v46 = vmax.f32 %v844_v41, 0.0  ;;  %v847_v48 = vadd.f32 %v831_v39, %v815_v43  ;;  %874 = vst [vmem:[%s1496_s5 + $0x50] sm:$0xff] %v858_v18 }
 0x137   : > { %875 = vst [vmem:[%s1496_s5 + $0x58] sm:$0xff] %v859_v44  ;;  %v861_v19 = vmax.f32 %v845_v45, 0.0  ;;  %v862_v49 = vmax.f32 %v846_v47, 0.0 }
 0x138   : > { %876 = vst [vmem:[%s1496_s5 + $0x60] sm:$0xff] %v860_v46  ;;  %v863_v50 = vmax.f32 %v847_v48, 0.0 }
 0x139   : > { %877 = vst [vmem:[%s1496_s5 + $0x68] sm:$0xff] %v861_v19  ;;  %878 = vst [vmem:[%s1496_s5 + $0x70] sm:$0xff] %v862_v49 }
 0x13a   : > { %879 = vst [vmem:[%s1496_s5 + $0x78] sm:$0xff] %v863_v50 }
 0x13b PF: > { %s15_s22 = sadd.s32 1, %s1215_s22   ;;  %s1497_s18 = smov %s1203_s19 }
 0x13c   : > { %p12_p12 = scmp.ge.s32.totalorder %s15_s22, 7   ;;  %s1498_s19 = smov %s1283_s26 }
 0x13d   : > { %s1499_s20 = smov %s1211_s21  ;;  %s1500_s21 = smov %s1502_s23 }
 0x13e   :  { %14 = sbr.rel (!%p12_p12) target bundleno = 3 (0x3), region = 136 }

// kernel: resnet18_forward.31
= control target key start
LH: loop header
LB: loop body
LE: loop exit
PB: predicated region body
PF: predicated region fallthrough
CT: control target
= control target key end

     0   :  { %s834_s15 = smov 0   ;;  %s836_s16 = smov 0   ;;  %s936_s0 = inlined_call_operand.vmem [shape: bf16[32,640], index: 0, kind: input, shape index: {}]   ;;  %s937_s1 = inlined_call_operand.vmem [shape: bf16[640,128], index: 1, kind: input, shape index: {}]   ;;  %s938_s2 = inlined_call_operand.vmem [shape: f32[1,128], index: 2, kind: input, shape index: {}]   ;;  %s939_s3 = inlined_call_operand.vmem [shape: f32[1,128], index: 3, kind: input, shape index: {}]   ;;  %s940_s4 = inlined_call_operand.vmem [shape: f32[32,128], index: 4, kind: output, shape index: {}]  }
   0x1   :  { %s838_s17 = smov 0   ;;  %s840_s18 = smov 0  }
   0x2   :  { %s842_s19 = smov 0  }
   0x3 LB: > { %s26_s20 = sadd.s32 1, %s802_s18  ;;  %p49_p1 = scmp.ne.s32.totalorder %s794_s16, %s790_s15  ;;  %s806_s19 = sphi %s842_s19, %s14_s19   ;;  %s802_s18 = sphi %s840_s18, %s944_s18   ;;  %s798_s17 = sphi %s838_s17, %s943_s17   ;;  %s794_s16 = sphi %s836_s16, %s942_s16   ;;  %s790_s15 = sphi %s834_s15, %s941_s15  }
   0x4   : > { %p27_p0 = scmp.ge.s32.totalorder %s26_s20, 5  ;;  %p50_p2 = scmp.eq.s32.totalorder %s806_s19, 0 }
   0x5   : > { %s42_s22 = sadd.s32 1, %s794_s16  ;;  %p662_p5 = scmp.ge.s32.totalorder %s806_s19, 5 }
   0x6   : > { %s946_s20 = smov (%p27_p0, %s26_s20), 0  ;;  %p51_p3 = por %p50_p2, %p49_p1 }
   0x7   : > { %s38_s21 = ssub.s32 %s802_s18, %s946_s20  ;;  %195 = sbr.rel (%p662_p5) target bundleno = 18 (0x12), region = 24 }
   0x8   : > { %p40_p4 = scmp.eq.s32.totalorder %s38_s21, 0 }
   0xa   : > { %s869_s23 = scalar_select %p40_p4, %s794_s16, %s42_s22  }
   0xc   : > { %198 = sbr.rel (!%p51_p3) target bundleno = 18 (0x12), region = 28  ;;  %s200_s24 = sand.u32 (%p51_p3), 1, %s794_s16  }
   0xd   : > { %s664_s25 = sshll.u32 (%p51_p3), %s802_s18, 2  ;;  %s663_s26 = sshll.u32 (%p51_p3), %s200_s24, 4 }
   0xe   : > { %s207_s29 = scalar_lea.vmem (%p51_p3), %s936_s0, %s664_s25  ;;  %s202_s30 = scalar_lea.vmem (%p51_p3), [#allocation3], %s663_s26 }
   0xf   : > { %v224_v0 = vld [vmem:[%s207_s29] sm:$0xf] (%p51_p3)  ;;  %v226_v1 = vld [vmem:[%s207_s29 + $0x14] sm:$0xf] (%p51_p3)  ;;  %v228_v2 = vld [vmem:[%s207_s29 + $0x28] sm:$0xf] (%p51_p3) }
  0x10   : > { %225 = vst [vmem:[%s202_s30] sm:$0xf] (%p51_p3), %v224_v0  ;;  %227 = vst [vmem:[%s202_s30 + $0x4] sm:$0xf] (%p51_p3), %v226_v1  ;;  %v230_v3 = vld [vmem:[%s207_s29 + $0x3c] sm:$0xf] (%p51_p3) }
  0x11   : > { %229 = vst [vmem:[%s202_s30 + $0x8] sm:$0xf] %v228_v2  ;;  %231 = vst [vmem:[%s202_s30 + $0xc] sm:$0xf] %v230_v3 }
  0x12 PF: > { %p665_p6 = scmp.ge.s32.totalorder %s806_s19, 1  ;;  %p274_p7 = scmp.lt.s32.totalorder %s806_s19, 6 }
  0x14   : > { %p275_p8 = pnand %p665_p6, %p274_p7 }
  0x15   : > { %s281_s5 = sand.u32 (!%p275_p8), 1, %s790_s15   ;;  %s667_s6 = sshll.u32 (!%p275_p8), %s798_s17, 4 }
  0x16   : > { %278 = sbr.rel (%p275_p8) target bundleno = 284 (0x11c), region = 73  ;;  %s881_s7 = sshll.u32 (!%p275_p8), %s281_s5, 4 }
  0x17   : > { %p325_p9 = scmp.lt.s32.totalorder (!%p275_p8), %s667_s6, 79  ;;  %s283_s12 = scalar_lea.vmem (!%p275_p8), [#allocation3], %s881_s7 }
  0x18   : > { %p669_p10 = scmp.ne.s32.totalorder (!%p275_p8), %s798_s17, 0 }
  0x1b   : > { %s948_s6 = smov (!%p325_p9, %s667_s6), 79  ;;  %352 = sbr.rel (%p669_p10) target bundleno = 35 (0x23), region = 81 }
  0x1c   : > { %s668_s8 = sshll.u32 %s948_s6, 2 }
  0x1d   : > { %s886_s11 = scalar_lea.vmem %s937_s1, %s668_s8 }
  0x20   : > { %v808_v4 = vmov 0.0  }
  0x21   : > { %353 = vst [vmem:[#allocation2 + $0x10] sm:$0xff] %v808_v4  ;;  %354 = vst [vmem:[#allocation2] sm:$0xff] %v808_v4 }
  0x22   : > { %355 = vst [vmem:[#allocation2 + $0x18] sm:$0xff] %v808_v4  ;;  %356 = vst [vmem:[#allocation2 + $0x8] sm:$0xff] %v808_v4 }
  0x23 PF: > { %v758_v5 = vld [vmem:[%s886_s11 + $0x38] sm:$0xff]   ;;  %v759_v6 = vld [vmem:[%s886_s11 + $0x30] sm:$0xff]   ;;  %v760_v7 = vld [vmem:[%s886_s11 + $0x28] sm:$0xff]   ;;  %p680_p11 = scmp.ne.s32.totalorder %s798_s17, 4 }
  0x24   : > { %697 = vmatprep.subr.bf16.mxu0 %v758_v5  ;;  %v761_v8 = vld [vmem:[%s886_s11 + $0x20] sm:$0xff]   ;;  %v762_v10 = vld [vmem:[%s886_s11 + $0x18] sm:$0xff]   ;;  %v763_v11 = vld [vmem:[%s886_s11 + $0x10] sm:$0xff]  }
  0x25   : > { %698 = vmatpush3.bf16.msra.mxu0 %v758_v5  ;;  %v766_v9 = vld [vmem:[%s283_s12] sm:$0xff]   ;;  %v764_v12 = vld [vmem:[%s886_s11 + $0x8] sm:$0xff]  }
  0x26   : > { %699 = vmatprep.subr.bf16.mxu0 %v759_v6  ;;  %713 = vmatprep.mubr.bf16.mxu0 %v766_v9  ;;  %v765_v13 = vld [vmem:[%s886_s11] sm:$0xff]   ;;  %v767_v14 = vld [vmem:[%s283_s12 + $0x8] sm:$0xff]  }
  0x28   : > { %v357_v17 = vld [vmem:[#allocation2 + $0x10] sm:$0xff]  ;;  %v358_v23 = vld [vmem:[#allocation2] sm:$0xff] }
  0x29   : > { %700 = vmatpush3.bf16.msra.mxu0 %v759_v6  ;;  %v359_v15 = vld [vmem:[#allocation2 + $0x18] sm:$0xff]  ;;  %v360_v20 = vld [vmem:[#allocation2 + $0x8] sm:$0xff] }
  0x2a   : > { %701 = vmatprep.subr.bf16.mxu0 %v760_v7 }
  0x2d   : > { %702 = vmatpush3.bf16.msra.mxu0 %v760_v7 }
  0x2e   : > { %703 = vmatprep.subr.bf16.mxu0 %v761_v8 }
  0x31   : > { %704 = vmatpush3.bf16.msra.mxu0 %v761_v8 }
  0x32   : > { %705 = vmatprep.subr.bf16.mxu0 %v762_v10 }
  0x35   : > { %706 = vmatpush3.bf16.msra.mxu0 %v762_v10 }
  0x36   : > { %707 = vmatprep.subr.bf16.mxu0 %v763_v11 }
  0x39   : > { %708 = vmatpush3.bf16.msra.mxu0 %v763_v11 }
  0x3a   : > { %709 = vmatprep.subr.bf16.mxu0 %v764_v12 }
  0x3d   : > { %710 = vmatpush3.bf16.msra.mxu0 %v764_v12 }
  0x3e   : > { %711 = vmatprep.subr.bf16.mxu0 %v765_v13 }
  0x41   : > { %712 = vmatpush3.bf16.msra.mxu0 %v765_v13 }
  0x44   : > { %714 = vmatmul.mubr.bf16.vlgmr.msra.gmra.mxu0 %v767_v14 }
 0x104   : > { %v715_v16 = vpop.f32.mrf.mxu0 }
 0x105   : > { %v492_v18 = vadd.f32 %v715_v16, %v359_v15 }
 0x106   : > { %v475_v19 = vpop.f32.mrf.mxu0 }
 0x107   : > { %496 = vst [vmem:[#allocation2 + $0x18] sm:$0xff] %v492_v18  ;;  %v490_v21 = vadd.f32 %v475_v19, %v357_v17 }
 0x108   : > { %v716_v22 = vpop.f32.mrf.mxu0 }
 0x109   : > { %494 = vst [vmem:[#allocation2 + $0x10] sm:$0xff] %v490_v21  ;;  %v493_v24 = vadd.f32 %v716_v22, %v360_v20  ;;  %501 = sbr.rel (%p680_p11) target bundleno = 284 (0x11c), region = 85 }
 0x10a   : > { %v478_v25 = vpop.f32.mrf.mxu0 }
 0x10b   : > { %497 = vst [vmem:[#allocation2 + $0x8] sm:$0xff] %v493_v24  ;;  %v491_v26 = vadd.f32 %v478_v25, %v358_v23 }
 0x10d   : > { %495 = vst [vmem:[#allocation2] sm:$0xff] %v491_v26 }
 0x10e   : > { %v681_v28 = vld [vmem:[%s938_s2] ss:$0 sm:$0xff]  ;;  %v504_v32 = vld [vmem:[#allocation2 + $0x18] sm:$0xff] }
 0x10f   : > { %v682_v29 = vld [vmem:[%s939_s3] ss:$0 sm:$0xff]  ;;  %v515_v35 = vmul.f32 %v681_v28, %v504_v32 }
 0x110   : > { %v502_v27 = vld [vmem:[#allocation2 + $0x10] sm:$0xff] }
 0x111   : > { %v513_v30 = vmul.f32 %v681_v28, %v502_v27  ;;  %v526_v39 = vadd.f32 %v682_v29, %v515_v35 }
 0x112   : > { %v505_v33 = vld [vmem:[#allocation2 + $0x8] sm:$0xff] }
 0x113   : > { %v516_v36 = vmul.f32 %v681_v28, %v505_v33  ;;  %v524_v37 = vadd.f32 %v682_v29, %v513_v30  ;;  %v530_v43 = vmax.f32 %v526_v39, 0.0 }
 0x114   : > { %v503_v31 = vld [vmem:[#allocation2] sm:$0xff] }
 0x115   : > { %v514_v34 = vmul.f32 %v681_v28, %v503_v31  ;;  %v527_v40 = vadd.f32 %v682_v29, %v516_v36  ;;  %v528_v41 = vmax.f32 %v524_v37, 0.0  ;;  %534 = vst [vmem:[%s940_s4 + $0x10] sm:$0xff] %v530_v43 }
 0x117   : > { %v525_v38 = vadd.f32 %v682_v29, %v514_v34  ;;  %v531_v44 = vmax.f32 %v527_v40, 0.0  ;;  %532 = vst [vmem:[%s940_s4] sm:$0xff] %v528_v41 }
 0x119   : > { %v529_v42 = vmax.f32 %v525_v38, 0.0  ;;  %535 = vst [vmem:[%s940_s4 + $0x18] sm:$0xff] %v531_v44 }
 0x11b   : > { %533 = vst [vmem:[%s940_s4 + $0x8] sm:$0xff] %v529_v42 }
 0x11c PF: > { %s14_s19 = sadd.s32 1, %s806_s19   ;;  %s941_s15 = smov %s794_s16 }
 0x11d   : > { %p11_p12 = scmp.ge.s32.totalorder %s14_s19, 7   ;;  %s942_s16 = smov %s869_s23 }
 0x11e   : > { %s943_s17 = smov %s802_s18  ;;  %s944_s18 = smov %s946_s20 }
 0x11f   :  { %13 = sbr.rel (!%p11_p12) target bundleno = 3 (0x3), region = 129 }

// kernel: resnet18_forward.30
= control target key start
LH: loop header
LB: loop body
LE: loop exit
PB: predicated region body
PF: predicated region fallthrough
CT: control target
= control target key end

     0   :  { %s329_s1 = inlined_call_operand.vmem [shape: bf16[128,128], index: 1, kind: input, shape index: {}]   ;;  %s330_s0 = inlined_call_operand.vmem [shape: bf16[32,128], index: 0, kind: input, shape index: {}]   ;;  %s331_s2 = inlined_call_operand.vmem [shape: f32[1,128], index: 2, kind: input, shape index: {}]   ;;  %s332_s3 = inlined_call_operand.vmem [shape: f32[1,128], index: 3, kind: input, shape index: {}]   ;;  %s333_s4 = inlined_call_operand.vmem [shape: f32[32,128], index: 4, kind: output, shape index: {}]  }
   0x1   :  { %v246_v0 = vld [vmem:[%s329_s1 + $0x38] sm:$0xff]   ;;  %v247_v1 = vld [vmem:[%s329_s1 + $0x30] sm:$0xff]   ;;  %v248_v2 = vld [vmem:[%s329_s1 + $0x28] sm:$0xff]  }
   0x2   :  { %226 = vmatprep.subr.bf16.mxu0 %v246_v0  ;;  %v249_v3 = vld [vmem:[%s329_s1 + $0x20] sm:$0xff]   ;;  %v250_v5 = vld [vmem:[%s329_s1 + $0x18] sm:$0xff]   ;;  %v251_v6 = vld [vmem:[%s329_s1 + $0x10] sm:$0xff]  }
   0x3   :  { %227 = vmatpush3.bf16.msra.mxu0 %v246_v0  ;;  %v254_v4 = vld [vmem:[%s330_s0] sm:$0xff]   ;;  %v252_v7 = vld [vmem:[%s329_s1 + $0x8] sm:$0xff]  }
   0x4   :  { %228 = vmatprep.subr.bf16.mxu0 %v247_v1  ;;  %242 = vmatprep.mubr.bf16.mxu0 %v254_v4  ;;  %v253_v8 = vld [vmem:[%s329_s1] sm:$0xff]   ;;  %v255_v9 = vld [vmem:[%s330_s0 + $0x8] sm:$0xff]  }
   0x5   :  { %v214_v10 = vld [vmem:[%s331_s2] ss:$0 sm:$0xff] }
   0x6   :  { %v215_v12 = vld [vmem:[%s332_s3] ss:$0 sm:$0xff] }
   0x7   :  { %229 = vmatpush3.bf16.msra.mxu0 %v247_v1 }
   0x8   :  { %230 = vmatprep.subr.bf16.mxu0 %v248_v2 }
   0xb   :  { %231 = vmatpush3.bf16.msra.mxu0 %v248_v2 }
   0xc   :  { %232 = vmatprep.subr.bf16.mxu0 %v249_v3 }
   0xf   :  { %233 = vmatpush3.bf16.msra.mxu0 %v249_v3 }
  0x10   :  { %234 = vmatprep.subr.bf16.mxu0 %v250_v5 }
  0x13   :  { %235 = vmatpush3.bf16.msra.mxu0 %v250_v5 }
  0x14   :  { %236 = vmatprep.subr.bf16.mxu0 %v251_v6 }
  0x17   :  { %237 = vmatpush3.bf16.msra.mxu0 %v251_v6 }
  0x18   :  { %238 = vmatprep.subr.bf16.mxu0 %v252_v7 }
  0x1b   :  { %239 = vmatpush3.bf16.msra.mxu0 %v252_v7 }
  0x1c   :  { %240 = vmatprep.subr.bf16.mxu0 %v253_v8 }
  0x1f   :  { %241 = vmatpush3.bf16.msra.mxu0 %v253_v8 }
  0x22   :  { %243 = vmatmul.mubr.bf16.vlgmr.msra.gmra.mxu0 %v255_v9 }
  0xe2   :  { %v244_v11 = vpop.f32.mrf.mxu0 }
  0xe3   :  { %v183_v13 = vmul.f32 %v244_v11, %v214_v10 }
  0xe4   :  { %v144_v14 = vpop.f32.mrf.mxu0 }
  0xe5   :  { %v194_v15 = vadd.f32 %v215_v12, %v183_v13  ;;  %v181_v16 = vmul.f32 %v214_v10, %v144_v14 }
  0xe6   :  { %v245_v17 = vpop.f32.mrf.mxu0 }
  0xe7   :  { %198 = vst [vmem:[%s333_s4 + $0x10] sm:$0xff] %v194_v15  ;;  %v192_v18 = vadd.f32 %v215_v12, %v181_v16  ;;  %v184_v19 = vmul.f32 %v245_v17, %v214_v10 }
  0xe8   :  { %v147_v20 = vpop.f32.mrf.mxu0 }
  0xe9   :  { %196 = vst [vmem:[%s333_s4] sm:$0xff] %v192_v18  ;;  %v195_v21 = vadd.f32 %v215_v12, %v184_v19  ;;  %v182_v22 = vmul.f32 %v214_v10, %v147_v20 }
  0xeb   :  { %199 = vst [vmem:[%s333_s4 + $0x18] sm:$0xff] %v195_v21  ;;  %v193_v23 = vadd.f32 %v215_v12, %v182_v22 }
  0xed   :  { %197 = vst [vmem:[%s333_s4 + $0x8] sm:$0xff] %v193_v23 }

// kernel: resnet18_forward.32
= control target key start
LH: loop header
LB: loop body
LE: loop exit
PB: predicated region body
PF: predicated region fallthrough
CT: control target
= control target key end

     0   :  { %s1200_s18 = smov 0   ;;  %s1202_s19 = smov 0   ;;  %s1331_s0 = inlined_call_operand.vmem [shape: bf16[32,1152], index: 0, kind: input, shape index: {}]   ;;  %s1332_s1 = inlined_call_operand.vmem [shape: bf16[1152,128], index: 1, kind: input, shape index: {}]   ;;  %s1333_s2 = inlined_call_operand.vmem [shape: f32[1,128], index: 2, kind: input, shape index: {}]   ;;  %s1334_s3 = inlined_call_operand.vmem [shape: f32[1,128], index: 3, kind: input, shape index: {}]   ;;  %s1335_s4 = inlined_call_operand.vmem [shape: f32[32,128], index: 4, kind: input, shape index: {}]   ;;  %s1336_s5 = inlined_call_operand.vmem [shape: f32[32,128], index: 5, kind: output, shape index: {}]  }
   0x1   :  { %s1204_s20 = smov 0   ;;  %s1206_s21 = smov 0  }
   0x2   :  { %s1208_s22 = smov 0  }
   0x3 LB: > { %s27_s23 = sadd.s32 1, %s1163_s21  ;;  %p50_p1 = scmp.ne.s32.totalorder %s1155_s19, %s1151_s18  ;;  %s1167_s22 = sphi %s1208_s22, %s15_s22   ;;  %s1163_s21 = sphi %s1206_s21, %s1340_s21   ;;  %s1159_s20 = sphi %s1204_s20, %s1339_s20   ;;  %s1155_s19 = sphi %s1202_s19, %s1338_s19   ;;  %s1151_s18 = sphi %s1200_s18, %s1337_s18  }
   0x4   : > { %p28_p0 = scmp.ge.s32.totalorder %s27_s23, 3  ;;  %p51_p2 = scmp.eq.s32.totalorder %s1167_s22, 0 }
   0x5   : > { %s43_s25 = sadd.s32 1, %s1155_s19  ;;  %p945_p5 = scmp.ge.s32.totalorder %s1167_s22, 3 }
   0x6   : > { %s1342_s23 = smov (%p28_p0, %s27_s23), 0  ;;  %p52_p3 = por %p51_p2, %p50_p1 }
   0x7   : > { %s39_s24 = ssub.s32 %s1163_s21, %s1342_s23  ;;  %236 = sbr.rel (%p945_p5) target bundleno = 21 (0x15), region = 28 }
   0x8   : > { %p41_p4 = scmp.eq.s32.totalorder %s39_s24, 0 }
   0xa   : > { %s1235_s26 = scalar_select %p41_p4, %s1155_s19, %s43_s25  }
   0xc   : > { %239 = sbr.rel (!%p52_p3) target bundleno = 21 (0x15), region = 32  ;;  %s241_s27 = sand.u32 (%p52_p3), 1, %s1155_s19  }
   0xd   : > { %s995_s28 = smul.u32 (%p52_p3), 12, %s1163_s21 }
   0xe   : > { %s1054_s29 = smul.u32 (%p52_p3), 48, %s241_s27 }
   0xf   : > { %s249_s7 = scalar_lea.vmem (%p52_p3), %s1331_s0, %s995_s28 }
  0x10   : > { %v264_v0 = vld [vmem:[%s249_s7] sm:$0xff] (%p52_p3)  ;;  %v268_v2 = vld [vmem:[%s249_s7 + $0x48] sm:$0xff] (%p52_p3)  ;;  %s243_s8 = scalar_lea.vmem (%p52_p3), [#allocation3], %s1054_s29  ;;  %v951_v6 = vld [vmem:[%s249_s7 + $0x50] sm:$0xf] (%p52_p3) }
  0x11   : > { %v266_v1 = vld [vmem:[%s249_s7 + $0x24] sm:$0xff]  ;;  %265 = vst [vmem:[%s243_s8] sm:$0xff] %v264_v0  ;;  %269 = vst [vmem:[%s243_s8 + $0x18] sm:$0xff] %v268_v2  ;;  %v270_v3 = vld [vmem:[%s249_s7 + $0x6c] sm:$0xff] }
  0x12   : > { %267 = vst [vmem:[%s243_s8 + $0xc] sm:$0xff] %v266_v1  ;;  %v947_v4 = vld [vmem:[%s249_s7 + $0x8] sm:$0xf]  ;;  %v949_v5 = vld [vmem:[%s249_s7 + $0x2c] sm:$0xf]  ;;  %271 = vst [vmem:[%s243_s8 + $0x24] sm:$0xff] %v270_v3 }
  0x13   : > { %948 = vst [vmem:[%s243_s8 + $0x8] sm:$0xf] %v947_v4  ;;  %950 = vst [vmem:[%s243_s8 + $0x14] sm:$0xf] %v949_v5  ;;  %v953_v7 = vld [vmem:[%s249_s7 + $0x74] sm:$0xf] }
  0x14   : > { %952 = vst [vmem:[%s243_s8 + $0x20] sm:$0xf] %v951_v6  ;;  %954 = vst [vmem:[%s243_s8 + $0x2c] sm:$0xf] %v953_v7 }
  0x15 PF: > { %p955_p6 = scmp.ge.s32.totalorder %s1167_s22, 1  ;;  %p304_p7 = scmp.lt.s32.totalorder %s1167_s22, 4 }
  0x17   : > { %p305_p8 = pnand %p955_p6, %p304_p7 }
  0x18   : > { %s311_s9 = sand.u32 (!%p305_p8), 1, %s1151_s18   ;;  %s365_s10 = smul.u32 (!%p305_p8), 48, %s1159_s20 }
  0x19   : > { %308 = sbr.rel (%p305_p8) target bundleno = 301 (0x12d), region = 62  ;;  %p957_p10 = scmp.ne.s32.totalorder (!%p305_p8), %s1159_s20, 0 }
  0x1a   : > { %s1055_s11 = smul.u32 (!%p305_p8), 48, %s311_s9  ;;  %p366_p9 = scmp.lt.s32.totalorder (!%p305_p8), %s365_s10, 143 }
  0x1c   : > { %s1252_s16 = scalar_lea.vmem (!%p305_p8), [#allocation3], %s1055_s11 }
  0x1e   : > { %s1344_s10 = smov (!%p366_p9, %s365_s10), 143  ;;  %402 = sbr.rel (%p957_p10) target bundleno = 38 (0x26), region = 70 }
  0x1f   : > { %s956_s12 = sshll.u32 %s1344_s10, 2 }
  0x20   : > { %s1250_s15 = scalar_lea.vmem %s1332_s1, %s956_s12 }
  0x23   : > { %v1169_v8 = vmov 0.0  }
  0x24   : > { %403 = vst [vmem:[#allocation2 + $0x10] sm:$0xff] %v1169_v8  ;;  %404 = vst [vmem:[#allocation2] sm:$0xff] %v1169_v8 }
  0x25   : > { %405 = vst [vmem:[#allocation2 + $0x18] sm:$0xff] %v1169_v8  ;;  %406 = vst [vmem:[#allocation2 + $0x8] sm:$0xff] %v1169_v8 }
  0x26 PF: > { %v1097_v9 = vld [vmem:[%s1250_s15 + $0x78] sm:$0xff]   ;;  %v1100_v12 = vld [vmem:[%s1250_s15 + $0x70] sm:$0xff]   ;;  %v1103_v15 = vld [vmem:[%s1250_s15 + $0x68] sm:$0xff]   ;;  %p988_p11 = scmp.ne.s32.totalorder %s1159_s20, 2 }
  0x27   : > { %v1098_v10 = vld [vmem:[%s1250_s15 + $0x38] sm:$0xff]   ;;  %996 = vmatprep.subr.bf16.mxu0 %v1097_v9  ;;  %v1101_v13 = vld [vmem:[%s1250_s15 + $0x30] sm:$0xff]   ;;  %v1104_v16 = vld [vmem:[%s1250_s15 + $0x28] sm:$0xff]  }
  0x28   : > { %v1099_v11 = vld [vmem:[%s1250_s15 + $0xb8] sm:$0xff]   ;;  %997 = vmatpush3.bf16.msra.mxu0 %v1098_v10  ;;  %v1102_v14 = vld [vmem:[%s1250_s15 + $0xb0] sm:$0xff]   ;;  %v1105_v17 = vld [vmem:[%s1250_s15 + $0xa8] sm:$0xff]  }
  0x29   : > { %1034 = vmatprep.subr.bf16.mxu1 %v1099_v11  ;;  %998 = vmatprep.subr.bf16.mxu0 %v1100_v12  ;;  %v1106_v18 = vld [vmem:[%s1250_s15 + $0x60] sm:$0xff]   ;;  %v1109_v21 = vld [vmem:[%s1250_s15 + $0x58] sm:$0xff]   ;;  %v1112_v24 = vld [vmem:[%s1250_s15 + $0x50] sm:$0xff]  }
  0x2a   : > { %1035 = vmatpush3.bf16.msra.mxu1 %v1099_v11  ;;  %v1107_v19 = vld [vmem:[%s1250_s15 + $0x20] sm:$0xff]   ;;  %v1111_v22 = vld [vmem:[%s1250_s15 + $0x98] sm:$0xff]   ;;  %v1114_v25 = vld [vmem:[%s1250_s15 + $0x90] sm:$0xff]  }
  0x2b   : > { %1036 = vmatprep.subr.bf16.mxu1 %v1102_v14  ;;  %v1108_v20 = vld [vmem:[%s1250_s15 + $0xa0] sm:$0xff]   ;;  %v1110_v23 = vld [vmem:[%s1250_s15 + $0x18] sm:$0xff]   ;;  %v1113_v26 = vld [vmem:[%s1250_s15 + $0x10] sm:$0xff]  }
  0x2c   : > { %999 = vmatpush3.bf16.msra.mxu0 %v1101_v13  ;;  %v1115_v27 = vld [vmem:[%s1250_s15 + $0x48] sm:$0xff]   ;;  %v1118_v30 = vld [vmem:[%s1250_s15 + $0x40] sm:$0xff]   ;;  %v407_v44 = vld [vmem:[#allocation2 + $0x10] sm:$0xff] }
  0x2d   : > { %1000 = vmatprep.subr.bf16.mxu0 %v1103_v15  ;;  %v1116_v28 = vld [vmem:[%s1250_s15 + $0x8] sm:$0xff]   ;;  %v1120_v31 = vld [vmem:[%s1250_s15 + $0x80] sm:$0xff]   ;;  %v409_v58 = vld [vmem:[#allocation2 + $0x18] sm:$0xff] }
  0x2e   : > { %1037 = vmatpush3.bf16.msra.mxu1 %v1102_v14  ;;  %v1117_v29 = vld [vmem:[%s1250_s15 + $0x88] sm:$0xff]   ;;  %v1123_v32 = vld [vmem:[%s1252_s16 + $0x4] ss:$12 sps:$4 sm:$0xff]  }
  0x2f   : > { %1038 = vmatprep.subr.bf16.mxu1 %v1105_v17  ;;  %v1124_v33 = vld [vmem:[%s1252_s16 + $0x8] ss:$12 sps:$4 sm:$0xff]   ;;  %675 = vmatprep.mubr.bf16.mxu0 %v1123_v32  ;;  %v1121_v35 = vld [vmem:[%s1252_s16] ss:$12 sps:$4 sm:$0xff]   ;;  %v1128_v38 = vld [vmem:[%s1252_s16 + $0x18] ss:$12 sps:$4 sm:$0xff]  }
  0x30   : > { %1001 = vmatpush3.bf16.msra.mxu0 %v1104_v16  ;;  %v1119_v34 = vld [vmem:[%s1250_s15] sm:$0xff]   ;;  %1050 = vmatprep.mubr.bf16.mxu1 %v1124_v33  ;;  %v1126_v36 = vld [vmem:[%s1252_s16 + $0x1c] ss:$12 sps:$4 sm:$0xff]  }
  0x31   : > { %1002 = vmatprep.subr.bf16.mxu0 %v1106_v18  ;;  %v1125_v37 = vld [vmem:[%s1252_s16 + $0x20] ss:$12 sps:$4 sm:$0xff]  }
  0x32   : > { %1039 = vmatpush3.bf16.msra.mxu1 %v1105_v17  ;;  %v408_v52 = vld [vmem:[#allocation2] sm:$0xff]  ;;  %v410_v0 = vld [vmem:[#allocation2 + $0x8] sm:$0xff] }
  0x33   : > { %1040 = vmatprep.subr.bf16.mxu1 %v1108_v20 }
  0x34   : > { %1003 = vmatpush3.bf16.msra.mxu0 %v1107_v19 }
  0x35   : > { %1004 = vmatprep.subr.bf16.mxu0 %v1109_v21 }
  0x36   : > { %1041 = vmatpush3.bf16.msra.mxu1 %v1108_v20 }
  0x37   : > { %1042 = vmatprep.subr.bf16.mxu1 %v1111_v22 }
  0x38   : > { %1005 = vmatpush3.bf16.msra.mxu0 %v1110_v23 }
  0x39   : > { %1006 = vmatprep.subr.bf16.mxu0 %v1112_v24 }
  0x3a   : > { %1043 = vmatpush3.bf16.msra.mxu1 %v1111_v22 }
  0x3b   : > { %1044 = vmatprep.subr.bf16.mxu1 %v1114_v25 }
  0x3c   : > { %1007 = vmatpush3.bf16.msra.mxu0 %v1113_v26 }
  0x3d   : > { %1008 = vmatprep.subr.bf16.mxu0 %v1115_v27 }
  0x3e   : > { %1045 = vmatpush3.bf16.msra.mxu1 %v1114_v25 }
  0x3f   : > { %1046 = vmatprep.subr.bf16.mxu1 %v1117_v29 }
  0x40   : > { %1009 = vmatpush3.bf16.msra.mxu0 %v1116_v28 }
  0x41   : > { %1010 = vmatprep.subr.bf16.mxu0 %v1118_v30 }
  0x42   : > { %1047 = vmatpush3.bf16.msra.mxu1 %v1117_v29 }
  0x43   : > { %1048 = vmatprep.subr.bf16.mxu1 %v1120_v31 }
  0x44   : > { %1011 = vmatpush3.bf16.msra.mxu0 %v1119_v34 }
  0x46   : > { %1049 = vmatpush3.bf16.msra.mxu1 %v1120_v31 }
  0x47   : > { %676 = vmatmul.mubr.bf16.vlgmr.msra.gmra.mxu0 %v1121_v35 }
  0x48   : > { %683 = vmatprep.mubr.bf16.mxu0 %v1126_v36 }
  0x49   : > { %1051 = vmatmul.mubr.bf16.vlgmr.msra.gmra.mxu1 %v1125_v37 }
  0x4f   : > { %684 = vmatmul.mubr.bf16.gmra.mxu0 %v1128_v38 }
 0x107   : > { %v1012_v39 = vpop.f32.mrf.mxu0 }
 0x109   : > { %v1013_v40 = vpop.f32.mrf.mxu0  ;;  %v1052_v41 = vpop.f32.mrf.mxu1 }
 0x10a   : > { %v1014_v42 = vadd.f32 %v1013_v40, %v1012_v39 }
 0x10b   : > { %v1015_v43 = vpop.f32.mrf.mxu0  ;;  %v726_v45 = vpop.f32.mrf.mxu1 }
 0x10c   : > { %v727_v46 = vadd.f32 %v1014_v42, %v726_v45 }
 0x10d   : > { %v1016_v47 = vpop.f32.mrf.mxu0  ;;  %v1053_v48 = vpop.f32.mrf.mxu1 }
 0x10e   : > { %v741_v49 = vadd.f32 %v727_v46, %v407_v44  ;;  %v1017_v50 = vadd.f32 %v1016_v47, %v1015_v43 }
 0x10f   : > { %v1018_v51 = vpop.f32.mrf.mxu0  ;;  %v729_v53 = vpop.f32.mrf.mxu1 }
 0x110   : > { %745 = vst [vmem:[#allocation2 + $0x10] sm:$0xff] %v741_v49  ;;  %v730_v54 = vadd.f32 %v1017_v50, %v729_v53 }
 0x111   : > { %v1019_v55 = vpop.f32.mrf.mxu0 }
 0x112   : > { %v742_v56 = vadd.f32 %v730_v54, %v408_v52  ;;  %v1020_v57 = vadd.f32 %v1019_v55, %v1018_v51 }
 0x113   : > { %v1021_v59 = vpop.f32.mrf.mxu0 }
 0x114   : > { %746 = vst [vmem:[#allocation2] sm:$0xff] %v742_v56  ;;  %v735_v60 = vadd.f32 %v1052_v41, %v1020_v57 }
 0x115   : > { %v1022_v61 = vpop.f32.mrf.mxu0 }
 0x116   : > { %v743_v62 = vadd.f32 %v735_v60, %v409_v58  ;;  %v1023_v63 = vadd.f32 %v1022_v61, %v1021_v59 }
 0x118   : > { %747 = vst [vmem:[#allocation2 + $0x18] sm:$0xff] %v743_v62  ;;  %v738_v1 = vadd.f32 %v1053_v48, %v1023_v63  ;;  %752 = sbr.rel (%p988_p11) target bundleno = 301 (0x12d), region = 74 }
 0x11a   : > { %v744_v2 = vadd.f32 %v738_v1, %v410_v0 }
 0x11c   : > { %748 = vst [vmem:[#allocation2 + $0x8] sm:$0xff] %v744_v2 }
 0x11d   : > { %v753_v3 = vld [vmem:[#allocation2 + $0x10] sm:$0xff]  ;;  %v989_v4 = vld [vmem:[%s1333_s2] ss:$0 sm:$0xff]  ;;  %v780_v13 = vld [vmem:[%s1335_s4 + $0x8] sm:$0xff] }
 0x11e   : > { %v990_v5 = vld [vmem:[%s1334_s3] ss:$0 sm:$0xff]  ;;  %v764_v6 = vmul.f32 %v989_v4, %v753_v3  ;;  %v781_v17 = vld [vmem:[%s1335_s4 + $0x10] sm:$0xff]  ;;  %v782_v18 = vld [vmem:[%s1335_s4 + $0x18] sm:$0xff] }
 0x11f   : > { %v754_v7 = vld [vmem:[#allocation2] sm:$0xff]  ;;  %v755_v10 = vld [vmem:[#allocation2 + $0x18] sm:$0xff] }
 0x120   : > { %v779_v8 = vld [vmem:[%s1335_s4] sm:$0xff]  ;;  %v765_v9 = vmul.f32 %v989_v4, %v754_v7  ;;  %v775_v12 = vadd.f32 %v990_v5, %v764_v6  ;;  %v766_v14 = vmul.f32 %v989_v4, %v755_v10 }
 0x122   : > { %v776_v16 = vadd.f32 %v990_v5, %v765_v9  ;;  %v783_v19 = vadd.f32 %v779_v8, %v775_v12  ;;  %v777_v20 = vadd.f32 %v990_v5, %v766_v14 }
 0x123   : > { %v756_v11 = vld [vmem:[#allocation2 + $0x8] sm:$0xff] }
 0x124   : > { %v767_v15 = vmul.f32 %v989_v4, %v756_v11  ;;  %v784_v22 = vadd.f32 %v780_v13, %v776_v16  ;;  %v787_v23 = vmax.f32 %v783_v19, 0.0  ;;  %v785_v24 = vadd.f32 %v781_v17, %v777_v20 }
 0x126   : > { %v778_v21 = vadd.f32 %v990_v5, %v767_v15  ;;  %v788_v26 = vmax.f32 %v784_v22, 0.0  ;;  %791 = vst [vmem:[%s1336_s5] sm:$0xff] %v787_v23  ;;  %v789_v27 = vmax.f32 %v785_v24, 0.0 }
 0x128   : > { %v786_v25 = vadd.f32 %v782_v18, %v778_v21  ;;  %792 = vst [vmem:[%s1336_s5 + $0x8] sm:$0xff] %v788_v26  ;;  %793 = vst [vmem:[%s1336_s5 + $0x10] sm:$0xff] %v789_v27 }
 0x12a   : > { %v790_v28 = vmax.f32 %v786_v25, 0.0 }
 0x12c   : > { %794 = vst [vmem:[%s1336_s5 + $0x18] sm:$0xff] %v790_v28 }
 0x12d PF: > { %s15_s22 = sadd.s32 1, %s1167_s22   ;;  %s1337_s18 = smov %s1155_s19 }
 0x12e   : > { %p12_p12 = scmp.ge.s32.totalorder %s15_s22, 5   ;;  %s1338_s19 = smov %s1235_s26 }
 0x12f   : > { %s1339_s20 = smov %s1163_s21  ;;  %s1340_s21 = smov %s1342_s23 }
 0x130   :  { %14 = sbr.rel (!%p12_p12) target bundleno = 3 (0x3), region = 127 }

// kernel: resnet18_forward.33
= control target key start
LH: loop header
LB: loop body
LE: loop exit
PB: predicated region body
PF: predicated region fallthrough
CT: control target
= control target key end

     0   :  { %s1108_s15 = smov 0   ;;  %s1110_s16 = smov 0   ;;  %s1227_s0 = inlined_call_operand.vmem [shape: bf16[32,1152], index: 0, kind: input, shape index: {}]   ;;  %s1228_s1 = inlined_call_operand.vmem [shape: bf16[1152,128], index: 1, kind: input, shape index: {}]   ;;  %s1229_s2 = inlined_call_operand.vmem [shape: f32[1,128], index: 2, kind: input, shape index: {}]   ;;  %s1230_s3 = inlined_call_operand.vmem [shape: f32[1,128], index: 3, kind: input, shape index: {}]   ;;  %s1231_s4 = inlined_call_operand.vmem [shape: f32[32,128], index: 4, kind: output, shape index: {}]  }
   0x1   :  { %s1112_s17 = smov 0   ;;  %s1114_s18 = smov 0  }
   0x2   :  { %s1116_s19 = smov 0  }
   0x3 LB: > { %s26_s20 = sadd.s32 1, %s1076_s18  ;;  %p49_p1 = scmp.ne.s32.totalorder %s1068_s16, %s1064_s15  ;;  %s1080_s19 = sphi %s1116_s19, %s14_s19   ;;  %s1076_s18 = sphi %s1114_s18, %s1235_s18   ;;  %s1072_s17 = sphi %s1112_s17, %s1234_s17   ;;  %s1068_s16 = sphi %s1110_s16, %s1233_s16   ;;  %s1064_s15 = sphi %s1108_s15, %s1232_s15  }
   0x4   : > { %p27_p0 = scmp.ge.s32.totalorder %s26_s20, 3  ;;  %p50_p2 = scmp.eq.s32.totalorder %s1080_s19, 0 }
   0x5   : > { %s42_s22 = sadd.s32 1, %s1068_s16  ;;  %p858_p5 = scmp.ge.s32.totalorder %s1080_s19, 3 }
   0x6   : > { %s1237_s20 = smov (%p27_p0, %s26_s20), 0  ;;  %p51_p3 = por %p50_p2, %p49_p1 }
   0x7   : > { %s38_s21 = ssub.s32 %s1076_s18, %s1237_s20  ;;  %195 = sbr.rel (%p858_p5) target bundleno = 21 (0x15), region = 24 }
   0x8   : > { %p40_p4 = scmp.eq.s32.totalorder %s38_s21, 0 }
   0xa   : > { %s1143_s23 = scalar_select %p40_p4, %s1068_s16, %s42_s22  }
   0xc   : > { %198 = sbr.rel (!%p51_p3) target bundleno = 21 (0x15), region = 28  ;;  %s200_s24 = sand.u32 (%p51_p3), 1, %s1068_s16  }
   0xd   : > { %s908_s25 = smul.u32 (%p51_p3), 12, %s1076_s18 }
   0xe   : > { %s967_s26 = smul.u32 (%p51_p3), 48, %s200_s24 }
   0xf   : > { %s208_s29 = scalar_lea.vmem (%p51_p3), %s1227_s0, %s908_s25 }
  0x10   : > { %v223_v0 = vld [vmem:[%s208_s29] sm:$0xff] (%p51_p3)  ;;  %v227_v2 = vld [vmem:[%s208_s29 + $0x48] sm:$0xff] (%p51_p3)  ;;  %s202_s30 = scalar_lea.vmem (%p51_p3), [#allocation3], %s967_s26  ;;  %v864_v6 = vld [vmem:[%s208_s29 + $0x50] sm:$0xf] (%p51_p3) }
  0x11   : > { %v225_v1 = vld [vmem:[%s208_s29 + $0x24] sm:$0xff]  ;;  %224 = vst [vmem:[%s202_s30] sm:$0xff] %v223_v0  ;;  %228 = vst [vmem:[%s202_s30 + $0x18] sm:$0xff] %v227_v2  ;;  %v229_v3 = vld [vmem:[%s208_s29 + $0x6c] sm:$0xff] }
  0x12   : > { %226 = vst [vmem:[%s202_s30 + $0xc] sm:$0xff] %v225_v1  ;;  %v860_v4 = vld [vmem:[%s208_s29 + $0x8] sm:$0xf]  ;;  %v862_v5 = vld [vmem:[%s208_s29 + $0x2c] sm:$0xf]  ;;  %230 = vst [vmem:[%s202_s30 + $0x24] sm:$0xff] %v229_v3 }
  0x13   : > { %861 = vst [vmem:[%s202_s30 + $0x8] sm:$0xf] %v860_v4  ;;  %863 = vst [vmem:[%s202_s30 + $0x14] sm:$0xf] %v862_v5  ;;  %v866_v7 = vld [vmem:[%s208_s29 + $0x74] sm:$0xf] }
  0x14   : > { %865 = vst [vmem:[%s202_s30 + $0x20] sm:$0xf] %v864_v6  ;;  %867 = vst [vmem:[%s202_s30 + $0x2c] sm:$0xf] %v866_v7 }
  0x15 PF: > { %p868_p6 = scmp.ge.s32.totalorder %s1080_s19, 1  ;;  %p263_p7 = scmp.lt.s32.totalorder %s1080_s19, 4 }
  0x17   : > { %p264_p8 = pnand %p868_p6, %p263_p7 }
  0x18   : > { %s270_s5 = sand.u32 (!%p264_p8), 1, %s1064_s15   ;;  %s314_s6 = smul.u32 (!%p264_p8), 48, %s1072_s17 }
  0x19   : > { %267 = sbr.rel (%p264_p8) target bundleno = 299 (0x12b), region = 58  ;;  %p870_p10 = scmp.ne.s32.totalorder (!%p264_p8), %s1072_s17, 0 }
  0x1a   : > { %s968_s7 = smul.u32 (!%p264_p8), 48, %s270_s5  ;;  %p315_p9 = scmp.lt.s32.totalorder (!%p264_p8), %s314_s6, 143 }
  0x1c   : > { %s1160_s12 = scalar_lea.vmem (!%p264_p8), [#allocation3], %s968_s7 }
  0x1e   : > { %s1239_s6 = smov (!%p315_p9, %s314_s6), 143  ;;  %342 = sbr.rel (%p870_p10) target bundleno = 38 (0x26), region = 66 }
  0x1f   : > { %s869_s8 = sshll.u32 %s1239_s6, 2 }
  0x20   : > { %s1158_s11 = scalar_lea.vmem %s1228_s1, %s869_s8 }
  0x23   : > { %v1082_v8 = vmov 0.0  }
  0x24   : > { %343 = vst [vmem:[#allocation2 + $0x10] sm:$0xff] %v1082_v8  ;;  %344 = vst [vmem:[#allocation2] sm:$0xff] %v1082_v8 }
  0x25   : > { %345 = vst [vmem:[#allocation2 + $0x18] sm:$0xff] %v1082_v8  ;;  %346 = vst [vmem:[#allocation2 + $0x8] sm:$0xff] %v1082_v8 }
  0x26 PF: > { %v1010_v9 = vld [vmem:[%s1158_s11 + $0x78] sm:$0xff]   ;;  %v1013_v12 = vld [vmem:[%s1158_s11 + $0x70] sm:$0xff]   ;;  %v1016_v15 = vld [vmem:[%s1158_s11 + $0x68] sm:$0xff]   ;;  %p901_p11 = scmp.ne.s32.totalorder %s1072_s17, 2 }
  0x27   : > { %v1011_v10 = vld [vmem:[%s1158_s11 + $0x38] sm:$0xff]   ;;  %909 = vmatprep.subr.bf16.mxu0 %v1010_v9  ;;  %v1014_v13 = vld [vmem:[%s1158_s11 + $0x30] sm:$0xff]   ;;  %v1017_v16 = vld [vmem:[%s1158_s11 + $0x28] sm:$0xff]  }
  0x28   : > { %v1012_v11 = vld [vmem:[%s1158_s11 + $0xb8] sm:$0xff]   ;;  %910 = vmatpush3.bf16.msra.mxu0 %v1011_v10  ;;  %v1015_v14 = vld [vmem:[%s1158_s11 + $0xb0] sm:$0xff]   ;;  %v1018_v17 = vld [vmem:[%s1158_s11 + $0xa8] sm:$0xff]  }
  0x29   : > { %947 = vmatprep.subr.bf16.mxu1 %v1012_v11  ;;  %911 = vmatprep.subr.bf16.mxu0 %v1013_v12  ;;  %v1019_v18 = vld [vmem:[%s1158_s11 + $0x60] sm:$0xff]   ;;  %v1022_v21 = vld [vmem:[%s1158_s11 + $0x58] sm:$0xff]   ;;  %v1025_v24 = vld [vmem:[%s1158_s11 + $0x50] sm:$0xff]  }
  0x2a   : > { %948 = vmatpush3.bf16.msra.mxu1 %v1012_v11  ;;  %v1020_v19 = vld [vmem:[%s1158_s11 + $0x20] sm:$0xff]   ;;  %v1024_v22 = vld [vmem:[%s1158_s11 + $0x98] sm:$0xff]   ;;  %v1027_v25 = vld [vmem:[%s1158_s11 + $0x90] sm:$0xff]  }
  0x2b   : > { %949 = vmatprep.subr.bf16.mxu1 %v1015_v14  ;;  %v1021_v20 = vld [vmem:[%s1158_s11 + $0xa0] sm:$0xff]   ;;  %v1023_v23 = vld [vmem:[%s1158_s11 + $0x18] sm:$0xff]   ;;  %v1026_v26 = vld [vmem:[%s1158_s11 + $0x10] sm:$0xff]  }
  0x2c   : > { %912 = vmatpush3.bf16.msra.mxu0 %v1014_v13  ;;  %v1028_v27 = vld [vmem:[%s1158_s11 + $0x48] sm:$0xff]   ;;  %v1031_v30 = vld [vmem:[%s1158_s11 + $0x40] sm:$0xff]   ;;  %v347_v44 = vld [vmem:[#allocation2 + $0x10] sm:$0xff] }
  0x2d   : > { %913 = vmatprep.subr.bf16.mxu0 %v1016_v15  ;;  %v1029_v28 = vld [vmem:[%s1158_s11 + $0x8] sm:$0xff]   ;;  %v1033_v31 = vld [vmem:[%s1158_s11 + $0x80] sm:$0xff]   ;;  %v349_v58 = vld [vmem:[#allocation2 + $0x18] sm:$0xff] }
  0x2e   : > { %950 = vmatpush3.bf16.msra.mxu1 %v1015_v14  ;;  %v1030_v29 = vld [vmem:[%s1158_s11 + $0x88] sm:$0xff]   ;;  %v1036_v32 = vld [vmem:[%s1160_s12 + $0x4] ss:$12 sps:$4 sm:$0xff]  }
  0x2f   : > { %951 = vmatprep.subr.bf16.mxu1 %v1018_v17  ;;  %v1037_v33 = vld [vmem:[%s1160_s12 + $0x8] ss:$12 sps:$4 sm:$0xff]   ;;  %615 = vmatprep.mubr.bf16.mxu0 %v1036_v32  ;;  %v1034_v35 = vld [vmem:[%s1160_s12] ss:$12 sps:$4 sm:$0xff]   ;;  %v1041_v38 = vld [vmem:[%s1160_s12 + $0x18] ss:$12 sps:$4 sm:$0xff]  }
  0x30   : > { %914 = vmatpush3.bf16.msra.mxu0 %v1017_v16  ;;  %v1032_v34 = vld [vmem:[%s1158_s11] sm:$0xff]   ;;  %963 = vmatprep.mubr.bf16.mxu1 %v1037_v33  ;;  %v1039_v36 = vld [vmem:[%s1160_s12 + $0x1c] ss:$12 sps:$4 sm:$0xff]  }
  0x31   : > { %915 = vmatprep.subr.bf16.mxu0 %v1019_v18  ;;  %v1038_v37 = vld [vmem:[%s1160_s12 + $0x20] ss:$12 sps:$4 sm:$0xff]  }
  0x32   : > { %952 = vmatpush3.bf16.msra.mxu1 %v1018_v17  ;;  %v348_v52 = vld [vmem:[#allocation2] sm:$0xff]  ;;  %v350_v0 = vld [vmem:[#allocation2 + $0x8] sm:$0xff] }
  0x33   : > { %953 = vmatprep.subr.bf16.mxu1 %v1021_v20 }
  0x34   : > { %916 = vmatpush3.bf16.msra.mxu0 %v1020_v19 }
  0x35   : > { %917 = vmatprep.subr.bf16.mxu0 %v1022_v21 }
  0x36   : > { %954 = vmatpush3.bf16.msra.mxu1 %v1021_v20 }
  0x37   : > { %955 = vmatprep.subr.bf16.mxu1 %v1024_v22 }
  0x38   : > { %918 = vmatpush3.bf16.msra.mxu0 %v1023_v23 }
  0x39   : > { %919 = vmatprep.subr.bf16.mxu0 %v1025_v24 }
  0x3a   : > { %956 = vmatpush3.bf16.msra.mxu1 %v1024_v22 }
  0x3b   : > { %957 = vmatprep.subr.bf16.mxu1 %v1027_v25 }
  0x3c   : > { %920 = vmatpush3.bf16.msra.mxu0 %v1026_v26 }
  0x3d   : > { %921 = vmatprep.subr.bf16.mxu0 %v1028_v27 }
  0x3e   : > { %958 = vmatpush3.bf16.msra.mxu1 %v1027_v25 }
  0x3f   : > { %959 = vmatprep.subr.bf16.mxu1 %v1030_v29 }
  0x40   : > { %922 = vmatpush3.bf16.msra.mxu0 %v1029_v28 }
  0x41   : > { %923 = vmatprep.subr.bf16.mxu0 %v1031_v30 }
  0x42   : > { %960 = vmatpush3.bf16.msra.mxu1 %v1030_v29 }
  0x43   : > { %961 = vmatprep.subr.bf16.mxu1 %v1033_v31 }
  0x44   : > { %924 = vmatpush3.bf16.msra.mxu0 %v1032_v34 }
  0x46   : > { %962 = vmatpush3.bf16.msra.mxu1 %v1033_v31 }
  0x47   : > { %616 = vmatmul.mubr.bf16.vlgmr.msra.gmra.mxu0 %v1034_v35 }
  0x48   : > { %623 = vmatprep.mubr.bf16.mxu0 %v1039_v36 }
  0x49   : > { %964 = vmatmul.mubr.bf16.vlgmr.msra.gmra.mxu1 %v1038_v37 }
  0x4f   : > { %624 = vmatmul.mubr.bf16.gmra.mxu0 %v1041_v38 }
 0x107   : > { %v925_v39 = vpop.f32.mrf.mxu0 }
 0x109   : > { %v926_v40 = vpop.f32.mrf.mxu0  ;;  %v965_v41 = vpop.f32.mrf.mxu1 }
 0x10a   : > { %v927_v42 = vadd.f32 %v926_v40, %v925_v39 }
 0x10b   : > { %v928_v43 = vpop.f32.mrf.mxu0  ;;  %v666_v45 = vpop.f32.mrf.mxu1 }
 0x10c   : > { %v667_v46 = vadd.f32 %v927_v42, %v666_v45 }
 0x10d   : > { %v929_v47 = vpop.f32.mrf.mxu0  ;;  %v966_v48 = vpop.f32.mrf.mxu1 }
 0x10e   : > { %v681_v49 = vadd.f32 %v667_v46, %v347_v44  ;;  %v930_v50 = vadd.f32 %v929_v47, %v928_v43 }
 0x10f   : > { %v931_v51 = vpop.f32.mrf.mxu0  ;;  %v669_v53 = vpop.f32.mrf.mxu1 }
 0x110   : > { %685 = vst [vmem:[#allocation2 + $0x10] sm:$0xff] %v681_v49  ;;  %v670_v54 = vadd.f32 %v930_v50, %v669_v53 }
 0x111   : > { %v932_v55 = vpop.f32.mrf.mxu0 }
 0x112   : > { %v682_v56 = vadd.f32 %v670_v54, %v348_v52  ;;  %v933_v57 = vadd.f32 %v932_v55, %v931_v51 }
 0x113   : > { %v934_v59 = vpop.f32.mrf.mxu0 }
 0x114   : > { %686 = vst [vmem:[#allocation2] sm:$0xff] %v682_v56  ;;  %v675_v60 = vadd.f32 %v965_v41, %v933_v57 }
 0x115   : > { %v935_v61 = vpop.f32.mrf.mxu0 }
 0x116   : > { %v683_v62 = vadd.f32 %v675_v60, %v349_v58  ;;  %v936_v63 = vadd.f32 %v935_v61, %v934_v59 }
 0x118   : > { %687 = vst [vmem:[#allocation2 + $0x18] sm:$0xff] %v683_v62  ;;  %v678_v1 = vadd.f32 %v966_v48, %v936_v63  ;;  %692 = sbr.rel (%p901_p11) target bundleno = 299 (0x12b), region = 70 }
 0x11a   : > { %v684_v2 = vadd.f32 %v678_v1, %v350_v0 }
 0x11c   : > { %688 = vst [vmem:[#allocation2 + $0x8] sm:$0xff] %v684_v2 }
 0x11d   : > { %v693_v3 = vld [vmem:[#allocation2 + $0x10] sm:$0xff]  ;;  %v902_v4 = vld [vmem:[%s1229_s2] ss:$0 sm:$0xff] }
 0x11e   : > { %v903_v5 = vld [vmem:[%s1230_s3] ss:$0 sm:$0xff]  ;;  %v704_v6 = vmul.f32 %v902_v4, %v693_v3 }
 0x11f   : > { %v694_v7 = vld [vmem:[#allocation2] sm:$0xff]  ;;  %v695_v8 = vld [vmem:[#allocation2 + $0x18] sm:$0xff] }
 0x120   : > { %v705_v10 = vmul.f32 %v902_v4, %v694_v7  ;;  %v706_v11 = vmul.f32 %v902_v4, %v695_v8  ;;  %v715_v13 = vadd.f32 %v903_v5, %v704_v6 }
 0x122   : > { %v716_v14 = vadd.f32 %v903_v5, %v705_v10  ;;  %v717_v15 = vadd.f32 %v903_v5, %v706_v11  ;;  %v719_v17 = vmax.f32 %v715_v13, 0.0 }
 0x123   : > { %v696_v9 = vld [vmem:[#allocation2 + $0x8] sm:$0xff] }
 0x124   : > { %v707_v12 = vmul.f32 %v902_v4, %v696_v9  ;;  %v720_v18 = vmax.f32 %v716_v14, 0.0  ;;  %v721_v19 = vmax.f32 %v717_v15, 0.0  ;;  %723 = vst [vmem:[%s1231_s4] sm:$0xff] %v719_v17 }
 0x126   : > { %v718_v16 = vadd.f32 %v903_v5, %v707_v12  ;;  %724 = vst [vmem:[%s1231_s4 + $0x8] sm:$0xff] %v720_v18  ;;  %725 = vst [vmem:[%s1231_s4 + $0x10] sm:$0xff] %v721_v19 }
 0x128   : > { %v722_v20 = vmax.f32 %v718_v16, 0.0 }
 0x12a   : > { %726 = vst [vmem:[%s1231_s4 + $0x18] sm:$0xff] %v722_v20 }
 0x12b PF: > { %s14_s19 = sadd.s32 1, %s1080_s19   ;;  %s1232_s15 = smov %s1068_s16 }
 0x12c   : > { %p11_p12 = scmp.ge.s32.totalorder %s14_s19, 5   ;;  %s1233_s16 = smov %s1143_s23 }
 0x12d   : > { %s1234_s17 = smov %s1076_s18  ;;  %s1235_s18 = smov %s1237_s20 }
 0x12e   :  { %13 = sbr.rel (!%p11_p12) target bundleno = 3 (0x3), region = 120 }

// kernel: resnet18_forward.36
= control target key start
LH: loop header
LB: loop body
LE: loop exit
PB: predicated region body
PF: predicated region fallthrough
CT: control target
= control target key end

     0   :  { %s1214_s15 = smov 0   ;;  %s1216_s16 = smov 0   ;;  %s1354_s0 = inlined_call_operand.vmem [shape: bf16[16,1152], index: 0, kind: input, shape index: {}]   ;;  %s1355_s1 = inlined_call_operand.vmem [shape: bf16[1152,256], index: 1, kind: input, shape index: {}]   ;;  %s1356_s2 = inlined_call_operand.vmem [shape: f32[1,256], index: 2, kind: input, shape index: {}]   ;;  %s1357_s3 = inlined_call_operand.vmem [shape: f32[1,256], index: 3, kind: input, shape index: {}]   ;;  %s1358_s4 = inlined_call_operand.vmem [shape: f32[16,256], index: 4, kind: output, shape index: {}]  }
   0x1   :  { %s1218_s17 = smov 0   ;;  %s1220_s18 = smov 0  }
   0x2   :  { %s1222_s19 = smov 0  }
   0x3 LB: > { %s26_s20 = sadd.s32 1, %s1181_s18  ;;  %p49_p1 = scmp.ne.s32.totalorder %s1173_s16, %s1169_s15  ;;  %s1185_s19 = sphi %s1222_s19, %s14_s19   ;;  %s1181_s18 = sphi %s1220_s18, %s1362_s18   ;;  %s1177_s17 = sphi %s1218_s17, %s1361_s17   ;;  %s1173_s16 = sphi %s1216_s16, %s1360_s16   ;;  %s1169_s15 = sphi %s1214_s15, %s1359_s15  }
   0x4   : > { %p27_p0 = scmp.ge.s32.totalorder %s26_s20, 3  ;;  %p50_p2 = scmp.eq.s32.totalorder %s1185_s19, 0 }
   0x5   : > { %s42_s22 = sadd.s32 1, %s1173_s16  ;;  %p959_p5 = scmp.ge.s32.totalorder %s1185_s19, 3 }
   0x6   : > { %s1364_s20 = smov (%p27_p0, %s26_s20), 0  ;;  %p51_p3 = por %p50_p2, %p49_p1 }
   0x7   : > { %s38_s21 = ssub.s32 %s1181_s18, %s1364_s20  ;;  %199 = sbr.rel (%p959_p5) target bundleno = 19 (0x13), region = 24 }
   0x8   : > { %p40_p4 = scmp.eq.s32.totalorder %s38_s21, 0 }
   0xa   : > { %s1249_s23 = scalar_select %p40_p4, %s1173_s16, %s42_s22  }
   0xc   : > { %202 = sbr.rel (!%p51_p3) target bundleno = 19 (0x13), region = 28  ;;  %s204_s24 = sand.u32 (%p51_p3), 1, %s1173_s16  }
   0xd   : > { %s1025_s25 = smul.u32 (%p51_p3), 12, %s1181_s18 }
   0xe   : > { %s1027_s26 = smul.u32 (%p51_p3), 24, %s204_s24 }
   0xf   : > { %s212_s29 = scalar_lea.vmem (%p51_p3), %s1354_s0, %s1025_s25 }
  0x10   : > { %v227_v0 = vld [vmem:[%s212_s29] sm:$0xff] (%p51_p3)  ;;  %v961_v2 = vld [vmem:[%s212_s29 + $0x8] sm:$0xf] (%p51_p3)  ;;  %s206_s30 = scalar_lea.vmem (%p51_p3), [#allocation3], %s1027_s26  ;;  %v963_v3 = vld [vmem:[%s212_s29 + $0x2c] sm:$0xf] (%p51_p3) }
  0x11   : > { %v229_v1 = vld [vmem:[%s212_s29 + $0x24] sm:$0xff]  ;;  %228 = vst [vmem:[%s206_s30] sm:$0xff] %v227_v0  ;;  %962 = vst [vmem:[%s206_s30 + $0x8] sm:$0xf] %v961_v2 }
  0x12   : > { %230 = vst [vmem:[%s206_s30 + $0xc] sm:$0xff] %v229_v1  ;;  %964 = vst [vmem:[%s206_s30 + $0x14] sm:$0xf] %v963_v3 }
  0x13 PF: > { %p965_p6 = scmp.ge.s32.totalorder %s1185_s19, 1  ;;  %p262_p7 = scmp.lt.s32.totalorder %s1185_s19, 4 }
  0x15   : > { %p263_p8 = pnand %p965_p6, %p262_p7 }
  0x16   : > { %s269_s5 = sand.u32 (!%p263_p8), 1, %s1169_s15   ;;  %s319_s6 = smul.u32 (!%p263_p8), 48, %s1177_s17 }
  0x17   : > { %266 = sbr.rel (%p263_p8) target bundleno = 321 (0x141), region = 58  ;;  %p968_p10 = scmp.ne.s32.totalorder (!%p263_p8), %s1177_s17, 0 }
  0x18   : > { %s1028_s7 = smul.u32 (!%p263_p8), 24, %s269_s5  ;;  %p321_p9 = scmp.lt.s32.totalorder (!%p263_p8), %s319_s6, 143 }
  0x1a   : > { %s1266_s12 = scalar_lea.vmem (!%p263_p8), [#allocation3], %s1028_s7 }
  0x1c   : > { %s1366_s6 = smov (!%p321_p9, %s319_s6), 143  ;;  %357 = sbr.rel (%p968_p10) target bundleno = 36 (0x24), region = 66 }
  0x1d   : > { %s1026_s8 = sshll.u32 %s1366_s6, 3 }
  0x1e   : > { %s1264_s11 = scalar_lea.vmem %s1355_s1, %s1026_s8 }
  0x21   : > { %v1187_v4 = vmov 0.0  }
  0x22   : > { %358 = vst [vmem:[#allocation2 + $0x10] sm:$0xff] %v1187_v4  ;;  %359 = vst [vmem:[#allocation2] sm:$0xff] %v1187_v4 }
  0x23   : > { %360 = vst [vmem:[#allocation2 + $0x18] sm:$0xff] %v1187_v4  ;;  %361 = vst [vmem:[#allocation2 + $0x8] sm:$0xff] %v1187_v4 }
  0x24 PF: > { %v1071_v5 = vld [vmem:[%s1264_s11 + $0x74] ss:$8 sps:$4 sm:$0xff]   ;;  %v1073_v6 = vld [vmem:[%s1264_s11 + $0x70] ss:$8 sps:$4 sm:$0xff]   ;;  %v1188_v7 = vmov 0   ;;  %p1020_p11 = scmp.ne.s32.totalorder %s1177_s17, 2 }
  0x25   : > { %749 = vmatprep.mubr.bf16.mxu1 %v1188_v7  ;;  %674 = vmatprep.subr.bf16.mxu0 %v1071_v5  ;;  %v1074_v8 = vld [vmem:[%s1264_s11 + $0x64] ss:$8 sps:$4 sm:$0xff]   ;;  %v1076_v9 = vld [vmem:[%s1264_s11 + $0x60] ss:$8 sps:$4 sm:$0xff]   ;;  %v1077_v10 = vld [vmem:[%s1264_s11 + $0x54] ss:$8 sps:$4 sm:$0xff]  }
  0x26   : > { %675 = vmatpush1.bf16.msra.mxu0 %v1073_v6  ;;  %v1079_v11 = vld [vmem:[%s1264_s11 + $0x50] ss:$8 sps:$4 sm:$0xff]   ;;  %v1080_v12 = vld [vmem:[%s1264_s11 + $0x44] ss:$8 sps:$4 sm:$0xff]   ;;  %v1092_v13 = vld [vmem:[%s1264_s11 + $0x174] ss:$8 sps:$4 sm:$0xff]  }
  0x27   : > { %676 = vmatprep.subr.bf16.mxu0 %v1074_v8  ;;  %v1094_v14 = vld [vmem:[%s1264_s11 + $0x170] ss:$8 sps:$4 sm:$0xff]   ;;  %v1082_v15 = vld [vmem:[%s1264_s11 + $0x40] ss:$8 sps:$4 sm:$0xff]   ;;  %v1083_v16 = vld [vmem:[%s1264_s11 + $0x34] ss:$8 sps:$4 sm:$0xff]   ;;  %717 = vmatprep.subr.bf16.mxu1 %v1092_v13 }
  0x28   : > { %v1098_v17 = vld [vmem:[%s1264_s11 + $0x164] ss:$8 sps:$4 sm:$0xff]   ;;  %718 = vmatpush1.bf16.msra.mxu1 %v1094_v14  ;;  %v1100_v18 = vld [vmem:[%s1264_s11 + $0x160] ss:$8 sps:$4 sm:$0xff]   ;;  %v1085_v19 = vld [vmem:[%s1264_s11 + $0x30] ss:$8 sps:$4 sm:$0xff]  }
  0x29   : > { %719 = vmatprep.subr.bf16.mxu1 %v1098_v17  ;;  %v1104_v20 = vld [vmem:[%s1264_s11 + $0x154] ss:$8 sps:$4 sm:$0xff]   ;;  %v1086_v21 = vld [vmem:[%s1264_s11 + $0x24] ss:$8 sps:$4 sm:$0xff]   ;;  %v1106_v22 = vld [vmem:[%s1264_s11 + $0x150] ss:$8 sps:$4 sm:$0xff]  }
  0x2a   : > { %677 = vmatpush1.bf16.msra.mxu0 %v1076_v9  ;;  %v1110_v23 = vld [vmem:[%s1264_s11 + $0x144] ss:$8 sps:$4 sm:$0xff]   ;;  %v1088_v24 = vld [vmem:[%s1264_s11 + $0x20] ss:$8 sps:$4 sm:$0xff]   ;;  %v1089_v25 = vld [vmem:[%s1264_s11 + $0x14] ss:$8 sps:$4 sm:$0xff]  }
  0x2b   : > { %678 = vmatprep.subr.bf16.mxu0 %v1077_v10  ;;  %v1112_v26 = vld [vmem:[%s1264_s11 + $0x140] ss:$8 sps:$4 sm:$0xff]   ;;  %v1116_v27 = vld [vmem:[%s1264_s11 + $0x134] ss:$8 sps:$4 sm:$0xff]   ;;  %v1091_v28 = vld [vmem:[%s1264_s11 + $0x10] ss:$8 sps:$4 sm:$0xff]  }
  0x2c   : > { %720 = vmatpush1.bf16.msra.mxu1 %v1100_v18  ;;  %v1095_v29 = vld [vmem:[%s1264_s11 + $0x4] ss:$8 sps:$4 sm:$0xff]   ;;  %v1118_v30 = vld [vmem:[%s1264_s11 + $0x130] ss:$8 sps:$4 sm:$0xff]   ;;  %v1097_v32 = vld [vmem:[%s1264_s11] ss:$8 sps:$4 sm:$0xff]  }
  0x2d   : > { %721 = vmatprep.subr.bf16.mxu1 %v1104_v20  ;;  %v1122_v31 = vld [vmem:[%s1264_s11 + $0x124] ss:$8 sps:$4 sm:$0xff]   ;;  %v1101_v33 = vld [vmem:[%s1264_s11 + $0xf4] ss:$8 sps:$4 sm:$0xff]   ;;  %v1124_v34 = vld [vmem:[%s1264_s11 + $0x120] ss:$8 sps:$4 sm:$0xff]  }
  0x2e   : > { %679 = vmatpush1.bf16.msra.mxu0 %v1079_v11  ;;  %v1128_v35 = vld [vmem:[%s1264_s11 + $0x114] ss:$8 sps:$4 sm:$0xff]   ;;  %v1103_v36 = vld [vmem:[%s1264_s11 + $0xf0] ss:$8 sps:$4 sm:$0xff]   ;;  %v1107_v37 = vld [vmem:[%s1264_s11 + $0xe4] ss:$8 sps:$4 sm:$0xff]  }
  0x2f   : > { %680 = vmatprep.subr.bf16.mxu0 %v1080_v12  ;;  %v1130_v38 = vld [vmem:[%s1264_s11 + $0x110] ss:$8 sps:$4 sm:$0xff]   ;;  %v1134_v39 = vld [vmem:[%s1264_s11 + $0x104] ss:$8 sps:$4 sm:$0xff]   ;;  %v1109_v41 = vld [vmem:[%s1264_s11 + $0xe0] ss:$8 sps:$4 sm:$0xff]  }
  0x30   : > { %722 = vmatpush1.bf16.msra.mxu1 %v1106_v22  ;;  %v1146_v40 = vld [vmem:[%s1266_s12 + $0x4] ss:$12 sps:$4 sm:$0xff]   ;;  %v1140_v46 = vld [vmem:[%s1266_s12 + $0x8] ss:$12 sps:$4 sm:$0xff]   ;;  %v1144_v56 = vld [vmem:[%s1266_s12] ss:$12 sps:$4 sm:$0xff]  }
  0x31   : > { %723 = vmatprep.subr.bf16.mxu1 %v1110_v23  ;;  %v1113_v42 = vld [vmem:[%s1264_s11 + $0xd4] ss:$8 sps:$4 sm:$0xff]   ;;  %706 = vmatprep.mubr.bf16.mxu0 %v1146_v40  ;;  %v1136_v43 = vld [vmem:[%s1264_s11 + $0x100] ss:$8 sps:$4 sm:$0xff]   ;;  %v1115_v44 = vld [vmem:[%s1264_s11 + $0xd0] ss:$8 sps:$4 sm:$0xff]  }
  0x32   : > { %681 = vmatpush1.bf16.msra.mxu0 %v1082_v15  ;;  %v1119_v45 = vld [vmem:[%s1264_s11 + $0xc4] ss:$8 sps:$4 sm:$0xff]   ;;  %v1121_v47 = vld [vmem:[%s1264_s11 + $0xc0] ss:$8 sps:$4 sm:$0xff]   ;;  %v1125_v48 = vld [vmem:[%s1264_s11 + $0xb4] ss:$8 sps:$4 sm:$0xff]  }
  0x33   : > { %682 = vmatprep.subr.bf16.mxu0 %v1083_v16  ;;  %v1127_v49 = vld [vmem:[%s1264_s11 + $0xb0] ss:$8 sps:$4 sm:$0xff]   ;;  %v1131_v50 = vld [vmem:[%s1264_s11 + $0xa4] ss:$8 sps:$4 sm:$0xff]   ;;  %v1133_v51 = vld [vmem:[%s1264_s11 + $0xa0] ss:$8 sps:$4 sm:$0xff]  }
  0x34   : > { %724 = vmatpush1.bf16.msra.mxu1 %v1112_v26  ;;  %v1137_v52 = vld [vmem:[%s1264_s11 + $0x94] ss:$8 sps:$4 sm:$0xff]   ;;  %v1139_v53 = vld [vmem:[%s1264_s11 + $0x90] ss:$8 sps:$4 sm:$0xff]   ;;  %v1141_v54 = vld [vmem:[%s1264_s11 + $0x84] ss:$8 sps:$4 sm:$0xff]  }
  0x35   : > { %725 = vmatprep.subr.bf16.mxu1 %v1116_v27  ;;  %v1143_v55 = vld [vmem:[%s1264_s11 + $0x80] ss:$8 sps:$4 sm:$0xff]   ;;  %v362_v59 = vld [vmem:[#allocation2 + $0x10] sm:$0xff]  ;;  %v364_v3 = vld [vmem:[#allocation2 + $0x18] sm:$0xff] }
  0x36   : > { %683 = vmatpush1.bf16.msra.mxu0 %v1085_v19  ;;  %v363_v63 = vld [vmem:[#allocation2] sm:$0xff]  ;;  %v365_v8 = vld [vmem:[#allocation2 + $0x8] sm:$0xff] }
  0x37   : > { %684 = vmatprep.subr.bf16.mxu0 %v1086_v21 }
  0x38   : > { %726 = vmatpush1.bf16.msra.mxu1 %v1118_v30 }
  0x39   : > { %727 = vmatprep.subr.bf16.mxu1 %v1122_v31 }
  0x3a   : > { %685 = vmatpush1.bf16.msra.mxu0 %v1088_v24 }
  0x3b   : > { %686 = vmatprep.subr.bf16.mxu0 %v1089_v25 }
  0x3c   : > { %728 = vmatpush1.bf16.msra.mxu1 %v1124_v34 }
  0x3d   : > { %729 = vmatprep.subr.bf16.mxu1 %v1128_v35 }
  0x3e   : > { %687 = vmatpush1.bf16.msra.mxu0 %v1091_v28 }
  0x3f   : > { %688 = vmatprep.subr.bf16.mxu0 %v1095_v29 }
  0x40   : > { %730 = vmatpush1.bf16.msra.mxu1 %v1130_v38 }
  0x41   : > { %731 = vmatprep.subr.bf16.mxu1 %v1134_v39 }
  0x42   : > { %689 = vmatpush1.bf16.msra.mxu0 %v1097_v32 }
  0x43   : > { %690 = vmatprep.subr.bf16.mxu0 %v1101_v33 }
  0x44   : > { %732 = vmatpush1.bf16.msra.mxu1 %v1136_v43 }
  0x46   : > { %691 = vmatpush2.bf16.msra.mxu0 %v1103_v36 }
  0x47   : > { %692 = vmatprep.subr.bf16.mxu0 %v1107_v37  ;;  %750 = vmatmul.mubr.bf16.vlgmr.msra.gmra.mxu1 %v1140_v46 }
  0x4a   : > { %693 = vmatpush2.bf16.msra.mxu0 %v1109_v41 }
  0x4b   : > { %694 = vmatprep.subr.bf16.mxu0 %v1113_v42 }
  0x4e   : > { %695 = vmatpush2.bf16.msra.mxu0 %v1115_v44 }
  0x4f   : > { %696 = vmatprep.subr.bf16.mxu0 %v1119_v45 }
  0x52   : > { %697 = vmatpush2.bf16.msra.mxu0 %v1121_v47 }
  0x53   : > { %698 = vmatprep.subr.bf16.mxu0 %v1125_v48 }
  0x56   : > { %699 = vmatpush2.bf16.msra.mxu0 %v1127_v49 }
  0x57   : > { %700 = vmatprep.subr.bf16.mxu0 %v1131_v50 }
  0x5a   : > { %701 = vmatpush2.bf16.msra.mxu0 %v1133_v51 }
  0x5b   : > { %702 = vmatprep.subr.bf16.mxu0 %v1137_v52 }
  0x5e   : > { %703 = vmatpush2.bf16.msra.mxu0 %v1139_v53 }
  0x5f   : > { %704 = vmatprep.subr.bf16.mxu0 %v1141_v54 }
  0x62   : > { %705 = vmatpush2.bf16.msra.mxu0 %v1143_v55 }
  0x65   : > { %707 = vmatmul.mubr.bf16.vlgmr.msra.gmra.mxu0 %v1144_v56 }
 0x107   : > { %v751_v57 = vpop.f32.mrf.mxu1 }
 0x109   : > { %v753_v58 = vpop.f32.mrf.mxu1 }
 0x10b   : > { %v755_v62 = vpop.f32.mrf.mxu1 }
 0x10d   : > { %v757_v7 = vpop.f32.mrf.mxu1 }
 0x125   : > { %v708_v60 = vpop.f32.mrf.mxu0 }
 0x126   : > { %v752_v61 = vadd.f32 %v751_v57, %v708_v60 }
 0x127   : > { %v710_v0 = vpop.f32.mrf.mxu0 }
 0x128   : > { %v760_v1 = vadd.f32 %v752_v61, %v362_v59  ;;  %v754_v2 = vadd.f32 %v753_v58, %v710_v0 }
 0x129   : > { %v712_v4 = vpop.f32.mrf.mxu0 }
 0x12a   : > { %764 = vst [vmem:[#allocation2 + $0x10] sm:$0xff] %v760_v1  ;;  %v761_v5 = vadd.f32 %v754_v2, %v363_v63  ;;  %v756_v6 = vadd.f32 %v755_v62, %v712_v4 }
 0x12b   : > { %v714_v9 = vpop.f32.mrf.mxu0 }
 0x12c   : > { %765 = vst [vmem:[#allocation2] sm:$0xff] %v761_v5  ;;  %v762_v10 = vadd.f32 %v756_v6, %v364_v3  ;;  %v758_v11 = vadd.f32 %v757_v7, %v714_v9  ;;  %771 = sbr.rel (%p1020_p11) target bundleno = 321 (0x141), region = 70 }
 0x12e   : > { %766 = vst [vmem:[#allocation2 + $0x18] sm:$0xff] %v762_v10  ;;  %v763_v12 = vadd.f32 %v758_v11, %v365_v8 }
 0x130   : > { %767 = vst [vmem:[#allocation2 + $0x8] sm:$0xff] %v763_v12 }
 0x131   : > { %v778_v13 = vlaneseq  ;;  %v776_v15 = vld [vmem:[%s1356_s2] sm:$0x3]  ;;  %v772_v17 = vld [vmem:[#allocation2 + $0x10] sm:$0xff] }
 0x132   : > { %v792_v16 = vld [vmem:[%s1357_s3] sm:$0x3] }
 0x133   : > { %v779_v14 = vshrl.u32 %v778_v13, 7  ;;  %v773_v20 = vld [vmem:[#allocation2] sm:$0xff] }
 0x135   : > { %v780_v18 = vsub.s32 0, %v779_v14  ;;  %v784_v19 = vsub.s32 1, %v779_v14  ;;  %v774_v21 = vld [vmem:[#allocation2 + $0x18] sm:$0xff] }
 0x137   : > { %v775_v22 = vld [vmem:[#allocation2 + $0x8] sm:$0xff]  ;;  %v781_v23 = vrot.slane %v776_v15, %v780_v18  ;;  %v797_v24 = vrot.slane %v792_v16, %v780_v18  ;;  %v785_v25 = vrot.slane %v776_v15, %v784_v19  ;;  %v801_v26 = vrot.slane %v792_v16, %v784_v19 }
 0x139   : > { %v788_v27 = vmul.f32 %v781_v23, %v772_v17  ;;  %v789_v28 = vmul.f32 %v785_v25, %v773_v20  ;;  %v790_v29 = vmul.f32 %v781_v23, %v774_v21  ;;  %v791_v30 = vmul.f32 %v785_v25, %v775_v22 }
 0x13b   : > { %v804_v31 = vadd.f32 %v797_v24, %v788_v27  ;;  %v805_v32 = vadd.f32 %v801_v26, %v789_v28  ;;  %v806_v33 = vadd.f32 %v797_v24, %v790_v29  ;;  %v807_v34 = vadd.f32 %v801_v26, %v791_v30 }
 0x13d   : > { %v808_v35 = vmax.f32 %v804_v31, 0.0  ;;  %v809_v36 = vmax.f32 %v805_v32, 0.0  ;;  %v810_v37 = vmax.f32 %v806_v33, 0.0  ;;  %v811_v38 = vmax.f32 %v807_v34, 0.0 }
 0x13f   : > { %812 = vst [vmem:[%s1358_s4] sm:$0xff] %v808_v35  ;;  %813 = vst [vmem:[%s1358_s4 + $0x8] sm:$0xff] %v809_v36 }
 0x140   : > { %814 = vst [vmem:[%s1358_s4 + $0x10] sm:$0xff] %v810_v37  ;;  %815 = vst [vmem:[%s1358_s4 + $0x18] sm:$0xff] %v811_v38 }
 0x141 PF: > { %s14_s19 = sadd.s32 1, %s1185_s19   ;;  %s1359_s15 = smov %s1173_s16 }
 0x142   : > { %p11_p12 = scmp.ge.s32.totalorder %s14_s19, 5   ;;  %s1360_s16 = smov %s1249_s23 }
 0x143   : > { %s1361_s17 = smov %s1181_s18  ;;  %s1362_s18 = smov %s1364_s20 }
 0x144   :  { %13 = sbr.rel (!%p11_p12) target bundleno = 3 (0x3), region = 120 }

// kernel: resnet18_forward.35
= control target key start
LH: loop header
LB: loop body
LE: loop exit
PB: predicated region body
PF: predicated region fallthrough
CT: control target
= control target key end

     0   :  { %v275_v1 = vmov 0   ;;  %v194_v18 = vlaneseq  ;;  %s370_s1 = inlined_call_operand.vmem [shape: bf16[128,256], index: 1, kind: input, shape index: {}]   ;;  %s371_s0 = inlined_call_operand.vmem [shape: bf16[16,128], index: 0, kind: input, shape index: {}]   ;;  %s372_s2 = inlined_call_operand.vmem [shape: f32[1,256], index: 2, kind: input, shape index: {}]   ;;  %s373_s3 = inlined_call_operand.vmem [shape: f32[1,256], index: 3, kind: input, shape index: {}]   ;;  %s374_s4 = inlined_call_operand.vmem [shape: f32[16,256], index: 4, kind: output, shape index: {}]  }
   0x1   :  { %v250_v0 = vld [vmem:[%s370_s1 + $0x74] ss:$8 sps:$4 sm:$0xff]   ;;  %166 = vmatprep.mubr.bf16.mxu0 %v275_v1  ;;  %v252_v2 = vld [vmem:[%s370_s1 + $0x70] ss:$8 sps:$4 sm:$0xff]   ;;  %v253_v3 = vld [vmem:[%s370_s1 + $0x64] ss:$8 sps:$4 sm:$0xff]  }
   0x2   :  { %134 = vmatprep.subr.bf16.mxu0 %v250_v0  ;;  %v255_v4 = vld [vmem:[%s370_s1 + $0x60] ss:$8 sps:$4 sm:$0xff]   ;;  %v256_v5 = vld [vmem:[%s370_s1 + $0x54] ss:$8 sps:$4 sm:$0xff]   ;;  %v258_v6 = vld [vmem:[%s370_s1 + $0x50] ss:$8 sps:$4 sm:$0xff]  }
   0x3   :  { %135 = vmatpush1.bf16.msra.mxu0 %v252_v2  ;;  %v259_v7 = vld [vmem:[%s370_s1 + $0x44] ss:$8 sps:$4 sm:$0xff]   ;;  %v261_v8 = vld [vmem:[%s370_s1 + $0x40] ss:$8 sps:$4 sm:$0xff]   ;;  %v262_v9 = vld [vmem:[%s370_s1 + $0x34] ss:$8 sps:$4 sm:$0xff]  }
   0x4   :  { %136 = vmatprep.subr.bf16.mxu0 %v253_v3  ;;  %v264_v10 = vld [vmem:[%s370_s1 + $0x30] ss:$8 sps:$4 sm:$0xff]   ;;  %v265_v11 = vld [vmem:[%s370_s1 + $0x24] ss:$8 sps:$4 sm:$0xff]   ;;  %v267_v12 = vld [vmem:[%s370_s1 + $0x20] ss:$8 sps:$4 sm:$0xff]  }
   0x5   :  { %v268_v13 = vld [vmem:[%s370_s1 + $0x14] ss:$8 sps:$4 sm:$0xff]   ;;  %v270_v14 = vld [vmem:[%s370_s1 + $0x10] ss:$8 sps:$4 sm:$0xff]   ;;  %v271_v15 = vld [vmem:[%s370_s1 + $0x4] ss:$8 sps:$4 sm:$0xff]  }
   0x6   :  { %v273_v16 = vld [vmem:[%s370_s1] ss:$8 sps:$4 sm:$0xff]   ;;  %v195_v19 = vshrl.u32 %v194_v18, 7 }
   0x7   :  { %137 = vmatpush1.bf16.msra.mxu0 %v255_v4  ;;  %v274_v17 = vld [vmem:[%s371_s0] sm:$0xff]  }
   0x8   :  { %138 = vmatprep.subr.bf16.mxu0 %v256_v5  ;;  %v196_v20 = vsub.s32 0, %v195_v19  ;;  %v192_v21 = vld [vmem:[%s372_s2] sm:$0x3]  ;;  %v200_v22 = vsub.s32 1, %v195_v19 }
   0x9   :  { %v208_v23 = vld [vmem:[%s373_s3] sm:$0x3] }
   0xa   :  { %v197_v24 = vrot.slane %v192_v21, %v196_v20  ;;  %v213_v25 = vrot.slane %v208_v23, %v196_v20  ;;  %v201_v26 = vrot.slane %v192_v21, %v200_v22  ;;  %v217_v29 = vrot.slane %v208_v23, %v200_v22 }
   0xb   :  { %139 = vmatpush1.bf16.msra.mxu0 %v258_v6 }
   0xc   :  { %140 = vmatprep.subr.bf16.mxu0 %v259_v7 }
   0xf   :  { %141 = vmatpush1.bf16.msra.mxu0 %v261_v8 }
  0x10   :  { %142 = vmatprep.subr.bf16.mxu0 %v262_v9 }
  0x13   :  { %143 = vmatpush1.bf16.msra.mxu0 %v264_v10 }
  0x14   :  { %144 = vmatprep.subr.bf16.mxu0 %v265_v11 }
  0x17   :  { %145 = vmatpush1.bf16.msra.mxu0 %v267_v12 }
  0x18   :  { %146 = vmatprep.subr.bf16.mxu0 %v268_v13 }
  0x1b   :  { %147 = vmatpush1.bf16.msra.mxu0 %v270_v14 }
  0x1c   :  { %148 = vmatprep.subr.bf16.mxu0 %v271_v15 }
  0x1f   :  { %149 = vmatpush1.bf16.msra.mxu0 %v273_v16 }
  0x22   :  { %167 = vmatmul.mubr.bf16.vlgmr.msra.gmra.mxu0 %v274_v17 }
  0xe2   :  { %v168_v27 = vpop.f32.mrf.mxu0 }
  0xe3   :  { %v204_v28 = vmul.f32 %v197_v24, %v168_v27 }
  0xe4   :  { %v170_v30 = vpop.f32.mrf.mxu0 }
  0xe5   :  { %v220_v31 = vadd.f32 %v213_v25, %v204_v28  ;;  %v205_v32 = vmul.f32 %v201_v26, %v170_v30 }
  0xe6   :  { %v172_v33 = vpop.f32.mrf.mxu0 }
  0xe7   :  { %224 = vst [vmem:[%s374_s4] sm:$0xff] %v220_v31  ;;  %v221_v34 = vadd.f32 %v217_v29, %v205_v32  ;;  %v206_v35 = vmul.f32 %v197_v24, %v172_v33 }
  0xe8   :  { %v174_v36 = vpop.f32.mrf.mxu0 }
  0xe9   :  { %225 = vst [vmem:[%s374_s4 + $0x8] sm:$0xff] %v221_v34  ;;  %v222_v37 = vadd.f32 %v213_v25, %v206_v35  ;;  %v207_v38 = vmul.f32 %v201_v26, %v174_v36 }
  0xeb   :  { %226 = vst [vmem:[%s374_s4 + $0x10] sm:$0xff] %v222_v37  ;;  %v223_v39 = vadd.f32 %v217_v29, %v207_v38 }
  0xed   :  { %227 = vst [vmem:[%s374_s4 + $0x18] sm:$0xff] %v223_v39 }

// kernel: resnet18_forward.37
= control target key start
LH: loop header
LB: loop body
LE: loop exit
PB: predicated region body
PF: predicated region fallthrough
CT: control target
= control target key end

     0   :  { %s1317_s18 = smov 0   ;;  %s1319_s19 = smov 0   ;;  %s1469_s0 = inlined_call_operand.vmem [shape: bf16[16,2304], index: 0, kind: input, shape index: {}]   ;;  %s1470_s1 = inlined_call_operand.vmem [shape: bf16[2304,256], index: 1, kind: input, shape index: {}]   ;;  %s1471_s2 = inlined_call_operand.vmem [shape: f32[1,256], index: 2, kind: input, shape index: {}]   ;;  %s1472_s3 = inlined_call_operand.vmem [shape: f32[1,256], index: 3, kind: input, shape index: {}]   ;;  %s1473_s4 = inlined_call_operand.vmem [shape: f32[16,256], index: 4, kind: input, shape index: {}]   ;;  %s1474_s5 = inlined_call_operand.vmem [shape: f32[16,256], index: 5, kind: output, shape index: {}]  }
   0x1   :  { %s1321_s20 = smov 0   ;;  %s1323_s21 = smov 0  }
   0x2   :  { %s1325_s22 = smov 0  }
   0x3 LB: > { %s27_s23 = sadd.s32 1, %s1279_s21  ;;  %p50_p1 = scmp.ne.s32.totalorder %s1271_s19, %s1267_s18  ;;  %s1283_s22 = sphi %s1325_s22, %s15_s22   ;;  %s1279_s21 = sphi %s1323_s21, %s1478_s21   ;;  %s1275_s20 = sphi %s1321_s20, %s1477_s20   ;;  %s1271_s19 = sphi %s1319_s19, %s1476_s19   ;;  %s1267_s18 = sphi %s1317_s18, %s1475_s18  }
   0x4   : > { %p28_p0 = scmp.ge.s32.totalorder %s27_s23, 6  ;;  %p51_p2 = scmp.eq.s32.totalorder %s1283_s22, 0 }
   0x5   : > { %s43_s25 = sadd.s32 1, %s1271_s19  ;;  %p1057_p5 = scmp.ge.s32.totalorder %s1283_s22, 6 }
   0x6   : > { %s1480_s23 = smov (%p28_p0, %s27_s23), 0  ;;  %p52_p3 = por %p51_p2, %p50_p1 }
   0x7   : > { %s39_s24 = ssub.s32 %s1279_s21, %s1480_s23  ;;  %243 = sbr.rel (%p1057_p5) target bundleno = 19 (0x13), region = 28 }
   0x8   : > { %p41_p4 = scmp.eq.s32.totalorder %s39_s24, 0 }
   0xa   : > { %s1352_s26 = scalar_select %p41_p4, %s1271_s19, %s43_s25  }
   0xc   : > { %246 = sbr.rel (!%p52_p3) target bundleno = 19 (0x13), region = 32  ;;  %s248_s27 = sand.u32 (%p52_p3), 1, %s1271_s19  }
   0xd   : > { %s1123_s28 = smul.u32 (%p52_p3), 12, %s1279_s21 }
   0xe   : > { %s1125_s29 = smul.u32 (%p52_p3), 24, %s248_s27 }
   0xf   : > { %s256_s7 = scalar_lea.vmem (%p52_p3), %s1469_s0, %s1123_s28 }
  0x10   : > { %v271_v0 = vld [vmem:[%s256_s7] sm:$0xff] (%p52_p3)  ;;  %v273_v1 = vld [vmem:[%s256_s7 + $0x48] sm:$0xff] (%p52_p3)  ;;  %s250_s8 = scalar_lea.vmem (%p52_p3), [#allocation3], %s1125_s29  ;;  %v1061_v3 = vld [vmem:[%s256_s7 + $0x50] sm:$0xf] (%p52_p3) }
  0x11   : > { %v1059_v2 = vld [vmem:[%s256_s7 + $0x8] sm:$0xf]  ;;  %272 = vst [vmem:[%s250_s8] sm:$0xff] %v271_v0  ;;  %274 = vst [vmem:[%s250_s8 + $0xc] sm:$0xff] %v273_v1 }
  0x12   : > { %1060 = vst [vmem:[%s250_s8 + $0x8] sm:$0xf] %v1059_v2  ;;  %1062 = vst [vmem:[%s250_s8 + $0x14] sm:$0xf] %v1061_v3 }
  0x13 PF: > { %p1063_p6 = scmp.ge.s32.totalorder %s1283_s22, 1  ;;  %p306_p7 = scmp.lt.s32.totalorder %s1283_s22, 7 }
  0x15   : > { %p307_p8 = pnand %p1063_p6, %p306_p7 }
  0x16   : > { %s313_s9 = sand.u32 (!%p307_p8), 1, %s1267_s18   ;;  %s375_s10 = smul.u32 (!%p307_p8), 48, %s1275_s20 }
  0x17   : > { %310 = sbr.rel (%p307_p8) target bundleno = 323 (0x143), region = 62  ;;  %p1066_p10 = scmp.ne.s32.totalorder (!%p307_p8), %s1275_s20, 0 }
  0x18   : > { %s1126_s11 = smul.u32 (!%p307_p8), 24, %s313_s9  ;;  %p377_p9 = scmp.lt.s32.totalorder (!%p307_p8), %s375_s10, 287 }
  0x1a   : > { %s1369_s16 = scalar_lea.vmem (!%p307_p8), [#allocation3], %s1126_s11 }
  0x1c   : > { %s1482_s10 = smov (!%p377_p9, %s375_s10), 287  ;;  %425 = sbr.rel (%p1066_p10) target bundleno = 36 (0x24), region = 70 }
  0x1d   : > { %s1124_s12 = sshll.u32 %s1482_s10, 3 }
  0x1e   : > { %s1367_s15 = scalar_lea.vmem %s1470_s1, %s1124_s12 }
  0x21   : > { %v1285_v4 = vmov 0.0  }
  0x22   : > { %426 = vst [vmem:[#allocation2 + $0x10] sm:$0xff] %v1285_v4  ;;  %427 = vst [vmem:[#allocation2] sm:$0xff] %v1285_v4 }
  0x23   : > { %428 = vst [vmem:[#allocation2 + $0x18] sm:$0xff] %v1285_v4  ;;  %429 = vst [vmem:[#allocation2 + $0x8] sm:$0xff] %v1285_v4 }
  0x24 PF: > { %v1169_v5 = vld [vmem:[%s1367_s15 + $0x74] ss:$8 sps:$4 sm:$0xff]   ;;  %v1171_v6 = vld [vmem:[%s1367_s15 + $0x70] ss:$8 sps:$4 sm:$0xff]   ;;  %v1286_v7 = vmov 0   ;;  %p1118_p11 = scmp.ne.s32.totalorder %s1275_s20, 5 }
  0x25   : > { %817 = vmatprep.mubr.bf16.mxu1 %v1286_v7  ;;  %742 = vmatprep.subr.bf16.mxu0 %v1169_v5  ;;  %v1172_v8 = vld [vmem:[%s1367_s15 + $0x64] ss:$8 sps:$4 sm:$0xff]   ;;  %v1174_v9 = vld [vmem:[%s1367_s15 + $0x60] ss:$8 sps:$4 sm:$0xff]   ;;  %v1175_v10 = vld [vmem:[%s1367_s15 + $0x54] ss:$8 sps:$4 sm:$0xff]  }
  0x26   : > { %743 = vmatpush1.bf16.msra.mxu0 %v1171_v6  ;;  %v1177_v11 = vld [vmem:[%s1367_s15 + $0x50] ss:$8 sps:$4 sm:$0xff]   ;;  %v1178_v12 = vld [vmem:[%s1367_s15 + $0x44] ss:$8 sps:$4 sm:$0xff]   ;;  %v1190_v13 = vld [vmem:[%s1367_s15 + $0x174] ss:$8 sps:$4 sm:$0xff]  }
  0x27   : > { %744 = vmatprep.subr.bf16.mxu0 %v1172_v8  ;;  %v1192_v14 = vld [vmem:[%s1367_s15 + $0x170] ss:$8 sps:$4 sm:$0xff]   ;;  %v1180_v15 = vld [vmem:[%s1367_s15 + $0x40] ss:$8 sps:$4 sm:$0xff]   ;;  %v1181_v16 = vld [vmem:[%s1367_s15 + $0x34] ss:$8 sps:$4 sm:$0xff]   ;;  %785 = vmatprep.subr.bf16.mxu1 %v1190_v13 }
  0x28   : > { %v1196_v17 = vld [vmem:[%s1367_s15 + $0x164] ss:$8 sps:$4 sm:$0xff]   ;;  %786 = vmatpush1.bf16.msra.mxu1 %v1192_v14  ;;  %v1198_v18 = vld [vmem:[%s1367_s15 + $0x160] ss:$8 sps:$4 sm:$0xff]   ;;  %v1183_v19 = vld [vmem:[%s1367_s15 + $0x30] ss:$8 sps:$4 sm:$0xff]  }
  0x29   : > { %787 = vmatprep.subr.bf16.mxu1 %v1196_v17  ;;  %v1202_v20 = vld [vmem:[%s1367_s15 + $0x154] ss:$8 sps:$4 sm:$0xff]   ;;  %v1184_v21 = vld [vmem:[%s1367_s15 + $0x24] ss:$8 sps:$4 sm:$0xff]   ;;  %v1204_v22 = vld [vmem:[%s1367_s15 + $0x150] ss:$8 sps:$4 sm:$0xff]  }
  0x2a   : > { %745 = vmatpush1.bf16.msra.mxu0 %v1174_v9  ;;  %v1208_v23 = vld [vmem:[%s1367_s15 + $0x144] ss:$8 sps:$4 sm:$0xff]   ;;  %v1186_v24 = vld [vmem:[%s1367_s15 + $0x20] ss:$8 sps:$4 sm:$0xff]   ;;  %v1187_v25 = vld [vmem:[%s1367_s15 + $0x14] ss:$8 sps:$4 sm:$0xff]  }
  0x2b   : > { %746 = vmatprep.subr.bf16.mxu0 %v1175_v10  ;;  %v1210_v26 = vld [vmem:[%s1367_s15 + $0x140] ss:$8 sps:$4 sm:$0xff]   ;;  %v1214_v27 = vld [vmem:[%s1367_s15 + $0x134] ss:$8 sps:$4 sm:$0xff]   ;;  %v1189_v28 = vld [vmem:[%s1367_s15 + $0x10] ss:$8 sps:$4 sm:$0xff]  }
  0x2c   : > { %788 = vmatpush1.bf16.msra.mxu1 %v1198_v18  ;;  %v1193_v29 = vld [vmem:[%s1367_s15 + $0x4] ss:$8 sps:$4 sm:$0xff]   ;;  %v1216_v30 = vld [vmem:[%s1367_s15 + $0x130] ss:$8 sps:$4 sm:$0xff]   ;;  %v1195_v32 = vld [vmem:[%s1367_s15] ss:$8 sps:$4 sm:$0xff]  }
  0x2d   : > { %789 = vmatprep.subr.bf16.mxu1 %v1202_v20  ;;  %v1220_v31 = vld [vmem:[%s1367_s15 + $0x124] ss:$8 sps:$4 sm:$0xff]   ;;  %v1199_v33 = vld [vmem:[%s1367_s15 + $0xf4] ss:$8 sps:$4 sm:$0xff]   ;;  %v1222_v34 = vld [vmem:[%s1367_s15 + $0x120] ss:$8 sps:$4 sm:$0xff]  }
  0x2e   : > { %747 = vmatpush1.bf16.msra.mxu0 %v1177_v11  ;;  %v1226_v35 = vld [vmem:[%s1367_s15 + $0x114] ss:$8 sps:$4 sm:$0xff]   ;;  %v1201_v36 = vld [vmem:[%s1367_s15 + $0xf0] ss:$8 sps:$4 sm:$0xff]   ;;  %v1205_v37 = vld [vmem:[%s1367_s15 + $0xe4] ss:$8 sps:$4 sm:$0xff]  }
  0x2f   : > { %748 = vmatprep.subr.bf16.mxu0 %v1178_v12  ;;  %v1228_v38 = vld [vmem:[%s1367_s15 + $0x110] ss:$8 sps:$4 sm:$0xff]   ;;  %v1232_v39 = vld [vmem:[%s1367_s15 + $0x104] ss:$8 sps:$4 sm:$0xff]   ;;  %v1207_v41 = vld [vmem:[%s1367_s15 + $0xe0] ss:$8 sps:$4 sm:$0xff]  }
  0x30   : > { %790 = vmatpush1.bf16.msra.mxu1 %v1204_v22  ;;  %v1244_v40 = vld [vmem:[%s1369_s16 + $0x4] ss:$12 sps:$4 sm:$0xff]   ;;  %v1238_v46 = vld [vmem:[%s1369_s16 + $0x8] ss:$12 sps:$4 sm:$0xff]   ;;  %v1242_v56 = vld [vmem:[%s1369_s16] ss:$12 sps:$4 sm:$0xff]  }
  0x31   : > { %791 = vmatprep.subr.bf16.mxu1 %v1208_v23  ;;  %v1211_v42 = vld [vmem:[%s1367_s15 + $0xd4] ss:$8 sps:$4 sm:$0xff]   ;;  %774 = vmatprep.mubr.bf16.mxu0 %v1244_v40  ;;  %v1234_v43 = vld [vmem:[%s1367_s15 + $0x100] ss:$8 sps:$4 sm:$0xff]   ;;  %v1213_v44 = vld [vmem:[%s1367_s15 + $0xd0] ss:$8 sps:$4 sm:$0xff]  }
  0x32   : > { %749 = vmatpush1.bf16.msra.mxu0 %v1180_v15  ;;  %v1217_v45 = vld [vmem:[%s1367_s15 + $0xc4] ss:$8 sps:$4 sm:$0xff]   ;;  %v1219_v47 = vld [vmem:[%s1367_s15 + $0xc0] ss:$8 sps:$4 sm:$0xff]   ;;  %v1223_v48 = vld [vmem:[%s1367_s15 + $0xb4] ss:$8 sps:$4 sm:$0xff]  }
  0x33   : > { %750 = vmatprep.subr.bf16.mxu0 %v1181_v16  ;;  %v1225_v49 = vld [vmem:[%s1367_s15 + $0xb0] ss:$8 sps:$4 sm:$0xff]   ;;  %v1229_v50 = vld [vmem:[%s1367_s15 + $0xa4] ss:$8 sps:$4 sm:$0xff]   ;;  %v1231_v51 = vld [vmem:[%s1367_s15 + $0xa0] ss:$8 sps:$4 sm:$0xff]  }
  0x34   : > { %792 = vmatpush1.bf16.msra.mxu1 %v1210_v26  ;;  %v1235_v52 = vld [vmem:[%s1367_s15 + $0x94] ss:$8 sps:$4 sm:$0xff]   ;;  %v1237_v53 = vld [vmem:[%s1367_s15 + $0x90] ss:$8 sps:$4 sm:$0xff]   ;;  %v1239_v54 = vld [vmem:[%s1367_s15 + $0x84] ss:$8 sps:$4 sm:$0xff]  }
  0x35   : > { %793 = vmatprep.subr.bf16.mxu1 %v1214_v27  ;;  %v1241_v55 = vld [vmem:[%s1367_s15 + $0x80] ss:$8 sps:$4 sm:$0xff]   ;;  %v430_v59 = vld [vmem:[#allocation2 + $0x10] sm:$0xff]  ;;  %v432_v3 = vld [vmem:[#allocation2 + $0x18] sm:$0xff] }
  0x36   : > { %751 = vmatpush1.bf16.msra.mxu0 %v1183_v19  ;;  %v431_v63 = vld [vmem:[#allocation2] sm:$0xff]  ;;  %v433_v8 = vld [vmem:[#allocation2 + $0x8] sm:$0xff] }
  0x37   : > { %752 = vmatprep.subr.bf16.mxu0 %v1184_v21 }
  0x38   : > { %794 = vmatpush1.bf16.msra.mxu1 %v1216_v30 }
  0x39   : > { %795 = vmatprep.subr.bf16.mxu1 %v1220_v31 }
  0x3a   : > { %753 = vmatpush1.bf16.msra.mxu0 %v1186_v24 }
  0x3b   : > { %754 = vmatprep.subr.bf16.mxu0 %v1187_v25 }
  0x3c   : > { %796 = vmatpush1.bf16.msra.mxu1 %v1222_v34 }
  0x3d   : > { %797 = vmatprep.subr.bf16.mxu1 %v1226_v35 }
  0x3e   : > { %755 = vmatpush1.bf16.msra.mxu0 %v1189_v28 }
  0x3f   : > { %756 = vmatprep.subr.bf16.mxu0 %v1193_v29 }
  0x40   : > { %798 = vmatpush1.bf16.msra.mxu1 %v1228_v38 }
  0x41   : > { %799 = vmatprep.subr.bf16.mxu1 %v1232_v39 }
  0x42   : > { %757 = vmatpush1.bf16.msra.mxu0 %v1195_v32 }
  0x43   : > { %758 = vmatprep.subr.bf16.mxu0 %v1199_v33 }
  0x44   : > { %800 = vmatpush1.bf16.msra.mxu1 %v1234_v43 }
  0x46   : > { %759 = vmatpush2.bf16.msra.mxu0 %v1201_v36 }
  0x47   : > { %760 = vmatprep.subr.bf16.mxu0 %v1205_v37  ;;  %818 = vmatmul.mubr.bf16.vlgmr.msra.gmra.mxu1 %v1238_v46 }
  0x4a   : > { %761 = vmatpush2.bf16.msra.mxu0 %v1207_v41 }
  0x4b   : > { %762 = vmatprep.subr.bf16.mxu0 %v1211_v42 }
  0x4e   : > { %763 = vmatpush2.bf16.msra.mxu0 %v1213_v44 }
  0x4f   : > { %764 = vmatprep.subr.bf16.mxu0 %v1217_v45 }
  0x52   : > { %765 = vmatpush2.bf16.msra.mxu0 %v1219_v47 }
  0x53   : > { %766 = vmatprep.subr.bf16.mxu0 %v1223_v48 }
  0x56   : > { %767 = vmatpush2.bf16.msra.mxu0 %v1225_v49 }
  0x57   : > { %768 = vmatprep.subr.bf16.mxu0 %v1229_v50 }
  0x5a   : > { %769 = vmatpush2.bf16.msra.mxu0 %v1231_v51 }
  0x5b   : > { %770 = vmatprep.subr.bf16.mxu0 %v1235_v52 }
  0x5e   : > { %771 = vmatpush2.bf16.msra.mxu0 %v1237_v53 }
  0x5f   : > { %772 = vmatprep.subr.bf16.mxu0 %v1239_v54 }
  0x62   : > { %773 = vmatpush2.bf16.msra.mxu0 %v1241_v55 }
  0x65   : > { %775 = vmatmul.mubr.bf16.vlgmr.msra.gmra.mxu0 %v1242_v56 }
 0x107   : > { %v819_v57 = vpop.f32.mrf.mxu1 }
 0x109   : > { %v821_v58 = vpop.f32.mrf.mxu1 }
 0x10b   : > { %v823_v62 = vpop.f32.mrf.mxu1 }
 0x10d   : > { %v825_v7 = vpop.f32.mrf.mxu1 }
 0x125   : > { %v776_v60 = vpop.f32.mrf.mxu0 }
 0x126   : > { %v820_v61 = vadd.f32 %v819_v57, %v776_v60 }
 0x127   : > { %v778_v0 = vpop.f32.mrf.mxu0 }
 0x128   : > { %v828_v1 = vadd.f32 %v820_v61, %v430_v59  ;;  %v822_v2 = vadd.f32 %v821_v58, %v778_v0 }
 0x129   : > { %v780_v4 = vpop.f32.mrf.mxu0 }
 0x12a   : > { %832 = vst [vmem:[#allocation2 + $0x10] sm:$0xff] %v828_v1  ;;  %v829_v5 = vadd.f32 %v822_v2, %v431_v63  ;;  %v824_v6 = vadd.f32 %v823_v62, %v780_v4 }
 0x12b   : > { %v782_v9 = vpop.f32.mrf.mxu0 }
 0x12c   : > { %833 = vst [vmem:[#allocation2] sm:$0xff] %v829_v5  ;;  %v830_v10 = vadd.f32 %v824_v6, %v432_v3  ;;  %v826_v11 = vadd.f32 %v825_v7, %v782_v9  ;;  %839 = sbr.rel (%p1118_p11) target bundleno = 323 (0x143), region = 74 }
 0x12e   : > { %834 = vst [vmem:[#allocation2 + $0x18] sm:$0xff] %v830_v10  ;;  %v831_v12 = vadd.f32 %v826_v11, %v433_v8 }
 0x130   : > { %835 = vst [vmem:[#allocation2 + $0x8] sm:$0xff] %v831_v12 }
 0x131   : > { %v846_v13 = vlaneseq  ;;  %v844_v15 = vld [vmem:[%s1471_s2] sm:$0x3]  ;;  %v840_v17 = vld [vmem:[#allocation2 + $0x10] sm:$0xff]  ;;  %v877_v32 = vld [vmem:[%s1473_s4 + $0x8] sm:$0xff] }
 0x132   : > { %v860_v16 = vld [vmem:[%s1472_s3] sm:$0x3]  ;;  %v878_v33 = vld [vmem:[%s1473_s4 + $0x10] sm:$0xff]  ;;  %v879_v34 = vld [vmem:[%s1473_s4 + $0x18] sm:$0xff] }
 0x133   : > { %v847_v14 = vshrl.u32 %v846_v13, 7  ;;  %v841_v20 = vld [vmem:[#allocation2] sm:$0xff] }
 0x134   : > { %v876_v28 = vld [vmem:[%s1473_s4] sm:$0xff] }
 0x135   : > { %v848_v18 = vsub.s32 0, %v847_v14  ;;  %v852_v19 = vsub.s32 1, %v847_v14  ;;  %v842_v21 = vld [vmem:[#allocation2 + $0x18] sm:$0xff] }
 0x137   : > { %v843_v22 = vld [vmem:[#allocation2 + $0x8] sm:$0xff]  ;;  %v849_v23 = vrot.slane %v844_v15, %v848_v18  ;;  %v865_v24 = vrot.slane %v860_v16, %v848_v18  ;;  %v853_v25 = vrot.slane %v844_v15, %v852_v19  ;;  %v869_v26 = vrot.slane %v860_v16, %v852_v19 }
 0x139   : > { %v856_v27 = vmul.f32 %v849_v23, %v840_v17  ;;  %v857_v29 = vmul.f32 %v853_v25, %v841_v20  ;;  %v858_v30 = vmul.f32 %v849_v23, %v842_v21  ;;  %v859_v31 = vmul.f32 %v853_v25, %v843_v22 }
 0x13b   : > { %v872_v35 = vadd.f32 %v865_v24, %v856_v27  ;;  %v873_v36 = vadd.f32 %v869_v26, %v857_v29  ;;  %v874_v37 = vadd.f32 %v865_v24, %v858_v30  ;;  %v875_v38 = vadd.f32 %v869_v26, %v859_v31 }
 0x13d   : > { %v880_v39 = vadd.f32 %v876_v28, %v872_v35  ;;  %v881_v40 = vadd.f32 %v877_v32, %v873_v36  ;;  %v882_v41 = vadd.f32 %v878_v33, %v874_v37  ;;  %v883_v42 = vadd.f32 %v879_v34, %v875_v38 }
 0x13f   : > { %v884_v43 = vmax.f32 %v880_v39, 0.0  ;;  %v885_v44 = vmax.f32 %v881_v40, 0.0  ;;  %v886_v45 = vmax.f32 %v882_v41, 0.0  ;;  %v887_v46 = vmax.f32 %v883_v42, 0.0 }
 0x141   : > { %888 = vst [vmem:[%s1474_s5] sm:$0xff] %v884_v43  ;;  %889 = vst [vmem:[%s1474_s5 + $0x8] sm:$0xff] %v885_v44 }
 0x142   : > { %890 = vst [vmem:[%s1474_s5 + $0x10] sm:$0xff] %v886_v45  ;;  %891 = vst [vmem:[%s1474_s5 + $0x18] sm:$0xff] %v887_v46 }
 0x143 PF: > { %s15_s22 = sadd.s32 1, %s1283_s22   ;;  %s1475_s18 = smov %s1271_s19 }
 0x144   : > { %p12_p12 = scmp.ge.s32.totalorder %s15_s22, 8   ;;  %s1476_s19 = smov %s1352_s26 }
 0x145   : > { %s1477_s20 = smov %s1279_s21  ;;  %s1478_s21 = smov %s1480_s23 }
 0x146   :  { %14 = sbr.rel (!%p12_p12) target bundleno = 3 (0x3), region = 127 }

// kernel: resnet18_forward.38
= control target key start
LH: loop header
LB: loop body
LE: loop exit
PB: predicated region body
PF: predicated region fallthrough
CT: control target
= control target key end

     0   :  { %s1214_s15 = smov 0   ;;  %s1216_s16 = smov 0   ;;  %s1354_s0 = inlined_call_operand.vmem [shape: bf16[16,2304], index: 0, kind: input, shape index: {}]   ;;  %s1355_s1 = inlined_call_operand.vmem [shape: bf16[2304,256], index: 1, kind: input, shape index: {}]   ;;  %s1356_s2 = inlined_call_operand.vmem [shape: f32[1,256], index: 2, kind: input, shape index: {}]   ;;  %s1357_s3 = inlined_call_operand.vmem [shape: f32[1,256], index: 3, kind: input, shape index: {}]   ;;  %s1358_s4 = inlined_call_operand.vmem [shape: f32[16,256], index: 4, kind: output, shape index: {}]  }
   0x1   :  { %s1218_s17 = smov 0   ;;  %s1220_s18 = smov 0  }
   0x2   :  { %s1222_s19 = smov 0  }
   0x3 LB: > { %s26_s20 = sadd.s32 1, %s1181_s18  ;;  %p49_p1 = scmp.ne.s32.totalorder %s1173_s16, %s1169_s15  ;;  %s1185_s19 = sphi %s1222_s19, %s14_s19   ;;  %s1181_s18 = sphi %s1220_s18, %s1362_s18   ;;  %s1177_s17 = sphi %s1218_s17, %s1361_s17   ;;  %s1173_s16 = sphi %s1216_s16, %s1360_s16   ;;  %s1169_s15 = sphi %s1214_s15, %s1359_s15  }
   0x4   : > { %p27_p0 = scmp.ge.s32.totalorder %s26_s20, 6  ;;  %p50_p2 = scmp.eq.s32.totalorder %s1185_s19, 0 }
   0x5   : > { %s42_s22 = sadd.s32 1, %s1173_s16  ;;  %p959_p5 = scmp.ge.s32.totalorder %s1185_s19, 6 }
   0x6   : > { %s1364_s20 = smov (%p27_p0, %s26_s20), 0  ;;  %p51_p3 = por %p50_p2, %p49_p1 }
   0x7   : > { %s38_s21 = ssub.s32 %s1181_s18, %s1364_s20  ;;  %199 = sbr.rel (%p959_p5) target bundleno = 19 (0x13), region = 24 }
   0x8   : > { %p40_p4 = scmp.eq.s32.totalorder %s38_s21, 0 }
   0xa   : > { %s1249_s23 = scalar_select %p40_p4, %s1173_s16, %s42_s22  }
   0xc   : > { %202 = sbr.rel (!%p51_p3) target bundleno = 19 (0x13), region = 28  ;;  %s204_s24 = sand.u32 (%p51_p3), 1, %s1173_s16  }
   0xd   : > { %s1025_s25 = smul.u32 (%p51_p3), 12, %s1181_s18 }
   0xe   : > { %s1027_s26 = smul.u32 (%p51_p3), 24, %s204_s24 }
   0xf   : > { %s212_s29 = scalar_lea.vmem (%p51_p3), %s1354_s0, %s1025_s25 }
  0x10   : > { %v227_v0 = vld [vmem:[%s212_s29] sm:$0xff] (%p51_p3)  ;;  %v229_v1 = vld [vmem:[%s212_s29 + $0x48] sm:$0xff] (%p51_p3)  ;;  %s206_s30 = scalar_lea.vmem (%p51_p3), [#allocation3], %s1027_s26  ;;  %v963_v3 = vld [vmem:[%s212_s29 + $0x50] sm:$0xf] (%p51_p3) }
  0x11   : > { %v961_v2 = vld [vmem:[%s212_s29 + $0x8] sm:$0xf]  ;;  %228 = vst [vmem:[%s206_s30] sm:$0xff] %v227_v0  ;;  %230 = vst [vmem:[%s206_s30 + $0xc] sm:$0xff] %v229_v1 }
  0x12   : > { %962 = vst [vmem:[%s206_s30 + $0x8] sm:$0xf] %v961_v2  ;;  %964 = vst [vmem:[%s206_s30 + $0x14] sm:$0xf] %v963_v3 }
  0x13 PF: > { %p965_p6 = scmp.ge.s32.totalorder %s1185_s19, 1  ;;  %p262_p7 = scmp.lt.s32.totalorder %s1185_s19, 7 }
  0x15   : > { %p263_p8 = pnand %p965_p6, %p262_p7 }
  0x16   : > { %s269_s5 = sand.u32 (!%p263_p8), 1, %s1169_s15   ;;  %s319_s6 = smul.u32 (!%p263_p8), 48, %s1177_s17 }
  0x17   : > { %266 = sbr.rel (%p263_p8) target bundleno = 321 (0x141), region = 58  ;;  %p968_p10 = scmp.ne.s32.totalorder (!%p263_p8), %s1177_s17, 0 }
  0x18   : > { %s1028_s7 = smul.u32 (!%p263_p8), 24, %s269_s5  ;;  %p321_p9 = scmp.lt.s32.totalorder (!%p263_p8), %s319_s6, 287 }
  0x1a   : > { %s1266_s12 = scalar_lea.vmem (!%p263_p8), [#allocation3], %s1028_s7 }
  0x1c   : > { %s1366_s6 = smov (!%p321_p9, %s319_s6), 287  ;;  %357 = sbr.rel (%p968_p10) target bundleno = 36 (0x24), region = 66 }
  0x1d   : > { %s1026_s8 = sshll.u32 %s1366_s6, 3 }
  0x1e   : > { %s1264_s11 = scalar_lea.vmem %s1355_s1, %s1026_s8 }
  0x21   : > { %v1187_v4 = vmov 0.0  }
  0x22   : > { %358 = vst [vmem:[#allocation2 + $0x10] sm:$0xff] %v1187_v4  ;;  %359 = vst [vmem:[#allocation2] sm:$0xff] %v1187_v4 }
  0x23   : > { %360 = vst [vmem:[#allocation2 + $0x18] sm:$0xff] %v1187_v4  ;;  %361 = vst [vmem:[#allocation2 + $0x8] sm:$0xff] %v1187_v4 }
  0x24 PF: > { %v1071_v5 = vld [vmem:[%s1264_s11 + $0x74] ss:$8 sps:$4 sm:$0xff]   ;;  %v1073_v6 = vld [vmem:[%s1264_s11 + $0x70] ss:$8 sps:$4 sm:$0xff]   ;;  %v1188_v7 = vmov 0   ;;  %p1020_p11 = scmp.ne.s32.totalorder %s1177_s17, 5 }
  0x25   : > { %749 = vmatprep.mubr.bf16.mxu1 %v1188_v7  ;;  %674 = vmatprep.subr.bf16.mxu0 %v1071_v5  ;;  %v1074_v8 = vld [vmem:[%s1264_s11 + $0x64] ss:$8 sps:$4 sm:$0xff]   ;;  %v1076_v9 = vld [vmem:[%s1264_s11 + $0x60] ss:$8 sps:$4 sm:$0xff]   ;;  %v1077_v10 = vld [vmem:[%s1264_s11 + $0x54] ss:$8 sps:$4 sm:$0xff]  }
  0x26   : > { %675 = vmatpush1.bf16.msra.mxu0 %v1073_v6  ;;  %v1079_v11 = vld [vmem:[%s1264_s11 + $0x50] ss:$8 sps:$4 sm:$0xff]   ;;  %v1080_v12 = vld [vmem:[%s1264_s11 + $0x44] ss:$8 sps:$4 sm:$0xff]   ;;  %v1092_v13 = vld [vmem:[%s1264_s11 + $0x174] ss:$8 sps:$4 sm:$0xff]  }
  0x27   : > { %676 = vmatprep.subr.bf16.mxu0 %v1074_v8  ;;  %v1094_v14 = vld [vmem:[%s1264_s11 + $0x170] ss:$8 sps:$4 sm:$0xff]   ;;  %v1082_v15 = vld [vmem:[%s1264_s11 + $0x40] ss:$8 sps:$4 sm:$0xff]   ;;  %v1083_v16 = vld [vmem:[%s1264_s11 + $0x34] ss:$8 sps:$4 sm:$0xff]   ;;  %717 = vmatprep.subr.bf16.mxu1 %v1092_v13 }
  0x28   : > { %v1098_v17 = vld [vmem:[%s1264_s11 + $0x164] ss:$8 sps:$4 sm:$0xff]   ;;  %718 = vmatpush1.bf16.msra.mxu1 %v1094_v14  ;;  %v1100_v18 = vld [vmem:[%s1264_s11 + $0x160] ss:$8 sps:$4 sm:$0xff]   ;;  %v1085_v19 = vld [vmem:[%s1264_s11 + $0x30] ss:$8 sps:$4 sm:$0xff]  }
  0x29   : > { %719 = vmatprep.subr.bf16.mxu1 %v1098_v17  ;;  %v1104_v20 = vld [vmem:[%s1264_s11 + $0x154] ss:$8 sps:$4 sm:$0xff]   ;;  %v1086_v21 = vld [vmem:[%s1264_s11 + $0x24] ss:$8 sps:$4 sm:$0xff]   ;;  %v1106_v22 = vld [vmem:[%s1264_s11 + $0x150] ss:$8 sps:$4 sm:$0xff]  }
  0x2a   : > { %677 = vmatpush1.bf16.msra.mxu0 %v1076_v9  ;;  %v1110_v23 = vld [vmem:[%s1264_s11 + $0x144] ss:$8 sps:$4 sm:$0xff]   ;;  %v1088_v24 = vld [vmem:[%s1264_s11 + $0x20] ss:$8 sps:$4 sm:$0xff]   ;;  %v1089_v25 = vld [vmem:[%s1264_s11 + $0x14] ss:$8 sps:$4 sm:$0xff]  }
  0x2b   : > { %678 = vmatprep.subr.bf16.mxu0 %v1077_v10  ;;  %v1112_v26 = vld [vmem:[%s1264_s11 + $0x140] ss:$8 sps:$4 sm:$0xff]   ;;  %v1116_v27 = vld [vmem:[%s1264_s11 + $0x134] ss:$8 sps:$4 sm:$0xff]   ;;  %v1091_v28 = vld [vmem:[%s1264_s11 + $0x10] ss:$8 sps:$4 sm:$0xff]  }
  0x2c   : > { %720 = vmatpush1.bf16.msra.mxu1 %v1100_v18  ;;  %v1095_v29 = vld [vmem:[%s1264_s11 + $0x4] ss:$8 sps:$4 sm:$0xff]   ;;  %v1118_v30 = vld [vmem:[%s1264_s11 + $0x130] ss:$8 sps:$4 sm:$0xff]   ;;  %v1097_v32 = vld [vmem:[%s1264_s11] ss:$8 sps:$4 sm:$0xff]  }
  0x2d   : > { %721 = vmatprep.subr.bf16.mxu1 %v1104_v20  ;;  %v1122_v31 = vld [vmem:[%s1264_s11 + $0x124] ss:$8 sps:$4 sm:$0xff]   ;;  %v1101_v33 = vld [vmem:[%s1264_s11 + $0xf4] ss:$8 sps:$4 sm:$0xff]   ;;  %v1124_v34 = vld [vmem:[%s1264_s11 + $0x120] ss:$8 sps:$4 sm:$0xff]  }
  0x2e   : > { %679 = vmatpush1.bf16.msra.mxu0 %v1079_v11  ;;  %v1128_v35 = vld [vmem:[%s1264_s11 + $0x114] ss:$8 sps:$4 sm:$0xff]   ;;  %v1103_v36 = vld [vmem:[%s1264_s11 + $0xf0] ss:$8 sps:$4 sm:$0xff]   ;;  %v1107_v37 = vld [vmem:[%s1264_s11 + $0xe4] ss:$8 sps:$4 sm:$0xff]  }
  0x2f   : > { %680 = vmatprep.subr.bf16.mxu0 %v1080_v12  ;;  %v1130_v38 = vld [vmem:[%s1264_s11 + $0x110] ss:$8 sps:$4 sm:$0xff]   ;;  %v1134_v39 = vld [vmem:[%s1264_s11 + $0x104] ss:$8 sps:$4 sm:$0xff]   ;;  %v1109_v41 = vld [vmem:[%s1264_s11 + $0xe0] ss:$8 sps:$4 sm:$0xff]  }
  0x30   : > { %722 = vmatpush1.bf16.msra.mxu1 %v1106_v22  ;;  %v1146_v40 = vld [vmem:[%s1266_s12 + $0x4] ss:$12 sps:$4 sm:$0xff]   ;;  %v1140_v46 = vld [vmem:[%s1266_s12 + $0x8] ss:$12 sps:$4 sm:$0xff]   ;;  %v1144_v56 = vld [vmem:[%s1266_s12] ss:$12 sps:$4 sm:$0xff]  }
  0x31   : > { %723 = vmatprep.subr.bf16.mxu1 %v1110_v23  ;;  %v1113_v42 = vld [vmem:[%s1264_s11 + $0xd4] ss:$8 sps:$4 sm:$0xff]   ;;  %706 = vmatprep.mubr.bf16.mxu0 %v1146_v40  ;;  %v1136_v43 = vld [vmem:[%s1264_s11 + $0x100] ss:$8 sps:$4 sm:$0xff]   ;;  %v1115_v44 = vld [vmem:[%s1264_s11 + $0xd0] ss:$8 sps:$4 sm:$0xff]  }
  0x32   : > { %681 = vmatpush1.bf16.msra.mxu0 %v1082_v15  ;;  %v1119_v45 = vld [vmem:[%s1264_s11 + $0xc4] ss:$8 sps:$4 sm:$0xff]   ;;  %v1121_v47 = vld [vmem:[%s1264_s11 + $0xc0] ss:$8 sps:$4 sm:$0xff]   ;;  %v1125_v48 = vld [vmem:[%s1264_s11 + $0xb4] ss:$8 sps:$4 sm:$0xff]  }
  0x33   : > { %682 = vmatprep.subr.bf16.mxu0 %v1083_v16  ;;  %v1127_v49 = vld [vmem:[%s1264_s11 + $0xb0] ss:$8 sps:$4 sm:$0xff]   ;;  %v1131_v50 = vld [vmem:[%s1264_s11 + $0xa4] ss:$8 sps:$4 sm:$0xff]   ;;  %v1133_v51 = vld [vmem:[%s1264_s11 + $0xa0] ss:$8 sps:$4 sm:$0xff]  }
  0x34   : > { %724 = vmatpush1.bf16.msra.mxu1 %v1112_v26  ;;  %v1137_v52 = vld [vmem:[%s1264_s11 + $0x94] ss:$8 sps:$4 sm:$0xff]   ;;  %v1139_v53 = vld [vmem:[%s1264_s11 + $0x90] ss:$8 sps:$4 sm:$0xff]   ;;  %v1141_v54 = vld [vmem:[%s1264_s11 + $0x84] ss:$8 sps:$4 sm:$0xff]  }
  0x35   : > { %725 = vmatprep.subr.bf16.mxu1 %v1116_v27  ;;  %v1143_v55 = vld [vmem:[%s1264_s11 + $0x80] ss:$8 sps:$4 sm:$0xff]   ;;  %v362_v59 = vld [vmem:[#allocation2 + $0x10] sm:$0xff]  ;;  %v364_v3 = vld [vmem:[#allocation2 + $0x18] sm:$0xff] }
  0x36   : > { %683 = vmatpush1.bf16.msra.mxu0 %v1085_v19  ;;  %v363_v63 = vld [vmem:[#allocation2] sm:$0xff]  ;;  %v365_v8 = vld [vmem:[#allocation2 + $0x8] sm:$0xff] }
  0x37   : > { %684 = vmatprep.subr.bf16.mxu0 %v1086_v21 }
  0x38   : > { %726 = vmatpush1.bf16.msra.mxu1 %v1118_v30 }
  0x39   : > { %727 = vmatprep.subr.bf16.mxu1 %v1122_v31 }
  0x3a   : > { %685 = vmatpush1.bf16.msra.mxu0 %v1088_v24 }
  0x3b   : > { %686 = vmatprep.subr.bf16.mxu0 %v1089_v25 }
  0x3c   : > { %728 = vmatpush1.bf16.msra.mxu1 %v1124_v34 }
  0x3d   : > { %729 = vmatprep.subr.bf16.mxu1 %v1128_v35 }
  0x3e   : > { %687 = vmatpush1.bf16.msra.mxu0 %v1091_v28 }
  0x3f   : > { %688 = vmatprep.subr.bf16.mxu0 %v1095_v29 }
  0x40   : > { %730 = vmatpush1.bf16.msra.mxu1 %v1130_v38 }
  0x41   : > { %731 = vmatprep.subr.bf16.mxu1 %v1134_v39 }
  0x42   : > { %689 = vmatpush1.bf16.msra.mxu0 %v1097_v32 }
  0x43   : > { %690 = vmatprep.subr.bf16.mxu0 %v1101_v33 }
  0x44   : > { %732 = vmatpush1.bf16.msra.mxu1 %v1136_v43 }
  0x46   : > { %691 = vmatpush2.bf16.msra.mxu0 %v1103_v36 }
  0x47   : > { %692 = vmatprep.subr.bf16.mxu0 %v1107_v37  ;;  %750 = vmatmul.mubr.bf16.vlgmr.msra.gmra.mxu1 %v1140_v46 }
  0x4a   : > { %693 = vmatpush2.bf16.msra.mxu0 %v1109_v41 }
  0x4b   : > { %694 = vmatprep.subr.bf16.mxu0 %v1113_v42 }
  0x4e   : > { %695 = vmatpush2.bf16.msra.mxu0 %v1115_v44 }
  0x4f   : > { %696 = vmatprep.subr.bf16.mxu0 %v1119_v45 }
  0x52   : > { %697 = vmatpush2.bf16.msra.mxu0 %v1121_v47 }
  0x53   : > { %698 = vmatprep.subr.bf16.mxu0 %v1125_v48 }
  0x56   : > { %699 = vmatpush2.bf16.msra.mxu0 %v1127_v49 }
  0x57   : > { %700 = vmatprep.subr.bf16.mxu0 %v1131_v50 }
  0x5a   : > { %701 = vmatpush2.bf16.msra.mxu0 %v1133_v51 }
  0x5b   : > { %702 = vmatprep.subr.bf16.mxu0 %v1137_v52 }
  0x5e   : > { %703 = vmatpush2.bf16.msra.mxu0 %v1139_v53 }
  0x5f   : > { %704 = vmatprep.subr.bf16.mxu0 %v1141_v54 }
  0x62   : > { %705 = vmatpush2.bf16.msra.mxu0 %v1143_v55 }
  0x65   : > { %707 = vmatmul.mubr.bf16.vlgmr.msra.gmra.mxu0 %v1144_v56 }
 0x107   : > { %v751_v57 = vpop.f32.mrf.mxu1 }
 0x109   : > { %v753_v58 = vpop.f32.mrf.mxu1 }
 0x10b   : > { %v755_v62 = vpop.f32.mrf.mxu1 }
 0x10d   : > { %v757_v7 = vpop.f32.mrf.mxu1 }
 0x125   : > { %v708_v60 = vpop.f32.mrf.mxu0 }
 0x126   : > { %v752_v61 = vadd.f32 %v751_v57, %v708_v60 }
 0x127   : > { %v710_v0 = vpop.f32.mrf.mxu0 }
 0x128   : > { %v760_v1 = vadd.f32 %v752_v61, %v362_v59  ;;  %v754_v2 = vadd.f32 %v753_v58, %v710_v0 }
 0x129   : > { %v712_v4 = vpop.f32.mrf.mxu0 }
 0x12a   : > { %764 = vst [vmem:[#allocation2 + $0x10] sm:$0xff] %v760_v1  ;;  %v761_v5 = vadd.f32 %v754_v2, %v363_v63  ;;  %v756_v6 = vadd.f32 %v755_v62, %v712_v4 }
 0x12b   : > { %v714_v9 = vpop.f32.mrf.mxu0 }
 0x12c   : > { %765 = vst [vmem:[#allocation2] sm:$0xff] %v761_v5  ;;  %v762_v10 = vadd.f32 %v756_v6, %v364_v3  ;;  %v758_v11 = vadd.f32 %v757_v7, %v714_v9  ;;  %771 = sbr.rel (%p1020_p11) target bundleno = 321 (0x141), region = 70 }
 0x12e   : > { %766 = vst [vmem:[#allocation2 + $0x18] sm:$0xff] %v762_v10  ;;  %v763_v12 = vadd.f32 %v758_v11, %v365_v8 }
 0x130   : > { %767 = vst [vmem:[#allocation2 + $0x8] sm:$0xff] %v763_v12 }
 0x131   : > { %v778_v13 = vlaneseq  ;;  %v776_v15 = vld [vmem:[%s1356_s2] sm:$0x3]  ;;  %v772_v17 = vld [vmem:[#allocation2 + $0x10] sm:$0xff] }
 0x132   : > { %v792_v16 = vld [vmem:[%s1357_s3] sm:$0x3] }
 0x133   : > { %v779_v14 = vshrl.u32 %v778_v13, 7  ;;  %v773_v20 = vld [vmem:[#allocation2] sm:$0xff] }
 0x135   : > { %v780_v18 = vsub.s32 0, %v779_v14  ;;  %v784_v19 = vsub.s32 1, %v779_v14  ;;  %v774_v21 = vld [vmem:[#allocation2 + $0x18] sm:$0xff] }
 0x137   : > { %v775_v22 = vld [vmem:[#allocation2 + $0x8] sm:$0xff]  ;;  %v781_v23 = vrot.slane %v776_v15, %v780_v18  ;;  %v797_v24 = vrot.slane %v792_v16, %v780_v18  ;;  %v785_v25 = vrot.slane %v776_v15, %v784_v19  ;;  %v801_v26 = vrot.slane %v792_v16, %v784_v19 }
 0x139   : > { %v788_v27 = vmul.f32 %v781_v23, %v772_v17  ;;  %v789_v28 = vmul.f32 %v785_v25, %v773_v20  ;;  %v790_v29 = vmul.f32 %v781_v23, %v774_v21  ;;  %v791_v30 = vmul.f32 %v785_v25, %v775_v22 }
 0x13b   : > { %v804_v31 = vadd.f32 %v797_v24, %v788_v27  ;;  %v805_v32 = vadd.f32 %v801_v26, %v789_v28  ;;  %v806_v33 = vadd.f32 %v797_v24, %v790_v29  ;;  %v807_v34 = vadd.f32 %v801_v26, %v791_v30 }
 0x13d   : > { %v808_v35 = vmax.f32 %v804_v31, 0.0  ;;  %v809_v36 = vmax.f32 %v805_v32, 0.0  ;;  %v810_v37 = vmax.f32 %v806_v33, 0.0  ;;  %v811_v38 = vmax.f32 %v807_v34, 0.0 }
 0x13f   : > { %812 = vst [vmem:[%s1358_s4] sm:$0xff] %v808_v35  ;;  %813 = vst [vmem:[%s1358_s4 + $0x8] sm:$0xff] %v809_v36 }
 0x140   : > { %814 = vst [vmem:[%s1358_s4 + $0x10] sm:$0xff] %v810_v37  ;;  %815 = vst [vmem:[%s1358_s4 + $0x18] sm:$0xff] %v811_v38 }
 0x141 PF: > { %s14_s19 = sadd.s32 1, %s1185_s19   ;;  %s1359_s15 = smov %s1173_s16 }
 0x142   : > { %p11_p12 = scmp.ge.s32.totalorder %s14_s19, 8   ;;  %s1360_s16 = smov %s1249_s23 }
 0x143   : > { %s1361_s17 = smov %s1181_s18  ;;  %s1362_s18 = smov %s1364_s20 }
 0x144   :  { %13 = sbr.rel (!%p11_p12) target bundleno = 3 (0x3), region = 120 }

// kernel: resnet18_forward.41
= control target key start
LH: loop header
LB: loop body
LE: loop exit
PB: predicated region body
PF: predicated region fallthrough
CT: control target
= control target key end

     0   :  { %s1874_s0 = inlined_call_operand.vmem [shape: bf16[16,2304], index: 0, kind: input, shape index: {}]   ;;  %s1875_s1 = inlined_call_operand.vmem [shape: bf16[2304,512], index: 1, kind: input, shape index: {}]   ;;  %s1876_s2 = inlined_call_operand.vmem [shape: f32[1,512], index: 2, kind: input, shape index: {}]   ;;  %s1877_s3 = inlined_call_operand.vmem [shape: f32[1,512], index: 3, kind: input, shape index: {}]   ;;  %s1878_s4 = inlined_call_operand.vmem [shape: f32[16,512], index: 4, kind: output, shape index: {}]  }
   0x1   :  { %1881 = sst [smem:[#allocation8_spill]] %s1874_s0 }
   0x2   :  { %1882 = sst [smem:[#allocation9_spill]] %s1875_s1 }
   0x3   :  { %s1528_s15 = smov 0   ;;  %s1530_s16 = smov 0  }
   0x4   :  { %s1532_s17 = smov 0   ;;  %s1534_s18 = smov 0  }
   0x5   :  { %s1536_s19 = smov 0   ;;  %s1538_s20 = smov 0  }
   0x6   :  { %s1540_s21 = smov 0   ;;  %s1542_s22 = smov 0  }
   0x7   :  { %s1544_s23 = smov 0   ;;  %s1546_s24 = smov 0  }
   0x8   :  { %s1548_s25 = smov 0  }
   0x9 LB: > { %s1166_s26 = sadd.s32 4294967295, %s1499_s25   ;;  %s26_s27 = sadd.s32 1, %s1491_s23  ;;  %s1499_s25 = sphi %s1548_s25, %s14_s25   ;;  %s1495_s24 = sphi %s1546_s24, %s1901_s24   ;;  %s1491_s23 = sphi %s1544_s23, %s1900_s23   ;;  %s1487_s22 = sphi %s1542_s22, %s1899_s22   ;;  %s1483_s21 = sphi %s1540_s21, %s1898_s21   ;;  %s1479_s20 = sphi %s1538_s20, %s1897_s20   ;;  %s1475_s19 = sphi %s1536_s19, %s1896_s19   ;;  %s1471_s18 = sphi %s1534_s18, %s1895_s18   ;;  %s1467_s17 = sphi %s1532_s17, %s1894_s17   ;;  %s1463_s16 = sphi %s1530_s16, %s1893_s16   ;;  %s1459_s15 = sphi %s1528_s15, %s1892_s15  }
   0xa   : > { %p27_p0 = scmp.ge.s32.totalorder %s26_s27, 6  ;;  %s29_s28 = sadd.s32 1, %s1495_s24 }
   0xb   : > { %s42_s29 = sadd.s32 1, %s1479_s20  ;;  %p49_p1 = scmp.ne.s32.totalorder %s1479_s20, %s1475_s19 }
   0xc   : > { %s1903_s27 = smov (%p27_p0, %s26_s27), 0  ;;  %s1905_s28 = smov (!%p27_p0, %s29_s28), %s1495_s24 }
   0xd   : > { %1883 = sst [smem:[#allocation6_spill]] %s1903_s27  ;;  %s38_s30 = ssub.s32 %s1491_s23, %s1903_s27 }
   0xe   : > { %p50_p2 = scmp.eq.s32.totalorder %s1499_s25, 0  ;;  %p31_p3 = scmp.ge.s32.totalorder %s1905_s28, 2 }
   0xf   : > { %p40_p4 = scmp.eq.s32.totalorder %s38_s30, 0  ;;  %s70_s6 = sadd.s32 1, %s1471_s18 }
  0x10   : > { %p1595_p5 = por %p50_p2, %p49_p1  ;;  %s1907_s28 = smov (%p31_p3, %s1905_s28), 0 }
  0x11   : > { %1885 = sst [smem:[#allocation7_spill]] %s1907_s28  ;;  %s66_s8 = ssub.s32 %s1495_s24, %s1907_s28 }
  0x12   : > { %s1603_s7 = scalar_select %p40_p4, %s1479_s20, %s42_s29  }
  0x13   : > { %p77_p6 = scmp.ne.s32.totalorder %s1471_s18, %s1467_s17  ;;  %s67_s9 = sor.u32 %s66_s8, %s38_s30 }
  0x14   : > { %p148_p7 = scmp.eq.s32.totalorder %s66_s8, 0  ;;  %p68_p8 = scmp.eq.s32.totalorder %s67_s9, 0 }
  0x15   : > { %p1609_p9 = por %p77_p6, %p50_p2  ;;  %s150_s11 = sadd.s32 1, %s1463_s16 }
  0x16   : > { %p160_p10 = scmp.ne.s32.totalorder %s1463_s16, %s1459_s15  ;;  %p161_p11 = scmp.eq.s32.totalorder %s1166_s26, 11 }
  0x17   : > { %s1617_s12 = scalar_select %p68_p8, %s1471_s18, %s70_s6  }
  0x18   : > { %s1620_s13 = scalar_select %p148_p7, %s1463_s16, %s150_s11  }
  0x19   : > { %p1622_p12 = por %p161_p11, %p160_p10  ;;  %p1169_p13 = scmp.ge.s32.totalorder %s1499_s25, 12 }
  0x1b   : > { %183 = sbr.rel (%p1169_p13) target bundleno = 77 (0x4d), region = 16 }
  0x20   : > { %186 = sbr.rel (!%p1595_p5) target bundleno = 43 (0x2b), region = 20  ;;  %s188_s29 = sand.u32 (%p1595_p5), 1, %s1479_s20  }
  0x21   : > { %s1240_s30 = smul.u32 (%p1595_p5), 12, %s1491_s23  ;;  %s1888_s0 = sld [smem:[#allocation8_spill]] (%p1595_p5) }
  0x22   : > { %s1243_s8 = smul.u32 (%p1595_p5), 24, %s188_s29 }
  0x24   : > { %s190_s26 = scalar_lea.vmem (%p1595_p5), [#allocation3], %s1243_s8 }
  0x27   : > { %s196_s11 = scalar_lea.vmem %s1888_s0, %s1240_s30 }
  0x28   : > { %v211_v0 = vld [vmem:[%s196_s11] sm:$0xff]  ;;  %v213_v1 = vld [vmem:[%s196_s11 + $0x48] sm:$0xff]  ;;  %v1173_v3 = vld [vmem:[%s196_s11 + $0x50] sm:$0xf] }
  0x29   : > { %v1171_v2 = vld [vmem:[%s196_s11 + $0x8] sm:$0xf]  ;;  %212 = vst [vmem:[%s190_s26] sm:$0xff] %v211_v0  ;;  %214 = vst [vmem:[%s190_s26 + $0xc] sm:$0xff] %v213_v1 }
  0x2a   : > { %1172 = vst [vmem:[%s190_s26 + $0x8] sm:$0xf] %v1171_v2  ;;  %1174 = vst [vmem:[%s190_s26 + $0x14] sm:$0xf] %v1173_v3 }
  0x2b PF: > { %232 = sbr.rel (!%p1609_p9) target bundleno = 77 (0x4d), region = 46  ;;  %s234_s5 = sand.u32 (%p1609_p9), 1, %s1471_s18  }
  0x2c   : > { %s1244_s29 = smul.u32 (%p1609_p9), 384, %s234_s5  ;;  %s1175_s6 = sshll.u32 (%p1609_p9), %s1495_s24, 1 }
  0x2d   : > { %s1241_s30 = smul.u32 (%p1609_p9), 192, %s1491_s23  ;;  %s1889_s1 = sld [smem:[#allocation9_spill]] (%p1609_p9) }
  0x2e   : > { %s1647_s10 = scalar_lea.vmem (%p1609_p9), [#allocation4], %s1244_s29 }
  0x2f   : > { %s240_s9 = sadd.s32 (%p1609_p9), %s1241_s30, %s1175_s6 }
  0x30   : > { %s1177_s0 = sshll.u32 %s240_s9, 2 }
  0x33   : > { %s1642_s27 = scalar_lea.vmem %s1889_s1, %s1177_s0 }
  0x34   : > { %v365_v4 = vld [vmem:[%s1642_s27] sm:$0xff]  ;;  %v367_v5 = vld [vmem:[%s1642_s27 + $0x10] sm:$0xff] }
  0x35   : > { %v369_v6 = vld [vmem:[%s1642_s27 + $0x20] sm:$0xff]  ;;  %366 = vst [vmem:[%s1647_s10] sm:$0xff] %v365_v4  ;;  %368 = vst [vmem:[%s1647_s10 + $0x8] sm:$0xff] %v367_v5  ;;  %v371_v7 = vld [vmem:[%s1642_s27 + $0x30] sm:$0xff] }
  0x36   : > { %370 = vst [vmem:[%s1647_s10 + $0x10] sm:$0xff] %v369_v6  ;;  %v373_v8 = vld [vmem:[%s1642_s27 + $0x40] sm:$0xff]  ;;  %v375_v9 = vld [vmem:[%s1642_s27 + $0x50] sm:$0xff]  ;;  %372 = vst [vmem:[%s1647_s10 + $0x18] sm:$0xff] %v371_v7 }
  0x37   : > { %374 = vst [vmem:[%s1647_s10 + $0x20] sm:$0xff] %v373_v8  ;;  %376 = vst [vmem:[%s1647_s10 + $0x28] sm:$0xff] %v375_v9  ;;  %v377_v10 = vld [vmem:[%s1642_s27 + $0x60] sm:$0xff]  ;;  %v379_v11 = vld [vmem:[%s1642_s27 + $0x70] sm:$0xff] }
  0x38   : > { %v381_v12 = vld [vmem:[%s1642_s27 + $0x80] sm:$0xff]  ;;  %378 = vst [vmem:[%s1647_s10 + $0x30] sm:$0xff] %v377_v10  ;;  %380 = vst [vmem:[%s1647_s10 + $0x38] sm:$0xff] %v379_v11  ;;  %v383_v13 = vld [vmem:[%s1642_s27 + $0x90] sm:$0xff] }
  0x39   : > { %382 = vst [vmem:[%s1647_s10 + $0x40] sm:$0xff] %v381_v12  ;;  %v385_v14 = vld [vmem:[%s1642_s27 + $0xa0] sm:$0xff]  ;;  %v387_v15 = vld [vmem:[%s1642_s27 + $0xb0] sm:$0xff]  ;;  %384 = vst [vmem:[%s1647_s10 + $0x48] sm:$0xff] %v383_v13 }
  0x3a   : > { %386 = vst [vmem:[%s1647_s10 + $0x50] sm:$0xff] %v385_v14  ;;  %388 = vst [vmem:[%s1647_s10 + $0x58] sm:$0xff] %v387_v15  ;;  %v389_v16 = vld [vmem:[%s1642_s27 + $0xc0] sm:$0xff]  ;;  %v391_v17 = vld [vmem:[%s1642_s27 + $0xd0] sm:$0xff] }
  0x3b   : > { %v393_v18 = vld [vmem:[%s1642_s27 + $0xe0] sm:$0xff]  ;;  %390 = vst [vmem:[%s1647_s10 + $0x60] sm:$0xff] %v389_v16  ;;  %392 = vst [vmem:[%s1647_s10 + $0x68] sm:$0xff] %v391_v17  ;;  %v395_v19 = vld [vmem:[%s1642_s27 + $0xf0] sm:$0xff] }
  0x3c   : > { %394 = vst [vmem:[%s1647_s10 + $0x70] sm:$0xff] %v393_v18  ;;  %v397_v20 = vld [vmem:[%s1642_s27 + $0x100] sm:$0xff]  ;;  %v399_v21 = vld [vmem:[%s1642_s27 + $0x110] sm:$0xff]  ;;  %396 = vst [vmem:[%s1647_s10 + $0x78] sm:$0xff] %v395_v19 }
  0x3d   : > { %398 = vst [vmem:[%s1647_s10 + $0x80] sm:$0xff] %v397_v20  ;;  %400 = vst [vmem:[%s1647_s10 + $0x88] sm:$0xff] %v399_v21  ;;  %v401_v22 = vld [vmem:[%s1642_s27 + $0x120] sm:$0xff]  ;;  %v403_v23 = vld [vmem:[%s1642_s27 + $0x130] sm:$0xff] }
  0x3e   : > { %v405_v24 = vld [vmem:[%s1642_s27 + $0x140] sm:$0xff]  ;;  %402 = vst [vmem:[%s1647_s10 + $0x90] sm:$0xff] %v401_v22  ;;  %404 = vst [vmem:[%s1647_s10 + $0x98] sm:$0xff] %v403_v23  ;;  %v407_v25 = vld [vmem:[%s1642_s27 + $0x150] sm:$0xff] }
  0x3f   : > { %406 = vst [vmem:[%s1647_s10 + $0xa0] sm:$0xff] %v405_v24  ;;  %v409_v26 = vld [vmem:[%s1642_s27 + $0x160] sm:$0xff]  ;;  %v411_v27 = vld [vmem:[%s1642_s27 + $0x170] sm:$0xff]  ;;  %408 = vst [vmem:[%s1647_s10 + $0xa8] sm:$0xff] %v407_v25 }
  0x40   : > { %410 = vst [vmem:[%s1647_s10 + $0xb0] sm:$0xff] %v409_v26  ;;  %412 = vst [vmem:[%s1647_s10 + $0xb8] sm:$0xff] %v411_v27  ;;  %v413_v28 = vld [vmem:[%s1642_s27 + $0x180] sm:$0xff]  ;;  %v415_v29 = vld [vmem:[%s1642_s27 + $0x190] sm:$0xff] }
  0x41   : > { %v417_v30 = vld [vmem:[%s1642_s27 + $0x1a0] sm:$0xff]  ;;  %414 = vst [vmem:[%s1647_s10 + $0xc0] sm:$0xff] %v413_v28  ;;  %416 = vst [vmem:[%s1647_s10 + $0xc8] sm:$0xff] %v415_v29  ;;  %v419_v31 = vld [vmem:[%s1642_s27 + $0x1b0] sm:$0xff] }
  0x42   : > { %418 = vst [vmem:[%s1647_s10 + $0xd0] sm:$0xff] %v417_v30  ;;  %v421_v32 = vld [vmem:[%s1642_s27 + $0x1c0] sm:$0xff]  ;;  %v423_v33 = vld [vmem:[%s1642_s27 + $0x1d0] sm:$0xff]  ;;  %420 = vst [vmem:[%s1647_s10 + $0xd8] sm:$0xff] %v419_v31 }
  0x43   : > { %422 = vst [vmem:[%s1647_s10 + $0xe0] sm:$0xff] %v421_v32  ;;  %424 = vst [vmem:[%s1647_s10 + $0xe8] sm:$0xff] %v423_v33  ;;  %v425_v34 = vld [vmem:[%s1642_s27 + $0x1e0] sm:$0xff]  ;;  %v427_v35 = vld [vmem:[%s1642_s27 + $0x1f0] sm:$0xff] }
  0x44   : > { %v429_v36 = vld [vmem:[%s1642_s27 + $0x200] sm:$0xff]  ;;  %426 = vst [vmem:[%s1647_s10 + $0xf0] sm:$0xff] %v425_v34  ;;  %428 = vst [vmem:[%s1647_s10 + $0xf8] sm:$0xff] %v427_v35  ;;  %v431_v37 = vld [vmem:[%s1642_s27 + $0x210] sm:$0xff] }
  0x45   : > { %430 = vst [vmem:[%s1647_s10 + $0x100] sm:$0xff] %v429_v36  ;;  %v433_v38 = vld [vmem:[%s1642_s27 + $0x220] sm:$0xff]  ;;  %v435_v39 = vld [vmem:[%s1642_s27 + $0x230] sm:$0xff]  ;;  %432 = vst [vmem:[%s1647_s10 + $0x108] sm:$0xff] %v431_v37 }
  0x46   : > { %434 = vst [vmem:[%s1647_s10 + $0x110] sm:$0xff] %v433_v38  ;;  %436 = vst [vmem:[%s1647_s10 + $0x118] sm:$0xff] %v435_v39  ;;  %v437_v40 = vld [vmem:[%s1642_s27 + $0x240] sm:$0xff]  ;;  %v439_v41 = vld [vmem:[%s1642_s27 + $0x250] sm:$0xff] }
  0x47   : > { %v441_v42 = vld [vmem:[%s1642_s27 + $0x260] sm:$0xff]  ;;  %438 = vst [vmem:[%s1647_s10 + $0x120] sm:$0xff] %v437_v40  ;;  %440 = vst [vmem:[%s1647_s10 + $0x128] sm:$0xff] %v439_v41  ;;  %v443_v43 = vld [vmem:[%s1642_s27 + $0x270] sm:$0xff] }
  0x48   : > { %442 = vst [vmem:[%s1647_s10 + $0x130] sm:$0xff] %v441_v42  ;;  %v445_v44 = vld [vmem:[%s1642_s27 + $0x280] sm:$0xff]  ;;  %v447_v45 = vld [vmem:[%s1642_s27 + $0x290] sm:$0xff]  ;;  %444 = vst [vmem:[%s1647_s10 + $0x138] sm:$0xff] %v443_v43 }
  0x49   : > { %446 = vst [vmem:[%s1647_s10 + $0x140] sm:$0xff] %v445_v44  ;;  %448 = vst [vmem:[%s1647_s10 + $0x148] sm:$0xff] %v447_v45  ;;  %v449_v46 = vld [vmem:[%s1642_s27 + $0x2a0] sm:$0xff]  ;;  %v451_v47 = vld [vmem:[%s1642_s27 + $0x2b0] sm:$0xff] }
  0x4a   : > { %v453_v48 = vld [vmem:[%s1642_s27 + $0x2c0] sm:$0xff]  ;;  %450 = vst [vmem:[%s1647_s10 + $0x150] sm:$0xff] %v449_v46  ;;  %452 = vst [vmem:[%s1647_s10 + $0x158] sm:$0xff] %v451_v47  ;;  %v455_v49 = vld [vmem:[%s1642_s27 + $0x2d0] sm:$0xff] }
  0x4b   : > { %454 = vst [vmem:[%s1647_s10 + $0x160] sm:$0xff] %v453_v48  ;;  %v457_v50 = vld [vmem:[%s1642_s27 + $0x2e0] sm:$0xff]  ;;  %v459_v51 = vld [vmem:[%s1642_s27 + $0x2f0] sm:$0xff]  ;;  %456 = vst [vmem:[%s1647_s10 + $0x168] sm:$0xff] %v455_v49 }
  0x4c   : > { %458 = vst [vmem:[%s1647_s10 + $0x170] sm:$0xff] %v457_v50  ;;  %460 = vst [vmem:[%s1647_s10 + $0x178] sm:$0xff] %v459_v51 }
  0x4d PF: > { %p1178_p0 = scmp.ge.s32.totalorder %s1499_s25, 1  ;;  %p481_p1 = scmp.lt.s32.totalorder %s1499_s25, 13 }
  0x4f   : > { %p482_p2 = pnand %p1178_p0, %p481_p1 }
  0x50   : > { %s488_s0 = sand.u32 (!%p482_p2), 1, %s1475_s19   ;;  %s495_s28 = sand.u32 (!%p482_p2), 1, %s1467_s17  }
  0x51   : > { %485 = sbr.rel (%p482_p2) target bundleno = 389 (0x185), region = 92  ;;  %s528_s26 = sand.u32 (!%p482_p2), 1, %s1459_s15  }
  0x52   : > { %s1245_s11 = smul.u32 (!%p482_p2), 24, %s488_s0  ;;  %s1179_s5 = sshll.u32 (!%p482_p2), %s528_s26, 5 }
  0x53   : > { %s1246_s27 = smul.u32 (!%p482_p2), 384, %s495_s28  ;;  %s1180_s29 = sshll.u32 (!%p482_p2), %s1487_s22, 1 }
  0x54   : > { %p536_p3 = scmp.lt.s32.totalorder (!%p482_p2), %s1180_s29, 3  ;;  %s1758_s19 = scalar_lea.vmem (!%p482_p2), [#allocation3], %s1245_s11 }
  0x55   : > { %s1760_s17 = scalar_lea.vmem (!%p482_p2), [#allocation4], %s1246_s27  ;;  %s1762_s15 = scalar_lea.vmem (!%p482_p2), [#allocation5], %s1179_s5 }
  0x56   : > { %s1909_s29 = smov (!%p536_p3, %s1180_s29), 3  ;;  %p1182_p4 = scmp.ne.s32.totalorder %s1483_s21, 0 }
  0x57   : > { %s538_s9 = scalar_lea.vmem %s1876_s2, %s1909_s29  ;;  %s543_s1 = scalar_lea.vmem %s1877_s3, %s1909_s29 }
  0x58   : > { %551 = sbr.rel (%p1182_p4) target bundleno = 96 (0x60), region = 104 }
  0x5d   : > { %v1501_v52 = vmov 0.0  }
  0x5e   : > { %552 = vst [vmem:[#allocation2 + $0x10] sm:$0xff] %v1501_v52  ;;  %553 = vst [vmem:[#allocation2] sm:$0xff] %v1501_v52 }
  0x5f   : > { %554 = vst [vmem:[#allocation2 + $0x18] sm:$0xff] %v1501_v52  ;;  %555 = vst [vmem:[#allocation2 + $0x8] sm:$0xff] %v1501_v52 }
  0x60 PF: > { %v1337_v53 = vld [vmem:[%s1760_s17 + $0x74] ss:$8 sps:$4 sm:$0xff]   ;;  %v1339_v54 = vld [vmem:[%s1760_s17 + $0x70] ss:$8 sps:$4 sm:$0xff]   ;;  %v1502_v55 = vmov 0   ;;  %p1234_p5 = scmp.ne.s32.totalorder %s1483_s21, 5 }
  0x61   : > { %943 = vmatprep.mubr.bf16.mxu1 %v1502_v55  ;;  %868 = vmatprep.subr.bf16.mxu0 %v1337_v53  ;;  %v1340_v56 = vld [vmem:[%s1760_s17 + $0x64] ss:$8 sps:$4 sm:$0xff]   ;;  %v1342_v57 = vld [vmem:[%s1760_s17 + $0x60] ss:$8 sps:$4 sm:$0xff]   ;;  %v1343_v58 = vld [vmem:[%s1760_s17 + $0x54] ss:$8 sps:$4 sm:$0xff]  }
  0x62   : > { %869 = vmatpush1.bf16.msra.mxu0 %v1339_v54  ;;  %v1345_v59 = vld [vmem:[%s1760_s17 + $0x50] ss:$8 sps:$4 sm:$0xff]   ;;  %v1346_v60 = vld [vmem:[%s1760_s17 + $0x44] ss:$8 sps:$4 sm:$0xff]   ;;  %v1358_v61 = vld [vmem:[%s1760_s17 + $0x174] ss:$8 sps:$4 sm:$0xff]  }
  0x63   : > { %870 = vmatprep.subr.bf16.mxu0 %v1340_v56  ;;  %v1360_v62 = vld [vmem:[%s1760_s17 + $0x170] ss:$8 sps:$4 sm:$0xff]   ;;  %v1348_v63 = vld [vmem:[%s1760_s17 + $0x40] ss:$8 sps:$4 sm:$0xff]   ;;  %v1349_v0 = vld [vmem:[%s1760_s17 + $0x34] ss:$8 sps:$4 sm:$0xff]   ;;  %911 = vmatprep.subr.bf16.mxu1 %v1358_v61 }
  0x64   : > { %v1364_v1 = vld [vmem:[%s1760_s17 + $0x164] ss:$8 sps:$4 sm:$0xff]   ;;  %912 = vmatpush1.bf16.msra.mxu1 %v1360_v62  ;;  %v1366_v2 = vld [vmem:[%s1760_s17 + $0x160] ss:$8 sps:$4 sm:$0xff]   ;;  %v1351_v3 = vld [vmem:[%s1760_s17 + $0x30] ss:$8 sps:$4 sm:$0xff]  }
  0x65   : > { %913 = vmatprep.subr.bf16.mxu1 %v1364_v1  ;;  %v1370_v4 = vld [vmem:[%s1760_s17 + $0x154] ss:$8 sps:$4 sm:$0xff]   ;;  %v1352_v5 = vld [vmem:[%s1760_s17 + $0x24] ss:$8 sps:$4 sm:$0xff]   ;;  %v1372_v6 = vld [vmem:[%s1760_s17 + $0x150] ss:$8 sps:$4 sm:$0xff]  }
  0x66   : > { %871 = vmatpush1.bf16.msra.mxu0 %v1342_v57  ;;  %v1376_v7 = vld [vmem:[%s1760_s17 + $0x144] ss:$8 sps:$4 sm:$0xff]   ;;  %v1354_v8 = vld [vmem:[%s1760_s17 + $0x20] ss:$8 sps:$4 sm:$0xff]   ;;  %v1355_v9 = vld [vmem:[%s1760_s17 + $0x14] ss:$8 sps:$4 sm:$0xff]  }
  0x67   : > { %872 = vmatprep.subr.bf16.mxu0 %v1343_v58  ;;  %v1378_v10 = vld [vmem:[%s1760_s17 + $0x140] ss:$8 sps:$4 sm:$0xff]   ;;  %v1382_v11 = vld [vmem:[%s1760_s17 + $0x134] ss:$8 sps:$4 sm:$0xff]   ;;  %v1357_v12 = vld [vmem:[%s1760_s17 + $0x10] ss:$8 sps:$4 sm:$0xff]  }
  0x68   : > { %914 = vmatpush1.bf16.msra.mxu1 %v1366_v2  ;;  %v1361_v13 = vld [vmem:[%s1760_s17 + $0x4] ss:$8 sps:$4 sm:$0xff]   ;;  %v1384_v14 = vld [vmem:[%s1760_s17 + $0x130] ss:$8 sps:$4 sm:$0xff]   ;;  %v1363_v16 = vld [vmem:[%s1760_s17] ss:$8 sps:$4 sm:$0xff]  }
  0x69   : > { %915 = vmatprep.subr.bf16.mxu1 %v1370_v4  ;;  %v1388_v15 = vld [vmem:[%s1760_s17 + $0x124] ss:$8 sps:$4 sm:$0xff]   ;;  %v1367_v17 = vld [vmem:[%s1760_s17 + $0xf4] ss:$8 sps:$4 sm:$0xff]   ;;  %v1390_v18 = vld [vmem:[%s1760_s17 + $0x120] ss:$8 sps:$4 sm:$0xff]  }
  0x6a   : > { %873 = vmatpush1.bf16.msra.mxu0 %v1345_v59  ;;  %v1394_v19 = vld [vmem:[%s1760_s17 + $0x114] ss:$8 sps:$4 sm:$0xff]   ;;  %v1369_v20 = vld [vmem:[%s1760_s17 + $0xf0] ss:$8 sps:$4 sm:$0xff]   ;;  %v1373_v21 = vld [vmem:[%s1760_s17 + $0xe4] ss:$8 sps:$4 sm:$0xff]  }
  0x6b   : > { %874 = vmatprep.subr.bf16.mxu0 %v1346_v60  ;;  %v1396_v22 = vld [vmem:[%s1760_s17 + $0x110] ss:$8 sps:$4 sm:$0xff]   ;;  %v1400_v23 = vld [vmem:[%s1760_s17 + $0x104] ss:$8 sps:$4 sm:$0xff]   ;;  %v1375_v25 = vld [vmem:[%s1760_s17 + $0xe0] ss:$8 sps:$4 sm:$0xff]  }
  0x6c   : > { %916 = vmatpush1.bf16.msra.mxu1 %v1372_v6  ;;  %v1412_v24 = vld [vmem:[%s1758_s19 + $0x4] ss:$12 sps:$4 sm:$0xff]   ;;  %v1406_v30 = vld [vmem:[%s1758_s19 + $0x8] ss:$12 sps:$4 sm:$0xff]   ;;  %v1410_v40 = vld [vmem:[%s1758_s19] ss:$12 sps:$4 sm:$0xff]  }
  0x6d   : > { %917 = vmatprep.subr.bf16.mxu1 %v1376_v7  ;;  %v1379_v26 = vld [vmem:[%s1760_s17 + $0xd4] ss:$8 sps:$4 sm:$0xff]   ;;  %900 = vmatprep.mubr.bf16.mxu0 %v1412_v24  ;;  %v1402_v27 = vld [vmem:[%s1760_s17 + $0x100] ss:$8 sps:$4 sm:$0xff]   ;;  %v1381_v28 = vld [vmem:[%s1760_s17 + $0xd0] ss:$8 sps:$4 sm:$0xff]  }
  0x6e   : > { %875 = vmatpush1.bf16.msra.mxu0 %v1348_v63  ;;  %v1385_v29 = vld [vmem:[%s1760_s17 + $0xc4] ss:$8 sps:$4 sm:$0xff]   ;;  %v1387_v31 = vld [vmem:[%s1760_s17 + $0xc0] ss:$8 sps:$4 sm:$0xff]   ;;  %v1391_v32 = vld [vmem:[%s1760_s17 + $0xb4] ss:$8 sps:$4 sm:$0xff]  }
  0x6f   : > { %876 = vmatprep.subr.bf16.mxu0 %v1349_v0  ;;  %v1393_v33 = vld [vmem:[%s1760_s17 + $0xb0] ss:$8 sps:$4 sm:$0xff]   ;;  %v1397_v34 = vld [vmem:[%s1760_s17 + $0xa4] ss:$8 sps:$4 sm:$0xff]   ;;  %v1399_v35 = vld [vmem:[%s1760_s17 + $0xa0] ss:$8 sps:$4 sm:$0xff]  }
  0x70   : > { %918 = vmatpush1.bf16.msra.mxu1 %v1378_v10  ;;  %v1403_v36 = vld [vmem:[%s1760_s17 + $0x94] ss:$8 sps:$4 sm:$0xff]   ;;  %v1405_v37 = vld [vmem:[%s1760_s17 + $0x90] ss:$8 sps:$4 sm:$0xff]   ;;  %v1407_v38 = vld [vmem:[%s1760_s17 + $0x84] ss:$8 sps:$4 sm:$0xff]  }
  0x71   : > { %919 = vmatprep.subr.bf16.mxu1 %v1382_v11  ;;  %v1409_v39 = vld [vmem:[%s1760_s17 + $0x80] ss:$8 sps:$4 sm:$0xff]   ;;  %v557_v47 = vld [vmem:[#allocation2] sm:$0xff]  ;;  %v559_v56 = vld [vmem:[#allocation2 + $0x8] sm:$0xff] }
  0x72   : > { %877 = vmatpush1.bf16.msra.mxu0 %v1351_v3  ;;  %v556_v43 = vld [vmem:[#allocation2 + $0x10] sm:$0xff]  ;;  %v558_v51 = vld [vmem:[#allocation2 + $0x18] sm:$0xff] }
  0x73   : > { %878 = vmatprep.subr.bf16.mxu0 %v1352_v5 }
  0x74   : > { %920 = vmatpush1.bf16.msra.mxu1 %v1384_v14 }
  0x75   : > { %921 = vmatprep.subr.bf16.mxu1 %v1388_v15 }
  0x76   : > { %879 = vmatpush1.bf16.msra.mxu0 %v1354_v8 }
  0x77   : > { %880 = vmatprep.subr.bf16.mxu0 %v1355_v9 }
  0x78   : > { %922 = vmatpush1.bf16.msra.mxu1 %v1390_v18 }
  0x79   : > { %923 = vmatprep.subr.bf16.mxu1 %v1394_v19 }
  0x7a   : > { %881 = vmatpush1.bf16.msra.mxu0 %v1357_v12 }
  0x7b   : > { %882 = vmatprep.subr.bf16.mxu0 %v1361_v13 }
  0x7c   : > { %924 = vmatpush1.bf16.msra.mxu1 %v1396_v22 }
  0x7d   : > { %925 = vmatprep.subr.bf16.mxu1 %v1400_v23 }
  0x7e   : > { %883 = vmatpush1.bf16.msra.mxu0 %v1363_v16 }
  0x7f   : > { %884 = vmatprep.subr.bf16.mxu0 %v1367_v17 }
  0x80   : > { %926 = vmatpush1.bf16.msra.mxu1 %v1402_v27 }
  0x82   : > { %885 = vmatpush2.bf16.msra.mxu0 %v1369_v20 }
  0x83   : > { %886 = vmatprep.subr.bf16.mxu0 %v1373_v21  ;;  %944 = vmatmul.mubr.bf16.vlgmr.msra.gmra.mxu1 %v1406_v30 }
  0x86   : > { %887 = vmatpush2.bf16.msra.mxu0 %v1375_v25 }
  0x87   : > { %888 = vmatprep.subr.bf16.mxu0 %v1379_v26 }
  0x8a   : > { %889 = vmatpush2.bf16.msra.mxu0 %v1381_v28 }
  0x8b   : > { %890 = vmatprep.subr.bf16.mxu0 %v1385_v29 }
  0x8e   : > { %891 = vmatpush2.bf16.msra.mxu0 %v1387_v31 }
  0x8f   : > { %892 = vmatprep.subr.bf16.mxu0 %v1391_v32 }
  0x92   : > { %893 = vmatpush2.bf16.msra.mxu0 %v1393_v33 }
  0x93   : > { %894 = vmatprep.subr.bf16.mxu0 %v1397_v34 }
  0x96   : > { %895 = vmatpush2.bf16.msra.mxu0 %v1399_v35 }
  0x97   : > { %896 = vmatprep.subr.bf16.mxu0 %v1403_v36 }
  0x9a   : > { %897 = vmatpush2.bf16.msra.mxu0 %v1405_v37 }
  0x9b   : > { %898 = vmatprep.subr.bf16.mxu0 %v1407_v38 }
  0x9e   : > { %899 = vmatpush2.bf16.msra.mxu0 %v1409_v39 }
  0xa1   : > { %901 = vmatmul.mubr.bf16.vlgmr.msra.gmra.mxu0 %v1410_v40 }
 0x143   : > { %v945_v41 = vpop.f32.mrf.mxu1 }
 0x145   : > { %v947_v42 = vpop.f32.mrf.mxu1 }
 0x147   : > { %v949_v46 = vpop.f32.mrf.mxu1 }
 0x149   : > { %v951_v55 = vpop.f32.mrf.mxu1 }
 0x161   : > { %v902_v44 = vpop.f32.mrf.mxu0 }
 0x162   : > { %v946_v45 = vadd.f32 %v945_v41, %v902_v44 }
 0x163   : > { %v904_v48 = vpop.f32.mrf.mxu0 }
 0x164   : > { %v954_v49 = vadd.f32 %v946_v45, %v556_v43  ;;  %v948_v50 = vadd.f32 %v947_v42, %v904_v48 }
 0x165   : > { %v906_v52 = vpop.f32.mrf.mxu0 }
 0x166   : > { %958 = vst [vmem:[#allocation2 + $0x10] sm:$0xff] %v954_v49  ;;  %v955_v53 = vadd.f32 %v948_v50, %v557_v47  ;;  %v950_v54 = vadd.f32 %v949_v46, %v906_v52 }
 0x167   : > { %v908_v57 = vpop.f32.mrf.mxu0 }
 0x168   : > { %959 = vst [vmem:[#allocation2] sm:$0xff] %v955_v53  ;;  %v956_v58 = vadd.f32 %v950_v54, %v558_v51  ;;  %v952_v59 = vadd.f32 %v951_v55, %v908_v57  ;;  %965 = sbr.rel (%p1234_p5) target bundleno = 381 (0x17d), region = 108 }
 0x16a   : > { %960 = vst [vmem:[#allocation2 + $0x18] sm:$0xff] %v956_v58  ;;  %v957_v60 = vadd.f32 %v952_v59, %v559_v56 }
 0x16c   : > { %961 = vst [vmem:[#allocation2 + $0x8] sm:$0xff] %v957_v60 }
 0x16d   : > { %v972_v61 = vlaneseq  ;;  %v970_v63 = vld [vmem:[%s538_s9] sm:$0x3]  ;;  %v966_v1 = vld [vmem:[#allocation2 + $0x10] sm:$0xff] }
 0x16e   : > { %v986_v0 = vld [vmem:[%s543_s1] sm:$0x3] }
 0x16f   : > { %v973_v62 = vshrl.u32 %v972_v61, 7  ;;  %v967_v4 = vld [vmem:[#allocation2] sm:$0xff] }
 0x171   : > { %v974_v2 = vsub.s32 0, %v973_v62  ;;  %v978_v3 = vsub.s32 1, %v973_v62  ;;  %v968_v5 = vld [vmem:[#allocation2 + $0x18] sm:$0xff] }
 0x173   : > { %v969_v6 = vld [vmem:[#allocation2 + $0x8] sm:$0xff]  ;;  %v975_v7 = vrot.slane %v970_v63, %v974_v2  ;;  %v991_v8 = vrot.slane %v986_v0, %v974_v2  ;;  %v979_v9 = vrot.slane %v970_v63, %v978_v3  ;;  %v995_v10 = vrot.slane %v986_v0, %v978_v3 }
 0x175   : > { %v982_v11 = vmul.f32 %v975_v7, %v966_v1  ;;  %v983_v12 = vmul.f32 %v979_v9, %v967_v4  ;;  %v984_v13 = vmul.f32 %v975_v7, %v968_v5  ;;  %v985_v14 = vmul.f32 %v979_v9, %v969_v6 }
 0x177   : > { %v998_v15 = vadd.f32 %v991_v8, %v982_v11  ;;  %v999_v16 = vadd.f32 %v995_v10, %v983_v12  ;;  %v1000_v17 = vadd.f32 %v991_v8, %v984_v13  ;;  %v1001_v18 = vadd.f32 %v995_v10, %v985_v14 }
 0x179   : > { %v1002_v19 = vmax.f32 %v998_v15, 0.0  ;;  %v1003_v20 = vmax.f32 %v999_v16, 0.0  ;;  %v1004_v21 = vmax.f32 %v1000_v17, 0.0  ;;  %v1005_v22 = vmax.f32 %v1001_v18, 0.0 }
 0x17b   : > { %1006 = vst [vmem:[%s1762_s15] sm:$0xff] %v1002_v19  ;;  %1007 = vst [vmem:[%s1762_s15 + $0x8] sm:$0xff] %v1003_v20 }
 0x17c   : > { %1008 = vst [vmem:[%s1762_s15 + $0x10] sm:$0xff] %v1004_v21  ;;  %1009 = vst [vmem:[%s1762_s15 + $0x18] sm:$0xff] %v1005_v22 }
 0x17d PF: > { %1016 = sbr.rel (!%p1622_p12) target bundleno = 389 (0x185), region = 112  ;;  %s1242_s1 = sshll.u32 (%p1622_p12), %s1487_s22, 4 }
 0x17e   : > { %s1022_s5 = scalar_lea.vmem (%p1622_p12), %s1878_s4, %s1242_s1 }
 0x182   : > { %v1035_v23 = vld [vmem:[%s1762_s15] sm:$0xff]  ;;  %v1037_v24 = vld [vmem:[%s1762_s15 + $0x8] sm:$0xff] }
 0x183   : > { %v1039_v25 = vld [vmem:[%s1762_s15 + $0x10] sm:$0xff]  ;;  %v1041_v26 = vld [vmem:[%s1762_s15 + $0x18] sm:$0xff]  ;;  %1036 = vst [vmem:[%s1022_s5] sm:$0xff] %v1035_v23  ;;  %1038 = vst [vmem:[%s1022_s5 + $0x8] sm:$0xff] %v1037_v24 }
 0x184   : > { %1040 = vst [vmem:[%s1022_s5 + $0x20] sm:$0xff] %v1039_v25  ;;  %1042 = vst [vmem:[%s1022_s5 + $0x28] sm:$0xff] %v1041_v26 }
 0x185 PF: > { %s14_s25 = sadd.s32 1, %s1499_s25   ;;  %s1890_s14 = sld [smem:[#allocation6_spill]] }
 0x186   : > { %p11_p6 = scmp.ge.s32.totalorder %s14_s25, 14   ;;  %s1891_s29 = sld [smem:[#allocation7_spill]] }
 0x187   : > { %s1892_s15 = smov %s1463_s16  ;;  %s1893_s16 = smov %s1620_s13 }
 0x188   : > { %s1894_s17 = smov %s1471_s18  ;;  %s1895_s18 = smov %s1617_s12 }
 0x189   : > { %s1896_s19 = smov %s1479_s20  ;;  %s1897_s20 = smov %s1603_s7 }
 0x18a   : > { %s1898_s21 = smov %s1491_s23  ;;  %s1899_s22 = smov %s1495_s24 }
 0x18b   : > { %s1900_s23 = smov %s1890_s14  ;;  %13 = sbr.rel (!%p11_p6) target bundleno = 9 (0x9), region = 186 }
 0x18c   : > { %s1901_s24 = smov %s1891_s29 }

// kernel: resnet18_forward.40
= control target key start
LH: loop header
LB: loop body
LE: loop exit
PB: predicated region body
PF: predicated region fallthrough
CT: control target
= control target key end

     0   :  { %s1130_s15 = smov 0   ;;  %s1132_s16 = smov 0   ;;  %s1321_s0 = inlined_call_operand.vmem [shape: bf16[16,256], index: 0, kind: input, shape index: {}]   ;;  %s1322_s1 = inlined_call_operand.vmem [shape: bf16[256,512], index: 1, kind: input, shape index: {}]   ;;  %s1323_s2 = inlined_call_operand.vmem [shape: f32[1,512], index: 2, kind: input, shape index: {}]   ;;  %s1324_s3 = inlined_call_operand.vmem [shape: f32[1,512], index: 3, kind: input, shape index: {}]   ;;  %s1325_s4 = inlined_call_operand.vmem [shape: f32[16,512], index: 4, kind: output, shape index: {}]  }
   0x1   :  { %s1134_s17 = smov 0   ;;  %s1136_s18 = smov 0  }
   0x2   :  { %s1138_s19 = smov 0  }
   0x3 LB: > { %s29_s20 = sadd.s32 1, %s1099_s18  ;;  %s920_s21 = sadd.s32 4294967295, %s1103_s19   ;;  %s1103_s19 = sphi %s1138_s19, %s14_s19   ;;  %s1099_s18 = sphi %s1136_s18, %s1330_s18   ;;  %s1095_s17 = sphi %s1134_s17, %s1329_s17   ;;  %s1091_s16 = sphi %s1132_s16, %s1328_s16   ;;  %s1087_s15 = sphi %s1130_s15, %s1327_s15  }
   0x4   : > { %p31_p0 = scmp.ge.s32.totalorder %s29_s20, 2  ;;  %p77_p1 = scmp.ne.s32.totalorder %s1091_s16, %s1087_s15 }
   0x5   : > { %p78_p2 = scmp.eq.s32.totalorder %s1103_s19, 0  ;;  %p161_p4 = scmp.eq.s32.totalorder %s920_s21, 1 }
   0x6   : > { %s1332_s20 = smov (%p31_p0, %s29_s20), 0  ;;  %s70_s23 = sadd.s32 1, %s1091_s16 }
   0x7   : > { %p79_p3 = por %p78_p2, %p77_p1  ;;  %s66_s22 = ssub.s32 %s1099_s18, %s1332_s20 }
   0x8   : > { %p68_p5 = scmp.eq.s32.totalorder %s66_s22, 0  ;;  %p1165_p6 = por %p161_p4, %p77_p1 }
   0x9   : > { %p924_p7 = scmp.ge.s32.totalorder %s1103_s19, 2 }
   0xa   : > { %s1170_s25 = scalar_select %p68_p5, %s1091_s16, %s70_s23  }
   0xb   : > { %198 = sbr.rel (%p924_p7) target bundleno = 36 (0x24), region = 20 }
  0x10   : > { %201 = sbr.rel (!%p79_p3) target bundleno = 36 (0x24), region = 24  ;;  %s203_s26 = sand.u32 (%p79_p3), 1, %s1091_s16  }
  0x11   : > { %s972_s27 = sshll.u32 (%p79_p3), %s1099_s18, 3  ;;  %s925_s28 = sshll.u32 (%p79_p3), %s203_s26, 8 }
  0x12   : > { %s1178_s5 = scalar_lea.vmem (%p79_p3), %s1322_s1, %s972_s27  ;;  %s1183_s6 = scalar_lea.vmem (%p79_p3), [#allocation3], %s925_s28 }
  0x13   : > { %v302_v0 = vld [vmem:[%s1178_s5] sm:$0xff] (%p79_p3)  ;;  %v304_v1 = vld [vmem:[%s1178_s5 + $0x10] sm:$0xff] (%p79_p3) }
  0x14   : > { %v306_v2 = vld [vmem:[%s1178_s5 + $0x20] sm:$0xff] (%p79_p3)  ;;  %303 = vst [vmem:[%s1183_s6] sm:$0xff] (%p79_p3), %v302_v0  ;;  %305 = vst [vmem:[%s1183_s6 + $0x8] sm:$0xff] (%p79_p3), %v304_v1  ;;  %v308_v3 = vld [vmem:[%s1178_s5 + $0x30] sm:$0xff] (%p79_p3) }
  0x15   : > { %307 = vst [vmem:[%s1183_s6 + $0x10] sm:$0xff] %v306_v2  ;;  %v310_v4 = vld [vmem:[%s1178_s5 + $0x40] sm:$0xff]  ;;  %v312_v5 = vld [vmem:[%s1178_s5 + $0x50] sm:$0xff]  ;;  %309 = vst [vmem:[%s1183_s6 + $0x18] sm:$0xff] %v308_v3 }
  0x16   : > { %311 = vst [vmem:[%s1183_s6 + $0x20] sm:$0xff] %v310_v4  ;;  %313 = vst [vmem:[%s1183_s6 + $0x28] sm:$0xff] %v312_v5  ;;  %v314_v6 = vld [vmem:[%s1178_s5 + $0x60] sm:$0xff]  ;;  %v316_v7 = vld [vmem:[%s1178_s5 + $0x70] sm:$0xff] }
  0x17   : > { %v318_v8 = vld [vmem:[%s1178_s5 + $0x80] sm:$0xff]  ;;  %315 = vst [vmem:[%s1183_s6 + $0x30] sm:$0xff] %v314_v6  ;;  %317 = vst [vmem:[%s1183_s6 + $0x38] sm:$0xff] %v316_v7  ;;  %v320_v9 = vld [vmem:[%s1178_s5 + $0x90] sm:$0xff] }
  0x18   : > { %319 = vst [vmem:[%s1183_s6 + $0x40] sm:$0xff] %v318_v8  ;;  %v322_v10 = vld [vmem:[%s1178_s5 + $0xa0] sm:$0xff]  ;;  %v324_v11 = vld [vmem:[%s1178_s5 + $0xb0] sm:$0xff]  ;;  %321 = vst [vmem:[%s1183_s6 + $0x48] sm:$0xff] %v320_v9 }
  0x19   : > { %323 = vst [vmem:[%s1183_s6 + $0x50] sm:$0xff] %v322_v10  ;;  %325 = vst [vmem:[%s1183_s6 + $0x58] sm:$0xff] %v324_v11  ;;  %v326_v12 = vld [vmem:[%s1178_s5 + $0xc0] sm:$0xff]  ;;  %v328_v13 = vld [vmem:[%s1178_s5 + $0xd0] sm:$0xff] }
  0x1a   : > { %v330_v14 = vld [vmem:[%s1178_s5 + $0xe0] sm:$0xff]  ;;  %327 = vst [vmem:[%s1183_s6 + $0x60] sm:$0xff] %v326_v12  ;;  %329 = vst [vmem:[%s1183_s6 + $0x68] sm:$0xff] %v328_v13  ;;  %v332_v15 = vld [vmem:[%s1178_s5 + $0xf0] sm:$0xff] }
  0x1b   : > { %331 = vst [vmem:[%s1183_s6 + $0x70] sm:$0xff] %v330_v14  ;;  %v334_v16 = vld [vmem:[%s1178_s5 + $0x100] sm:$0xff]  ;;  %v336_v17 = vld [vmem:[%s1178_s5 + $0x110] sm:$0xff]  ;;  %333 = vst [vmem:[%s1183_s6 + $0x78] sm:$0xff] %v332_v15 }
  0x1c   : > { %335 = vst [vmem:[%s1183_s6 + $0x80] sm:$0xff] %v334_v16  ;;  %337 = vst [vmem:[%s1183_s6 + $0x88] sm:$0xff] %v336_v17  ;;  %v338_v18 = vld [vmem:[%s1178_s5 + $0x120] sm:$0xff]  ;;  %v340_v19 = vld [vmem:[%s1178_s5 + $0x130] sm:$0xff] }
  0x1d   : > { %v342_v20 = vld [vmem:[%s1178_s5 + $0x140] sm:$0xff]  ;;  %339 = vst [vmem:[%s1183_s6 + $0x90] sm:$0xff] %v338_v18  ;;  %341 = vst [vmem:[%s1183_s6 + $0x98] sm:$0xff] %v340_v19  ;;  %v344_v21 = vld [vmem:[%s1178_s5 + $0x150] sm:$0xff] }
  0x1e   : > { %343 = vst [vmem:[%s1183_s6 + $0xa0] sm:$0xff] %v342_v20  ;;  %v346_v22 = vld [vmem:[%s1178_s5 + $0x160] sm:$0xff]  ;;  %v348_v23 = vld [vmem:[%s1178_s5 + $0x170] sm:$0xff]  ;;  %345 = vst [vmem:[%s1183_s6 + $0xa8] sm:$0xff] %v344_v21 }
  0x1f   : > { %347 = vst [vmem:[%s1183_s6 + $0xb0] sm:$0xff] %v346_v22  ;;  %349 = vst [vmem:[%s1183_s6 + $0xb8] sm:$0xff] %v348_v23  ;;  %v350_v24 = vld [vmem:[%s1178_s5 + $0x180] sm:$0xff]  ;;  %v352_v25 = vld [vmem:[%s1178_s5 + $0x190] sm:$0xff] }
  0x20   : > { %v354_v26 = vld [vmem:[%s1178_s5 + $0x1a0] sm:$0xff]  ;;  %351 = vst [vmem:[%s1183_s6 + $0xc0] sm:$0xff] %v350_v24  ;;  %353 = vst [vmem:[%s1183_s6 + $0xc8] sm:$0xff] %v352_v25  ;;  %v356_v27 = vld [vmem:[%s1178_s5 + $0x1b0] sm:$0xff] }
  0x21   : > { %355 = vst [vmem:[%s1183_s6 + $0xd0] sm:$0xff] %v354_v26  ;;  %v358_v28 = vld [vmem:[%s1178_s5 + $0x1c0] sm:$0xff]  ;;  %v360_v29 = vld [vmem:[%s1178_s5 + $0x1d0] sm:$0xff]  ;;  %357 = vst [vmem:[%s1183_s6 + $0xd8] sm:$0xff] %v356_v27 }
  0x22   : > { %359 = vst [vmem:[%s1183_s6 + $0xe0] sm:$0xff] %v358_v28  ;;  %361 = vst [vmem:[%s1183_s6 + $0xe8] sm:$0xff] %v360_v29  ;;  %v362_v30 = vld [vmem:[%s1178_s5 + $0x1e0] sm:$0xff]  ;;  %v364_v31 = vld [vmem:[%s1178_s5 + $0x1f0] sm:$0xff] }
  0x23   : > { %363 = vst [vmem:[%s1183_s6 + $0xf0] sm:$0xff] %v362_v30  ;;  %365 = vst [vmem:[%s1183_s6 + $0xf8] sm:$0xff] %v364_v31 }
  0x24 PF: > { %p928_p8 = scmp.ge.s32.totalorder %s1103_s19, 1  ;;  %p386_p9 = scmp.lt.s32.totalorder %s1103_s19, 3 }
  0x26   : > { %p387_p10 = pnand %p928_p8, %p386_p9 }
  0x27   : > { %s393_s7 = sand.u32 (!%p387_p10), 1, %s1087_s15   ;;  %s931_s14 = sshll.u32 (!%p387_p10), %s1095_s17, 1 }
  0x28   : > { %390 = sbr.rel (%p387_p10) target bundleno = 322 (0x142), region = 70  ;;  %s929_s8 = sshll.u32 (!%p387_p10), %s393_s7, 8 }
  0x29   : > { %s1254_s11 = scalar_lea.vmem (!%p387_p10), [#allocation3], %s929_s8  ;;  %p450_p11 = scmp.lt.s32.totalorder (!%p387_p10), %s931_s14, 3 }
  0x2a   : > { %s930_s29 = sshll.u32 (!%p387_p10), %s393_s7, 5 }
  0x2b   : > { %s434_s30 = scalar_lea.vmem (!%p387_p10), [#allocation4], %s930_s29 }
  0x2d   : > { %v1064_v32 = vld [vmem:[%s1321_s0 + $0x4] ss:$8 sps:$4 sm:$0xff]   ;;  %v1014_v33 = vld [vmem:[%s1254_s11 + $0x74] ss:$8 sps:$4 sm:$0xff]   ;;  %v1016_v34 = vld [vmem:[%s1254_s11 + $0x70] ss:$8 sps:$4 sm:$0xff]   ;;  %v737_v2 = vlaneseq }
  0x2e   : > { %709 = vmatprep.mubr.bf16.mxu0 %v1064_v32  ;;  %677 = vmatprep.subr.bf16.mxu0 %v1014_v33  ;;  %v1017_v35 = vld [vmem:[%s1254_s11 + $0x64] ss:$8 sps:$4 sm:$0xff]   ;;  %v1019_v36 = vld [vmem:[%s1254_s11 + $0x60] ss:$8 sps:$4 sm:$0xff]   ;;  %v1020_v37 = vld [vmem:[%s1254_s11 + $0x54] ss:$8 sps:$4 sm:$0xff]  }
  0x2f   : > { %678 = vmatpush1.bf16.msra.mxu0 %v1016_v34  ;;  %v1022_v38 = vld [vmem:[%s1254_s11 + $0x50] ss:$8 sps:$4 sm:$0xff]   ;;  %v1023_v39 = vld [vmem:[%s1254_s11 + $0x44] ss:$8 sps:$4 sm:$0xff]   ;;  %v1025_v40 = vld [vmem:[%s1254_s11 + $0x40] ss:$8 sps:$4 sm:$0xff]  }
  0x30   : > { %679 = vmatprep.subr.bf16.mxu0 %v1017_v35  ;;  %v1026_v41 = vld [vmem:[%s1254_s11 + $0x34] ss:$8 sps:$4 sm:$0xff]   ;;  %v1028_v42 = vld [vmem:[%s1254_s11 + $0x30] ss:$8 sps:$4 sm:$0xff]   ;;  %v1029_v43 = vld [vmem:[%s1254_s11 + $0x24] ss:$8 sps:$4 sm:$0xff]  }
  0x31   : > { %v1031_v44 = vld [vmem:[%s1254_s11 + $0x20] ss:$8 sps:$4 sm:$0xff]   ;;  %v1032_v45 = vld [vmem:[%s1254_s11 + $0x14] ss:$8 sps:$4 sm:$0xff]   ;;  %v1034_v46 = vld [vmem:[%s1254_s11 + $0x10] ss:$8 sps:$4 sm:$0xff]  }
  0x32   : > { %v1035_v47 = vld [vmem:[%s1254_s11 + $0x4] ss:$8 sps:$4 sm:$0xff]   ;;  %v1037_v48 = vld [vmem:[%s1254_s11] ss:$8 sps:$4 sm:$0xff]   ;;  %v1038_v49 = vld [vmem:[%s1254_s11 + $0xf4] ss:$8 sps:$4 sm:$0xff]  }
  0x33   : > { %680 = vmatpush1.bf16.msra.mxu0 %v1019_v36  ;;  %v1040_v50 = vld [vmem:[%s1254_s11 + $0xf0] ss:$8 sps:$4 sm:$0xff]   ;;  %v1041_v51 = vld [vmem:[%s1254_s11 + $0xe4] ss:$8 sps:$4 sm:$0xff]   ;;  %v1043_v52 = vld [vmem:[%s1254_s11 + $0xe0] ss:$8 sps:$4 sm:$0xff]  }
  0x34   : > { %681 = vmatprep.subr.bf16.mxu0 %v1020_v37  ;;  %v1044_v53 = vld [vmem:[%s1254_s11 + $0xd4] ss:$8 sps:$4 sm:$0xff]   ;;  %v1046_v54 = vld [vmem:[%s1254_s11 + $0xd0] ss:$8 sps:$4 sm:$0xff]   ;;  %v1047_v55 = vld [vmem:[%s1254_s11 + $0xc4] ss:$8 sps:$4 sm:$0xff]  }
  0x35   : > { %v1049_v56 = vld [vmem:[%s1254_s11 + $0xc0] ss:$8 sps:$4 sm:$0xff]   ;;  %v1050_v57 = vld [vmem:[%s1254_s11 + $0xb4] ss:$8 sps:$4 sm:$0xff]   ;;  %v1052_v58 = vld [vmem:[%s1254_s11 + $0xb0] ss:$8 sps:$4 sm:$0xff]  }
  0x36   : > { %v1053_v59 = vld [vmem:[%s1254_s11 + $0xa4] ss:$8 sps:$4 sm:$0xff]   ;;  %v1055_v60 = vld [vmem:[%s1254_s11 + $0xa0] ss:$8 sps:$4 sm:$0xff]   ;;  %v1056_v61 = vld [vmem:[%s1254_s11 + $0x94] ss:$8 sps:$4 sm:$0xff]  }
  0x37   : > { %682 = vmatpush1.bf16.msra.mxu0 %v1022_v38  ;;  %v1058_v62 = vld [vmem:[%s1254_s11 + $0x90] ss:$8 sps:$4 sm:$0xff]   ;;  %v1059_v63 = vld [vmem:[%s1254_s11 + $0x84] ss:$8 sps:$4 sm:$0xff]   ;;  %v1061_v0 = vld [vmem:[%s1254_s11 + $0x80] ss:$8 sps:$4 sm:$0xff]  }
  0x38   : > { %683 = vmatprep.subr.bf16.mxu0 %v1023_v39  ;;  %v1062_v1 = vld [vmem:[%s1321_s0] ss:$8 sps:$4 sm:$0xff]   ;;  %s1334_s14 = smov (!%p450_p11, %s931_s14), 3  ;;  %v738_v3 = vshrl.u32 %v737_v2, 7  ;;  %s973_s15 = sshll.u32 (%p1165_p6), %s1095_s17, 4 }
  0x39   : > { %s452_s23 = scalar_lea.vmem %s1323_s2, %s1334_s14  ;;  %s457_s28 = scalar_lea.vmem %s1324_s3, %s1334_s14 }
  0x3a   : > { %v739_v4 = vsub.s32 0, %v738_v3  ;;  %v735_v5 = vld [vmem:[%s452_s23] sm:$0x3]  ;;  %v743_v6 = vsub.s32 1, %v738_v3  ;;  %s783_s7 = scalar_lea.vmem (%p1165_p6), %s1325_s4, %s973_s15 }
  0x3b   : > { %684 = vmatpush1.bf16.msra.mxu0 %v1025_v40  ;;  %v751_v7 = vld [vmem:[%s457_s28] sm:$0x3] }
  0x3c   : > { %685 = vmatprep.subr.bf16.mxu0 %v1026_v41  ;;  %v740_v8 = vrot.slane %v735_v5, %v739_v4  ;;  %v756_v9 = vrot.slane %v751_v7, %v739_v4  ;;  %v744_v10 = vrot.slane %v735_v5, %v743_v6  ;;  %v760_v13 = vrot.slane %v751_v7, %v743_v6 }
  0x3f   : > { %686 = vmatpush1.bf16.msra.mxu0 %v1028_v42 }
  0x40   : > { %687 = vmatprep.subr.bf16.mxu0 %v1029_v43 }
  0x43   : > { %688 = vmatpush1.bf16.msra.mxu0 %v1031_v44 }
  0x44   : > { %689 = vmatprep.subr.bf16.mxu0 %v1032_v45 }
  0x47   : > { %690 = vmatpush1.bf16.msra.mxu0 %v1034_v46 }
  0x48   : > { %691 = vmatprep.subr.bf16.mxu0 %v1035_v47 }
  0x4b   : > { %692 = vmatpush1.bf16.msra.mxu0 %v1037_v48 }
  0x4c   : > { %693 = vmatprep.subr.bf16.mxu0 %v1038_v49 }
  0x4f   : > { %694 = vmatpush2.bf16.msra.mxu0 %v1040_v50 }
  0x50   : > { %695 = vmatprep.subr.bf16.mxu0 %v1041_v51 }
  0x53   : > { %696 = vmatpush2.bf16.msra.mxu0 %v1043_v52 }
  0x54   : > { %697 = vmatprep.subr.bf16.mxu0 %v1044_v53 }
  0x57   : > { %698 = vmatpush2.bf16.msra.mxu0 %v1046_v54 }
  0x58   : > { %699 = vmatprep.subr.bf16.mxu0 %v1047_v55 }
  0x5b   : > { %700 = vmatpush2.bf16.msra.mxu0 %v1049_v56 }
  0x5c   : > { %701 = vmatprep.subr.bf16.mxu0 %v1050_v57 }
  0x5f   : > { %702 = vmatpush2.bf16.msra.mxu0 %v1052_v58 }
  0x60   : > { %703 = vmatprep.subr.bf16.mxu0 %v1053_v59 }
  0x63   : > { %704 = vmatpush2.bf16.msra.mxu0 %v1055_v60 }
  0x64   : > { %705 = vmatprep.subr.bf16.mxu0 %v1056_v61 }
  0x67   : > { %706 = vmatpush2.bf16.msra.mxu0 %v1058_v62 }
  0x68   : > { %707 = vmatprep.subr.bf16.mxu0 %v1059_v63 }
  0x6b   : > { %708 = vmatpush2.bf16.msra.mxu0 %v1061_v0 }
  0x6e   : > { %710 = vmatmul.mubr.bf16.vlgmr.msra.gmra.mxu0 %v1062_v1 }
 0x12e   : > { %v711_v11 = vpop.f32.mrf.mxu0 }
 0x12f   : > { %v747_v12 = vmul.f32 %v740_v8, %v711_v11 }
 0x130   : > { %v713_v14 = vpop.f32.mrf.mxu0 }
 0x131   : > { %v763_v15 = vadd.f32 %v756_v9, %v747_v12  ;;  %v748_v16 = vmul.f32 %v744_v10, %v713_v14 }
 0x132   : > { %v715_v17 = vpop.f32.mrf.mxu0 }
 0x133   : > { %767 = vst [vmem:[%s434_s30] sm:$0xff] %v763_v15  ;;  %v764_v18 = vadd.f32 %v760_v13, %v748_v16  ;;  %v749_v19 = vmul.f32 %v740_v8, %v715_v17 }
 0x134   : > { %v717_v20 = vpop.f32.mrf.mxu0 }
 0x135   : > { %768 = vst [vmem:[%s434_s30 + $0x8] sm:$0xff] %v764_v18  ;;  %v765_v21 = vadd.f32 %v756_v9, %v749_v19  ;;  %v750_v22 = vmul.f32 %v744_v10, %v717_v20  ;;  %777 = sbr.rel (!%p1165_p6) target bundleno = 322 (0x142), region = 86 }
 0x137   : > { %769 = vst [vmem:[%s434_s30 + $0x10] sm:$0xff] %v765_v21  ;;  %v766_v23 = vadd.f32 %v760_v13, %v750_v22 }
 0x139   : > { %770 = vst [vmem:[%s434_s30 + $0x18] sm:$0xff] %v766_v23 }
 0x13a   : > { %v796_v24 = vld [vmem:[%s434_s30] sm:$0xff] }
 0x13b   : > { %797 = vst [vmem:[%s783_s7] sm:$0xff] %v796_v24 }
 0x13c   : > { %v798_v25 = vld [vmem:[%s434_s30 + $0x8] sm:$0xff] }
 0x13d   : > { %799 = vst [vmem:[%s783_s7 + $0x8] sm:$0xff] %v798_v25 }
 0x13e   : > { %v800_v26 = vld [vmem:[%s434_s30 + $0x10] sm:$0xff] }
 0x13f   : > { %801 = vst [vmem:[%s783_s7 + $0x20] sm:$0xff] %v800_v26 }
 0x140   : > { %v802_v27 = vld [vmem:[%s434_s30 + $0x18] sm:$0xff] }
 0x141   : > { %803 = vst [vmem:[%s783_s7 + $0x28] sm:$0xff] %v802_v27 }
 0x142 PF: > { %s14_s19 = sadd.s32 1, %s1103_s19   ;;  %s1327_s15 = smov %s1091_s16 }
 0x143   : > { %p11_p12 = scmp.ge.s32.totalorder %s14_s19, 4   ;;  %s1328_s16 = smov %s1170_s25 }
 0x144   : > { %s1329_s17 = smov %s1099_s18  ;;  %s1330_s18 = smov %s1332_s20 }
 0x145   :  { %13 = sbr.rel (!%p11_p12) target bundleno = 3 (0x3), region = 149 }

// kernel: resnet18_forward.42
= control target key start
LH: loop header
LB: loop body
LE: loop exit
PB: predicated region body
PF: predicated region fallthrough
CT: control target
= control target key end

     0   :  { %s2253_s0 = inlined_call_operand.vmem [shape: bf16[16,4608], index: 0, kind: input, shape index: {}]   ;;  %s2254_s1 = inlined_call_operand.vmem [shape: bf16[4608,512], index: 1, kind: input, shape index: {}]   ;;  %s2255_s2 = inlined_call_operand.vmem [shape: f32[1,512], index: 2, kind: input, shape index: {}]   ;;  %s2256_s3 = inlined_call_operand.vmem [shape: f32[1,512], index: 3, kind: input, shape index: {}]   ;;  %s2257_s4 = inlined_call_operand.vmem [shape: f32[16,512], index: 4, kind: input, shape index: {}]   ;;  %s2258_s5 = inlined_call_operand.vmem [shape: f32[16,512], index: 5, kind: output, shape index: {}]  }
   0x1   :  { %2262 = sst [smem:[#allocation11_spill]] %s2253_s0 }
   0x2   :  { %s1835_s18 = smov 0   ;;  %s1837_s19 = smov 0  }
   0x3   :  { %s1839_s20 = smov 0   ;;  %s1841_s21 = smov 0  }
   0x4   :  { %s1843_s22 = smov 0   ;;  %s1845_s23 = smov 0  }
   0x5   :  { %s1847_s24 = smov 0   ;;  %s1849_s25 = smov 0  }
   0x6   :  { %s1851_s26 = smov 0   ;;  %s1853_s27 = smov 0  }
   0x7   :  { %s1855_s28 = smov 0  }
   0x8 LB: > { %2263 = sst [smem:[#allocation7_spill]] %s1782_s23  ;;  %s1424_s29 = sadd.s32 4294967295, %s1802_s28   ;;  %s1802_s28 = sphi %s1855_s28, %s15_s28   ;;  %s1798_s27 = sphi %s1853_s27, %s2283_s27   ;;  %s1794_s26 = sphi %s1851_s26, %s2282_s26   ;;  %s1790_s25 = sphi %s1849_s25, %s2281_s25   ;;  %s1786_s24 = sphi %s1847_s24, %s2280_s24   ;;  %s1782_s23 = sphi %s1845_s23, %s2273_s23   ;;  %s1778_s22 = sphi %s1843_s22, %s2272_s22   ;;  %s1774_s21 = sphi %s1841_s21, %s2279_s21   ;;  %s1770_s20 = sphi %s1839_s20, %s2278_s20   ;;  %s1766_s19 = sphi %s1837_s19, %s2277_s19   ;;  %s1762_s18 = sphi %s1835_s18, %s2276_s18  }
   0x9   : > { %s27_s30 = sadd.s32 1, %s1794_s26  ;;  %s30_s6 = sadd.s32 1, %s1798_s27 }
   0xa   : > { %p28_p0 = scmp.ge.s32.totalorder %s27_s30, 9  ;;  %s43_s7 = sadd.s32 1, %s1782_s23 }
   0xb   : > { %p50_p1 = scmp.ne.s32.totalorder %s1782_s23, %s1778_s22  ;;  %p51_p2 = scmp.eq.s32.totalorder %s1802_s28, 0 }
   0xc   : > { %s2285_s30 = smov (%p28_p0, %s27_s30), 0  ;;  %s2287_s6 = smov (!%p28_p0, %s30_s6), %s1798_s27 }
   0xd   : > { %2264 = sst [smem:[#allocation8_spill]] %s2285_s30  ;;  %s39_s8 = ssub.s32 %s1794_s26, %s2285_s30 }
   0xe   : > { %p32_p3 = scmp.ge.s32.totalorder %s2287_s6, 2  ;;  %p41_p4 = scmp.eq.s32.totalorder %s39_s8, 0 }
   0xf   : > { %p1904_p5 = por %p51_p2, %p50_p1  ;;  %s71_s10 = sadd.s32 1, %s1774_s21 }
  0x10   : > { %s2289_s6 = smov (%p32_p3, %s2287_s6), 0  ;;  %p78_p6 = scmp.ne.s32.totalorder %s1774_s21, %s1770_s20 }
  0x11   : > { %2266 = sst [smem:[#allocation9_spill]] %s2289_s6  ;;  %s67_s12 = ssub.s32 %s1798_s27, %s2289_s6 }
  0x12   : > { %s1912_s11 = scalar_select %p41_p4, %s1782_s23, %s43_s7  }
  0x13   : > { %s68_s13 = sor.u32 %s67_s12, %s39_s8  ;;  %p149_p7 = scmp.eq.s32.totalorder %s67_s12, 0 }
  0x14   : > { %2267 = sst [smem:[#allocation10_spill]] %s1912_s11  ;;  %p69_p8 = scmp.eq.s32.totalorder %s68_s13, 0 }
  0x15   : > { %p1920_p9 = por %p78_p6, %p51_p2  ;;  %s151_s15 = sadd.s32 1, %s1766_s19 }
  0x16   : > { %p158_p10 = scmp.ne.s32.totalorder %s1766_s19, %s1762_s18  ;;  %p190_p12 = scmp.eq.s32.totalorder %s1424_s29, 17 }
  0x17   : > { %s1928_s16 = scalar_select %p69_p8, %s1774_s21, %s71_s10  }
  0x18   : > { %s1931_s17 = scalar_select %p149_p7, %s1766_s19, %s151_s15  }
  0x19   : > { %p1935_p11 = por %p158_p10, %p51_p2  ;;  %p1939_p13 = por %p190_p12, %p158_p10 }
  0x1a   : > { %p1427_p0 = scmp.ge.s32.totalorder %s1802_s28, 18 }
  0x1c   : > { %212 = sbr.rel (%p1427_p0) target bundleno = 90 (0x5a), region = 16 }
  0x21   : > { %215 = sbr.rel (!%p1904_p5) target bundleno = 45 (0x2d), region = 20  ;;  %s217_s10 = sand.u32 (%p1904_p5), 1, %s1782_s23  }
  0x22   : > { %s1521_s12 = sshll.u32 (%p1904_p5), %s1794_s26, 4  ;;  %s1428_s13 = sshll.u32 (%p1904_p5), %s217_s10, 5 }
  0x23   : > { %s2271_s0 = sld [smem:[#allocation11_spill]] (%p1904_p5)  ;;  %s219_s29 = scalar_lea.vmem (%p1904_p5), [#allocation3], %s1428_s13 }
  0x29   : > { %s225_s30 = scalar_lea.vmem %s2271_s0, %s1521_s12 }
  0x2a   : > { %v238_v0 = vld [vmem:[%s225_s30] sm:$0xff]  ;;  %v240_v1 = vld [vmem:[%s225_s30 + $0x8] sm:$0xff]  ;;  %v242_v2 = vld [vmem:[%s225_s30 + $0x90] sm:$0xff] }
  0x2b   : > { %239 = vst [vmem:[%s219_s29] sm:$0xff] %v238_v0  ;;  %241 = vst [vmem:[%s219_s29 + $0x8] sm:$0xff] %v240_v1  ;;  %v244_v3 = vld [vmem:[%s225_s30 + $0x98] sm:$0xff] }
  0x2c   : > { %243 = vst [vmem:[%s219_s29 + $0x10] sm:$0xff] %v242_v2  ;;  %245 = vst [vmem:[%s219_s29 + $0x18] sm:$0xff] %v244_v3 }
  0x2d PF: > { %251 = sbr.rel (!%p1920_p9) target bundleno = 84 (0x54), region = 43  ;;  %s253_s9 = sand.u32 (%p1920_p9), 1, %s1774_s21  }
  0x2e   : > { %s1433_s10 = sshll.u32 (%p1920_p9), %s1798_s27, 1  ;;  %s1431_s6 = sshll.u32 (%p1920_p9), %s253_s9, 9 }
  0x2f   : > { %s1522_s12 = sshll.u32 (%p1920_p9), %s1794_s26, 8  ;;  %s1964_s30 = scalar_lea.vmem (%p1920_p9), [#allocation4], %s1431_s6 }
  0x30   : > { %s259_s15 = sadd.s32 (%p1920_p9), %s1522_s12, %s1433_s10 }
  0x31   : > { %s1435_s0 = sshll.u32 (%p1920_p9), %s259_s15, 2 }
  0x32   : > { %s1959_s23 = scalar_lea.vmem %s2254_s1, %s1435_s0 }
  0x33   : > { %v416_v4 = vld [vmem:[%s1959_s23] sm:$0xff]  ;;  %v418_v5 = vld [vmem:[%s1959_s23 + $0x10] sm:$0xff] }
  0x34   : > { %v420_v6 = vld [vmem:[%s1959_s23 + $0x20] sm:$0xff]  ;;  %417 = vst [vmem:[%s1964_s30] sm:$0xff] %v416_v4  ;;  %419 = vst [vmem:[%s1964_s30 + $0x8] sm:$0xff] %v418_v5  ;;  %v422_v7 = vld [vmem:[%s1959_s23 + $0x30] sm:$0xff] }
  0x35   : > { %421 = vst [vmem:[%s1964_s30 + $0x10] sm:$0xff] %v420_v6  ;;  %v424_v8 = vld [vmem:[%s1959_s23 + $0x40] sm:$0xff]  ;;  %v426_v9 = vld [vmem:[%s1959_s23 + $0x50] sm:$0xff]  ;;  %423 = vst [vmem:[%s1964_s30 + $0x18] sm:$0xff] %v422_v7 }
  0x36   : > { %425 = vst [vmem:[%s1964_s30 + $0x20] sm:$0xff] %v424_v8  ;;  %427 = vst [vmem:[%s1964_s30 + $0x28] sm:$0xff] %v426_v9  ;;  %v428_v10 = vld [vmem:[%s1959_s23 + $0x60] sm:$0xff]  ;;  %v430_v11 = vld [vmem:[%s1959_s23 + $0x70] sm:$0xff] }
  0x37   : > { %v432_v12 = vld [vmem:[%s1959_s23 + $0x80] sm:$0xff]  ;;  %429 = vst [vmem:[%s1964_s30 + $0x30] sm:$0xff] %v428_v10  ;;  %431 = vst [vmem:[%s1964_s30 + $0x38] sm:$0xff] %v430_v11  ;;  %v434_v13 = vld [vmem:[%s1959_s23 + $0x90] sm:$0xff] }
  0x38   : > { %433 = vst [vmem:[%s1964_s30 + $0x40] sm:$0xff] %v432_v12  ;;  %v436_v14 = vld [vmem:[%s1959_s23 + $0xa0] sm:$0xff]  ;;  %v438_v15 = vld [vmem:[%s1959_s23 + $0xb0] sm:$0xff]  ;;  %435 = vst [vmem:[%s1964_s30 + $0x48] sm:$0xff] %v434_v13 }
  0x39   : > { %437 = vst [vmem:[%s1964_s30 + $0x50] sm:$0xff] %v436_v14  ;;  %439 = vst [vmem:[%s1964_s30 + $0x58] sm:$0xff] %v438_v15  ;;  %v440_v16 = vld [vmem:[%s1959_s23 + $0xc0] sm:$0xff]  ;;  %v442_v17 = vld [vmem:[%s1959_s23 + $0xd0] sm:$0xff] }
  0x3a   : > { %v444_v18 = vld [vmem:[%s1959_s23 + $0xe0] sm:$0xff]  ;;  %441 = vst [vmem:[%s1964_s30 + $0x60] sm:$0xff] %v440_v16  ;;  %443 = vst [vmem:[%s1964_s30 + $0x68] sm:$0xff] %v442_v17  ;;  %v446_v19 = vld [vmem:[%s1959_s23 + $0xf0] sm:$0xff] }
  0x3b   : > { %445 = vst [vmem:[%s1964_s30 + $0x70] sm:$0xff] %v444_v18  ;;  %v448_v20 = vld [vmem:[%s1959_s23 + $0x100] sm:$0xff]  ;;  %v450_v21 = vld [vmem:[%s1959_s23 + $0x110] sm:$0xff]  ;;  %447 = vst [vmem:[%s1964_s30 + $0x78] sm:$0xff] %v446_v19 }
  0x3c   : > { %449 = vst [vmem:[%s1964_s30 + $0x80] sm:$0xff] %v448_v20  ;;  %451 = vst [vmem:[%s1964_s30 + $0x88] sm:$0xff] %v450_v21  ;;  %v452_v22 = vld [vmem:[%s1959_s23 + $0x120] sm:$0xff]  ;;  %v454_v23 = vld [vmem:[%s1959_s23 + $0x130] sm:$0xff] }
  0x3d   : > { %v456_v24 = vld [vmem:[%s1959_s23 + $0x140] sm:$0xff]  ;;  %453 = vst [vmem:[%s1964_s30 + $0x90] sm:$0xff] %v452_v22  ;;  %455 = vst [vmem:[%s1964_s30 + $0x98] sm:$0xff] %v454_v23  ;;  %v458_v25 = vld [vmem:[%s1959_s23 + $0x150] sm:$0xff] }
  0x3e   : > { %457 = vst [vmem:[%s1964_s30 + $0xa0] sm:$0xff] %v456_v24  ;;  %v460_v26 = vld [vmem:[%s1959_s23 + $0x160] sm:$0xff]  ;;  %v462_v27 = vld [vmem:[%s1959_s23 + $0x170] sm:$0xff]  ;;  %459 = vst [vmem:[%s1964_s30 + $0xa8] sm:$0xff] %v458_v25 }
  0x3f   : > { %461 = vst [vmem:[%s1964_s30 + $0xb0] sm:$0xff] %v460_v26  ;;  %463 = vst [vmem:[%s1964_s30 + $0xb8] sm:$0xff] %v462_v27  ;;  %v464_v28 = vld [vmem:[%s1959_s23 + $0x180] sm:$0xff]  ;;  %v466_v29 = vld [vmem:[%s1959_s23 + $0x190] sm:$0xff] }
  0x40   : > { %v468_v30 = vld [vmem:[%s1959_s23 + $0x1a0] sm:$0xff]  ;;  %465 = vst [vmem:[%s1964_s30 + $0xc0] sm:$0xff] %v464_v28  ;;  %467 = vst [vmem:[%s1964_s30 + $0xc8] sm:$0xff] %v466_v29  ;;  %v470_v31 = vld [vmem:[%s1959_s23 + $0x1b0] sm:$0xff] }
  0x41   : > { %469 = vst [vmem:[%s1964_s30 + $0xd0] sm:$0xff] %v468_v30  ;;  %v472_v32 = vld [vmem:[%s1959_s23 + $0x1c0] sm:$0xff]  ;;  %v474_v33 = vld [vmem:[%s1959_s23 + $0x1d0] sm:$0xff]  ;;  %471 = vst [vmem:[%s1964_s30 + $0xd8] sm:$0xff] %v470_v31 }
  0x42   : > { %473 = vst [vmem:[%s1964_s30 + $0xe0] sm:$0xff] %v472_v32  ;;  %475 = vst [vmem:[%s1964_s30 + $0xe8] sm:$0xff] %v474_v33  ;;  %v476_v34 = vld [vmem:[%s1959_s23 + $0x1e0] sm:$0xff]  ;;  %v478_v35 = vld [vmem:[%s1959_s23 + $0x1f0] sm:$0xff] }
  0x43   : > { %v480_v36 = vld [vmem:[%s1959_s23 + $0x200] sm:$0xff]  ;;  %477 = vst [vmem:[%s1964_s30 + $0xf0] sm:$0xff] %v476_v34  ;;  %479 = vst [vmem:[%s1964_s30 + $0xf8] sm:$0xff] %v478_v35  ;;  %v482_v37 = vld [vmem:[%s1959_s23 + $0x210] sm:$0xff] }
  0x44   : > { %481 = vst [vmem:[%s1964_s30 + $0x100] sm:$0xff] %v480_v36  ;;  %v484_v38 = vld [vmem:[%s1959_s23 + $0x220] sm:$0xff]  ;;  %v486_v39 = vld [vmem:[%s1959_s23 + $0x230] sm:$0xff]  ;;  %483 = vst [vmem:[%s1964_s30 + $0x108] sm:$0xff] %v482_v37 }
  0x45   : > { %485 = vst [vmem:[%s1964_s30 + $0x110] sm:$0xff] %v484_v38  ;;  %487 = vst [vmem:[%s1964_s30 + $0x118] sm:$0xff] %v486_v39  ;;  %v488_v40 = vld [vmem:[%s1959_s23 + $0x240] sm:$0xff]  ;;  %v490_v41 = vld [vmem:[%s1959_s23 + $0x250] sm:$0xff] }
  0x46   : > { %v492_v42 = vld [vmem:[%s1959_s23 + $0x260] sm:$0xff]  ;;  %489 = vst [vmem:[%s1964_s30 + $0x120] sm:$0xff] %v488_v40  ;;  %491 = vst [vmem:[%s1964_s30 + $0x128] sm:$0xff] %v490_v41  ;;  %v494_v43 = vld [vmem:[%s1959_s23 + $0x270] sm:$0xff] }
  0x47   : > { %493 = vst [vmem:[%s1964_s30 + $0x130] sm:$0xff] %v492_v42  ;;  %v496_v44 = vld [vmem:[%s1959_s23 + $0x280] sm:$0xff]  ;;  %v498_v45 = vld [vmem:[%s1959_s23 + $0x290] sm:$0xff]  ;;  %495 = vst [vmem:[%s1964_s30 + $0x138] sm:$0xff] %v494_v43 }
  0x48   : > { %497 = vst [vmem:[%s1964_s30 + $0x140] sm:$0xff] %v496_v44  ;;  %499 = vst [vmem:[%s1964_s30 + $0x148] sm:$0xff] %v498_v45  ;;  %v500_v46 = vld [vmem:[%s1959_s23 + $0x2a0] sm:$0xff]  ;;  %v502_v47 = vld [vmem:[%s1959_s23 + $0x2b0] sm:$0xff] }
  0x49   : > { %v504_v48 = vld [vmem:[%s1959_s23 + $0x2c0] sm:$0xff]  ;;  %501 = vst [vmem:[%s1964_s30 + $0x150] sm:$0xff] %v500_v46  ;;  %503 = vst [vmem:[%s1964_s30 + $0x158] sm:$0xff] %v502_v47  ;;  %v506_v49 = vld [vmem:[%s1959_s23 + $0x2d0] sm:$0xff] }
  0x4a   : > { %505 = vst [vmem:[%s1964_s30 + $0x160] sm:$0xff] %v504_v48  ;;  %v508_v50 = vld [vmem:[%s1959_s23 + $0x2e0] sm:$0xff]  ;;  %v510_v51 = vld [vmem:[%s1959_s23 + $0x2f0] sm:$0xff]  ;;  %507 = vst [vmem:[%s1964_s30 + $0x168] sm:$0xff] %v506_v49 }
  0x4b   : > { %509 = vst [vmem:[%s1964_s30 + $0x170] sm:$0xff] %v508_v50  ;;  %511 = vst [vmem:[%s1964_s30 + $0x178] sm:$0xff] %v510_v51  ;;  %v512_v52 = vld [vmem:[%s1959_s23 + $0x300] sm:$0xff]  ;;  %v514_v53 = vld [vmem:[%s1959_s23 + $0x310] sm:$0xff] }
  0x4c   : > { %v516_v54 = vld [vmem:[%s1959_s23 + $0x320] sm:$0xff]  ;;  %513 = vst [vmem:[%s1964_s30 + $0x180] sm:$0xff] %v512_v52  ;;  %515 = vst [vmem:[%s1964_s30 + $0x188] sm:$0xff] %v514_v53  ;;  %v518_v55 = vld [vmem:[%s1959_s23 + $0x330] sm:$0xff] }
  0x4d   : > { %517 = vst [vmem:[%s1964_s30 + $0x190] sm:$0xff] %v516_v54  ;;  %v520_v56 = vld [vmem:[%s1959_s23 + $0x340] sm:$0xff]  ;;  %v522_v57 = vld [vmem:[%s1959_s23 + $0x350] sm:$0xff]  ;;  %519 = vst [vmem:[%s1964_s30 + $0x198] sm:$0xff] %v518_v55 }
  0x4e   : > { %521 = vst [vmem:[%s1964_s30 + $0x1a0] sm:$0xff] %v520_v56  ;;  %523 = vst [vmem:[%s1964_s30 + $0x1a8] sm:$0xff] %v522_v57  ;;  %v524_v58 = vld [vmem:[%s1959_s23 + $0x360] sm:$0xff]  ;;  %v526_v59 = vld [vmem:[%s1959_s23 + $0x370] sm:$0xff] }
  0x4f   : > { %v528_v60 = vld [vmem:[%s1959_s23 + $0x380] sm:$0xff]  ;;  %525 = vst [vmem:[%s1964_s30 + $0x1b0] sm:$0xff] %v524_v58  ;;  %527 = vst [vmem:[%s1964_s30 + $0x1b8] sm:$0xff] %v526_v59  ;;  %v530_v61 = vld [vmem:[%s1959_s23 + $0x390] sm:$0xff] }
  0x50   : > { %529 = vst [vmem:[%s1964_s30 + $0x1c0] sm:$0xff] %v528_v60  ;;  %v532_v62 = vld [vmem:[%s1959_s23 + $0x3a0] sm:$0xff]  ;;  %v534_v63 = vld [vmem:[%s1959_s23 + $0x3b0] sm:$0xff]  ;;  %531 = vst [vmem:[%s1964_s30 + $0x1c8] sm:$0xff] %v530_v61 }
  0x51   : > { %533 = vst [vmem:[%s1964_s30 + $0x1d0] sm:$0xff] %v532_v62  ;;  %535 = vst [vmem:[%s1964_s30 + $0x1d8] sm:$0xff] %v534_v63  ;;  %v536_v0 = vld [vmem:[%s1959_s23 + $0x3c0] sm:$0xff]  ;;  %v538_v1 = vld [vmem:[%s1959_s23 + $0x3d0] sm:$0xff] }
  0x52   : > { %v540_v2 = vld [vmem:[%s1959_s23 + $0x3e0] sm:$0xff]  ;;  %537 = vst [vmem:[%s1964_s30 + $0x1e0] sm:$0xff] %v536_v0  ;;  %539 = vst [vmem:[%s1964_s30 + $0x1e8] sm:$0xff] %v538_v1  ;;  %v542_v3 = vld [vmem:[%s1959_s23 + $0x3f0] sm:$0xff] }
  0x53   : > { %541 = vst [vmem:[%s1964_s30 + $0x1f0] sm:$0xff] %v540_v2  ;;  %543 = vst [vmem:[%s1964_s30 + $0x1f8] sm:$0xff] %v542_v3 }
  0x54 PF: > { %565 = sbr.rel (!%p1935_p11) target bundleno = 90 (0x5a), region = 89  ;;  %s567_s0 = sand.u32 (%p1935_p11), 1, %s1766_s19  }
  0x55   : > { %s1523_s11 = sshll.u32 (%p1935_p11), %s1798_s27, 4  ;;  %s1436_s14 = sshll.u32 (%p1935_p11), %s567_s0, 5 }
  0x56   : > { %s575_s10 = scalar_lea.vmem (%p1935_p11), %s2257_s4, %s1523_s11  ;;  %s569_s6 = scalar_lea.vmem (%p1935_p11), [#allocation5], %s1436_s14 }
  0x57   : > { %v588_v4 = vld [vmem:[%s575_s10] sm:$0xff] (%p1935_p11)  ;;  %v590_v5 = vld [vmem:[%s575_s10 + $0x8] sm:$0xff] (%p1935_p11) }
  0x58   : > { %v592_v6 = vld [vmem:[%s575_s10 + $0x20] sm:$0xff] (%p1935_p11)  ;;  %589 = vst [vmem:[%s569_s6] sm:$0xff] (%p1935_p11), %v588_v4  ;;  %591 = vst [vmem:[%s569_s6 + $0x8] sm:$0xff] (%p1935_p11), %v590_v5  ;;  %v594_v7 = vld [vmem:[%s575_s10 + $0x28] sm:$0xff] (%p1935_p11) }
  0x59   : > { %593 = vst [vmem:[%s569_s6 + $0x10] sm:$0xff] %v592_v6  ;;  %595 = vst [vmem:[%s569_s6 + $0x18] sm:$0xff] %v594_v7 }
  0x5a PF: > { %p1439_p1 = scmp.ge.s32.totalorder %s1802_s28, 1  ;;  %p600_p2 = scmp.lt.s32.totalorder %s1802_s28, 19 }
  0x5c   : > { %p601_p3 = pnand %p1439_p1, %p600_p2 }
  0x5d   : > { %s607_s23 = sand.u32 (!%p601_p3), 1, %s1778_s22   ;;  %s614_s7 = sand.u32 (!%p601_p3), 1, %s1770_s20  }
  0x5e   : > { %604 = sbr.rel (%p601_p3) target bundleno = 407 (0x197), region = 112  ;;  %s1440_s12 = sshll.u32 (!%p601_p3), %s607_s23, 5 }
  0x5f   : > { %s1441_s15 = sshll.u32 (!%p601_p3), %s614_s7, 9  ;;  %s621_s13 = sand.u32 (!%p601_p3), 1, %s1762_s18  }
  0x60   : > { %s1444_s30 = sshll.u32 (!%p601_p3), %s1790_s25, 1  ;;  %s1442_s0 = sshll.u32 (!%p601_p3), %s621_s13, 5 }
  0x61   : > { %p668_p4 = scmp.lt.s32.totalorder (!%p601_p3), %s1444_s30, 3  ;;  %s2114_s22 = scalar_lea.vmem (!%p601_p3), [#allocation3], %s1440_s12 }
  0x62   : > { %s2116_s20 = scalar_lea.vmem (!%p601_p3), [#allocation4], %s1441_s15  ;;  %s2118_s18 = scalar_lea.vmem (!%p601_p3), [#allocation5], %s1442_s0 }
  0x63   : > { %s2291_s30 = smov (!%p668_p4, %s1444_s30), 3  ;;  %s2120_s23 = scalar_lea.vmem [#allocation6], %s1442_s0 }
  0x64   : > { %s670_s29 = scalar_lea.vmem %s2255_s2, %s2291_s30  ;;  %s675_s6 = scalar_lea.vmem %s2256_s3, %s2291_s30 }
  0x65   : > { %p1446_p5 = scmp.ne.s32.totalorder %s1786_s24, 0 }
  0x67   : > { %684 = sbr.rel (%p1446_p5) target bundleno = 111 (0x6f), region = 128 }
  0x6c   : > { %v1804_v8 = vmov 0.0  }
  0x6d   : > { %685 = vst [vmem:[#allocation2 + $0x10] sm:$0xff] %v1804_v8  ;;  %686 = vst [vmem:[#allocation2] sm:$0xff] %v1804_v8 }
  0x6e   : > { %687 = vst [vmem:[#allocation2 + $0x18] sm:$0xff] %v1804_v8  ;;  %688 = vst [vmem:[#allocation2 + $0x8] sm:$0xff] %v1804_v8 }
  0x6f PF: > { %v1614_v9 = vld [vmem:[%s2116_s20 + $0x74] ss:$8 sps:$4 sm:$0xff]   ;;  %v1618_v11 = vld [vmem:[%s2116_s20 + $0x70] ss:$8 sps:$4 sm:$0xff]   ;;  %v1620_v13 = vld [vmem:[%s2116_s20 + $0x64] ss:$8 sps:$4 sm:$0xff]  }
  0x70   : > { %v1616_v10 = vld [vmem:[%s2116_s20 + $0x174] ss:$8 sps:$4 sm:$0xff]   ;;  %1101 = vmatprep.subr.bf16.mxu0 %v1614_v9  ;;  %v1619_v12 = vld [vmem:[%s2116_s20 + $0x170] ss:$8 sps:$4 sm:$0xff]   ;;  %v1622_v14 = vld [vmem:[%s2116_s20 + $0x164] ss:$8 sps:$4 sm:$0xff]  }
  0x71   : > { %1144 = vmatprep.subr.bf16.mxu1 %v1616_v10  ;;  %1102 = vmatpush1.bf16.msra.mxu0 %v1618_v11  ;;  %v1624_v15 = vld [vmem:[%s2116_s20 + $0x60] ss:$8 sps:$4 sm:$0xff]   ;;  %v1626_v17 = vld [vmem:[%s2116_s20 + $0x54] ss:$8 sps:$4 sm:$0xff]   ;;  %v1630_v19 = vld [vmem:[%s2116_s20 + $0x50] ss:$8 sps:$4 sm:$0xff]  }
  0x72   : > { %1145 = vmatpush1.bf16.msra.mxu1 %v1619_v12  ;;  %1103 = vmatprep.subr.bf16.mxu0 %v1620_v13  ;;  %v1625_v16 = vld [vmem:[%s2116_s20 + $0x160] ss:$8 sps:$4 sm:$0xff]   ;;  %v1628_v18 = vld [vmem:[%s2116_s20 + $0x154] ss:$8 sps:$4 sm:$0xff]   ;;  %v1631_v20 = vld [vmem:[%s2116_s20 + $0x150] ss:$8 sps:$4 sm:$0xff]  }
  0x73   : > { %1146 = vmatprep.subr.bf16.mxu1 %v1622_v14  ;;  %v1632_v21 = vld [vmem:[%s2116_s20 + $0x44] ss:$8 sps:$4 sm:$0xff]   ;;  %v1636_v23 = vld [vmem:[%s2116_s20 + $0x40] ss:$8 sps:$4 sm:$0xff]   ;;  %v1638_v25 = vld [vmem:[%s2116_s20 + $0x34] ss:$8 sps:$4 sm:$0xff]  }
  0x74   : > { %v1634_v22 = vld [vmem:[%s2116_s20 + $0x144] ss:$8 sps:$4 sm:$0xff]   ;;  %v1637_v24 = vld [vmem:[%s2116_s20 + $0x140] ss:$8 sps:$4 sm:$0xff]   ;;  %v1640_v26 = vld [vmem:[%s2116_s20 + $0x134] ss:$8 sps:$4 sm:$0xff]  }
  0x75   : > { %1104 = vmatpush1.bf16.msra.mxu0 %v1624_v15  ;;  %v1642_v27 = vld [vmem:[%s2116_s20 + $0x30] ss:$8 sps:$4 sm:$0xff]   ;;  %v1644_v29 = vld [vmem:[%s2116_s20 + $0x24] ss:$8 sps:$4 sm:$0xff]   ;;  %v1648_v31 = vld [vmem:[%s2116_s20 + $0x20] ss:$8 sps:$4 sm:$0xff]  }
  0x76   : > { %1147 = vmatpush1.bf16.msra.mxu1 %v1625_v16  ;;  %1105 = vmatprep.subr.bf16.mxu0 %v1626_v17  ;;  %v1643_v28 = vld [vmem:[%s2116_s20 + $0x130] ss:$8 sps:$4 sm:$0xff]   ;;  %v1646_v30 = vld [vmem:[%s2116_s20 + $0x124] ss:$8 sps:$4 sm:$0xff]   ;;  %v1649_v32 = vld [vmem:[%s2116_s20 + $0x120] ss:$8 sps:$4 sm:$0xff]  }
  0x77   : > { %1148 = vmatprep.subr.bf16.mxu1 %v1628_v18  ;;  %v1650_v33 = vld [vmem:[%s2116_s20 + $0x14] ss:$8 sps:$4 sm:$0xff]   ;;  %v1654_v35 = vld [vmem:[%s2116_s20 + $0x10] ss:$8 sps:$4 sm:$0xff]   ;;  %v1656_v37 = vld [vmem:[%s2116_s20 + $0x4] ss:$8 sps:$4 sm:$0xff]  }
  0x78   : > { %v1652_v34 = vld [vmem:[%s2116_s20 + $0x114] ss:$8 sps:$4 sm:$0xff]   ;;  %v1655_v36 = vld [vmem:[%s2116_s20 + $0x110] ss:$8 sps:$4 sm:$0xff]   ;;  %v1658_v38 = vld [vmem:[%s2116_s20 + $0x104] ss:$8 sps:$4 sm:$0xff]  }
  0x79   : > { %1106 = vmatpush1.bf16.msra.mxu0 %v1630_v19  ;;  %v1660_v39 = vld [vmem:[%s2116_s20] ss:$8 sps:$4 sm:$0xff]   ;;  %v1662_v41 = vld [vmem:[%s2116_s20 + $0xf4] ss:$8 sps:$4 sm:$0xff]   ;;  %v1666_v43 = vld [vmem:[%s2116_s20 + $0xf0] ss:$8 sps:$4 sm:$0xff]  }
  0x7a   : > { %1149 = vmatpush1.bf16.msra.mxu1 %v1631_v20  ;;  %1107 = vmatprep.subr.bf16.mxu0 %v1632_v21  ;;  %v1661_v40 = vld [vmem:[%s2116_s20 + $0x100] ss:$8 sps:$4 sm:$0xff]   ;;  %v1664_v42 = vld [vmem:[%s2116_s20 + $0x1f4] ss:$8 sps:$4 sm:$0xff]   ;;  %v1667_v44 = vld [vmem:[%s2116_s20 + $0x1f0] ss:$8 sps:$4 sm:$0xff]  }
  0x7b   : > { %1150 = vmatprep.subr.bf16.mxu1 %v1634_v22  ;;  %v1668_v45 = vld [vmem:[%s2116_s20 + $0xe4] ss:$8 sps:$4 sm:$0xff]   ;;  %v1672_v47 = vld [vmem:[%s2116_s20 + $0xe0] ss:$8 sps:$4 sm:$0xff]   ;;  %v1674_v49 = vld [vmem:[%s2116_s20 + $0xd4] ss:$8 sps:$4 sm:$0xff]  }
  0x7c   : > { %v1670_v46 = vld [vmem:[%s2116_s20 + $0x1e4] ss:$8 sps:$4 sm:$0xff]   ;;  %v1673_v48 = vld [vmem:[%s2116_s20 + $0x1e0] ss:$8 sps:$4 sm:$0xff]   ;;  %v1676_v50 = vld [vmem:[%s2116_s20 + $0x1d4] ss:$8 sps:$4 sm:$0xff]  }
  0x7d   : > { %1108 = vmatpush1.bf16.msra.mxu0 %v1636_v23  ;;  %v1678_v51 = vld [vmem:[%s2116_s20 + $0xd0] ss:$8 sps:$4 sm:$0xff]   ;;  %v1680_v53 = vld [vmem:[%s2116_s20 + $0xc4] ss:$8 sps:$4 sm:$0xff]   ;;  %v1684_v55 = vld [vmem:[%s2116_s20 + $0xc0] ss:$8 sps:$4 sm:$0xff]  }
  0x7e   : > { %1151 = vmatpush1.bf16.msra.mxu1 %v1637_v24  ;;  %1109 = vmatprep.subr.bf16.mxu0 %v1638_v25  ;;  %v1679_v52 = vld [vmem:[%s2116_s20 + $0x1d0] ss:$8 sps:$4 sm:$0xff]   ;;  %v1682_v54 = vld [vmem:[%s2116_s20 + $0x1c4] ss:$8 sps:$4 sm:$0xff]   ;;  %v1685_v57 = vld [vmem:[%s2116_s20 + $0x1c0] ss:$8 sps:$4 sm:$0xff]  }
  0x7f   : > { %1152 = vmatprep.subr.bf16.mxu1 %v1640_v26  ;;  %v1712_v56 = vld [vmem:[%s2114_s22 + $0x4] ss:$16 sps:$4 sm:$0xff]   ;;  %v1715_v60 = vld [vmem:[%s2114_s22 + $0xc] ss:$16 sps:$4 sm:$0xff]   ;;  %v1690_v61 = vld [vmem:[%s2116_s20 + $0xb0] ss:$8 sps:$4 sm:$0xff]  }
  0x80   : > { %v1686_v58 = vld [vmem:[%s2116_s20 + $0xb4] ss:$8 sps:$4 sm:$0xff]   ;;  %1133 = vmatprep.mubr.bf16.mxu0 %v1712_v56  ;;  %1176 = vmatprep.mubr.bf16.mxu1 %v1715_v60  ;;  %v1691_v62 = vld [vmem:[%s2116_s20 + $0x1b0] ss:$8 sps:$4 sm:$0xff]   ;;  %v1692_v63 = vld [vmem:[%s2116_s20 + $0xa4] ss:$8 sps:$4 sm:$0xff]  }
  0x81   : > { %1110 = vmatpush1.bf16.msra.mxu0 %v1642_v27  ;;  %v1688_v59 = vld [vmem:[%s2116_s20 + $0x1b4] ss:$8 sps:$4 sm:$0xff]   ;;  %v1694_v0 = vld [vmem:[%s2116_s20 + $0x1a4] ss:$8 sps:$4 sm:$0xff]   ;;  %v1696_v1 = vld [vmem:[%s2116_s20 + $0xa0] ss:$8 sps:$4 sm:$0xff]  }
  0x82   : > { %1153 = vmatpush1.bf16.msra.mxu1 %v1643_v28  ;;  %1111 = vmatprep.subr.bf16.mxu0 %v1644_v29  ;;  %v1697_v2 = vld [vmem:[%s2116_s20 + $0x1a0] ss:$8 sps:$4 sm:$0xff]   ;;  %v1698_v3 = vld [vmem:[%s2116_s20 + $0x94] ss:$8 sps:$4 sm:$0xff]   ;;  %v1702_v5 = vld [vmem:[%s2116_s20 + $0x90] ss:$8 sps:$4 sm:$0xff]  }
  0x83   : > { %1154 = vmatprep.subr.bf16.mxu1 %v1646_v30  ;;  %v1700_v4 = vld [vmem:[%s2116_s20 + $0x194] ss:$8 sps:$4 sm:$0xff]   ;;  %v1703_v6 = vld [vmem:[%s2116_s20 + $0x190] ss:$8 sps:$4 sm:$0xff]   ;;  %v1704_v7 = vld [vmem:[%s2116_s20 + $0x84] ss:$8 sps:$4 sm:$0xff]  }
  0x84   : > { %v1706_v8 = vld [vmem:[%s2116_s20 + $0x184] ss:$8 sps:$4 sm:$0xff]   ;;  %v1708_v9 = vld [vmem:[%s2116_s20 + $0x80] ss:$8 sps:$4 sm:$0xff]   ;;  %v689_v14 = vld [vmem:[#allocation2 + $0x10] sm:$0xff]  ;;  %p1515_p6 = scmp.ne.s32.totalorder %s1786_s24, 8 }
  0x85   : > { %1112 = vmatpush1.bf16.msra.mxu0 %v1648_v31  ;;  %v1709_v10 = vld [vmem:[%s2116_s20 + $0x180] ss:$8 sps:$4 sm:$0xff]   ;;  %v691_v23 = vld [vmem:[#allocation2 + $0x18] sm:$0xff] }
  0x86   : > { %1155 = vmatpush1.bf16.msra.mxu1 %v1649_v32  ;;  %1113 = vmatprep.subr.bf16.mxu0 %v1650_v33  ;;  %v1710_v11 = vld [vmem:[%s2114_s22] ss:$16 sps:$4 sm:$0xff]   ;;  %v1713_v12 = vld [vmem:[%s2114_s22 + $0x8] ss:$16 sps:$4 sm:$0xff]  }
  0x87   : > { %1156 = vmatprep.subr.bf16.mxu1 %v1652_v34  ;;  %v690_v18 = vld [vmem:[#allocation2] sm:$0xff]  ;;  %v692_v28 = vld [vmem:[#allocation2 + $0x8] sm:$0xff] }
  0x89   : > { %1114 = vmatpush1.bf16.msra.mxu0 %v1654_v35 }
  0x8a   : > { %1157 = vmatpush1.bf16.msra.mxu1 %v1655_v36  ;;  %1115 = vmatprep.subr.bf16.mxu0 %v1656_v37 }
  0x8b   : > { %1158 = vmatprep.subr.bf16.mxu1 %v1658_v38 }
  0x8d   : > { %1116 = vmatpush1.bf16.msra.mxu0 %v1660_v39 }
  0x8e   : > { %1159 = vmatpush1.bf16.msra.mxu1 %v1661_v40  ;;  %1117 = vmatprep.subr.bf16.mxu0 %v1662_v41 }
  0x8f   : > { %1160 = vmatprep.subr.bf16.mxu1 %v1664_v42 }
  0x91   : > { %1118 = vmatpush2.bf16.msra.mxu0 %v1666_v43 }
  0x92   : > { %1161 = vmatpush2.bf16.msra.mxu1 %v1667_v44  ;;  %1119 = vmatprep.subr.bf16.mxu0 %v1668_v45 }
  0x93   : > { %1162 = vmatprep.subr.bf16.mxu1 %v1670_v46 }
  0x95   : > { %1120 = vmatpush2.bf16.msra.mxu0 %v1672_v47 }
  0x96   : > { %1163 = vmatpush2.bf16.msra.mxu1 %v1673_v48  ;;  %1121 = vmatprep.subr.bf16.mxu0 %v1674_v49 }
  0x97   : > { %1164 = vmatprep.subr.bf16.mxu1 %v1676_v50 }
  0x99   : > { %1122 = vmatpush2.bf16.msra.mxu0 %v1678_v51 }
  0x9a   : > { %1165 = vmatpush2.bf16.msra.mxu1 %v1679_v52  ;;  %1123 = vmatprep.subr.bf16.mxu0 %v1680_v53 }
  0x9b   : > { %1166 = vmatprep.subr.bf16.mxu1 %v1682_v54 }
  0x9d   : > { %1124 = vmatpush2.bf16.msra.mxu0 %v1684_v55 }
  0x9e   : > { %1167 = vmatpush2.bf16.msra.mxu1 %v1685_v57  ;;  %1125 = vmatprep.subr.bf16.mxu0 %v1686_v58 }
  0x9f   : > { %1168 = vmatprep.subr.bf16.mxu1 %v1688_v59 }
  0xa1   : > { %1126 = vmatpush2.bf16.msra.mxu0 %v1690_v61 }
  0xa2   : > { %1169 = vmatpush2.bf16.msra.mxu1 %v1691_v62  ;;  %1127 = vmatprep.subr.bf16.mxu0 %v1692_v63 }
  0xa3   : > { %1170 = vmatprep.subr.bf16.mxu1 %v1694_v0 }
  0xa5   : > { %1128 = vmatpush2.bf16.msra.mxu0 %v1696_v1 }
  0xa6   : > { %1171 = vmatpush2.bf16.msra.mxu1 %v1697_v2  ;;  %1129 = vmatprep.subr.bf16.mxu0 %v1698_v3 }
  0xa7   : > { %1172 = vmatprep.subr.bf16.mxu1 %v1700_v4 }
  0xa9   : > { %1130 = vmatpush2.bf16.msra.mxu0 %v1702_v5 }
  0xaa   : > { %1173 = vmatpush2.bf16.msra.mxu1 %v1703_v6  ;;  %1131 = vmatprep.subr.bf16.mxu0 %v1704_v7 }
  0xab   : > { %1174 = vmatprep.subr.bf16.mxu1 %v1706_v8 }
  0xad   : > { %1132 = vmatpush2.bf16.msra.mxu0 %v1708_v9 }
  0xae   : > { %1175 = vmatpush2.bf16.msra.mxu1 %v1709_v10 }
  0xb0   : > { %1134 = vmatmul.mubr.bf16.vlgmr.msra.gmra.mxu0 %v1710_v11 }
  0xb1   : > { %1177 = vmatmul.mubr.bf16.vlgmr.msra.gmra.mxu1 %v1713_v12 }
 0x170   : > { %v1135_v13 = vpop.f32.mrf.mxu0 }
 0x171   : > { %v1178_v15 = vpop.f32.mrf.mxu1 }
 0x172   : > { %v1179_v16 = vadd.f32 %v1178_v15, %v1135_v13  ;;  %v1137_v17 = vpop.f32.mrf.mxu0 }
 0x173   : > { %v1180_v19 = vpop.f32.mrf.mxu1 }
 0x174   : > { %v1187_v20 = vadd.f32 %v1179_v16, %v689_v14  ;;  %v1181_v21 = vadd.f32 %v1180_v19, %v1137_v17  ;;  %v1139_v22 = vpop.f32.mrf.mxu0 }
 0x175   : > { %v1182_v24 = vpop.f32.mrf.mxu1 }
 0x176   : > { %1191 = vst [vmem:[#allocation2 + $0x10] sm:$0xff] %v1187_v20  ;;  %v1188_v25 = vadd.f32 %v1181_v21, %v690_v18  ;;  %v1183_v26 = vadd.f32 %v1182_v24, %v1139_v22  ;;  %v1141_v27 = vpop.f32.mrf.mxu0 }
 0x177   : > { %v1184_v29 = vpop.f32.mrf.mxu1 }
 0x178   : > { %1192 = vst [vmem:[#allocation2] sm:$0xff] %v1188_v25  ;;  %v1189_v30 = vadd.f32 %v1183_v26, %v691_v23  ;;  %v1185_v31 = vadd.f32 %v1184_v29, %v1141_v27  ;;  %1198 = sbr.rel (%p1515_p6) target bundleno = 399 (0x18f), region = 132 }
 0x17a   : > { %1193 = vst [vmem:[#allocation2 + $0x18] sm:$0xff] %v1189_v30  ;;  %v1190_v32 = vadd.f32 %v1185_v31, %v692_v28 }
 0x17c   : > { %1194 = vst [vmem:[#allocation2 + $0x8] sm:$0xff] %v1190_v32 }
 0x17d   : > { %v1205_v33 = vlaneseq  ;;  %v1203_v35 = vld [vmem:[%s670_s29] sm:$0x3]  ;;  %v1199_v37 = vld [vmem:[#allocation2 + $0x10] sm:$0xff]  ;;  %v1236_v52 = vld [vmem:[%s2118_s18 + $0x8] sm:$0xff] }
 0x17e   : > { %v1219_v36 = vld [vmem:[%s675_s6] sm:$0x3]  ;;  %v1237_v53 = vld [vmem:[%s2118_s18 + $0x10] sm:$0xff]  ;;  %v1238_v54 = vld [vmem:[%s2118_s18 + $0x18] sm:$0xff] }
 0x17f   : > { %v1206_v34 = vshrl.u32 %v1205_v33, 7  ;;  %v1200_v40 = vld [vmem:[#allocation2] sm:$0xff] }
 0x180   : > { %v1235_v48 = vld [vmem:[%s2118_s18] sm:$0xff] }
 0x181   : > { %v1207_v38 = vsub.s32 0, %v1206_v34  ;;  %v1211_v39 = vsub.s32 1, %v1206_v34  ;;  %v1201_v41 = vld [vmem:[#allocation2 + $0x18] sm:$0xff] }
 0x183   : > { %v1202_v42 = vld [vmem:[#allocation2 + $0x8] sm:$0xff]  ;;  %v1208_v43 = vrot.slane %v1203_v35, %v1207_v38  ;;  %v1224_v44 = vrot.slane %v1219_v36, %v1207_v38  ;;  %v1212_v45 = vrot.slane %v1203_v35, %v1211_v39  ;;  %v1228_v46 = vrot.slane %v1219_v36, %v1211_v39 }
 0x185   : > { %v1215_v47 = vmul.f32 %v1208_v43, %v1199_v37  ;;  %v1216_v49 = vmul.f32 %v1212_v45, %v1200_v40  ;;  %v1217_v50 = vmul.f32 %v1208_v43, %v1201_v41  ;;  %v1218_v51 = vmul.f32 %v1212_v45, %v1202_v42 }
 0x187   : > { %v1231_v55 = vadd.f32 %v1224_v44, %v1215_v47  ;;  %v1232_v56 = vadd.f32 %v1228_v46, %v1216_v49  ;;  %v1233_v57 = vadd.f32 %v1224_v44, %v1217_v50  ;;  %v1234_v58 = vadd.f32 %v1228_v46, %v1218_v51 }
 0x189   : > { %v1239_v59 = vadd.f32 %v1235_v48, %v1231_v55  ;;  %v1240_v60 = vadd.f32 %v1236_v52, %v1232_v56  ;;  %v1241_v61 = vadd.f32 %v1237_v53, %v1233_v57  ;;  %v1242_v62 = vadd.f32 %v1238_v54, %v1234_v58 }
 0x18b   : > { %v1243_v63 = vmax.f32 %v1239_v59, 0.0  ;;  %v1244_v0 = vmax.f32 %v1240_v60, 0.0  ;;  %v1245_v1 = vmax.f32 %v1241_v61, 0.0  ;;  %v1246_v2 = vmax.f32 %v1242_v62, 0.0 }
 0x18d   : > { %1247 = vst [vmem:[%s2120_s23] sm:$0xff] %v1243_v63  ;;  %1248 = vst [vmem:[%s2120_s23 + $0x8] sm:$0xff] %v1244_v0 }
 0x18e   : > { %1249 = vst [vmem:[%s2120_s23 + $0x10] sm:$0xff] %v1245_v1  ;;  %1250 = vst [vmem:[%s2120_s23 + $0x18] sm:$0xff] %v1246_v2 }
 0x18f PF: > { %1257 = sbr.rel (!%p1939_p13) target bundleno = 407 (0x197), region = 136  ;;  %s1524_s24 = sshll.u32 (%p1939_p13), %s1790_s25, 4 }
 0x190   : > { %s1263_s11 = scalar_lea.vmem (%p1939_p13), %s2258_s5, %s1524_s24 }
 0x194   : > { %v1276_v3 = vld [vmem:[%s2120_s23] sm:$0xff]  ;;  %v1278_v4 = vld [vmem:[%s2120_s23 + $0x8] sm:$0xff] }
 0x195   : > { %v1280_v5 = vld [vmem:[%s2120_s23 + $0x10] sm:$0xff]  ;;  %v1282_v6 = vld [vmem:[%s2120_s23 + $0x18] sm:$0xff]  ;;  %1277 = vst [vmem:[%s1263_s11] sm:$0xff] %v1276_v3  ;;  %1279 = vst [vmem:[%s1263_s11 + $0x8] sm:$0xff] %v1278_v4 }
 0x196   : > { %1281 = vst [vmem:[%s1263_s11 + $0x20] sm:$0xff] %v1280_v5  ;;  %1283 = vst [vmem:[%s1263_s11 + $0x28] sm:$0xff] %v1282_v6 }
 0x197 PF: > { %s15_s28 = sadd.s32 1, %s1802_s28   ;;  %s2272_s22 = sld [smem:[#allocation7_spill]] }
 0x198   : > { %p12_p7 = scmp.ge.s32.totalorder %s15_s28, 20   ;;  %s2273_s23 = sld [smem:[#allocation10_spill]] }
 0x199   : > { %s2274_s8 = sld [smem:[#allocation8_spill]]  ;;  %s2276_s18 = smov %s1766_s19 }
 0x19a   : > { %s2275_s14 = sld [smem:[#allocation9_spill]]  ;;  %s2277_s19 = smov %s1931_s17 }
 0x19b   : > { %s2278_s20 = smov %s1774_s21  ;;  %s2279_s21 = smov %s1928_s16 }
 0x19c   : > { %s2280_s24 = smov %s1794_s26  ;;  %s2281_s25 = smov %s1798_s27 }
 0x19d   :  { %14 = sbr.rel (!%p12_p7) target bundleno = 8 (0x8), region = 212 }
 0x19f   : > { %s2282_s26 = smov %s2274_s8 }
 0x1a0   : > { %s2283_s27 = smov %s2275_s14 }

// kernel: resnet18_forward.43
= control target key start
LH: loop header
LB: loop body
LE: loop exit
PB: predicated region body
PF: predicated region fallthrough
CT: control target
= control target key end

     0   :  { %s2111_s0 = inlined_call_operand.vmem [shape: bf16[16,4608], index: 0, kind: input, shape index: {}]   ;;  %s2112_s1 = inlined_call_operand.vmem [shape: bf16[4608,512], index: 1, kind: input, shape index: {}]   ;;  %s2113_s2 = inlined_call_operand.vmem [shape: f32[1,512], index: 2, kind: input, shape index: {}]   ;;  %s2114_s3 = inlined_call_operand.vmem [shape: f32[1,512], index: 3, kind: input, shape index: {}]   ;;  %s2115_s4 = inlined_call_operand.vmem [shape: f32[16,512], index: 4, kind: output, shape index: {}]  }
   0x1   :  { %2118 = sst [smem:[#allocation8_spill]] %s2111_s0 }
   0x2   :  { %2119 = sst [smem:[#allocation9_spill]] %s2112_s1 }
   0x3   :  { %s1716_s15 = smov 0   ;;  %s1718_s16 = smov 0  }
   0x4   :  { %s1720_s17 = smov 0   ;;  %s1722_s18 = smov 0  }
   0x5   :  { %s1724_s19 = smov 0   ;;  %s1726_s20 = smov 0  }
   0x6   :  { %s1728_s21 = smov 0   ;;  %s1730_s22 = smov 0  }
   0x7   :  { %s1732_s23 = smov 0   ;;  %s1734_s24 = smov 0  }
   0x8   :  { %s1736_s25 = smov 0  }
   0x9 LB: > { %s1315_s26 = sadd.s32 4294967295, %s1688_s25   ;;  %s26_s27 = sadd.s32 1, %s1680_s23  ;;  %s1688_s25 = sphi %s1736_s25, %s14_s25   ;;  %s1684_s24 = sphi %s1734_s24, %s2138_s24   ;;  %s1680_s23 = sphi %s1732_s23, %s2137_s23   ;;  %s1676_s22 = sphi %s1730_s22, %s2136_s22   ;;  %s1672_s21 = sphi %s1728_s21, %s2135_s21   ;;  %s1668_s20 = sphi %s1726_s20, %s2134_s20   ;;  %s1664_s19 = sphi %s1724_s19, %s2133_s19   ;;  %s1660_s18 = sphi %s1722_s18, %s2132_s18   ;;  %s1656_s17 = sphi %s1720_s17, %s2131_s17   ;;  %s1652_s16 = sphi %s1718_s16, %s2130_s16   ;;  %s1648_s15 = sphi %s1716_s15, %s2129_s15  }
   0xa   : > { %p27_p0 = scmp.ge.s32.totalorder %s26_s27, 9  ;;  %s29_s28 = sadd.s32 1, %s1684_s24 }
   0xb   : > { %s42_s29 = sadd.s32 1, %s1668_s20  ;;  %p49_p1 = scmp.ne.s32.totalorder %s1668_s20, %s1664_s19 }
   0xc   : > { %s2140_s27 = smov (%p27_p0, %s26_s27), 0  ;;  %s2142_s28 = smov (!%p27_p0, %s29_s28), %s1684_s24 }
   0xd   : > { %2120 = sst [smem:[#allocation6_spill]] %s2140_s27  ;;  %s38_s30 = ssub.s32 %s1680_s23, %s2140_s27 }
   0xe   : > { %p50_p2 = scmp.eq.s32.totalorder %s1688_s25, 0  ;;  %p31_p3 = scmp.ge.s32.totalorder %s2142_s28, 2 }
   0xf   : > { %p40_p4 = scmp.eq.s32.totalorder %s38_s30, 0  ;;  %s70_s6 = sadd.s32 1, %s1660_s18 }
  0x10   : > { %p1783_p5 = por %p50_p2, %p49_p1  ;;  %s2144_s28 = smov (%p31_p3, %s2142_s28), 0 }
  0x11   : > { %2122 = sst [smem:[#allocation7_spill]] %s2144_s28  ;;  %s66_s8 = ssub.s32 %s1684_s24, %s2144_s28 }
  0x12   : > { %s1791_s7 = scalar_select %p40_p4, %s1668_s20, %s42_s29  }
  0x13   : > { %p77_p6 = scmp.ne.s32.totalorder %s1660_s18, %s1656_s17  ;;  %s67_s9 = sor.u32 %s66_s8, %s38_s30 }
  0x14   : > { %p148_p7 = scmp.eq.s32.totalorder %s66_s8, 0  ;;  %p68_p8 = scmp.eq.s32.totalorder %s67_s9, 0 }
  0x15   : > { %p1797_p9 = por %p77_p6, %p50_p2  ;;  %s150_s11 = sadd.s32 1, %s1652_s16 }
  0x16   : > { %p160_p10 = scmp.ne.s32.totalorder %s1652_s16, %s1648_s15  ;;  %p161_p11 = scmp.eq.s32.totalorder %s1315_s26, 17 }
  0x17   : > { %s1805_s12 = scalar_select %p68_p8, %s1660_s18, %s70_s6  }
  0x18   : > { %s1808_s13 = scalar_select %p148_p7, %s1652_s16, %s150_s11  }
  0x19   : > { %p1810_p12 = por %p161_p11, %p160_p10  ;;  %p1318_p13 = scmp.ge.s32.totalorder %s1688_s25, 18 }
  0x1b   : > { %183 = sbr.rel (%p1318_p13) target bundleno = 86 (0x56), region = 16 }
  0x20   : > { %186 = sbr.rel (!%p1783_p5) target bundleno = 44 (0x2c), region = 20  ;;  %s188_s29 = sand.u32 (%p1783_p5), 1, %s1668_s20  }
  0x21   : > { %s1408_s30 = sshll.u32 (%p1783_p5), %s1680_s23, 4  ;;  %s1319_s8 = sshll.u32 (%p1783_p5), %s188_s29, 5 }
  0x22   : > { %s2125_s0 = sld [smem:[#allocation8_spill]] (%p1783_p5)  ;;  %s190_s26 = scalar_lea.vmem (%p1783_p5), [#allocation3], %s1319_s8 }
  0x28   : > { %s196_s11 = scalar_lea.vmem %s2125_s0, %s1408_s30 }
  0x29   : > { %v209_v0 = vld [vmem:[%s196_s11] sm:$0xff]  ;;  %v211_v1 = vld [vmem:[%s196_s11 + $0x8] sm:$0xff]  ;;  %v213_v2 = vld [vmem:[%s196_s11 + $0x90] sm:$0xff] }
  0x2a   : > { %210 = vst [vmem:[%s190_s26] sm:$0xff] %v209_v0  ;;  %212 = vst [vmem:[%s190_s26 + $0x8] sm:$0xff] %v211_v1  ;;  %v215_v3 = vld [vmem:[%s196_s11 + $0x98] sm:$0xff] }
  0x2b   : > { %214 = vst [vmem:[%s190_s26 + $0x10] sm:$0xff] %v213_v2  ;;  %216 = vst [vmem:[%s190_s26 + $0x18] sm:$0xff] %v215_v3 }
  0x2c PF: > { %222 = sbr.rel (!%p1797_p9) target bundleno = 86 (0x56), region = 43  ;;  %s224_s5 = sand.u32 (%p1797_p9), 1, %s1660_s18  }
  0x2d   : > { %s1324_s29 = sshll.u32 (%p1797_p9), %s1684_s24, 1  ;;  %s1322_s6 = sshll.u32 (%p1797_p9), %s224_s5, 9 }
  0x2e   : > { %s1409_s30 = sshll.u32 (%p1797_p9), %s1680_s23, 8  ;;  %s2126_s1 = sld [smem:[#allocation9_spill]] (%p1797_p9) }
  0x2f   : > { %s230_s9 = sadd.s32 (%p1797_p9), %s1409_s30, %s1324_s29  ;;  %s1835_s10 = scalar_lea.vmem (%p1797_p9), [#allocation4], %s1322_s6 }
  0x30   : > { %s1326_s0 = sshll.u32 (%p1797_p9), %s230_s9, 2 }
  0x34   : > { %s1830_s27 = scalar_lea.vmem %s2126_s1, %s1326_s0 }
  0x35   : > { %v387_v4 = vld [vmem:[%s1830_s27] sm:$0xff]  ;;  %v389_v5 = vld [vmem:[%s1830_s27 + $0x10] sm:$0xff] }
  0x36   : > { %v391_v6 = vld [vmem:[%s1830_s27 + $0x20] sm:$0xff]  ;;  %388 = vst [vmem:[%s1835_s10] sm:$0xff] %v387_v4  ;;  %390 = vst [vmem:[%s1835_s10 + $0x8] sm:$0xff] %v389_v5  ;;  %v393_v7 = vld [vmem:[%s1830_s27 + $0x30] sm:$0xff] }
  0x37   : > { %392 = vst [vmem:[%s1835_s10 + $0x10] sm:$0xff] %v391_v6  ;;  %v395_v8 = vld [vmem:[%s1830_s27 + $0x40] sm:$0xff]  ;;  %v397_v9 = vld [vmem:[%s1830_s27 + $0x50] sm:$0xff]  ;;  %394 = vst [vmem:[%s1835_s10 + $0x18] sm:$0xff] %v393_v7 }
  0x38   : > { %396 = vst [vmem:[%s1835_s10 + $0x20] sm:$0xff] %v395_v8  ;;  %398 = vst [vmem:[%s1835_s10 + $0x28] sm:$0xff] %v397_v9  ;;  %v399_v10 = vld [vmem:[%s1830_s27 + $0x60] sm:$0xff]  ;;  %v401_v11 = vld [vmem:[%s1830_s27 + $0x70] sm:$0xff] }
  0x39   : > { %v403_v12 = vld [vmem:[%s1830_s27 + $0x80] sm:$0xff]  ;;  %400 = vst [vmem:[%s1835_s10 + $0x30] sm:$0xff] %v399_v10  ;;  %402 = vst [vmem:[%s1835_s10 + $0x38] sm:$0xff] %v401_v11  ;;  %v405_v13 = vld [vmem:[%s1830_s27 + $0x90] sm:$0xff] }
  0x3a   : > { %404 = vst [vmem:[%s1835_s10 + $0x40] sm:$0xff] %v403_v12  ;;  %v407_v14 = vld [vmem:[%s1830_s27 + $0xa0] sm:$0xff]  ;;  %v409_v15 = vld [vmem:[%s1830_s27 + $0xb0] sm:$0xff]  ;;  %406 = vst [vmem:[%s1835_s10 + $0x48] sm:$0xff] %v405_v13 }
  0x3b   : > { %408 = vst [vmem:[%s1835_s10 + $0x50] sm:$0xff] %v407_v14  ;;  %410 = vst [vmem:[%s1835_s10 + $0x58] sm:$0xff] %v409_v15  ;;  %v411_v16 = vld [vmem:[%s1830_s27 + $0xc0] sm:$0xff]  ;;  %v413_v17 = vld [vmem:[%s1830_s27 + $0xd0] sm:$0xff] }
  0x3c   : > { %v415_v18 = vld [vmem:[%s1830_s27 + $0xe0] sm:$0xff]  ;;  %412 = vst [vmem:[%s1835_s10 + $0x60] sm:$0xff] %v411_v16  ;;  %414 = vst [vmem:[%s1835_s10 + $0x68] sm:$0xff] %v413_v17  ;;  %v417_v19 = vld [vmem:[%s1830_s27 + $0xf0] sm:$0xff] }
  0x3d   : > { %416 = vst [vmem:[%s1835_s10 + $0x70] sm:$0xff] %v415_v18  ;;  %v419_v20 = vld [vmem:[%s1830_s27 + $0x100] sm:$0xff]  ;;  %v421_v21 = vld [vmem:[%s1830_s27 + $0x110] sm:$0xff]  ;;  %418 = vst [vmem:[%s1835_s10 + $0x78] sm:$0xff] %v417_v19 }
  0x3e   : > { %420 = vst [vmem:[%s1835_s10 + $0x80] sm:$0xff] %v419_v20  ;;  %422 = vst [vmem:[%s1835_s10 + $0x88] sm:$0xff] %v421_v21  ;;  %v423_v22 = vld [vmem:[%s1830_s27 + $0x120] sm:$0xff]  ;;  %v425_v23 = vld [vmem:[%s1830_s27 + $0x130] sm:$0xff] }
  0x3f   : > { %v427_v24 = vld [vmem:[%s1830_s27 + $0x140] sm:$0xff]  ;;  %424 = vst [vmem:[%s1835_s10 + $0x90] sm:$0xff] %v423_v22  ;;  %426 = vst [vmem:[%s1835_s10 + $0x98] sm:$0xff] %v425_v23  ;;  %v429_v25 = vld [vmem:[%s1830_s27 + $0x150] sm:$0xff] }
  0x40   : > { %428 = vst [vmem:[%s1835_s10 + $0xa0] sm:$0xff] %v427_v24  ;;  %v431_v26 = vld [vmem:[%s1830_s27 + $0x160] sm:$0xff]  ;;  %v433_v27 = vld [vmem:[%s1830_s27 + $0x170] sm:$0xff]  ;;  %430 = vst [vmem:[%s1835_s10 + $0xa8] sm:$0xff] %v429_v25 }
  0x41   : > { %432 = vst [vmem:[%s1835_s10 + $0xb0] sm:$0xff] %v431_v26  ;;  %434 = vst [vmem:[%s1835_s10 + $0xb8] sm:$0xff] %v433_v27  ;;  %v435_v28 = vld [vmem:[%s1830_s27 + $0x180] sm:$0xff]  ;;  %v437_v29 = vld [vmem:[%s1830_s27 + $0x190] sm:$0xff] }
  0x42   : > { %v439_v30 = vld [vmem:[%s1830_s27 + $0x1a0] sm:$0xff]  ;;  %436 = vst [vmem:[%s1835_s10 + $0xc0] sm:$0xff] %v435_v28  ;;  %438 = vst [vmem:[%s1835_s10 + $0xc8] sm:$0xff] %v437_v29  ;;  %v441_v31 = vld [vmem:[%s1830_s27 + $0x1b0] sm:$0xff] }
  0x43   : > { %440 = vst [vmem:[%s1835_s10 + $0xd0] sm:$0xff] %v439_v30  ;;  %v443_v32 = vld [vmem:[%s1830_s27 + $0x1c0] sm:$0xff]  ;;  %v445_v33 = vld [vmem:[%s1830_s27 + $0x1d0] sm:$0xff]  ;;  %442 = vst [vmem:[%s1835_s10 + $0xd8] sm:$0xff] %v441_v31 }
  0x44   : > { %444 = vst [vmem:[%s1835_s10 + $0xe0] sm:$0xff] %v443_v32  ;;  %446 = vst [vmem:[%s1835_s10 + $0xe8] sm:$0xff] %v445_v33  ;;  %v447_v34 = vld [vmem:[%s1830_s27 + $0x1e0] sm:$0xff]  ;;  %v449_v35 = vld [vmem:[%s1830_s27 + $0x1f0] sm:$0xff] }
  0x45   : > { %v451_v36 = vld [vmem:[%s1830_s27 + $0x200] sm:$0xff]  ;;  %448 = vst [vmem:[%s1835_s10 + $0xf0] sm:$0xff] %v447_v34  ;;  %450 = vst [vmem:[%s1835_s10 + $0xf8] sm:$0xff] %v449_v35  ;;  %v453_v37 = vld [vmem:[%s1830_s27 + $0x210] sm:$0xff] }
  0x46   : > { %452 = vst [vmem:[%s1835_s10 + $0x100] sm:$0xff] %v451_v36  ;;  %v455_v38 = vld [vmem:[%s1830_s27 + $0x220] sm:$0xff]  ;;  %v457_v39 = vld [vmem:[%s1830_s27 + $0x230] sm:$0xff]  ;;  %454 = vst [vmem:[%s1835_s10 + $0x108] sm:$0xff] %v453_v37 }
  0x47   : > { %456 = vst [vmem:[%s1835_s10 + $0x110] sm:$0xff] %v455_v38  ;;  %458 = vst [vmem:[%s1835_s10 + $0x118] sm:$0xff] %v457_v39  ;;  %v459_v40 = vld [vmem:[%s1830_s27 + $0x240] sm:$0xff]  ;;  %v461_v41 = vld [vmem:[%s1830_s27 + $0x250] sm:$0xff] }
  0x48   : > { %v463_v42 = vld [vmem:[%s1830_s27 + $0x260] sm:$0xff]  ;;  %460 = vst [vmem:[%s1835_s10 + $0x120] sm:$0xff] %v459_v40  ;;  %462 = vst [vmem:[%s1835_s10 + $0x128] sm:$0xff] %v461_v41  ;;  %v465_v43 = vld [vmem:[%s1830_s27 + $0x270] sm:$0xff] }
  0x49   : > { %464 = vst [vmem:[%s1835_s10 + $0x130] sm:$0xff] %v463_v42  ;;  %v467_v44 = vld [vmem:[%s1830_s27 + $0x280] sm:$0xff]  ;;  %v469_v45 = vld [vmem:[%s1830_s27 + $0x290] sm:$0xff]  ;;  %466 = vst [vmem:[%s1835_s10 + $0x138] sm:$0xff] %v465_v43 }
  0x4a   : > { %468 = vst [vmem:[%s1835_s10 + $0x140] sm:$0xff] %v467_v44  ;;  %470 = vst [vmem:[%s1835_s10 + $0x148] sm:$0xff] %v469_v45  ;;  %v471_v46 = vld [vmem:[%s1830_s27 + $0x2a0] sm:$0xff]  ;;  %v473_v47 = vld [vmem:[%s1830_s27 + $0x2b0] sm:$0xff] }
  0x4b   : > { %v475_v48 = vld [vmem:[%s1830_s27 + $0x2c0] sm:$0xff]  ;;  %472 = vst [vmem:[%s1835_s10 + $0x150] sm:$0xff] %v471_v46  ;;  %474 = vst [vmem:[%s1835_s10 + $0x158] sm:$0xff] %v473_v47  ;;  %v477_v49 = vld [vmem:[%s1830_s27 + $0x2d0] sm:$0xff] }
  0x4c   : > { %476 = vst [vmem:[%s1835_s10 + $0x160] sm:$0xff] %v475_v48  ;;  %v479_v50 = vld [vmem:[%s1830_s27 + $0x2e0] sm:$0xff]  ;;  %v481_v51 = vld [vmem:[%s1830_s27 + $0x2f0] sm:$0xff]  ;;  %478 = vst [vmem:[%s1835_s10 + $0x168] sm:$0xff] %v477_v49 }
  0x4d   : > { %480 = vst [vmem:[%s1835_s10 + $0x170] sm:$0xff] %v479_v50  ;;  %482 = vst [vmem:[%s1835_s10 + $0x178] sm:$0xff] %v481_v51  ;;  %v483_v52 = vld [vmem:[%s1830_s27 + $0x300] sm:$0xff]  ;;  %v485_v53 = vld [vmem:[%s1830_s27 + $0x310] sm:$0xff] }
  0x4e   : > { %v487_v54 = vld [vmem:[%s1830_s27 + $0x320] sm:$0xff]  ;;  %484 = vst [vmem:[%s1835_s10 + $0x180] sm:$0xff] %v483_v52  ;;  %486 = vst [vmem:[%s1835_s10 + $0x188] sm:$0xff] %v485_v53  ;;  %v489_v55 = vld [vmem:[%s1830_s27 + $0x330] sm:$0xff] }
  0x4f   : > { %488 = vst [vmem:[%s1835_s10 + $0x190] sm:$0xff] %v487_v54  ;;  %v491_v56 = vld [vmem:[%s1830_s27 + $0x340] sm:$0xff]  ;;  %v493_v57 = vld [vmem:[%s1830_s27 + $0x350] sm:$0xff]  ;;  %490 = vst [vmem:[%s1835_s10 + $0x198] sm:$0xff] %v489_v55 }
  0x50   : > { %492 = vst [vmem:[%s1835_s10 + $0x1a0] sm:$0xff] %v491_v56  ;;  %494 = vst [vmem:[%s1835_s10 + $0x1a8] sm:$0xff] %v493_v57  ;;  %v495_v58 = vld [vmem:[%s1830_s27 + $0x360] sm:$0xff]  ;;  %v497_v59 = vld [vmem:[%s1830_s27 + $0x370] sm:$0xff] }
  0x51   : > { %v499_v60 = vld [vmem:[%s1830_s27 + $0x380] sm:$0xff]  ;;  %496 = vst [vmem:[%s1835_s10 + $0x1b0] sm:$0xff] %v495_v58  ;;  %498 = vst [vmem:[%s1835_s10 + $0x1b8] sm:$0xff] %v497_v59  ;;  %v501_v61 = vld [vmem:[%s1830_s27 + $0x390] sm:$0xff] }
  0x52   : > { %500 = vst [vmem:[%s1835_s10 + $0x1c0] sm:$0xff] %v499_v60  ;;  %v503_v62 = vld [vmem:[%s1830_s27 + $0x3a0] sm:$0xff]  ;;  %v505_v63 = vld [vmem:[%s1830_s27 + $0x3b0] sm:$0xff]  ;;  %502 = vst [vmem:[%s1835_s10 + $0x1c8] sm:$0xff] %v501_v61 }
  0x53   : > { %504 = vst [vmem:[%s1835_s10 + $0x1d0] sm:$0xff] %v503_v62  ;;  %506 = vst [vmem:[%s1835_s10 + $0x1d8] sm:$0xff] %v505_v63  ;;  %v507_v0 = vld [vmem:[%s1830_s27 + $0x3c0] sm:$0xff]  ;;  %v509_v1 = vld [vmem:[%s1830_s27 + $0x3d0] sm:$0xff] }
  0x54   : > { %v511_v2 = vld [vmem:[%s1830_s27 + $0x3e0] sm:$0xff]  ;;  %508 = vst [vmem:[%s1835_s10 + $0x1e0] sm:$0xff] %v507_v0  ;;  %510 = vst [vmem:[%s1835_s10 + $0x1e8] sm:$0xff] %v509_v1  ;;  %v513_v3 = vld [vmem:[%s1830_s27 + $0x3f0] sm:$0xff] }
  0x55   : > { %512 = vst [vmem:[%s1835_s10 + $0x1f0] sm:$0xff] %v511_v2  ;;  %514 = vst [vmem:[%s1835_s10 + $0x1f8] sm:$0xff] %v513_v3 }
  0x56 PF: > { %p1327_p0 = scmp.ge.s32.totalorder %s1688_s25, 1  ;;  %p535_p1 = scmp.lt.s32.totalorder %s1688_s25, 19 }
  0x58   : > { %p536_p2 = pnand %p1327_p0, %p535_p1 }
  0x59   : > { %s542_s0 = sand.u32 (!%p536_p2), 1, %s1664_s19   ;;  %s549_s28 = sand.u32 (!%p536_p2), 1, %s1656_s17  }
  0x5a   : > { %539 = sbr.rel (%p536_p2) target bundleno = 399 (0x18f), region = 89  ;;  %s1328_s11 = sshll.u32 (!%p536_p2), %s542_s0, 5 }
  0x5b   : > { %s1329_s26 = sshll.u32 (!%p536_p2), %s549_s28, 9  ;;  %s582_s5 = sand.u32 (!%p536_p2), 1, %s1648_s15  }
  0x5c   : > { %s1331_s29 = sshll.u32 (!%p536_p2), %s1676_s22, 1  ;;  %s1330_s27 = sshll.u32 (!%p536_p2), %s582_s5, 5 }
  0x5d   : > { %p590_p3 = scmp.lt.s32.totalorder (!%p536_p2), %s1331_s29, 3  ;;  %s1978_s19 = scalar_lea.vmem (!%p536_p2), [#allocation3], %s1328_s11 }
  0x5e   : > { %s1980_s17 = scalar_lea.vmem (!%p536_p2), [#allocation4], %s1329_s26  ;;  %s1982_s15 = scalar_lea.vmem (!%p536_p2), [#allocation5], %s1330_s27 }
  0x5f   : > { %s2146_s29 = smov (!%p590_p3, %s1331_s29), 3  ;;  %p1333_p4 = scmp.ne.s32.totalorder %s1672_s21, 0 }
  0x60   : > { %s592_s9 = scalar_lea.vmem %s2113_s2, %s2146_s29  ;;  %s597_s1 = scalar_lea.vmem %s2114_s3, %s2146_s29 }
  0x61   : > { %604 = sbr.rel (%p1333_p4) target bundleno = 105 (0x69), region = 101 }
  0x66   : > { %v1690_v4 = vmov 0.0  }
  0x67   : > { %605 = vst [vmem:[#allocation2 + $0x10] sm:$0xff] %v1690_v4  ;;  %606 = vst [vmem:[#allocation2] sm:$0xff] %v1690_v4 }
  0x68   : > { %607 = vst [vmem:[#allocation2 + $0x18] sm:$0xff] %v1690_v4  ;;  %608 = vst [vmem:[#allocation2 + $0x8] sm:$0xff] %v1690_v4 }
  0x69 PF: > { %v1500_v5 = vld [vmem:[%s1980_s17 + $0x74] ss:$8 sps:$4 sm:$0xff]   ;;  %v1504_v7 = vld [vmem:[%s1980_s17 + $0x70] ss:$8 sps:$4 sm:$0xff]   ;;  %v1506_v9 = vld [vmem:[%s1980_s17 + $0x64] ss:$8 sps:$4 sm:$0xff]  }
  0x6a   : > { %v1502_v6 = vld [vmem:[%s1980_s17 + $0x174] ss:$8 sps:$4 sm:$0xff]   ;;  %1021 = vmatprep.subr.bf16.mxu0 %v1500_v5  ;;  %v1505_v8 = vld [vmem:[%s1980_s17 + $0x170] ss:$8 sps:$4 sm:$0xff]   ;;  %v1508_v10 = vld [vmem:[%s1980_s17 + $0x164] ss:$8 sps:$4 sm:$0xff]  }
  0x6b   : > { %1064 = vmatprep.subr.bf16.mxu1 %v1502_v6  ;;  %1022 = vmatpush1.bf16.msra.mxu0 %v1504_v7  ;;  %v1510_v11 = vld [vmem:[%s1980_s17 + $0x60] ss:$8 sps:$4 sm:$0xff]   ;;  %v1512_v13 = vld [vmem:[%s1980_s17 + $0x54] ss:$8 sps:$4 sm:$0xff]   ;;  %v1516_v15 = vld [vmem:[%s1980_s17 + $0x50] ss:$8 sps:$4 sm:$0xff]  }
  0x6c   : > { %1065 = vmatpush1.bf16.msra.mxu1 %v1505_v8  ;;  %1023 = vmatprep.subr.bf16.mxu0 %v1506_v9  ;;  %v1511_v12 = vld [vmem:[%s1980_s17 + $0x160] ss:$8 sps:$4 sm:$0xff]   ;;  %v1514_v14 = vld [vmem:[%s1980_s17 + $0x154] ss:$8 sps:$4 sm:$0xff]   ;;  %v1517_v16 = vld [vmem:[%s1980_s17 + $0x150] ss:$8 sps:$4 sm:$0xff]  }
  0x6d   : > { %1066 = vmatprep.subr.bf16.mxu1 %v1508_v10  ;;  %v1518_v17 = vld [vmem:[%s1980_s17 + $0x44] ss:$8 sps:$4 sm:$0xff]   ;;  %v1522_v19 = vld [vmem:[%s1980_s17 + $0x40] ss:$8 sps:$4 sm:$0xff]   ;;  %v1524_v21 = vld [vmem:[%s1980_s17 + $0x34] ss:$8 sps:$4 sm:$0xff]  }
  0x6e   : > { %v1520_v18 = vld [vmem:[%s1980_s17 + $0x144] ss:$8 sps:$4 sm:$0xff]   ;;  %v1523_v20 = vld [vmem:[%s1980_s17 + $0x140] ss:$8 sps:$4 sm:$0xff]   ;;  %v1526_v22 = vld [vmem:[%s1980_s17 + $0x134] ss:$8 sps:$4 sm:$0xff]  }
  0x6f   : > { %1024 = vmatpush1.bf16.msra.mxu0 %v1510_v11  ;;  %v1528_v23 = vld [vmem:[%s1980_s17 + $0x30] ss:$8 sps:$4 sm:$0xff]   ;;  %v1530_v25 = vld [vmem:[%s1980_s17 + $0x24] ss:$8 sps:$4 sm:$0xff]   ;;  %v1534_v27 = vld [vmem:[%s1980_s17 + $0x20] ss:$8 sps:$4 sm:$0xff]  }
  0x70   : > { %1067 = vmatpush1.bf16.msra.mxu1 %v1511_v12  ;;  %1025 = vmatprep.subr.bf16.mxu0 %v1512_v13  ;;  %v1529_v24 = vld [vmem:[%s1980_s17 + $0x130] ss:$8 sps:$4 sm:$0xff]   ;;  %v1532_v26 = vld [vmem:[%s1980_s17 + $0x124] ss:$8 sps:$4 sm:$0xff]   ;;  %v1535_v28 = vld [vmem:[%s1980_s17 + $0x120] ss:$8 sps:$4 sm:$0xff]  }
  0x71   : > { %1068 = vmatprep.subr.bf16.mxu1 %v1514_v14  ;;  %v1536_v29 = vld [vmem:[%s1980_s17 + $0x14] ss:$8 sps:$4 sm:$0xff]   ;;  %v1540_v31 = vld [vmem:[%s1980_s17 + $0x10] ss:$8 sps:$4 sm:$0xff]   ;;  %v1542_v33 = vld [vmem:[%s1980_s17 + $0x4] ss:$8 sps:$4 sm:$0xff]  }
  0x72   : > { %v1538_v30 = vld [vmem:[%s1980_s17 + $0x114] ss:$8 sps:$4 sm:$0xff]   ;;  %v1541_v32 = vld [vmem:[%s1980_s17 + $0x110] ss:$8 sps:$4 sm:$0xff]   ;;  %v1544_v34 = vld [vmem:[%s1980_s17 + $0x104] ss:$8 sps:$4 sm:$0xff]  }
  0x73   : > { %1026 = vmatpush1.bf16.msra.mxu0 %v1516_v15  ;;  %v1546_v35 = vld [vmem:[%s1980_s17] ss:$8 sps:$4 sm:$0xff]   ;;  %v1548_v37 = vld [vmem:[%s1980_s17 + $0xf4] ss:$8 sps:$4 sm:$0xff]   ;;  %v1552_v39 = vld [vmem:[%s1980_s17 + $0xf0] ss:$8 sps:$4 sm:$0xff]  }
  0x74   : > { %1069 = vmatpush1.bf16.msra.mxu1 %v1517_v16  ;;  %1027 = vmatprep.subr.bf16.mxu0 %v1518_v17  ;;  %v1547_v36 = vld [vmem:[%s1980_s17 + $0x100] ss:$8 sps:$4 sm:$0xff]   ;;  %v1550_v38 = vld [vmem:[%s1980_s17 + $0x1f4] ss:$8 sps:$4 sm:$0xff]   ;;  %v1553_v40 = vld [vmem:[%s1980_s17 + $0x1f0] ss:$8 sps:$4 sm:$0xff]  }
  0x75   : > { %1070 = vmatprep.subr.bf16.mxu1 %v1520_v18  ;;  %v1554_v41 = vld [vmem:[%s1980_s17 + $0xe4] ss:$8 sps:$4 sm:$0xff]   ;;  %v1558_v43 = vld [vmem:[%s1980_s17 + $0xe0] ss:$8 sps:$4 sm:$0xff]   ;;  %v1560_v45 = vld [vmem:[%s1980_s17 + $0xd4] ss:$8 sps:$4 sm:$0xff]  }
  0x76   : > { %v1556_v42 = vld [vmem:[%s1980_s17 + $0x1e4] ss:$8 sps:$4 sm:$0xff]   ;;  %v1559_v44 = vld [vmem:[%s1980_s17 + $0x1e0] ss:$8 sps:$4 sm:$0xff]   ;;  %v1562_v46 = vld [vmem:[%s1980_s17 + $0x1d4] ss:$8 sps:$4 sm:$0xff]  }
  0x77   : > { %1028 = vmatpush1.bf16.msra.mxu0 %v1522_v19  ;;  %v1564_v47 = vld [vmem:[%s1980_s17 + $0xd0] ss:$8 sps:$4 sm:$0xff]   ;;  %v1566_v49 = vld [vmem:[%s1980_s17 + $0xc4] ss:$8 sps:$4 sm:$0xff]   ;;  %v1570_v51 = vld [vmem:[%s1980_s17 + $0xc0] ss:$8 sps:$4 sm:$0xff]  }
  0x78   : > { %1071 = vmatpush1.bf16.msra.mxu1 %v1523_v20  ;;  %1029 = vmatprep.subr.bf16.mxu0 %v1524_v21  ;;  %v1565_v48 = vld [vmem:[%s1980_s17 + $0x1d0] ss:$8 sps:$4 sm:$0xff]   ;;  %v1568_v50 = vld [vmem:[%s1980_s17 + $0x1c4] ss:$8 sps:$4 sm:$0xff]   ;;  %v1571_v53 = vld [vmem:[%s1980_s17 + $0x1c0] ss:$8 sps:$4 sm:$0xff]  }
  0x79   : > { %1072 = vmatprep.subr.bf16.mxu1 %v1526_v22  ;;  %v1598_v52 = vld [vmem:[%s1978_s19 + $0x4] ss:$16 sps:$4 sm:$0xff]   ;;  %v1601_v56 = vld [vmem:[%s1978_s19 + $0xc] ss:$16 sps:$4 sm:$0xff]   ;;  %v1576_v57 = vld [vmem:[%s1980_s17 + $0xb0] ss:$8 sps:$4 sm:$0xff]  }
  0x7a   : > { %v1572_v54 = vld [vmem:[%s1980_s17 + $0xb4] ss:$8 sps:$4 sm:$0xff]   ;;  %1053 = vmatprep.mubr.bf16.mxu0 %v1598_v52  ;;  %1096 = vmatprep.mubr.bf16.mxu1 %v1601_v56  ;;  %v1577_v58 = vld [vmem:[%s1980_s17 + $0x1b0] ss:$8 sps:$4 sm:$0xff]   ;;  %v1578_v59 = vld [vmem:[%s1980_s17 + $0xa4] ss:$8 sps:$4 sm:$0xff]  }
  0x7b   : > { %1030 = vmatpush1.bf16.msra.mxu0 %v1528_v23  ;;  %v1574_v55 = vld [vmem:[%s1980_s17 + $0x1b4] ss:$8 sps:$4 sm:$0xff]   ;;  %v1580_v60 = vld [vmem:[%s1980_s17 + $0x1a4] ss:$8 sps:$4 sm:$0xff]   ;;  %v1582_v61 = vld [vmem:[%s1980_s17 + $0xa0] ss:$8 sps:$4 sm:$0xff]  }
  0x7c   : > { %1073 = vmatpush1.bf16.msra.mxu1 %v1529_v24  ;;  %1031 = vmatprep.subr.bf16.mxu0 %v1530_v25  ;;  %v1583_v62 = vld [vmem:[%s1980_s17 + $0x1a0] ss:$8 sps:$4 sm:$0xff]   ;;  %v1584_v63 = vld [vmem:[%s1980_s17 + $0x94] ss:$8 sps:$4 sm:$0xff]   ;;  %v1588_v1 = vld [vmem:[%s1980_s17 + $0x90] ss:$8 sps:$4 sm:$0xff]  }
  0x7d   : > { %1074 = vmatprep.subr.bf16.mxu1 %v1532_v26  ;;  %v1586_v0 = vld [vmem:[%s1980_s17 + $0x194] ss:$8 sps:$4 sm:$0xff]   ;;  %v1589_v2 = vld [vmem:[%s1980_s17 + $0x190] ss:$8 sps:$4 sm:$0xff]   ;;  %v1590_v3 = vld [vmem:[%s1980_s17 + $0x84] ss:$8 sps:$4 sm:$0xff]  }
  0x7e   : > { %v1592_v4 = vld [vmem:[%s1980_s17 + $0x184] ss:$8 sps:$4 sm:$0xff]   ;;  %v1594_v5 = vld [vmem:[%s1980_s17 + $0x80] ss:$8 sps:$4 sm:$0xff]   ;;  %v609_v10 = vld [vmem:[#allocation2 + $0x10] sm:$0xff]  ;;  %p1402_p5 = scmp.ne.s32.totalorder %s1672_s21, 8 }
  0x7f   : > { %1032 = vmatpush1.bf16.msra.mxu0 %v1534_v27  ;;  %v1595_v6 = vld [vmem:[%s1980_s17 + $0x180] ss:$8 sps:$4 sm:$0xff]   ;;  %v611_v19 = vld [vmem:[#allocation2 + $0x18] sm:$0xff] }
  0x80   : > { %1075 = vmatpush1.bf16.msra.mxu1 %v1535_v28  ;;  %1033 = vmatprep.subr.bf16.mxu0 %v1536_v29  ;;  %v1596_v7 = vld [vmem:[%s1978_s19] ss:$16 sps:$4 sm:$0xff]   ;;  %v1599_v8 = vld [vmem:[%s1978_s19 + $0x8] ss:$16 sps:$4 sm:$0xff]  }
  0x81   : > { %1076 = vmatprep.subr.bf16.mxu1 %v1538_v30  ;;  %v610_v14 = vld [vmem:[#allocation2] sm:$0xff]  ;;  %v612_v24 = vld [vmem:[#allocation2 + $0x8] sm:$0xff] }
  0x83   : > { %1034 = vmatpush1.bf16.msra.mxu0 %v1540_v31 }
  0x84   : > { %1077 = vmatpush1.bf16.msra.mxu1 %v1541_v32  ;;  %1035 = vmatprep.subr.bf16.mxu0 %v1542_v33 }
  0x85   : > { %1078 = vmatprep.subr.bf16.mxu1 %v1544_v34 }
  0x87   : > { %1036 = vmatpush1.bf16.msra.mxu0 %v1546_v35 }
  0x88   : > { %1079 = vmatpush1.bf16.msra.mxu1 %v1547_v36  ;;  %1037 = vmatprep.subr.bf16.mxu0 %v1548_v37 }
  0x89   : > { %1080 = vmatprep.subr.bf16.mxu1 %v1550_v38 }
  0x8b   : > { %1038 = vmatpush2.bf16.msra.mxu0 %v1552_v39 }
  0x8c   : > { %1081 = vmatpush2.bf16.msra.mxu1 %v1553_v40  ;;  %1039 = vmatprep.subr.bf16.mxu0 %v1554_v41 }
  0x8d   : > { %1082 = vmatprep.subr.bf16.mxu1 %v1556_v42 }
  0x8f   : > { %1040 = vmatpush2.bf16.msra.mxu0 %v1558_v43 }
  0x90   : > { %1083 = vmatpush2.bf16.msra.mxu1 %v1559_v44  ;;  %1041 = vmatprep.subr.bf16.mxu0 %v1560_v45 }
  0x91   : > { %1084 = vmatprep.subr.bf16.mxu1 %v1562_v46 }
  0x93   : > { %1042 = vmatpush2.bf16.msra.mxu0 %v1564_v47 }
  0x94   : > { %1085 = vmatpush2.bf16.msra.mxu1 %v1565_v48  ;;  %1043 = vmatprep.subr.bf16.mxu0 %v1566_v49 }
  0x95   : > { %1086 = vmatprep.subr.bf16.mxu1 %v1568_v50 }
  0x97   : > { %1044 = vmatpush2.bf16.msra.mxu0 %v1570_v51 }
  0x98   : > { %1087 = vmatpush2.bf16.msra.mxu1 %v1571_v53  ;;  %1045 = vmatprep.subr.bf16.mxu0 %v1572_v54 }
  0x99   : > { %1088 = vmatprep.subr.bf16.mxu1 %v1574_v55 }
  0x9b   : > { %1046 = vmatpush2.bf16.msra.mxu0 %v1576_v57 }
  0x9c   : > { %1089 = vmatpush2.bf16.msra.mxu1 %v1577_v58  ;;  %1047 = vmatprep.subr.bf16.mxu0 %v1578_v59 }
  0x9d   : > { %1090 = vmatprep.subr.bf16.mxu1 %v1580_v60 }
  0x9f   : > { %1048 = vmatpush2.bf16.msra.mxu0 %v1582_v61 }
  0xa0   : > { %1091 = vmatpush2.bf16.msra.mxu1 %v1583_v62  ;;  %1049 = vmatprep.subr.bf16.mxu0 %v1584_v63 }
  0xa1   : > { %1092 = vmatprep.subr.bf16.mxu1 %v1586_v0 }
  0xa3   : > { %1050 = vmatpush2.bf16.msra.mxu0 %v1588_v1 }
  0xa4   : > { %1093 = vmatpush2.bf16.msra.mxu1 %v1589_v2  ;;  %1051 = vmatprep.subr.bf16.mxu0 %v1590_v3 }
  0xa5   : > { %1094 = vmatprep.subr.bf16.mxu1 %v1592_v4 }
  0xa7   : > { %1052 = vmatpush2.bf16.msra.mxu0 %v1594_v5 }
  0xa8   : > { %1095 = vmatpush2.bf16.msra.mxu1 %v1595_v6 }
  0xaa   : > { %1054 = vmatmul.mubr.bf16.vlgmr.msra.gmra.mxu0 %v1596_v7 }
  0xab   : > { %1097 = vmatmul.mubr.bf16.vlgmr.msra.gmra.mxu1 %v1599_v8 }
 0x16a   : > { %v1055_v9 = vpop.f32.mrf.mxu0 }
 0x16b   : > { %v1098_v11 = vpop.f32.mrf.mxu1 }
 0x16c   : > { %v1099_v12 = vadd.f32 %v1098_v11, %v1055_v9  ;;  %v1057_v13 = vpop.f32.mrf.mxu0 }
 0x16d   : > { %v1100_v15 = vpop.f32.mrf.mxu1 }
 0x16e   : > { %v1107_v16 = vadd.f32 %v1099_v12, %v609_v10  ;;  %v1101_v17 = vadd.f32 %v1100_v15, %v1057_v13  ;;  %v1059_v18 = vpop.f32.mrf.mxu0 }
 0x16f   : > { %v1102_v20 = vpop.f32.mrf.mxu1 }
 0x170   : > { %1111 = vst [vmem:[#allocation2 + $0x10] sm:$0xff] %v1107_v16  ;;  %v1108_v21 = vadd.f32 %v1101_v17, %v610_v14  ;;  %v1103_v22 = vadd.f32 %v1102_v20, %v1059_v18  ;;  %v1061_v23 = vpop.f32.mrf.mxu0 }
 0x171   : > { %v1104_v25 = vpop.f32.mrf.mxu1 }
 0x172   : > { %1112 = vst [vmem:[#allocation2] sm:$0xff] %v1108_v21  ;;  %v1109_v26 = vadd.f32 %v1103_v22, %v611_v19  ;;  %v1105_v27 = vadd.f32 %v1104_v25, %v1061_v23  ;;  %1118 = sbr.rel (%p1402_p5) target bundleno = 391 (0x187), region = 105 }
 0x174   : > { %1113 = vst [vmem:[#allocation2 + $0x18] sm:$0xff] %v1109_v26  ;;  %v1110_v28 = vadd.f32 %v1105_v27, %v612_v24 }
 0x176   : > { %1114 = vst [vmem:[#allocation2 + $0x8] sm:$0xff] %v1110_v28 }
 0x177   : > { %v1125_v29 = vlaneseq  ;;  %v1123_v31 = vld [vmem:[%s592_s9] sm:$0x3]  ;;  %v1119_v33 = vld [vmem:[#allocation2 + $0x10] sm:$0xff] }
 0x178   : > { %v1139_v32 = vld [vmem:[%s597_s1] sm:$0x3] }
 0x179   : > { %v1126_v30 = vshrl.u32 %v1125_v29, 7  ;;  %v1120_v36 = vld [vmem:[#allocation2] sm:$0xff] }
 0x17b   : > { %v1127_v34 = vsub.s32 0, %v1126_v30  ;;  %v1131_v35 = vsub.s32 1, %v1126_v30  ;;  %v1121_v37 = vld [vmem:[#allocation2 + $0x18] sm:$0xff] }
 0x17d   : > { %v1122_v38 = vld [vmem:[#allocation2 + $0x8] sm:$0xff]  ;;  %v1128_v39 = vrot.slane %v1123_v31, %v1127_v34  ;;  %v1144_v40 = vrot.slane %v1139_v32, %v1127_v34  ;;  %v1132_v41 = vrot.slane %v1123_v31, %v1131_v35  ;;  %v1148_v42 = vrot.slane %v1139_v32, %v1131_v35 }
 0x17f   : > { %v1135_v43 = vmul.f32 %v1128_v39, %v1119_v33  ;;  %v1136_v44 = vmul.f32 %v1132_v41, %v1120_v36  ;;  %v1137_v45 = vmul.f32 %v1128_v39, %v1121_v37  ;;  %v1138_v46 = vmul.f32 %v1132_v41, %v1122_v38 }
 0x181   : > { %v1151_v47 = vadd.f32 %v1144_v40, %v1135_v43  ;;  %v1152_v48 = vadd.f32 %v1148_v42, %v1136_v44  ;;  %v1153_v49 = vadd.f32 %v1144_v40, %v1137_v45  ;;  %v1154_v50 = vadd.f32 %v1148_v42, %v1138_v46 }
 0x183   : > { %v1155_v51 = vmax.f32 %v1151_v47, 0.0  ;;  %v1156_v52 = vmax.f32 %v1152_v48, 0.0  ;;  %v1157_v53 = vmax.f32 %v1153_v49, 0.0  ;;  %v1158_v54 = vmax.f32 %v1154_v50, 0.0 }
 0x185   : > { %1159 = vst [vmem:[%s1982_s15] sm:$0xff] %v1155_v51  ;;  %1160 = vst [vmem:[%s1982_s15 + $0x8] sm:$0xff] %v1156_v52 }
 0x186   : > { %1161 = vst [vmem:[%s1982_s15 + $0x10] sm:$0xff] %v1157_v53  ;;  %1162 = vst [vmem:[%s1982_s15 + $0x18] sm:$0xff] %v1158_v54 }
 0x187 PF: > { %1169 = sbr.rel (!%p1810_p12) target bundleno = 399 (0x18f), region = 109  ;;  %s1410_s1 = sshll.u32 (%p1810_p12), %s1676_s22, 4 }
 0x188   : > { %s1175_s29 = scalar_lea.vmem (%p1810_p12), %s2115_s4, %s1410_s1 }
 0x18c   : > { %v1188_v55 = vld [vmem:[%s1982_s15] sm:$0xff]  ;;  %v1190_v56 = vld [vmem:[%s1982_s15 + $0x8] sm:$0xff] }
 0x18d   : > { %v1192_v57 = vld [vmem:[%s1982_s15 + $0x10] sm:$0xff]  ;;  %v1194_v58 = vld [vmem:[%s1982_s15 + $0x18] sm:$0xff]  ;;  %1189 = vst [vmem:[%s1175_s29] sm:$0xff] %v1188_v55  ;;  %1191 = vst [vmem:[%s1175_s29 + $0x8] sm:$0xff] %v1190_v56 }
 0x18e   : > { %1193 = vst [vmem:[%s1175_s29 + $0x20] sm:$0xff] %v1192_v57  ;;  %1195 = vst [vmem:[%s1175_s29 + $0x28] sm:$0xff] %v1194_v58 }
 0x18f PF: > { %s14_s25 = sadd.s32 1, %s1688_s25   ;;  %s2127_s14 = sld [smem:[#allocation6_spill]] }
 0x190   : > { %p11_p6 = scmp.ge.s32.totalorder %s14_s25, 20   ;;  %s2128_s27 = sld [smem:[#allocation7_spill]] }
 0x191   : > { %s2129_s15 = smov %s1652_s16  ;;  %s2130_s16 = smov %s1808_s13 }
 0x192   : > { %s2131_s17 = smov %s1660_s18  ;;  %s2132_s18 = smov %s1805_s12 }
 0x193   : > { %s2133_s19 = smov %s1668_s20  ;;  %s2134_s20 = smov %s1791_s7 }
 0x194   : > { %s2135_s21 = smov %s1680_s23  ;;  %s2136_s22 = smov %s1684_s24 }
 0x195   : > { %s2137_s23 = smov %s2127_s14  ;;  %13 = sbr.rel (!%p11_p6) target bundleno = 9 (0x9), region = 177 }
 0x196   : > { %s2138_s24 = smov %s2128_s27 }

// kernel: resnet18_forward.45
= control target key start
LH: loop header
LB: loop body
LE: loop exit
PB: predicated region body
PF: predicated region fallthrough
CT: control target
= control target key end

     0   :  { %v373_v28 = vmov 1966171168   ;;  %v96_v30 = vlaneseq  ;;  %s596_s0 = inlined_call_operand.vmem [shape: f32[2,1,512], index: 0, kind: input, shape index: {}]   ;;  %s597_s1 = inlined_call_operand.vmem [shape: f32[512,128], index: 1, kind: input, shape index: {}]   ;;  %s598_s2 = inlined_call_operand.vmem [shape: f32[1,128], index: 2, kind: input, shape index: {}]   ;;  %s599_s3 = inlined_call_operand.hbm [shape: f32[2,128], index: 3, kind: output, shape index: {}]  }
   0x1   :  { %v50_v0 = vld [vmem:[%s597_s1 + $0xf8] sm:$0xff]  ;;  %v49_v4 = vld [vmem:[%s597_s1 + $0xf0] sm:$0xff]  ;;  %v48_v8 = vld [vmem:[%s597_s1 + $0xe8] sm:$0xff]  ;;  %v94_v29 = vunpack.c.l.s4 %v373_v28 }
   0x2   :  { %v82_v1 = vld [vmem:[%s597_s1 + $0x1f8] sm:$0xff]  ;;  %277 = vmatprep.subr.mxu0 %v50_v0  ;;  %v81_v5 = vld [vmem:[%s597_s1 + $0x1f0] sm:$0xff]  ;;  %v80_v9 = vld [vmem:[%s597_s1 + $0x1e8] sm:$0xff]  ;;  %v97_v40 = vshrl.u32 %v96_v30, 7 }
   0x3   :  { %v34_v2 = vld [vmem:[%s597_s1 + $0x78] sm:$0xff]  ;;  %312 = vmatprep.subr.mxu1 %v82_v1  ;;  %v33_v6 = vld [vmem:[%s597_s1 + $0x70] sm:$0xff]  ;;  %v32_v10 = vld [vmem:[%s597_s1 + $0x68] sm:$0xff]  ;;  %v95_v39 = vunpack.c.0.s8 %v94_v29 }
   0x4   :  { %v66_v3 = vld [vmem:[%s597_s1 + $0x178] sm:$0xff]  ;;  %278 = vmatpush3.msra.mxu0 %v34_v2  ;;  %v65_v7 = vld [vmem:[%s597_s1 + $0x170] sm:$0xff]  ;;  %v64_v11 = vld [vmem:[%s597_s1 + $0x168] sm:$0xff] }
   0x5   :  { %313 = vmatpush3.msra.mxu1 %v66_v3  ;;  %279 = vmatprep.subr.mxu0 %v49_v4  ;;  %v47_v12 = vld [vmem:[%s597_s1 + $0xe0] sm:$0xff]  ;;  %v46_v16 = vld [vmem:[%s597_s1 + $0xd8] sm:$0xff]  ;;  %v45_v20 = vld [vmem:[%s597_s1 + $0xd0] sm:$0xff]  ;;  %v98_v50 = vsub.s32 %v95_v39, %v97_v40 }
   0x6   :  { %314 = vmatprep.subr.mxu1 %v81_v5  ;;  %280 = vmatpush3.msra.mxu0 %v33_v6  ;;  %v79_v13 = vld [vmem:[%s597_s1 + $0x1e0] sm:$0xff]  ;;  %v78_v17 = vld [vmem:[%s597_s1 + $0x1d8] sm:$0xff]  ;;  %v77_v21 = vld [vmem:[%s597_s1 + $0x1d0] sm:$0xff] }
   0x7   :  { %315 = vmatpush3.msra.mxu1 %v65_v7  ;;  %281 = vmatprep.subr.mxu0 %v48_v8  ;;  %v31_v14 = vld [vmem:[%s597_s1 + $0x60] sm:$0xff]  ;;  %v30_v18 = vld [vmem:[%s597_s1 + $0x58] sm:$0xff]  ;;  %v29_v22 = vld [vmem:[%s597_s1 + $0x50] sm:$0xff] }
   0x8   :  { %316 = vmatprep.subr.mxu1 %v80_v9  ;;  %v63_v15 = vld [vmem:[%s597_s1 + $0x160] sm:$0xff]  ;;  %282 = vmatpush3.msra.mxu0 %v32_v10  ;;  %v62_v19 = vld [vmem:[%s597_s1 + $0x158] sm:$0xff]  ;;  %v61_v23 = vld [vmem:[%s597_s1 + $0x150] sm:$0xff] }
   0x9   :  { %317 = vmatpush3.msra.mxu1 %v64_v11  ;;  %283 = vmatprep.subr.mxu0 %v47_v12  ;;  %v44_v24 = vld [vmem:[%s597_s1 + $0xc8] sm:$0xff]  ;;  %v43_v31 = vld [vmem:[%s597_s1 + $0xc0] sm:$0xff]  ;;  %v42_v35 = vld [vmem:[%s597_s1 + $0xb8] sm:$0xff] }
   0xa   :  { %318 = vmatprep.subr.mxu1 %v79_v13  ;;  %284 = vmatpush3.msra.mxu0 %v31_v14  ;;  %v76_v25 = vld [vmem:[%s597_s1 + $0x1c8] sm:$0xff]  ;;  %v75_v32 = vld [vmem:[%s597_s1 + $0x1c0] sm:$0xff]  ;;  %v74_v36 = vld [vmem:[%s597_s1 + $0x1b8] sm:$0xff] }
   0xb   :  { %319 = vmatpush3.msra.mxu1 %v63_v15  ;;  %285 = vmatprep.subr.mxu0 %v46_v16  ;;  %v28_v26 = vld [vmem:[%s597_s1 + $0x48] sm:$0xff]  ;;  %v27_v33 = vld [vmem:[%s597_s1 + $0x40] sm:$0xff]  ;;  %v26_v37 = vld [vmem:[%s597_s1 + $0x38] sm:$0xff] }
   0xc   :  { %320 = vmatprep.subr.mxu1 %v78_v17  ;;  %286 = vmatpush3.msra.mxu0 %v30_v18  ;;  %v60_v27 = vld [vmem:[%s597_s1 + $0x148] sm:$0xff]  ;;  %v59_v34 = vld [vmem:[%s597_s1 + $0x140] sm:$0xff]  ;;  %v58_v38 = vld [vmem:[%s597_s1 + $0x138] sm:$0xff] }
   0xd   :  { %321 = vmatpush3.msra.mxu1 %v62_v19  ;;  %287 = vmatprep.subr.mxu0 %v45_v20  ;;  %v41_v41 = vld [vmem:[%s597_s1 + $0xb0] sm:$0xff]  ;;  %v40_v45 = vld [vmem:[%s597_s1 + $0xa8] sm:$0xff]  ;;  %v39_v49 = vld [vmem:[%s597_s1 + $0xa0] sm:$0xff] }
   0xe   :  { %322 = vmatprep.subr.mxu1 %v77_v21  ;;  %288 = vmatpush3.msra.mxu0 %v29_v22  ;;  %v73_v42 = vld [vmem:[%s597_s1 + $0x1b0] sm:$0xff]  ;;  %v72_v46 = vld [vmem:[%s597_s1 + $0x1a8] sm:$0xff]  ;;  %v71_v51 = vld [vmem:[%s597_s1 + $0x1a0] sm:$0xff] }
   0xf   :  { %323 = vmatpush3.msra.mxu1 %v61_v23  ;;  %289 = vmatprep.subr.mxu0 %v44_v24  ;;  %v25_v43 = vld [vmem:[%s597_s1 + $0x30] sm:$0xff]  ;;  %v24_v47 = vld [vmem:[%s597_s1 + $0x28] sm:$0xff]  ;;  %v23_v52 = vld [vmem:[%s597_s1 + $0x20] sm:$0xff] }
  0x10   :  { %324 = vmatprep.subr.mxu1 %v76_v25  ;;  %290 = vmatpush3.msra.mxu0 %v28_v26  ;;  %v57_v44 = vld [vmem:[%s597_s1 + $0x130] sm:$0xff]  ;;  %v56_v48 = vld [vmem:[%s597_s1 + $0x128] sm:$0xff]  ;;  %v55_v53 = vld [vmem:[%s597_s1 + $0x120] sm:$0xff] }
  0x11   :  { %325 = vmatpush3.msra.mxu1 %v60_v27  ;;  %291 = vmatprep.subr.mxu0 %v43_v31  ;;  %v350_v54 = vld.sshfl [vmem:[%s596_s0] sm:$0xff pattern:$0x75316420]  ;;  %v38_v55 = vld [vmem:[%s597_s1 + $0x98] sm:$0xff] }
  0x12   :  { %326 = vmatprep.subr.mxu1 %v75_v32  ;;  %292 = vmatpush3.msra.mxu0 %v27_v33  ;;  %v70_v56 = vld [vmem:[%s597_s1 + $0x198] sm:$0xff] }
  0x13   :  { %327 = vmatpush3.msra.mxu1 %v59_v34  ;;  %293 = vmatprep.subr.mxu0 %v42_v35 }
  0x14   :  { %328 = vmatprep.subr.mxu1 %v74_v36  ;;  %294 = vmatpush3.msra.mxu0 %v26_v37 }
  0x15   :  { %329 = vmatpush3.msra.mxu1 %v58_v38  ;;  %295 = vmatprep.subr.mxu0 %v41_v41 }
  0x16   :  { %330 = vmatprep.subr.mxu1 %v73_v42  ;;  %296 = vmatpush3.msra.mxu0 %v25_v43 }
  0x17   :  { %331 = vmatpush3.msra.mxu1 %v57_v44  ;;  %297 = vmatprep.subr.mxu0 %v40_v45 }
  0x18   :  { %332 = vmatprep.subr.mxu1 %v72_v46  ;;  %298 = vmatpush3.msra.mxu0 %v24_v47 }
  0x19   :  { %333 = vmatpush3.msra.mxu1 %v56_v48 }
  0x1a   :  { %8 = vsyncpa [#allocation3], 0  ;;  %299 = vmatprep.subr.mxu0 %v39_v49  ;;  %334 = vmatprep.subr.mxu1 %v71_v51  ;;  %v22_v57 = vld [vmem:[%s597_s1 + $0x18] sm:$0xff]  ;;  %v37_v59 = vld [vmem:[%s597_s1 + $0x90] sm:$0xff]  ;;  %v100_v63 = vcombine.high %v350_v54, %v350_v54  ;;  %v107_v2 = vrot.slane %v350_v54, %v98_v50  ;;  %s374_s8 = smov [#allocation2]  }
  0x1b   :  { %v54_v58 = vld [vmem:[%s597_s1 + $0x118] sm:$0xff]  ;;  %300 = vmatpush3.msra.mxu0 %v23_v52  ;;  %335 = vmatpush3.msra.mxu1 %v55_v53  ;;  %v69_v60 = vld [vmem:[%s597_s1 + $0x190] sm:$0xff]  ;;  %v36_v0 = vld [vmem:[%s597_s1 + $0x88] sm:$0xff] }
  0x1c   :  { %301 = vmatprep.subr.mxu0 %v38_v55  ;;  %336 = vmatprep.subr.mxu1 %v70_v56  ;;  %v21_v61 = vld [vmem:[%s597_s1 + $0x10] sm:$0xff]  ;;  %v68_v1 = vld [vmem:[%s597_s1 + $0x188] sm:$0xff]  ;;  %v114_v5 = vrot.slane %v100_v63, %v98_v50  ;;  %v35_v6 = vld [vmem:[%s597_s1 + $0x80] sm:$0xff]  ;;  %v115_v11 = vcombine.high %v107_v2, %v107_v2 }
  0x1d   :  { %v53_v62 = vld [vmem:[%s597_s1 + $0x110] sm:$0xff]  ;;  %302 = vmatpush3.msra.mxu0 %v22_v57  ;;  %337 = vmatpush3.msra.mxu1 %v54_v58  ;;  %v20_v3 = vld [vmem:[%s597_s1 + $0x8] sm:$0xff]  ;;  %v67_v7 = vld [vmem:[%s597_s1 + $0x180] sm:$0xff] }
  0x1e   :  { %303 = vmatprep.subr.mxu0 %v37_v59  ;;  %338 = vmatprep.subr.mxu1 %v69_v60  ;;  %v52_v4 = vld [vmem:[%s597_s1 + $0x108] sm:$0xff]  ;;  %v19_v8 = vld [vmem:[%s597_s1] sm:$0xff]  ;;  %v116_v9 = vcombine.high %v114_v5, %v114_v5 }
  0x1f   :  { %304 = vmatpush3.msra.mxu0 %v21_v61  ;;  %339 = vmatpush3.msra.mxu1 %v53_v62  ;;  %v51_v10 = vld [vmem:[%s597_s1 + $0x100] sm:$0xff]  ;;  %s268_s1 = sshll.u32 %s374_s8, 4  ;;  %s269_s1 = int_to_ptr.vmem [resolvable:$true] %s268_s1 }
  0x20   :  { %305 = vmatprep.subr.mxu0 %v36_v0  ;;  %340 = vmatprep.subr.mxu1 %v68_v1  ;;  %v276_v14 = vld [vmem:[%s598_s2] ss:$0 sm:$0xff]  ;;  %s351_s9 = scalar_lea.vmem %s269_s1, 32  ;;  %p356_p1 = scmp.lt.s32.totalorder %s269_s1, %s269_s1 }
  0x21   :  { %306 = vmatpush3.msra.mxu0 %v20_v3  ;;  %341 = vmatpush3.msra.mxu1 %v52_v4  ;;  %p352_p0 = scmp.ne.s32.totalorder %s269_s1, %s351_s9  ;;  %p357_p2 = scmp.lt.s32.totalorder %s351_s9, %s351_s9 }
  0x22   :  { %307 = vmatprep.subr.mxu0 %v35_v6  ;;  %342 = vmatprep.subr.mxu1 %v67_v7 }
  0x23   :  { %308 = vmatpush3.msra.mxu0 %v19_v8  ;;  %185 = vmatprep.mubr.f32.mxu0 %v114_v5  ;;  %p358_p3 = por %p357_p2, %p356_p1 }
  0x24   :  { %343 = vmatpush3.msra.mxu1 %v51_v10  ;;  %255 = vmatprep.mubr.f32.mxu1 %v116_v9 }
  0x25   :  { %186 = vmatmul.mubr.f32.vlgmr.msra.gmra.mxu0 %v107_v2  ;;  %256 = vmatmul.mubr.f32.vlgmr.msra.gmra.mxu1 %v115_v11  ;;  %p359_p4 = pnand %p358_p3, %p352_p0 }
  0xe5   :  { %v309_v12 = vpop.f32.mrf.mxu0  ;;  %v344_v13 = vpop.f32.mrf.mxu1 }
  0xe7   :  { %v310_v15 = vpop.f32.mrf.mxu0  ;;  %v345_v16 = vpop.f32.mrf.mxu1 }
  0xe8   :  { %v311_v17 = vadd.f32 %v310_v15, %v309_v12  ;;  %v346_v19 = vadd.f32 %v345_v16, %v344_v13 }
  0xea   :  { %v188_v18 = vadd.f32 %v311_v17, %v276_v14 }
  0xec   :  { %v258_v20 = vadd.f32 %v346_v19, %v188_v18 }
  0xee   :  { %261 = vst [vmem:[#allocation2] sm:$0x3] %v258_v20 }
  0xef   :  { %362 = shalt.err (!%p359_p4)
}
  0xf0   :  { %271 = dma.vmem_to_hbm [thread:$0]  %s269_s1, 32, %s599_s3, [#allocation3]  }
  0xf1   :  { %371 = dma.done.wait [#allocation3], 32  }
  0xf2   :  { %372 = vsyncadd [#allocation3], 4294967264 }
  0xf3   :  { %275 = vsyncpa [#allocation3], 1 }

</bundles_post_ra>
